<compile_context>
chip_gen: v5e
topology: v5e:2x2
jax: 0.10.0
libtpu: 0.0.40
codegen_flags: <defaults>
</compile_context>

<pallas_src>
import functools

import jax
import jax.numpy as jnp
from jax.experimental import pallas as pl
from jax.experimental.pallas import tpu as pltpu

BN_EPS = 1e-3
SCALE = 0.17  # Block17 residual scale (constructor arg of the module)


def _pick_tile(n, target):
    """Largest divisor of n that is <= target, preferring multiples of 8."""
    t = min(target, n)
    for c in range(t, 0, -1):
        if n % c == 0 and (c % 8 == 0 or c == n):
            return c
    return n


# ----------------------------------------------------------------------------
# Kernel 1: fused branch0 + branch1a 1x1 convs  (+ partial BN stats)
# ----------------------------------------------------------------------------
def _conv1x1_pair_stats_kernel(x_ref, w_ref, r0_ref, r1_ref, stats_ref):
    acc = jnp.dot(x_ref[...], w_ref[...], preferred_element_type=jnp.float32)
    c = r0_ref.shape[1]
    r0_ref[...] = acc[:, :c]           # branch0 raw conv output
    r1_ref[...] = acc[:, c:]           # branch1a raw conv output
    s = jnp.sum(acc, axis=0, keepdims=True)
    ss = jnp.sum(acc * acc, axis=0, keepdims=True)
    stats_ref[...] = jnp.concatenate([s, ss], axis=0).reshape(stats_ref.shape)


def conv1x1_pair_stats(x_bf, w_bf, tm=256):
    M, Cin = x_bf.shape
    Cout = w_bf.shape[1]
    c_half = Cout // 2
    tm = _pick_tile(M, tm)
    T = M // tm
    return pl.pallas_call(
        _conv1x1_pair_stats_kernel,
        out_shape=(jax.ShapeDtypeStruct((M, c_half), jnp.float32),
                   jax.ShapeDtypeStruct((M, c_half), jnp.float32),
                   jax.ShapeDtypeStruct((T, 2, Cout), jnp.float32)),
        grid=(T,),
        in_specs=[pl.BlockSpec((tm, Cin), lambda i: (i, 0)),
                  pl.BlockSpec((Cin, Cout), lambda i: (0, 0))],
        out_specs=(pl.BlockSpec((tm, c_half), lambda i: (i, 0)),
                   pl.BlockSpec((tm, c_half), lambda i: (i, 0)),
                   pl.BlockSpec((1, 2, Cout), lambda i: (i, 0, 0))),
        compiler_params=pltpu.CompilerParams(
            dimension_semantics=("parallel",)),
    )(x_bf, w_bf)


# ----------------------------------------------------------------------------
# Kernel 2: 7-tap 1-D conv (shift axis = block axis 1) + partial BN stats.
# Taps are built in-kernel from a single padded activation block.
# ----------------------------------------------------------------------------
def _tapconv_stats_kernel(x_ref, w_ref, raw_ref, stats_ref, *, taps):
    s_out = raw_ref.shape[1]                 # output extent along shift axis
    cin = x_ref.shape[-1]
    cout = raw_ref.shape[-1]
    rows = 1
    for d in raw_ref.shape[:-1]:
        rows *= d
    nd = len(x_ref.shape)
    acc = jnp.zeros((rows, cout), jnp.float32)
    for t in range(taps):                    # static, unrolled; same VMEM tile
        sl = (slice(None), slice(t, t + s_out)) + (slice(None),) * (nd - 2)
        xt = x_ref[sl].reshape(rows, cin)    # shifted view, no extra HBM read
        acc = acc + jnp.dot(xt, w_ref[t], preferred_element_type=jnp.float32)
    raw_ref[...] = acc.reshape(raw_ref.shape)
    s = jnp.sum(acc, axis=0, keepdims=True)
    ss = jnp.sum(acc * acc, axis=0, keepdims=True)
    stats_ref[...] = jnp.concatenate([s, ss], axis=0).reshape(stats_ref.shape)


def tapconv_stats_rows(yp, w_taps, out_len, rows_target=8):
    """(1,7)-style conv: yp is (NH, W+6, C) bf16, conv along axis 1."""
    NH, Wp, C = yp.shape
    taps, _, Cout = w_taps.shape
    R = _pick_tile(NH, rows_target)
    T = NH // R
    return pl.pallas_call(
        functools.partial(_tapconv_stats_kernel, taps=taps),
        out_shape=(jax.ShapeDtypeStruct((NH, out_len, Cout), jnp.float32),
                   jax.ShapeDtypeStruct((T, 2, Cout), jnp.float32)),
        grid=(T,),
        in_specs=[pl.BlockSpec((R, Wp, C), lambda i: (i, 0, 0)),
                  pl.BlockSpec((taps, C, Cout), lambda i: (0, 0, 0))],
        out_specs=(pl.BlockSpec((R, out_len, Cout), lambda i: (i, 0, 0)),
                   pl.BlockSpec((1, 2, Cout), lambda i: (i, 0, 0))),
        compiler_params=pltpu.CompilerParams(
            dimension_semantics=("parallel",)),
    )(yp, w_taps)


def tapconv_stats_images(zp, w_taps, out_len):
    """(7,1)-style conv: zp is (N, H+6, W, C) bf16, conv along axis 1."""
    N, Hp, W, C = zp.shape
    taps, _, Cout = w_taps.shape
    return pl.pallas_call(
        functools.partial(_tapconv_stats_kernel, taps=taps),
        out_shape=(jax.ShapeDtypeStruct((N, out_len, W, Cout), jnp.float32),
                   jax.ShapeDtypeStruct((N, 2, Cout), jnp.float32)),
        grid=(N,),
        in_specs=[pl.BlockSpec((1, Hp, W, C), lambda i: (i, 0, 0, 0)),
                  pl.BlockSpec((taps, C, Cout), lambda i: (0, 0, 0))],
        out_specs=(pl.BlockSpec((1, out_len, W, Cout), lambda i: (i, 0, 0, 0)),
                   pl.BlockSpec((1, 2, Cout), lambda i: (i, 0, 0))),
        compiler_params=pltpu.CompilerParams(
            dimension_semantics=("parallel",)),
    )(zp, w_taps)


# ----------------------------------------------------------------------------
# Kernel 3: BN apply (scale/shift) + ReLU, output bf16 (feeds the next matmul)
# ----------------------------------------------------------------------------
def _bn_relu_kernel(x_ref, ab_ref, o_ref):
    y = x_ref[...] * ab_ref[0:1, :] + ab_ref[1:2, :]
    o_ref[...] = jnp.maximum(y, 0.0).astype(o_ref.dtype)


def bn_relu(raw, a, b, tm=512):
    M, C = raw.shape
    tm = _pick_tile(M, tm)
    ab = jnp.stack([a, b], axis=0)
    return pl.pallas_call(
        _bn_relu_kernel,
        out_shape=jax.ShapeDtypeStruct((M, C), jnp.bfloat16),
        grid=(M // tm,),
        in_specs=[pl.BlockSpec((tm, C), lambda i: (i, 0)),
                  pl.BlockSpec((2, C), lambda i: (0, 0))],
        out_specs=pl.BlockSpec((tm, C), lambda i: (i, 0)),
        compiler_params=pltpu.CompilerParams(
            dimension_semantics=("parallel",)),
    )(raw, ab)


# ----------------------------------------------------------------------------
# Kernel 4: BN(branch0) + BN(branch1c) + final 1x1 conv (split weights, no
#           concat) + bias + residual scale-add + ReLU
# ----------------------------------------------------------------------------
def _out_conv_residual_kernel(r0_ref, r1_ref, ab0_ref, ab1_ref,
                              w0_ref, w1_ref, bias_ref, res_ref, o_ref,
                              *, scale):
    x0 = jnp.maximum(r0_ref[...] * ab0_ref[0:1, :] + ab0_ref[1:2, :], 0.0)
    x1 = jnp.maximum(r1_ref[...] * ab1_ref[0:1, :] + ab1_ref[1:2, :], 0.0)
    y = jnp.dot(x0.astype(jnp.bfloat16), w0_ref[...],
                preferred_element_type=jnp.float32)
    y = y + jnp.dot(x1.astype(jnp.bfloat16), w1_ref[...],
                    preferred_element_type=jnp.float32)
    y = (y + bias_ref[...]) * scale + res_ref[...]
    o_ref[...] = jnp.maximum(y, 0.0)


def out_conv_residual(raw0, raw1, ab0, ab1, w0, w1, bias, residual, scale,
                      tm=256):
    M, Ci = raw0.shape
    Cout = w0.shape[1]
    tm = _pick_tile(M, tm)
    return pl.pallas_call(
        functools.partial(_out_conv_residual_kernel, scale=scale),
        out_shape=jax.ShapeDtypeStruct((M, Cout), jnp.float32),
        grid=(M // tm,),
        in_specs=[pl.BlockSpec((tm, Ci), lambda i: (i, 0)),
                  pl.BlockSpec((tm, Ci), lambda i: (i, 0)),
                  pl.BlockSpec((2, Ci), lambda i: (0, 0)),
                  pl.BlockSpec((2, Ci), lambda i: (0, 0)),
                  pl.BlockSpec((Ci, Cout), lambda i: (0, 0)),
                  pl.BlockSpec((Ci, Cout), lambda i: (0, 0)),
                  pl.BlockSpec((1, Cout), lambda i: (0, 0)),
                  pl.BlockSpec((tm, Cout), lambda i: (i, 0))],
        out_specs=pl.BlockSpec((tm, Cout), lambda i: (i, 0)),
        compiler_params=pltpu.CompilerParams(
            dimension_semantics=("parallel",)),
    )(raw0, raw1, ab0, ab1, w0, w1, bias.reshape(1, -1), residual)


# ----------------------------------------------------------------------------
# Glue (layout plumbing + tiny stat reductions in plain JAX)
# ----------------------------------------------------------------------------
def _bn_coeffs(stats, gamma, beta, m):
    """stats: (T, 2, C) per-tile [sum, sumsq] -> per-channel scale/shift."""
    tot = jnp.sum(stats, axis=0)
    mean = tot[0] / m
    # NOTE: E[x^2]-E[x]^2 in f32; post-conv activations here are ~zero-mean so
    # cancellation is benign (validated against the lax.conv reference below).
    var = jnp.maximum(tot[1] / m - mean * mean, 0.0)
    a = gamma * jax.lax.rsqrt(var + BN_EPS)
    b = beta - mean * a
    return a, b


@functools.partial(jax.jit, static_argnums=(2,))
def block17_forward(x_nchw, P, scale):
    N, C, H, W = x_nchw.shape
    M = N * H * W
    x_flat = jnp.transpose(x_nchw, (0, 2, 3, 1)).reshape(M, C)   # f32 residual
    x_bf = x_flat.astype(jnp.bfloat16)                           # matmul input

    # PyTorch OIHW weights -> kernel-friendly layouts (bf16 matmul operands)
    w0 = P["w0"][:, :, 0, 0].T                                   # (896, 128)
    w1a = P["w1a"][:, :, 0, 0].T                                 # (896, 128)
    w01 = jnp.concatenate([w0, w1a], axis=1).astype(jnp.bfloat16)  # (896, 256)
    w1b = jnp.transpose(P["w1b"][:, :, 0, :], (2, 1, 0)).astype(jnp.bfloat16)
    w1c = jnp.transpose(P["w1c"][:, :, :, 0], (2, 1, 0)).astype(jnp.bfloat16)
    wc = P["wc"][:, :, 0, 0].T                                   # (256, 896)
    wc0 = wc[:128].astype(jnp.bfloat16)
    wc1 = wc[128:].astype(jnp.bfloat16)

    # --- fused branch0 + branch1a 1x1 convs (one read of x_flat) ------------
    raw0, raw1a, st01 = conv1x1_pair_stats(x_bf, w01)
    g01 = jnp.concatenate([P["g0"], P["g1a"]])
    be01 = jnp.concatenate([P["b0"], P["b1a"]])
    a01, b01 = _bn_coeffs(st01, g01, be01, M)
    ab0 = jnp.stack([a01[:128], b01[:128]], axis=0)   # branch0 BN (applied later)
    bn1a = bn_relu(raw1a, a01[128:], b01[128:])       # (M,128) bf16

    # --- branch1: (1,7) conv along W -----------------------------------------
    yp = jnp.pad(bn1a.reshape(N * H, W, 128), ((0, 0), (3, 3), (0, 0)))
    raw1b, st1b = tapconv_stats_rows(yp, w1b, out_len=W)
    a1b, b1b = _bn_coeffs(st1b, P["g1b"], P["b1b"], M)
    bn1b = bn_relu(raw1b.reshape(M, 128), a1b, b1b)

    # --- branch1: (7,1) conv along H -----------------------------------------
    zp = jnp.pad(bn1b.reshape(N, H, W, 128), ((0, 0), (3, 3), (0, 0), (0, 0)))
    raw1c, st1c = tapconv_stats_images(zp, w1c, out_len=H)
    a1c, b1c = _bn_coeffs(st1c, P["g1c"], P["b1c"], M)
    ab1 = jnp.stack([a1c, b1c], axis=0)

    # --- final 1x1 conv (+BN of both branches fused in), residual, ReLU ------
    out = out_conv_residual(raw0, raw1c.reshape(M, 128), ab0, ab1,
                            wc0, wc1, P["bc"], x_flat, scale)
    return jnp.transpose(out.reshape(N, H, W, C), (0, 3, 1, 2))


# ----------------------------------------------------------------------------
# Pure-JAX reference (NCHW, lax.conv) for verification
# ----------------------------------------------------------------------------
def _ref_conv(x, w_oihw, padding):
    return jax.lax.conv_general_dilated(
        x, w_oihw, window_strides=(1, 1), padding=padding,
        dimension_numbers=("NCHW", "OIHW", "NCHW"))


def _ref_bn_relu(y, gamma, beta):
    mean = jnp.mean(y, axis=(0, 2, 3), keepdims=True)
    var = jnp.mean((y - mean) ** 2, axis=(0, 2, 3), keepdims=True)
    y = (y - mean) * jax.lax.rsqrt(var + BN_EPS)
    y = y * gamma.reshape(1, -1, 1, 1) + beta.reshape(1, -1, 1, 1)
    return jnp.maximum(y, 0.0)


def block17_reference(x, P, scale):
    x0 = _ref_bn_relu(_ref_conv(x, P["w0"], [(0, 0), (0, 0)]), P["g0"], P["b0"])
    y = _ref_bn_relu(_ref_conv(x, P["w1a"], [(0, 0), (0, 0)]), P["g1a"], P["b1a"])
    y = _ref_bn_relu(_ref_conv(y, P["w1b"], [(0, 0), (3, 3)]), P["g1b"], P["b1b"])
    y = _ref_bn_relu(_ref_conv(y, P["w1c"], [(3, 3), (0, 0)]), P["g1c"], P["b1c"])
    out = jnp.concatenate([x0, y], axis=1)
    out = _ref_conv(out, P["wc"], [(0, 0), (0, 0)]) + P["bc"].reshape(1, -1, 1, 1)
    out = out * scale + x
    return jnp.maximum(out, 0.0)


# ----------------------------------------------------------------------------
# Deterministic parameter construction (shapes per module __init__)
# ----------------------------------------------------------------------------
def make_params(key):
    ks = jax.random.split(key, 16)

    def conv_w(k, o, i, kh, kw):
        fan_in = i * kh * kw
        return jax.random.normal(k, (o, i, kh, kw), jnp.float32) / jnp.sqrt(
            jnp.float32(fan_in))

    def bn(kg, kb, c):
        g = 1.0 + 0.05 * jax.random.normal(kg, (c,), jnp.float32)
        b = 0.05 * jax.random.normal(kb, (c,), jnp.float32)
        return g, b

    P = {}
    P["w0"] = conv_w(ks[0], 128, 896, 1, 1)
    P["g0"], P["b0"] = bn(ks[1], ks[2], 128)
    P["w1a"] = conv_w(ks[3], 128, 896, 1, 1)
    P["g1a"], P["b1a"] = bn(ks[4], ks[5], 128)
    P["w1b"] = conv_w(ks[6], 128, 128, 1, 7)
    P["g1b"], P["b1b"] = bn(ks[7], ks[8], 128)
    P["w1c"] = conv_w(ks[9], 128, 128, 7, 1)
    P["g1c"], P["b1c"] = bn(ks[10], ks[11], 128)
    P["wc"] = conv_w(ks[12], 896, 256, 1, 1)
    P["bc"] = 0.05 * jax.random.normal(ks[13], (896,), jnp.float32)
    return P, ks[15]


if __name__ == "__main__":
    key = jax.random.PRNGKey(0)
    P, kx = make_params(key)
    # small spatial / batch; channels (896) are fixed by the module definition
    x = jax.random.normal(kx, (2, 896, 8, 8), jnp.float32)

    out = jax.block_until_ready(block17_forward(x, P, SCALE))

    ref = block17_reference(x, P, SCALE)
    assert out.shape == x.shape and out.dtype == jnp.float32
    max_err = float(jnp.max(jnp.abs(out - ref)))
    # tolerance absorbs the bf16 matmul operands (f32 accumulation throughout)
    assert max_err < 1e-1, f"max abs err {max_err}"
    print("KERNEL_OK")
</pallas_src>

<mosaic_0001>
module attributes {stable_mosaic.version = 11 : i64} {
  func.func @_conv1x1_pair_stats_kernel(%arg0: i32, %arg1: memref<128x896xbf16, #tpu.memory_space<vmem>>, %arg2: memref<896x256xbf16, #tpu.memory_space<vmem>>, %arg3: memref<128x128xf32, #tpu.memory_space<vmem>>, %arg4: memref<128x128xf32, #tpu.memory_space<vmem>>, %arg5: memref<1x2x256xf32, #tpu.memory_space<vmem>>) attributes {dimension_semantics = [#tpu.dimension_semantics<parallel>], iteration_bounds = array<i64: 1>, scalar_prefetch = 0 : i64, scratch_operands = 0 : i64, tpu.core_type = #tpu.core_type<tc>, window_params = [{transform_indices = @transform_0, window_bounds = array<i64: 128, 896>}, {pipeline_mode = #tpu.pipeline_mode<synchronous>, transform_indices = @transform_1, window_bounds = array<i64: 896, 256>}, {transform_indices = @transform_2, window_bounds = array<i64: 128, 128>}, {transform_indices = @transform_3, window_bounds = array<i64: 128, 128>}, {transform_indices = @transform_4, window_bounds = array<i64: 1, 2, 256>}]} {
    %c0 = arith.constant 0 : index
    %c0_0 = arith.constant 0 : index
    %0 = vector.load %arg1[%c0, %c0_0] : memref<128x896xbf16, #tpu.memory_space<vmem>>, vector<128x896xbf16>
    %c0_1 = arith.constant 0 : index
    %c0_2 = arith.constant 0 : index
    %1 = vector.load %arg2[%c0_1, %c0_2] : memref<896x256xbf16, #tpu.memory_space<vmem>>, vector<896x256xbf16>
    %cst = arith.constant dense<0.000000e+00> : vector<128x256xf32>
    %2 = tpu.matmul %0, %1, %cst {dimension_numbers = #tpu.dot_dimension_numbers<[1], [0], [0], [1], [0, 0, 1, 1], [], []>} : vector<128x896xbf16>, vector<896x256xbf16>, vector<128x256xf32> -> vector<128x256xf32>
    %3 = vector.extract_strided_slice %2 {offsets = [0, 0], sizes = [128, 128], strides = [1, 1]} : vector<128x256xf32> to vector<128x128xf32>
    %c0_3 = arith.constant 0 : index
    %c0_4 = arith.constant 0 : index
    %4 = vector.load %arg3[%c0_3, %c0_4] : memref<128x128xf32, #tpu.memory_space<vmem>>, vector<128x128xf32>
    tpu.vector_store %arg3[%c0_3, %c0_4], %3 {strides = array<i32>} : memref<128x128xf32, #tpu.memory_space<vmem>>, vector<128x128xf32>,
    %5 = vector.extract_strided_slice %2 {offsets = [0, 128], sizes = [128, 128], strides = [1, 1]} : vector<128x256xf32> to vector<128x128xf32>
    %c0_5 = arith.constant 0 : index
    %c0_6 = arith.constant 0 : index
    %6 = vector.load %arg4[%c0_5, %c0_6] : memref<128x128xf32, #tpu.memory_space<vmem>>, vector<128x128xf32>
    tpu.vector_store %arg4[%c0_5, %c0_6], %5 {strides = array<i32>} : memref<128x128xf32, #tpu.memory_space<vmem>>, vector<128x128xf32>,
    %cst_7 = arith.constant dense<0.000000e+00> : vector<256xf32>
    %7 = vector.multi_reduction <add>, %2, %cst_7 [0] : vector<128x256xf32> to vector<256xf32>
    %8 = vector.shape_cast %7 : vector<256xf32> to vector<1x256xf32>
    %9 = arith.mulf %2, %2 : vector<128x256xf32>
    %cst_8 = arith.constant dense<0.000000e+00> : vector<256xf32>
    %10 = vector.multi_reduction <add>, %9, %cst_8 [0] : vector<128x256xf32> to vector<256xf32>
    %11 = vector.shape_cast %10 : vector<256xf32> to vector<1x256xf32>
    %12 = tpu.concatenate %8, %11 in 0 : vector<1x256xf32>, vector<1x256xf32> -> vector<2x256xf32>
    %13 = vector.shape_cast %12 : vector<2x256xf32> to vector<1x2x256xf32>
    %c0_9 = arith.constant 0 : index
    %c0_10 = arith.constant 0 : index
    %c0_11 = arith.constant 0 : index
    %14 = vector.load %arg5[%c0_9, %c0_10, %c0_11] : memref<1x2x256xf32, #tpu.memory_space<vmem>>, vector<1x2x256xf32>
    tpu.vector_store %arg5[%c0_9, %c0_10, %c0_11], %13 {strides = array<i32>} : memref<1x2x256xf32, #tpu.memory_space<vmem>>, vector<1x2x256xf32>,
    return
  }
  func.func @transform_0(%arg0: i32) -> (i32, i32) {
    %c0_i32 = arith.constant 0 : i32
    %c0_i32_0 = arith.constant 0 : i32
    return %arg0, %c0_i32 : i32, i32
  }
  func.func @transform_1(%arg0: i32) -> (i32, i32) {
    %c0_i32 = arith.constant 0 : i32
    %c0_i32_0 = arith.constant 0 : i32
    %c0_i32_1 = arith.constant 0 : i32
    return %c0_i32, %c0_i32_0 : i32, i32
  }
  func.func @transform_2(%arg0: i32) -> (i32, i32) {
    %c0_i32 = arith.constant 0 : i32
    %c0_i32_0 = arith.constant 0 : i32
    return %arg0, %c0_i32 : i32, i32
  }
  func.func @transform_3(%arg0: i32) -> (i32, i32) {
    %c0_i32 = arith.constant 0 : i32
    %c0_i32_0 = arith.constant 0 : i32
    return %arg0, %c0_i32 : i32, i32
  }
  func.func @transform_4(%arg0: i32) -> (i32, i32, i32) {
    %c0_i32 = arith.constant 0 : i32
    %c0_i32_0 = arith.constant 0 : i32
    %c0_i32_1 = arith.constant 0 : i32
    return %arg0, %c0_i32, %c0_i32_0 : i32, i32, i32
  }
}

module attributes {stable_mosaic.version = 11 : i64} {
  func.func @_bn_relu_kernel(%arg0: i32, %arg1: memref<128x128xf32, #tpu.memory_space<vmem>>, %arg2: memref<2x128xf32, #tpu.memory_space<vmem>>, %arg3: memref<128x128xbf16, #tpu.memory_space<vmem>>) attributes {dimension_semantics = [#tpu.dimension_semantics<parallel>], iteration_bounds = array<i64: 1>, scalar_prefetch = 0 : i64, scratch_operands = 0 : i64, tpu.core_type = #tpu.core_type<tc>, window_params = [{transform_indices = @transform_0, window_bounds = array<i64: 128, 128>}, {pipeline_mode = #tpu.pipeline_mode<synchronous>, transform_indices = @transform_1, window_bounds = array<i64: 2, 128>}, {transform_indices = @transform_2, window_bounds = array<i64: 128, 128>}]} {
    %c0 = arith.constant 0 : index
    %c0_0 = arith.constant 0 : index
    %0 = vector.load %arg1[%c0, %c0_0] : memref<128x128xf32, #tpu.memory_space<vmem>>, vector<128x128xf32>
    %c0_1 = arith.constant 0 : index
    %c0_2 = arith.constant 0 : index
    %1 = vector.load %arg2[%c0_1, %c0_2] : memref<2x128xf32, #tpu.memory_space<vmem>>, vector<1x128xf32>
    %2 = vector.broadcast %1 : vector<1x128xf32> to vector<128x128xf32>
    %3 = arith.mulf %0, %2 : vector<128x128xf32>
    %c1 = arith.constant 1 : index
    %c0_3 = arith.constant 0 : index
    %4 = vector.load %arg2[%c1, %c0_3] : memref<2x128xf32, #tpu.memory_space<vmem>>, vector<1x128xf32>
    %5 = vector.broadcast %4 : vector<1x128xf32> to vector<128x128xf32>
    %6 = arith.addf %3, %5 : vector<128x128xf32>
    %cst = arith.constant 0.000000e+00 : f32
    %7 = vector.broadcast %cst : f32 to vector<128x128xf32>
    %8 = arith.maximumf %6, %7 : vector<128x128xf32>
    %9 = arith.truncf %8 : vector<128x128xf32> to vector<128x128xbf16>
    %c0_4 = arith.constant 0 : index
    %c0_5 = arith.constant 0 : index
    %10 = vector.load %arg3[%c0_4, %c0_5] : memref<128x128xbf16, #tpu.memory_space<vmem>>, vector<128x128xbf16>
    tpu.vector_store %arg3[%c0_4, %c0_5], %9 {strides = array<i32>} : memref<128x128xbf16, #tpu.memory_space<vmem>>, vector<128x128xbf16>,
    return
  }
  func.func @transform_0(%arg0: i32) -> (i32, i32) {
    %c0_i32 = arith.constant 0 : i32
    %c0_i32_0 = arith.constant 0 : i32
    return %arg0, %c0_i32 : i32, i32
  }
  func.func @transform_1(%arg0: i32) -> (i32, i32) {
    %c0_i32 = arith.constant 0 : i32
    %c0_i32_0 = arith.constant 0 : i32
    %c0_i32_1 = arith.constant 0 : i32
    return %c0_i32, %c0_i32_0 : i32, i32
  }
  func.func @transform_2(%arg0: i32) -> (i32, i32) {
    %c0_i32 = arith.constant 0 : i32
    %c0_i32_0 = arith.constant 0 : i32
    return %arg0, %c0_i32 : i32, i32
  }
}

module attributes {stable_mosaic.version = 11 : i64} {
  func.func @_tapconv_stats_kernel(%arg0: i32, %arg1: memref<8x14x128xbf16, #tpu.memory_space<vmem>>, %arg2: memref<7x128x128xbf16, #tpu.memory_space<vmem>>, %arg3: memref<8x8x128xf32, #tpu.memory_space<vmem>>, %arg4: memref<1x2x128xf32, #tpu.memory_space<vmem>>) attributes {dimension_semantics = [#tpu.dimension_semantics<parallel>], iteration_bounds = array<i64: 2>, scalar_prefetch = 0 : i64, scratch_operands = 0 : i64, tpu.core_type = #tpu.core_type<tc>, window_params = [{transform_indices = @transform_0, window_bounds = array<i64: 8, 14, 128>}, {pipeline_mode = #tpu.pipeline_mode<synchronous>, transform_indices = @transform_1, window_bounds = array<i64: 7, 128, 128>}, {transform_indices = @transform_2, window_bounds = array<i64: 8, 8, 128>}, {transform_indices = @transform_3, window_bounds = array<i64: 1, 2, 128>}]} {
    %cst = arith.constant 0.000000e+00 : f32
    %0 = vector.broadcast %cst : f32 to vector<64x128xf32>
    %c0 = arith.constant 0 : index
    %c0_0 = arith.constant 0 : index
    %c0_1 = arith.constant 0 : index
    %1 = vector.load %arg1[%c0, %c0_0, %c0_1] : memref<8x14x128xbf16, #tpu.memory_space<vmem>>, vector<8x8x128xbf16>
    %2 = vector.shape_cast %1 : vector<8x8x128xbf16> to vector<64x128xbf16>
    %c0_2 = arith.constant 0 : index
    %c0_3 = arith.constant 0 : index
    %c0_4 = arith.constant 0 : index
    %3 = vector.load %arg2[%c0_2, %c0_3, %c0_4] : memref<7x128x128xbf16, #tpu.memory_space<vmem>>, vector<1x128x128xbf16>
    %4 = vector.shape_cast %3 : vector<1x128x128xbf16> to vector<128x128xbf16>
    %cst_5 = arith.constant dense<0.000000e+00> : vector<64x128xf32>
    %5 = tpu.matmul %2, %4, %cst_5 {dimension_numbers = #tpu.dot_dimension_numbers<[1], [0], [0], [1], [0, 0, 1, 1], [], []>} : vector<64x128xbf16>, vector<128x128xbf16>, vector<64x128xf32> -> vector<64x128xf32>
    %6 = arith.addf %0, %5 : vector<64x128xf32>
    %c0_6 = arith.constant 0 : index
    %c1 = arith.constant 1 : index
    %c0_7 = arith.constant 0 : index
    %7 = vector.load %arg1[%c0_6, %c1, %c0_7] : memref<8x14x128xbf16, #tpu.memory_space<vmem>>, vector<8x8x128xbf16>
    %8 = vector.shape_cast %7 : vector<8x8x128xbf16> to vector<64x128xbf16>
    %c1_8 = arith.constant 1 : index
    %c0_9 = arith.constant 0 : index
    %c0_10 = arith.constant 0 : index
    %9 = vector.load %arg2[%c1_8, %c0_9, %c0_10] : memref<7x128x128xbf16, #tpu.memory_space<vmem>>, vector<1x128x128xbf16>
    %10 = vector.shape_cast %9 : vector<1x128x128xbf16> to vector<128x128xbf16>
    %cst_11 = arith.constant dense<0.000000e+00> : vector<64x128xf32>
    %11 = tpu.matmul %8, %10, %cst_11 {dimension_numbers = #tpu.dot_dimension_numbers<[1], [0], [0], [1], [0, 0, 1, 1], [], []>} : vector<64x128xbf16>, vector<128x128xbf16>, vector<64x128xf32> -> vector<64x128xf32>
    %12 = arith.addf %6, %11 : vector<64x128xf32>
    %c0_12 = arith.constant 0 : index
    %c2 = arith.constant 2 : index
    %c0_13 = arith.constant 0 : index
    %13 = vector.load %arg1[%c0_12, %c2, %c0_13] : memref<8x14x128xbf16, #tpu.memory_space<vmem>>, vector<8x8x128xbf16>
    %14 = vector.shape_cast %13 : vector<8x8x128xbf16> to vector<64x128xbf16>
    %c2_14 = arith.constant 2 : index
    %c0_15 = arith.constant 0 : index
    %c0_16 = arith.constant 0 : index
    %15 = vector.load %arg2[%c2_14, %c0_15, %c0_16] : memref<7x128x128xbf16, #tpu.memory_space<vmem>>, vector<1x128x128xbf16>
    %16 = vector.shape_cast %15 : vector<1x128x128xbf16> to vector<128x128xbf16>
    %cst_17 = arith.constant dense<0.000000e+00> : vector<64x128xf32>
    %17 = tpu.matmul %14, %16, %cst_17 {dimension_numbers = #tpu.dot_dimension_numbers<[1], [0], [0], [1], [0, 0, 1, 1], [], []>} : vector<64x128xbf16>, vector<128x128xbf16>, vector<64x128xf32> -> vector<64x128xf32>
    %18 = arith.addf %12, %17 : vector<64x128xf32>
    %c0_18 = arith.constant 0 : index
    %c3 = arith.constant 3 : index
    %c0_19 = arith.constant 0 : index
    %19 = vector.load %arg1[%c0_18, %c3, %c0_19] : memref<8x14x128xbf16, #tpu.memory_space<vmem>>, vector<8x8x128xbf16>
    %20 = vector.shape_cast %19 : vector<8x8x128xbf16> to vector<64x128xbf16>
    %c3_20 = arith.constant 3 : index
    %c0_21 = arith.constant 0 : index
    %c0_22 = arith.constant 0 : index
    %21 = vector.load %arg2[%c3_20, %c0_21, %c0_22] : memref<7x128x128xbf16, #tpu.memory_space<vmem>>, vector<1x128x128xbf16>
    %22 = vector.shape_cast %21 : vector<1x128x128xbf16> to vector<128x128xbf16>
    %cst_23 = arith.constant dense<0.000000e+00> : vector<64x128xf32>
    %23 = tpu.matmul %20, %22, %cst_23 {dimension_numbers = #tpu.dot_dimension_numbers<[1], [0], [0], [1], [0, 0, 1, 1], [], []>} : vector<64x128xbf16>, vector<128x128xbf16>, vector<64x128xf32> -> vector<64x128xf32>
    %24 = arith.addf %18, %23 : vector<64x128xf32>
    %c0_24 = arith.constant 0 : index
    %c4 = arith.constant 4 : index
    %c0_25 = arith.constant 0 : index
    %25 = vector.load %arg1[%c0_24, %c4, %c0_25] : memref<8x14x128xbf16, #tpu.memory_space<vmem>>, vector<8x8x128xbf16>
    %26 = vector.shape_cast %25 : vector<8x8x128xbf16> to vector<64x128xbf16>
    %c4_26 = arith.constant 4 : index
    %c0_27 = arith.constant 0 : index
    %c0_28 = arith.constant 0 : index
    %27 = vector.load %arg2[%c4_26, %c0_27, %c0_28] : memref<7x128x128xbf16, #tpu.memory_space<vmem>>, vector<1x128x128xbf16>
    %28 = vector.shape_cast %27 : vector<1x128x128xbf16> to vector<128x128xbf16>
    %cst_29 = arith.constant dense<0.000000e+00> : vector<64x128xf32>
    %29 = tpu.matmul %26, %28, %cst_29 {dimension_numbers = #tpu.dot_dimension_numbers<[1], [0], [0], [1], [0, 0, 1, 1], [], []>} : vector<64x128xbf16>, vector<128x128xbf16>, vector<64x128xf32> -> vector<64x128xf32>
    %30 = arith.addf %24, %29 : vector<64x128xf32>
    %c0_30 = arith.constant 0 : index
    %c5 = arith.constant 5 : index
    %c0_31 = arith.constant 0 : index
    %31 = vector.load %arg1[%c0_30, %c5, %c0_31] : memref<8x14x128xbf16, #tpu.memory_space<vmem>>, vector<8x8x128xbf16>
    %32 = vector.shape_cast %31 : vector<8x8x128xbf16> to vector<64x128xbf16>
    %c5_32 = arith.constant 5 : index
    %c0_33 = arith.constant 0 : index
    %c0_34 = arith.constant 0 : index
    %33 = vector.load %arg2[%c5_32, %c0_33, %c0_34] : memref<7x128x128xbf16, #tpu.memory_space<vmem>>, vector<1x128x128xbf16>
    %34 = vector.shape_cast %33 : vector<1x128x128xbf16> to vector<128x128xbf16>
    %cst_35 = arith.constant dense<0.000000e+00> : vector<64x128xf32>
    %35 = tpu.matmul %32, %34, %cst_35 {dimension_numbers = #tpu.dot_dimension_numbers<[1], [0], [0], [1], [0, 0, 1, 1], [], []>} : vector<64x128xbf16>, vector<128x128xbf16>, vector<64x128xf32> -> vector<64x128xf32>
    %36 = arith.addf %30, %35 : vector<64x128xf32>
    %c0_36 = arith.constant 0 : index
    %c6 = arith.constant 6 : index
    %c0_37 = arith.constant 0 : index
    %37 = vector.load %arg1[%c0_36, %c6, %c0_37] : memref<8x14x128xbf16, #tpu.memory_space<vmem>>, vector<8x8x128xbf16>
    %38 = vector.shape_cast %37 : vector<8x8x128xbf16> to vector<64x128xbf16>
    %c6_38 = arith.constant 6 : index
    %c0_39 = arith.constant 0 : index
    %c0_40 = arith.constant 0 : index
    %39 = vector.load %arg2[%c6_38, %c0_39, %c0_40] : memref<7x128x128xbf16, #tpu.memory_space<vmem>>, vector<1x128x128xbf16>
    %40 = vector.shape_cast %39 : vector<1x128x128xbf16> to vector<128x128xbf16>
    %cst_41 = arith.constant dense<0.000000e+00> : vector<64x128xf32>
    %41 = tpu.matmul %38, %40, %cst_41 {dimension_numbers = #tpu.dot_dimension_numbers<[1], [0], [0], [1], [0, 0, 1, 1], [], []>} : vector<64x128xbf16>, vector<128x128xbf16>, vector<64x128xf32> -> vector<64x128xf32>
    %42 = arith.addf %36, %41 : vector<64x128xf32>
    %43 = vector.shape_cast %42 : vector<64x128xf32> to vector<8x8x128xf32>
    %c0_42 = arith.constant 0 : index
    %c0_43 = arith.constant 0 : index
    %c0_44 = arith.constant 0 : index
    %44 = vector.load %arg3[%c0_42, %c0_43, %c0_44] : memref<8x8x128xf32, #tpu.memory_space<vmem>>, vector<8x8x128xf32>
    tpu.vector_store %arg3[%c0_42, %c0_43, %c0_44], %43 {strides = array<i32>} : memref<8x8x128xf32, #tpu.memory_space<vmem>>, vector<8x8x128xf32>,
    %cst_45 = arith.constant dense<0.000000e+00> : vector<128xf32>
    %45 = vector.multi_reduction <add>, %42, %cst_45 [0] : vector<64x128xf32> to vector<128xf32>
    %46 = vector.shape_cast %45 : vector<128xf32> to vector<1x128xf32>
    %47 = arith.mulf %42, %42 : vector<64x128xf32>
    %cst_46 = arith.constant dense<0.000000e+00> : vector<128xf32>
    %48 = vector.multi_reduction <add>, %47, %cst_46 [0] : vector<64x128xf32> to vector<128xf32>
    %49 = vector.shape_cast %48 : vector<128xf32> to vector<1x128xf32>
    %50 = tpu.concatenate %46, %49 in 0 : vector<1x128xf32>, vector<1x128xf32> -> vector<2x128xf32>
    %51 = vector.shape_cast %50 : vector<2x128xf32> to vector<1x2x128xf32>
    %c0_47 = arith.constant 0 : index
    %c0_48 = arith.constant 0 : index
    %c0_49 = arith.constant 0 : index
    %52 = vector.load %arg4[%c0_47, %c0_48, %c0_49] : memref<1x2x128xf32, #tpu.memory_space<vmem>>, vector<1x2x128xf32>
    tpu.vector_store %arg4[%c0_47, %c0_48, %c0_49], %51 {strides = array<i32>} : memref<1x2x128xf32, #tpu.memory_space<vmem>>, vector<1x2x128xf32>,
    return
  }
  func.func @transform_0(%arg0: i32) -> (i32, i32, i32) {
    %c0_i32 = arith.constant 0 : i32
    %c0_i32_0 = arith.constant 0 : i32
    %c0_i32_1 = arith.constant 0 : i32
    return %arg0, %c0_i32, %c0_i32_0 : i32, i32, i32
  }
  func.func @transform_1(%arg0: i32) -> (i32, i32, i32) {
    %c0_i32 = arith.constant 0 : i32
    %c0_i32_0 = arith.constant 0 : i32
    %c0_i32_1 = arith.constant 0 : i32
    %c0_i32_2 = arith.constant 0 : i32
    return %c0_i32, %c0_i32_0, %c0_i32_1 : i32, i32, i32
  }
  func.func @transform_2(%arg0: i32) -> (i32, i32, i32) {
    %c0_i32 = arith.constant 0 : i32
    %c0_i32_0 = arith.constant 0 : i32
    %c0_i32_1 = arith.constant 0 : i32
    return %arg0, %c0_i32, %c0_i32_0 : i32, i32, i32
  }
  func.func @transform_3(%arg0: i32) -> (i32, i32, i32) {
    %c0_i32 = arith.constant 0 : i32
    %c0_i32_0 = arith.constant 0 : i32
    %c0_i32_1 = arith.constant 0 : i32
    return %arg0, %c0_i32, %c0_i32_0 : i32, i32, i32
  }
}

module attributes {stable_mosaic.version = 11 : i64} {
  func.func @_tapconv_stats_kernel(%arg0: i32, %arg1: memref<1x14x8x128xbf16, #tpu.memory_space<vmem>>, %arg2: memref<7x128x128xbf16, #tpu.memory_space<vmem>>, %arg3: memref<1x8x8x128xf32, #tpu.memory_space<vmem>>, %arg4: memref<1x2x128xf32, #tpu.memory_space<vmem>>) attributes {dimension_semantics = [#tpu.dimension_semantics<parallel>], iteration_bounds = array<i64: 2>, scalar_prefetch = 0 : i64, scratch_operands = 0 : i64, tpu.core_type = #tpu.core_type<tc>, window_params = [{transform_indices = @transform_0, window_bounds = array<i64: 1, 14, 8, 128>}, {pipeline_mode = #tpu.pipeline_mode<synchronous>, transform_indices = @transform_1, window_bounds = array<i64: 7, 128, 128>}, {transform_indices = @transform_2, window_bounds = array<i64: 1, 8, 8, 128>}, {transform_indices = @transform_3, window_bounds = array<i64: 1, 2, 128>}]} {
    %cst = arith.constant 0.000000e+00 : f32
    %0 = vector.broadcast %cst : f32 to vector<64x128xf32>
    %c0 = arith.constant 0 : index
    %c0_0 = arith.constant 0 : index
    %c0_1 = arith.constant 0 : index
    %c0_2 = arith.constant 0 : index
    %1 = vector.load %arg1[%c0, %c0_0, %c0_1, %c0_2] : memref<1x14x8x128xbf16, #tpu.memory_space<vmem>>, vector<1x8x8x128xbf16>
    %2 = vector.shape_cast %1 : vector<1x8x8x128xbf16> to vector<64x128xbf16>
    %c0_3 = arith.constant 0 : index
    %c0_4 = arith.constant 0 : index
    %c0_5 = arith.constant 0 : index
    %3 = vector.load %arg2[%c0_3, %c0_4, %c0_5] : memref<7x128x128xbf16, #tpu.memory_space<vmem>>, vector<1x128x128xbf16>
    %4 = vector.shape_cast %3 : vector<1x128x128xbf16> to vector<128x128xbf16>
    %cst_6 = arith.constant dense<0.000000e+00> : vector<64x128xf32>
    %5 = tpu.matmul %2, %4, %cst_6 {dimension_numbers = #tpu.dot_dimension_numbers<[1], [0], [0], [1], [0, 0, 1, 1], [], []>} : vector<64x128xbf16>, vector<128x128xbf16>, vector<64x128xf32> -> vector<64x128xf32>
    %6 = arith.addf %0, %5 : vector<64x128xf32>
    %c0_7 = arith.constant 0 : index
    %c1 = arith.constant 1 : index
    %c0_8 = arith.constant 0 : index
    %c0_9 = arith.constant 0 : index
    %7 = vector.load %arg1[%c0_7, %c1, %c0_8, %c0_9] : memref<1x14x8x128xbf16, #tpu.memory_space<vmem>>, vector<1x8x8x128xbf16>
    %8 = vector.shape_cast %7 : vector<1x8x8x128xbf16> to vector<64x128xbf16>
    %c1_10 = arith.constant 1 : index
    %c0_11 = arith.constant 0 : index
    %c0_12 = arith.constant 0 : index
    %9 = vector.load %arg2[%c1_10, %c0_11, %c0_12] : memref<7x128x128xbf16, #tpu.memory_space<vmem>>, vector<1x128x128xbf16>
    %10 = vector.shape_cast %9 : vector<1x128x128xbf16> to vector<128x128xbf16>
    %cst_13 = arith.constant dense<0.000000e+00> : vector<64x128xf32>
    %11 = tpu.matmul %8, %10, %cst_13 {dimension_numbers = #tpu.dot_dimension_numbers<[1], [0], [0], [1], [0, 0, 1, 1], [], []>} : vector<64x128xbf16>, vector<128x128xbf16>, vector<64x128xf32> -> vector<64x128xf32>
    %12 = arith.addf %6, %11 : vector<64x128xf32>
    %c0_14 = arith.constant 0 : index
    %c2 = arith.constant 2 : index
    %c0_15 = arith.constant 0 : index
    %c0_16 = arith.constant 0 : index
    %13 = vector.load %arg1[%c0_14, %c2, %c0_15, %c0_16] : memref<1x14x8x128xbf16, #tpu.memory_space<vmem>>, vector<1x8x8x128xbf16>
    %14 = vector.shape_cast %13 : vector<1x8x8x128xbf16> to vector<64x128xbf16>
    %c2_17 = arith.constant 2 : index
    %c0_18 = arith.constant 0 : index
    %c0_19 = arith.constant 0 : index
    %15 = vector.load %arg2[%c2_17, %c0_18, %c0_19] : memref<7x128x128xbf16, #tpu.memory_space<vmem>>, vector<1x128x128xbf16>
    %16 = vector.shape_cast %15 : vector<1x128x128xbf16> to vector<128x128xbf16>
    %cst_20 = arith.constant dense<0.000000e+00> : vector<64x128xf32>
    %17 = tpu.matmul %14, %16, %cst_20 {dimension_numbers = #tpu.dot_dimension_numbers<[1], [0], [0], [1], [0, 0, 1, 1], [], []>} : vector<64x128xbf16>, vector<128x128xbf16>, vector<64x128xf32> -> vector<64x128xf32>
    %18 = arith.addf %12, %17 : vector<64x128xf32>
    %c0_21 = arith.constant 0 : index
    %c3 = arith.constant 3 : index
    %c0_22 = arith.constant 0 : index
    %c0_23 = arith.constant 0 : index
    %19 = vector.load %arg1[%c0_21, %c3, %c0_22, %c0_23] : memref<1x14x8x128xbf16, #tpu.memory_space<vmem>>, vector<1x8x8x128xbf16>
    %20 = vector.shape_cast %19 : vector<1x8x8x128xbf16> to vector<64x128xbf16>
    %c3_24 = arith.constant 3 : index
    %c0_25 = arith.constant 0 : index
    %c0_26 = arith.constant 0 : index
    %21 = vector.load %arg2[%c3_24, %c0_25, %c0_26] : memref<7x128x128xbf16, #tpu.memory_space<vmem>>, vector<1x128x128xbf16>
    %22 = vector.shape_cast %21 : vector<1x128x128xbf16> to vector<128x128xbf16>
    %cst_27 = arith.constant dense<0.000000e+00> : vector<64x128xf32>
    %23 = tpu.matmul %20, %22, %cst_27 {dimension_numbers = #tpu.dot_dimension_numbers<[1], [0], [0], [1], [0, 0, 1, 1], [], []>} : vector<64x128xbf16>, vector<128x128xbf16>, vector<64x128xf32> -> vector<64x128xf32>
    %24 = arith.addf %18, %23 : vector<64x128xf32>
    %c0_28 = arith.constant 0 : index
    %c4 = arith.constant 4 : index
    %c0_29 = arith.constant 0 : index
    %c0_30 = arith.constant 0 : index
    %25 = vector.load %arg1[%c0_28, %c4, %c0_29, %c0_30] : memref<1x14x8x128xbf16, #tpu.memory_space<vmem>>, vector<1x8x8x128xbf16>
    %26 = vector.shape_cast %25 : vector<1x8x8x128xbf16> to vector<64x128xbf16>
    %c4_31 = arith.constant 4 : index
    %c0_32 = arith.constant 0 : index
    %c0_33 = arith.constant 0 : index
    %27 = vector.load %arg2[%c4_31, %c0_32, %c0_33] : memref<7x128x128xbf16, #tpu.memory_space<vmem>>, vector<1x128x128xbf16>
    %28 = vector.shape_cast %27 : vector<1x128x128xbf16> to vector<128x128xbf16>
    %cst_34 = arith.constant dense<0.000000e+00> : vector<64x128xf32>
    %29 = tpu.matmul %26, %28, %cst_34 {dimension_numbers = #tpu.dot_dimension_numbers<[1], [0], [0], [1], [0, 0, 1, 1], [], []>} : vector<64x128xbf16>, vector<128x128xbf16>, vector<64x128xf32> -> vector<64x128xf32>
    %30 = arith.addf %24, %29 : vector<64x128xf32>
    %c0_35 = arith.constant 0 : index
    %c5 = arith.constant 5 : index
    %c0_36 = arith.constant 0 : index
    %c0_37 = arith.constant 0 : index
    %31 = vector.load %arg1[%c0_35, %c5, %c0_36, %c0_37] : memref<1x14x8x128xbf16, #tpu.memory_space<vmem>>, vector<1x8x8x128xbf16>
    %32 = vector.shape_cast %31 : vector<1x8x8x128xbf16> to vector<64x128xbf16>
    %c5_38 = arith.constant 5 : index
    %c0_39 = arith.constant 0 : index
    %c0_40 = arith.constant 0 : index
    %33 = vector.load %arg2[%c5_38, %c0_39, %c0_40] : memref<7x128x128xbf16, #tpu.memory_space<vmem>>, vector<1x128x128xbf16>
    %34 = vector.shape_cast %33 : vector<1x128x128xbf16> to vector<128x128xbf16>
    %cst_41 = arith.constant dense<0.000000e+00> : vector<64x128xf32>
    %35 = tpu.matmul %32, %34, %cst_41 {dimension_numbers = #tpu.dot_dimension_numbers<[1], [0], [0], [1], [0, 0, 1, 1], [], []>} : vector<64x128xbf16>, vector<128x128xbf16>, vector<64x128xf32> -> vector<64x128xf32>
    %36 = arith.addf %30, %35 : vector<64x128xf32>
    %c0_42 = arith.constant 0 : index
    %c6 = arith.constant 6 : index
    %c0_43 = arith.constant 0 : index
    %c0_44 = arith.constant 0 : index
    %37 = vector.load %arg1[%c0_42, %c6, %c0_43, %c0_44] : memref<1x14x8x128xbf16, #tpu.memory_space<vmem>>, vector<1x8x8x128xbf16>
    %38 = vector.shape_cast %37 : vector<1x8x8x128xbf16> to vector<64x128xbf16>
    %c6_45 = arith.constant 6 : index
    %c0_46 = arith.constant 0 : index
    %c0_47 = arith.constant 0 : index
    %39 = vector.load %arg2[%c6_45, %c0_46, %c0_47] : memref<7x128x128xbf16, #tpu.memory_space<vmem>>, vector<1x128x128xbf16>
    %40 = vector.shape_cast %39 : vector<1x128x128xbf16> to vector<128x128xbf16>
    %cst_48 = arith.constant dense<0.000000e+00> : vector<64x128xf32>
    %41 = tpu.matmul %38, %40, %cst_48 {dimension_numbers = #tpu.dot_dimension_numbers<[1], [0], [0], [1], [0, 0, 1, 1], [], []>} : vector<64x128xbf16>, vector<128x128xbf16>, vector<64x128xf32> -> vector<64x128xf32>
    %42 = arith.addf %36, %41 : vector<64x128xf32>
    %43 = vector.shape_cast %42 : vector<64x128xf32> to vector<1x8x8x128xf32>
    %c0_49 = arith.constant 0 : index
    %c0_50 = arith.constant 0 : index
    %c0_51 = arith.constant 0 : index
    %c0_52 = arith.constant 0 : index
    %44 = vector.load %arg3[%c0_49, %c0_50, %c0_51, %c0_52] : memref<1x8x8x128xf32, #tpu.memory_space<vmem>>, vector<1x8x8x128xf32>
    tpu.vector_store %arg3[%c0_49, %c0_50, %c0_51, %c0_52], %43 {strides = array<i32>} : memref<1x8x8x128xf32, #tpu.memory_space<vmem>>, vector<1x8x8x128xf32>,
    %cst_53 = arith.constant dense<0.000000e+00> : vector<128xf32>
    %45 = vector.multi_reduction <add>, %42, %cst_53 [0] : vector<64x128xf32> to vector<128xf32>
    %46 = vector.shape_cast %45 : vector<128xf32> to vector<1x128xf32>
    %47 = arith.mulf %42, %42 : vector<64x128xf32>
    %cst_54 = arith.constant dense<0.000000e+00> : vector<128xf32>
    %48 = vector.multi_reduction <add>, %47, %cst_54 [0] : vector<64x128xf32> to vector<128xf32>
    %49 = vector.shape_cast %48 : vector<128xf32> to vector<1x128xf32>
    %50 = tpu.concatenate %46, %49 in 0 : vector<1x128xf32>, vector<1x128xf32> -> vector<2x128xf32>
    %51 = vector.shape_cast %50 : vector<2x128xf32> to vector<1x2x128xf32>
    %c0_55 = arith.constant 0 : index
    %c0_56 = arith.constant 0 : index
    %c0_57 = arith.constant 0 : index
    %52 = vector.load %arg4[%c0_55, %c0_56, %c0_57] : memref<1x2x128xf32, #tpu.memory_space<vmem>>, vector<1x2x128xf32>
    tpu.vector_store %arg4[%c0_55, %c0_56, %c0_57], %51 {strides = array<i32>} : memref<1x2x128xf32, #tpu.memory_space<vmem>>, vector<1x2x128xf32>,
    return
  }
  func.func @transform_0(%arg0: i32) -> (i32, i32, i32, i32) {
    %c0_i32 = arith.constant 0 : i32
    %c0_i32_0 = arith.constant 0 : i32
    %c0_i32_1 = arith.constant 0 : i32
    %c0_i32_2 = arith.constant 0 : i32
    return %arg0, %c0_i32, %c0_i32_0, %c0_i32_1 : i32, i32, i32, i32
  }
  func.func @transform_1(%arg0: i32) -> (i32, i32, i32) {
    %c0_i32 = arith.constant 0 : i32
    %c0_i32_0 = arith.constant 0 : i32
    %c0_i32_1 = arith.constant 0 : i32
    %c0_i32_2 = arith.constant 0 : i32
    return %c0_i32, %c0_i32_0, %c0_i32_1 : i32, i32, i32
  }
  func.func @transform_2(%arg0: i32) -> (i32, i32, i32, i32) {
    %c0_i32 = arith.constant 0 : i32
    %c0_i32_0 = arith.constant 0 : i32
    %c0_i32_1 = arith.constant 0 : i32
    %c0_i32_2 = arith.constant 0 : i32
    return %arg0, %c0_i32, %c0_i32_0, %c0_i32_1 : i32, i32, i32, i32
  }
  func.func @transform_3(%arg0: i32) -> (i32, i32, i32) {
    %c0_i32 = arith.constant 0 : i32
    %c0_i32_0 = arith.constant 0 : i32
    %c0_i32_1 = arith.constant 0 : i32
    return %arg0, %c0_i32, %c0_i32_0 : i32, i32, i32
  }
}

module attributes {stable_mosaic.version = 11 : i64} {
  func.func @_out_conv_residual_kernel(%arg0: i32, %arg1: memref<128x128xf32, #tpu.memory_space<vmem>>, %arg2: memref<128x128xf32, #tpu.memory_space<vmem>>, %arg3: memref<2x128xf32, #tpu.memory_space<vmem>>, %arg4: memref<2x128xf32, #tpu.memory_space<vmem>>, %arg5: memref<128x896xbf16, #tpu.memory_space<vmem>>, %arg6: memref<128x896xbf16, #tpu.memory_space<vmem>>, %arg7: memref<1x896xf32, #tpu.memory_space<vmem>>, %arg8: memref<128x896xf32, #tpu.memory_space<vmem>>, %arg9: memref<128x896xf32, #tpu.memory_space<vmem>>) attributes {dimension_semantics = [#tpu.dimension_semantics<parallel>], iteration_bounds = array<i64: 1>, scalar_prefetch = 0 : i64, scratch_operands = 0 : i64, tpu.core_type = #tpu.core_type<tc>, window_params = [{transform_indices = @transform_0, window_bounds = array<i64: 128, 128>}, {transform_indices = @transform_1, window_bounds = array<i64: 128, 128>}, {pipeline_mode = #tpu.pipeline_mode<synchronous>, transform_indices = @transform_2, window_bounds = array<i64: 2, 128>}, {pipeline_mode = #tpu.pipeline_mode<synchronous>, transform_indices = @transform_3, window_bounds = array<i64: 2, 128>}, {pipeline_mode = #tpu.pipeline_mode<synchronous>, transform_indices = @transform_4, window_bounds = array<i64: 128, 896>}, {pipeline_mode = #tpu.pipeline_mode<synchronous>, transform_indices = @transform_5, window_bounds = array<i64: 128, 896>}, {pipeline_mode = #tpu.pipeline_mode<synchronous>, transform_indices = @transform_6, window_bounds = array<i64: 1, 896>}, {transform_indices = @transform_7, window_bounds = array<i64: 128, 896>}, {transform_indices = @transform_8, window_bounds = array<i64: 128, 896>}]} {
    %c0 = arith.constant 0 : index
    %c0_0 = arith.constant 0 : index
    %0 = vector.load %arg1[%c0, %c0_0] : memref<128x128xf32, #tpu.memory_space<vmem>>, vector<128x128xf32>
    %c0_1 = arith.constant 0 : index
    %c0_2 = arith.constant 0 : index
    %1 = vector.load %arg3[%c0_1, %c0_2] : memref<2x128xf32, #tpu.memory_space<vmem>>, vector<1x128xf32>
    %2 = vector.broadcast %1 : vector<1x128xf32> to vector<128x128xf32>
    %3 = arith.mulf %0, %2 : vector<128x128xf32>
    %c1 = arith.constant 1 : index
    %c0_3 = arith.constant 0 : index
    %4 = vector.load %arg3[%c1, %c0_3] : memref<2x128xf32, #tpu.memory_space<vmem>>, vector<1x128xf32>
    %5 = vector.broadcast %4 : vector<1x128xf32> to vector<128x128xf32>
    %6 = arith.addf %3, %5 : vector<128x128xf32>
    %cst = arith.constant 0.000000e+00 : f32
    %7 = vector.broadcast %cst : f32 to vector<128x128xf32>
    %8 = arith.maximumf %6, %7 : vector<128x128xf32>
    %c0_4 = arith.constant 0 : index
    %c0_5 = arith.constant 0 : index
    %9 = vector.load %arg2[%c0_4, %c0_5] : memref<128x128xf32, #tpu.memory_space<vmem>>, vector<128x128xf32>
    %c0_6 = arith.constant 0 : index
    %c0_7 = arith.constant 0 : index
    %10 = vector.load %arg4[%c0_6, %c0_7] : memref<2x128xf32, #tpu.memory_space<vmem>>, vector<1x128xf32>
    %11 = vector.broadcast %10 : vector<1x128xf32> to vector<128x128xf32>
    %12 = arith.mulf %9, %11 : vector<128x128xf32>
    %c1_8 = arith.constant 1 : index
    %c0_9 = arith.constant 0 : index
    %13 = vector.load %arg4[%c1_8, %c0_9] : memref<2x128xf32, #tpu.memory_space<vmem>>, vector<1x128xf32>
    %14 = vector.broadcast %13 : vector<1x128xf32> to vector<128x128xf32>
    %15 = arith.addf %12, %14 : vector<128x128xf32>
    %cst_10 = arith.constant 0.000000e+00 : f32
    %16 = vector.broadcast %cst_10 : f32 to vector<128x128xf32>
    %17 = arith.maximumf %15, %16 : vector<128x128xf32>
    %18 = arith.truncf %8 : vector<128x128xf32> to vector<128x128xbf16>
    %c0_11 = arith.constant 0 : index
    %c0_12 = arith.constant 0 : index
    %19 = vector.load %arg5[%c0_11, %c0_12] : memref<128x896xbf16, #tpu.memory_space<vmem>>, vector<128x896xbf16>
    %cst_13 = arith.constant dense<0.000000e+00> : vector<128x896xf32>
    %20 = tpu.matmul %18, %19, %cst_13 {dimension_numbers = #tpu.dot_dimension_numbers<[1], [0], [0], [1], [0, 0, 1, 1], [], []>} : vector<128x128xbf16>, vector<128x896xbf16>, vector<128x896xf32> -> vector<128x896xf32>
    %21 = arith.truncf %17 : vector<128x128xf32> to vector<128x128xbf16>
    %c0_14 = arith.constant 0 : index
    %c0_15 = arith.constant 0 : index
    %22 = vector.load %arg6[%c0_14, %c0_15] : memref<128x896xbf16, #tpu.memory_space<vmem>>, vector<128x896xbf16>
    %cst_16 = arith.constant dense<0.000000e+00> : vector<128x896xf32>
    %23 = tpu.matmul %21, %22, %cst_16 {dimension_numbers = #tpu.dot_dimension_numbers<[1], [0], [0], [1], [0, 0, 1, 1], [], []>} : vector<128x128xbf16>, vector<128x896xbf16>, vector<128x896xf32> -> vector<128x896xf32>
    %24 = arith.addf %20, %23 : vector<128x896xf32>
    %c0_17 = arith.constant 0 : index
    %c0_18 = arith.constant 0 : index
    %25 = vector.load %arg7[%c0_17, %c0_18] : memref<1x896xf32, #tpu.memory_space<vmem>>, vector<1x896xf32>
    %26 = vector.broadcast %25 : vector<1x896xf32> to vector<128x896xf32>
    %27 = arith.addf %24, %26 : vector<128x896xf32>
    %cst_19 = arith.constant 1.700000e-01 : f32
    %28 = vector.broadcast %cst_19 : f32 to vector<128x896xf32>
    %29 = arith.mulf %27, %28 : vector<128x896xf32>
    %c0_20 = arith.constant 0 : index
    %c0_21 = arith.constant 0 : index
    %30 = vector.load %arg8[%c0_20, %c0_21] : memref<128x896xf32, #tpu.memory_space<vmem>>, vector<128x896xf32>
    %31 = arith.addf %29, %30 : vector<128x896xf32>
    %cst_22 = arith.constant 0.000000e+00 : f32
    %32 = vector.broadcast %cst_22 : f32 to vector<128x896xf32>
    %33 = arith.maximumf %31, %32 : vector<128x896xf32>
    %c0_23 = arith.constant 0 : index
    %c0_24 = arith.constant 0 : index
    %34 = vector.load %arg9[%c0_23, %c0_24] : memref<128x896xf32, #tpu.memory_space<vmem>>, vector<128x896xf32>
    tpu.vector_store %arg9[%c0_23, %c0_24], %33 {strides = array<i32>} : memref<128x896xf32, #tpu.memory_space<vmem>>, vector<128x896xf32>,
    return
  }
  func.func @transform_0(%arg0: i32) -> (i32, i32) {
    %c0_i32 = arith.constant 0 : i32
    %c0_i32_0 = arith.constant 0 : i32
    return %arg0, %c0_i32 : i32, i32
  }
  func.func @transform_1(%arg0: i32) -> (i32, i32) {
    %c0_i32 = arith.constant 0 : i32
    %c0_i32_0 = arith.constant 0 : i32
    return %arg0, %c0_i32 : i32, i32
  }
  func.func @transform_2(%arg0: i32) -> (i32, i32) {
    %c0_i32 = arith.constant 0 : i32
    %c0_i32_0 = arith.constant 0 : i32
    %c0_i32_1 = arith.constant 0 : i32
    return %c0_i32, %c0_i32_0 : i32, i32
  }
  func.func @transform_3(%arg0: i32) -> (i32, i32) {
    %c0_i32 = arith.constant 0 : i32
    %c0_i32_0 = arith.constant 0 : i32
    %c0_i32_1 = arith.constant 0 : i32
    return %c0_i32, %c0_i32_0 : i32, i32
  }
  func.func @transform_4(%arg0: i32) -> (i32, i32) {
    %c0_i32 = arith.constant 0 : i32
    %c0_i32_0 = arith.constant 0 : i32
    %c0_i32_1 = arith.constant 0 : i32
    return %c0_i32, %c0_i32_0 : i32, i32
  }
  func.func @transform_5(%arg0: i32) -> (i32, i32) {
    %c0_i32 = arith.constant 0 : i32
    %c0_i32_0 = arith.constant 0 : i32
    %c0_i32_1 = arith.constant 0 : i32
    return %c0_i32, %c0_i32_0 : i32, i32
  }
  func.func @transform_6(%arg0: i32) -> (i32, i32) {
    %c0_i32 = arith.constant 0 : i32
    %c0_i32_0 = arith.constant 0 : i32
    %c0_i32_1 = arith.constant 0 : i32
    return %c0_i32, %c0_i32_0 : i32, i32
  }
  func.func @transform_7(%arg0: i32) -> (i32, i32) {
    %c0_i32 = arith.constant 0 : i32
    %c0_i32_0 = arith.constant 0 : i32
    return %arg0, %c0_i32 : i32, i32
  }
  func.func @transform_8(%arg0: i32) -> (i32, i32) {
    %c0_i32 = arith.constant 0 : i32
    %c0_i32_0 = arith.constant 0 : i32
    return %arg0, %c0_i32 : i32, i32
  }
}

</mosaic_0001>

<bundles_post_ra>
// kernel: block17_forward.7
= control target key start
LH: loop header
LB: loop body
LE: loop exit
PB: predicated region body
PF: predicated region fallthrough
CT: control target
= control target key end

     0   :  { %s275_s0 = inlined_call_operand.vmem [shape: f32[128,128], index: 0, kind: input, shape index: {}]   ;;  %s276_s1 = inlined_call_operand.vmem [shape: f32[2,128], index: 1, kind: input, shape index: {}]   ;;  %s277_s2 = inlined_call_operand.vmem [shape: bf16[128,128], index: 2, kind: output, shape index: {}]  }
   0x1   :  { %v11_v0 = vld [vmem:[%s275_s0] sm:$0xff]  ;;  %v12_v1 = vld [vmem:[%s275_s0 + $0x8] sm:$0xff]  ;;  %v13_v4 = vld [vmem:[%s275_s0 + $0x10] sm:$0xff] }
   0x2   :  { %v162_v2 = vld [vmem:[%s276_s1] ss:$0 sm:$0xff]  ;;  %v191_v3 = vld [vmem:[%s276_s1 + $0x1] ss:$0 sm:$0xff]  ;;  %v14_v5 = vld [vmem:[%s275_s0 + $0x18] sm:$0xff] }
   0x3   :  { %v15_v6 = vld [vmem:[%s275_s0 + $0x20] sm:$0xff]  ;;  %v29_v7 = vmul.f32 %v162_v2, %v11_v0  ;;  %v30_v8 = vmul.f32 %v162_v2, %v12_v1  ;;  %v31_v9 = vmul.f32 %v162_v2, %v13_v4  ;;  %v32_v10 = vmul.f32 %v162_v2, %v14_v5  ;;  %v16_v11 = vld [vmem:[%s275_s0 + $0x28] sm:$0xff]  ;;  %v17_v12 = vld [vmem:[%s275_s0 + $0x30] sm:$0xff] }
   0x4   :  { %v18_v13 = vld [vmem:[%s275_s0 + $0x38] sm:$0xff]  ;;  %v33_v14 = vmul.f32 %v162_v2, %v15_v6  ;;  %v34_v15 = vmul.f32 %v162_v2, %v16_v11  ;;  %v35_v16 = vmul.f32 %v162_v2, %v17_v12  ;;  %v19_v26 = vld [vmem:[%s275_s0 + $0x40] sm:$0xff]  ;;  %v20_v27 = vld [vmem:[%s275_s0 + $0x48] sm:$0xff] }
   0x5   :  { %v36_v17 = vmul.f32 %v162_v2, %v18_v13  ;;  %v47_v18 = vadd.f32 %v191_v3, %v29_v7  ;;  %v48_v19 = vadd.f32 %v191_v3, %v30_v8  ;;  %v49_v20 = vadd.f32 %v191_v3, %v31_v9  ;;  %v21_v32 = vld [vmem:[%s275_s0 + $0x50] sm:$0xff]  ;;  %v22_v33 = vld [vmem:[%s275_s0 + $0x58] sm:$0xff]  ;;  %v23_v38 = vld [vmem:[%s275_s0 + $0x60] sm:$0xff] }
   0x6   :  { %v50_v21 = vadd.f32 %v191_v3, %v32_v10  ;;  %v51_v22 = vadd.f32 %v191_v3, %v33_v14  ;;  %v52_v23 = vadd.f32 %v191_v3, %v34_v15  ;;  %v53_v24 = vadd.f32 %v191_v3, %v35_v16  ;;  %v24_v39 = vld [vmem:[%s275_s0 + $0x68] sm:$0xff]  ;;  %v25_v44 = vld [vmem:[%s275_s0 + $0x70] sm:$0xff]  ;;  %v26_v45 = vld [vmem:[%s275_s0 + $0x78] sm:$0xff] }
   0x7   :  { %v54_v25 = vadd.f32 %v191_v3, %v36_v17  ;;  %v63_v28 = vmax.f32 %v47_v18, 0.0  ;;  %v64_v29 = vmax.f32 %v48_v19, 0.0  ;;  %v65_v30 = vmax.f32 %v49_v20, 0.0 }
   0x8   :  { %v66_v31 = vmax.f32 %v50_v21, 0.0  ;;  %v67_v34 = vmax.f32 %v51_v22, 0.0  ;;  %v68_v35 = vmax.f32 %v52_v23, 0.0  ;;  %v69_v36 = vmax.f32 %v53_v24, 0.0 }
   0x9   :  { %v70_v37 = vmax.f32 %v54_v25, 0.0  ;;  %v118_v40 = vpack.c.bf16 %v64_v29, %v63_v28  ;;  %v37_v42 = vmul.f32 %v162_v2, %v19_v26  ;;  %v38_v43 = vmul.f32 %v162_v2, %v20_v27 }
   0xa   :  { %v123_v41 = vpack.c.bf16 %v66_v31, %v65_v30  ;;  %v128_v46 = vpack.c.bf16 %v68_v35, %v67_v34  ;;  %v39_v48 = vmul.f32 %v162_v2, %v21_v32  ;;  %v40_v49 = vmul.f32 %v162_v2, %v22_v33 }
   0xb   :  { %v133_v47 = vpack.c.bf16 %v70_v37, %v69_v36  ;;  %119 = vst [vmem:[%s277_s2] sm:$0xff] %v118_v40   ;;  %v55_v50 = vadd.f32 %v191_v3, %v37_v42  ;;  %v56_v51 = vadd.f32 %v191_v3, %v38_v43  ;;  %v41_v52 = vmul.f32 %v162_v2, %v23_v38 }
   0xc   :  { %v42_v53 = vmul.f32 %v162_v2, %v24_v39  ;;  %155 = vst [vmem:[%s277_s2 + $0x8] sm:$0xff] %v123_v41   ;;  %v57_v54 = vadd.f32 %v191_v3, %v39_v48  ;;  %v58_v55 = vadd.f32 %v191_v3, %v40_v49  ;;  %v43_v56 = vmul.f32 %v162_v2, %v25_v44 }
   0xd   :  { %v44_v57 = vmul.f32 %v162_v2, %v26_v45  ;;  %156 = vst [vmem:[%s277_s2 + $0x10] sm:$0xff] %v128_v46   ;;  %v71_v58 = vmax.f32 %v55_v50, 0.0  ;;  %v72_v59 = vmax.f32 %v56_v51, 0.0  ;;  %v59_v60 = vadd.f32 %v191_v3, %v41_v52 }
   0xe   :  { %v60_v61 = vadd.f32 %v191_v3, %v42_v53  ;;  %157 = vst [vmem:[%s277_s2 + $0x18] sm:$0xff] %v133_v47   ;;  %v73_v62 = vmax.f32 %v57_v54, 0.0  ;;  %v74_v63 = vmax.f32 %v58_v55, 0.0  ;;  %v61_v0 = vadd.f32 %v191_v3, %v43_v56 }
   0xf   :  { %v62_v1 = vadd.f32 %v191_v3, %v44_v57  ;;  %v138_v2 = vpack.c.bf16 %v72_v59, %v71_v58  ;;  %v75_v4 = vmax.f32 %v59_v60, 0.0 }
  0x10   :  { %v76_v5 = vmax.f32 %v60_v61, 0.0  ;;  %v143_v6 = vpack.c.bf16 %v74_v63, %v73_v62  ;;  %v77_v7 = vmax.f32 %v61_v0, 0.0 }
  0x11   :  { %v78_v8 = vmax.f32 %v62_v1, 0.0  ;;  %158 = vst [vmem:[%s277_s2 + $0x20] sm:$0xff] %v138_v2  }
  0x12   :  { %v148_v9 = vpack.c.bf16 %v76_v5, %v75_v4  ;;  %159 = vst [vmem:[%s277_s2 + $0x28] sm:$0xff] %v143_v6  }
  0x13   :  { %v153_v10 = vpack.c.bf16 %v78_v8, %v77_v7 }
  0x14   :  { %160 = vst [vmem:[%s277_s2 + $0x30] sm:$0xff] %v148_v9  }
  0x15   :  { %161 = vst [vmem:[%s277_s2 + $0x38] sm:$0xff] %v153_v10  }

// kernel: block17_forward.6
= control target key start
LH: loop header
LB: loop body
LE: loop exit
PB: predicated region body
PF: predicated region fallthrough
CT: control target
= control target key end

     0   :  { %vm1872_vm0 = vcmask 1040384   ;;  %vm1878_vm1 = vcmask 1041408   ;;  %s4255_s1 = inlined_call_operand.vmem [shape: bf16[896,256], index: 1, kind: input, shape index: {}]   ;;  %s4256_s0 = inlined_call_operand.vmem [shape: bf16[128,896], index: 0, kind: input, shape index: {}]   ;;  %s4257_s2 = inlined_call_operand.vmem [shape: f32[128,128], index: 2, kind: output, shape index: {0}]   ;;  %s4258_s3 = inlined_call_operand.vmem [shape: f32[128,128], index: 3, kind: output, shape index: {1}]   ;;  %s4259_s4 = inlined_call_operand.vmem [shape: f32[1,2,256], index: 4, kind: output, shape index: {2}]  }
   0x1   :  { %v2176_v0 = vld [vmem:[%s4255_s1 + $0x70] sm:$0xf]  ;;  %v2637_v1 = vld [vmem:[%s4255_s1 + $0x74] sm:$0xf0]  ;;  %v2168_v5 = vld [vmem:[%s4255_s1 + $0x60] sm:$0xf] }
   0x2   :  { %v2240_v2 = vld [vmem:[%s4255_s1 + $0xf0] sm:$0xf]  ;;  %v2177_v3 = vor.u32 %v2637_v1, %v2176_v0  ;;  %v2653_v4 = vld [vmem:[%s4255_s1 + $0xf4] sm:$0xf0]  ;;  %v2635_v6 = vld [vmem:[%s4255_s1 + $0x64] sm:$0xf0] }
   0x3   :  { %v2241_v7 = vor.u32 %v2653_v4, %v2240_v2  ;;  %v2232_v8 = vld [vmem:[%s4255_s1 + $0xe0] sm:$0xf]  ;;  %v2651_v9 = vld [vmem:[%s4255_s1 + $0xe4] sm:$0xf0]  ;;  %v2169_v10 = vor.u32 %v2635_v6, %v2168_v5  ;;  %v2160_v12 = vld [vmem:[%s4255_s1 + $0x50] sm:$0xf] }
   0x4   :  { %2734 = vmatpush.bf16.msra.mxu2 %v2177_v3  ;;  %1038 = vmatpush.bf16.msra.mxu0 %v2177_v3  ;;  %v2233_v11 = vor.u32 %v2651_v9, %v2232_v8  ;;  %v2633_v13 = vld [vmem:[%s4255_s1 + $0x54] sm:$0xf0]  ;;  %v2224_v14 = vld [vmem:[%s4255_s1 + $0xd0] sm:$0xf]  ;;  %v2152_v18 = vld [vmem:[%s4255_s1 + $0x40] sm:$0xf] }
   0x5   :  { %2742 = vmatpush.bf16.msra.mxu3 %v2241_v7  ;;  %1087 = vmatpush.bf16.msra.mxu1 %v2241_v7  ;;  %v2649_v15 = vld [vmem:[%s4255_s1 + $0xd4] sm:$0xf0]  ;;  %v2161_v16 = vor.u32 %v2633_v13, %v2160_v12  ;;  %v2631_v19 = vld [vmem:[%s4255_s1 + $0x44] sm:$0xf0]  ;;  %v2216_v20 = vld [vmem:[%s4255_s1 + $0xc0] sm:$0xf] }
   0x6   :  { %v2225_v17 = vor.u32 %v2649_v15, %v2224_v14  ;;  %v2647_v21 = vld [vmem:[%s4255_s1 + $0xc4] sm:$0xf0]  ;;  %v2153_v22 = vor.u32 %v2631_v19, %v2152_v18  ;;  %v2144_v24 = vld [vmem:[%s4255_s1 + $0x30] sm:$0xf]  ;;  %v2629_v25 = vld [vmem:[%s4255_s1 + $0x34] sm:$0xf0] }
   0x7   :  { %v2217_v23 = vor.u32 %v2647_v21, %v2216_v20  ;;  %v2208_v26 = vld [vmem:[%s4255_s1 + $0xb0] sm:$0xf]  ;;  %v2645_v27 = vld [vmem:[%s4255_s1 + $0xb4] sm:$0xf0]  ;;  %v2145_v28 = vor.u32 %v2629_v25, %v2144_v24  ;;  %v2136_v30 = vld [vmem:[%s4255_s1 + $0x20] sm:$0xf] }
   0x8   :  { %2735 = vmatpush.bf16.msra.mxu2 %v2169_v10  ;;  %1039 = vmatpush.bf16.msra.mxu0 %v2169_v10  ;;  %v2209_v29 = vor.u32 %v2645_v27, %v2208_v26  ;;  %v2627_v31 = vld [vmem:[%s4255_s1 + $0x24] sm:$0xf0]  ;;  %v2200_v32 = vld [vmem:[%s4255_s1 + $0xa0] sm:$0xf]  ;;  %v2128_v36 = vld [vmem:[%s4255_s1 + $0x10] sm:$0xf] }
   0x9   :  { %2743 = vmatpush.bf16.msra.mxu3 %v2233_v11  ;;  %1088 = vmatpush.bf16.msra.mxu1 %v2233_v11  ;;  %v2643_v33 = vld [vmem:[%s4255_s1 + $0xa4] sm:$0xf0]  ;;  %v2137_v34 = vor.u32 %v2627_v31, %v2136_v30  ;;  %v2625_v37 = vld [vmem:[%s4255_s1 + $0x14] sm:$0xf0]  ;;  %v2192_v38 = vld [vmem:[%s4255_s1 + $0x90] sm:$0xf] }
   0xa   :  { %v2201_v35 = vor.u32 %v2643_v33, %v2200_v32  ;;  %v2641_v39 = vld [vmem:[%s4255_s1 + $0x94] sm:$0xf0]  ;;  %v2129_v40 = vor.u32 %v2625_v37, %v2128_v36  ;;  %v2120_v41 = vld [vmem:[%s4255_s1] sm:$0xf]  ;;  %v2623_v43 = vld [vmem:[%s4255_s1 + $0x4] sm:$0xf0] }
   0xb   :  { %v2193_v42 = vor.u32 %v2641_v39, %v2192_v38  ;;  %v2184_v44 = vld [vmem:[%s4255_s1 + $0x80] sm:$0xf]  ;;  %v2639_v45 = vld [vmem:[%s4255_s1 + $0x84] sm:$0xf0]  ;;  %v2597_v47 = vld [vmem:[%s4256_s0 + $0xf8] sm:$0xf0]  ;;  %v2121_v54 = vor.u32 %v2623_v43, %v2120_v41 }
   0xc   :  { %2736 = vmatpush.bf16.msra.mxu2 %v2161_v16  ;;  %1040 = vmatpush.bf16.msra.mxu0 %v2161_v16  ;;  %v2008_v46 = vld [vmem:[%s4256_s0 + $0xe0] sm:$0xf]  ;;  %v2304_v48 = vld [vmem:[%s4255_s1 + $0x170] sm:$0xf]  ;;  %v2594_v49 = vld [vmem:[%s4256_s0 + $0xe4] sm:$0xf]  ;;  %v2185_v58 = vor.u32 %v2639_v45, %v2184_v44 }
   0xd   :  { %2744 = vmatpush.bf16.msra.mxu3 %v2225_v17  ;;  %1089 = vmatpush.bf16.msra.mxu1 %v2225_v17  ;;  %v2010_v50 = vld [vmem:[%s4256_s0 + $0xfc] sm:$0xf0]  ;;  %v2669_v51 = vld [vmem:[%s4255_s1 + $0x174] sm:$0xf0]  ;;  %v2368_v52 = vld [vmem:[%s4255_s1 + $0x1f0] sm:$0xf]  ;;  %v2922_v3 = vor.u32 %v2597_v47, %v2008_v46 }
   0xe   :  { %v2685_v53 = vld [vmem:[%s4255_s1 + $0x1f4] sm:$0xf0]  ;;  %v1896_v55 = vld [vmem:[%s4256_s0] sm:$0xf]  ;;  %v2569_v56 = vld [vmem:[%s4256_s0 + $0x18] sm:$0xf0]  ;;  %v2305_v62 = vor.u32 %v2669_v51, %v2304_v48  ;;  %v2935_v8 = vor.u32 %v2594_v49, %v2010_v50 }
   0xf   :  { %v2566_v57 = vld [vmem:[%s4256_s0 + $0x4] sm:$0xf]  ;;  %v1898_v59 = vld [vmem:[%s4256_s0 + $0x1c] sm:$0xf0]  ;;  %v2432_v61 = vld [vmem:[%s4255_s1 + $0x270] sm:$0xf]  ;;  %v2369_v63 = vor.u32 %v2685_v53, %v2368_v52  ;;  %v2924_v4 = vor.u32 %v2569_v56, %v1896_v55 }
  0x10   :  { %2737 = vmatpush.bf16.msra.mxu2 %v2153_v22  ;;  %1041 = vmatpush.bf16.msra.mxu0 %v2153_v22  ;;  %v2296_v60 = vld [vmem:[%s4255_s1 + $0x160] sm:$0xf]  ;;  %v2701_v0 = vld [vmem:[%s4255_s1 + $0x274] sm:$0xf0]  ;;  %v2496_v1 = vld [vmem:[%s4255_s1 + $0x2f0] sm:$0xf]  ;;  %v2937_v9 = vor.u32 %v2566_v57, %v1898_v59 }
  0x11   :  { %2745 = vmatpush.bf16.msra.mxu3 %v2217_v23  ;;  %1090 = vmatpush.bf16.msra.mxu1 %v2217_v23  ;;  %v2717_v2 = vld [vmem:[%s4255_s1 + $0x2f4] sm:$0xf0]  ;;  %v2667_v5 = vld [vmem:[%s4255_s1 + $0x164] sm:$0xf0]  ;;  %v2360_v6 = vld [vmem:[%s4255_s1 + $0x1e0] sm:$0xf]  ;;  %v2433_v10 = vor.u32 %v2701_v0, %v2432_v61 }
  0x12   :  { %v2683_v7 = vld [vmem:[%s4255_s1 + $0x1e4] sm:$0xf0]  ;;  %v2497_v11 = vor.u32 %v2717_v2, %v2496_v1  ;;  %v2288_v12 = vld [vmem:[%s4255_s1 + $0x150] sm:$0xf]  ;;  %v2424_v13 = vld [vmem:[%s4255_s1 + $0x260] sm:$0xf]  ;;  %v2297_v14 = vor.u32 %v2667_v5, %v2296_v60 }
  0x13   :  { %v2361_v15 = vor.u32 %v2683_v7, %v2360_v6  ;;  %v2699_v16 = vld [vmem:[%s4255_s1 + $0x264] sm:$0xf0]  ;;  %v2488_v17 = vld [vmem:[%s4255_s1 + $0x2e0] sm:$0xf]  ;;  %v2665_v19 = vld [vmem:[%s4255_s1 + $0x154] sm:$0xf0] }
  0x14   :  { %2738 = vmatpush.bf16.msra.mxu2 %v2145_v28  ;;  %1042 = vmatpush.bf16.msra.mxu0 %v2145_v28  ;;  %v2715_v18 = vld [vmem:[%s4255_s1 + $0x2e4] sm:$0xf0]  ;;  %v2352_v20 = vld [vmem:[%s4255_s1 + $0x1d0] sm:$0xf]  ;;  %v2681_v21 = vld [vmem:[%s4255_s1 + $0x1d4] sm:$0xf0]  ;;  %v2425_v22 = vor.u32 %v2699_v16, %v2424_v13  ;;  %v2289_v26 = vor.u32 %v2665_v19, %v2288_v12 }
  0x15   :  { %2746 = vmatpush.bf16.msra.mxu3 %v2209_v29  ;;  %1091 = vmatpush.bf16.msra.mxu1 %v2209_v29  ;;  %v2489_v23 = vor.u32 %v2715_v18, %v2488_v17  ;;  %v2280_v24 = vld [vmem:[%s4255_s1 + $0x140] sm:$0xf]  ;;  %v2416_v25 = vld [vmem:[%s4255_s1 + $0x250] sm:$0xf]  ;;  %v2353_v27 = vor.u32 %v2681_v21, %v2352_v20  ;;  %v2697_v28 = vld [vmem:[%s4255_s1 + $0x254] sm:$0xf0] }
  0x16   :  { %v2480_v29 = vld [vmem:[%s4255_s1 + $0x2d0] sm:$0xf]  ;;  %v2713_v30 = vld [vmem:[%s4255_s1 + $0x2d4] sm:$0xf0]  ;;  %v2663_v31 = vld [vmem:[%s4255_s1 + $0x144] sm:$0xf0] }
  0x17   :  { %v2344_v32 = vld [vmem:[%s4255_s1 + $0x1c0] sm:$0xf]  ;;  %v2679_v33 = vld [vmem:[%s4255_s1 + $0x1c4] sm:$0xf0]  ;;  %v2272_v36 = vld [vmem:[%s4255_s1 + $0x130] sm:$0xf] }
  0x18   :  { %2739 = vmatpush.bf16.msra.mxu2 %v2137_v34  ;;  %1043 = vmatpush.bf16.msra.mxu0 %v2137_v34  ;;  %v2417_v34 = vor.u32 %v2697_v28, %v2416_v25  ;;  %v2408_v37 = vld [vmem:[%s4255_s1 + $0x240] sm:$0xf]  ;;  %v2036_v38 = vld [vmem:[%s4256_s0 + $0x118] sm:$0xf]  ;;  %v2604_v39 = vld [vmem:[%s4256_s0 + $0x130] sm:$0xf0]  ;;  %v2345_v41 = vor.u32 %v2679_v33, %v2344_v32 }
  0x19   :  { %2747 = vmatpush.bf16.msra.mxu3 %v2201_v35  ;;  %1092 = vmatpush.bf16.msra.mxu1 %v2201_v35  ;;  %v2481_v35 = vor.u32 %v2713_v30, %v2480_v29  ;;  %v2472_v43 = vld [vmem:[%s4255_s1 + $0x2c0] sm:$0xf]  ;;  %v2711_v44 = vld [vmem:[%s4255_s1 + $0x2c4] sm:$0xf0]  ;;  %v2601_v45 = vld [vmem:[%s4256_s0 + $0x11c] sm:$0xf] }
  0x1a   :  { %v2038_v46 = vld [vmem:[%s4256_s0 + $0x134] sm:$0xf0]  ;;  %v2336_v48 = vld [vmem:[%s4255_s1 + $0x1b0] sm:$0xf]  ;;  %v2576_v51 = vld [vmem:[%s4256_s0 + $0x50] sm:$0xf0]  ;;  %v2473_v55 = vor.u32 %v2711_v44, %v2472_v43 }
  0x1b   :  { %v2661_v47 = vld [vmem:[%s4255_s1 + $0x134] sm:$0xf0]  ;;  %v2573_v52 = vld [vmem:[%s4256_s0 + $0x3c] sm:$0xf]  ;;  %v2264_v56 = vld [vmem:[%s4255_s1 + $0x120] sm:$0xf]  ;;  %v3067_v6 = vor.u32 %v2601_v45, %v2038_v46 }
  0x1c   :  { %2740 = vmatpush.bf16.msra.mxu2 %v2129_v40  ;;  %1044 = vmatpush.bf16.msra.mxu0 %v2129_v40  ;;  %v2281_v40 = vor.u32 %v2663_v31, %v2280_v24  ;;  %v2677_v49 = vld [vmem:[%s4255_s1 + $0x1b4] sm:$0xf0]  ;;  %v2400_v57 = vld [vmem:[%s4255_s1 + $0x230] sm:$0xf]  ;;  %v2659_v1 = vld [vmem:[%s4255_s1 + $0x124] sm:$0xf0] }
  0x1d   :  { %2748 = vmatpush.bf16.msra.mxu3 %v2193_v42  ;;  %1093 = vmatpush.bf16.msra.mxu1 %v2193_v42  ;;  %v2695_v42 = vld [vmem:[%s4255_s1 + $0x244] sm:$0xf0]  ;;  %v1924_v50 = vld [vmem:[%s4256_s0 + $0x38] sm:$0xf]  ;;  %v2337_v59 = vor.u32 %v2677_v49, %v2336_v48  ;;  %v2464_v61 = vld [vmem:[%s4255_s1 + $0x2b0] sm:$0xf]  ;;  %v2265_v12 = vor.u32 %v2659_v1, %v2264_v56 }
  0x1e   :  { %v1926_v53 = vld [vmem:[%s4256_s0 + $0x54] sm:$0xf0]  ;;  %v3056_v0 = vor.u32 %v2576_v51, %v1924_v50  ;;  %v2328_v2 = vld [vmem:[%s4255_s1 + $0x1a0] sm:$0xf]  ;;  %v2675_v5 = vld [vmem:[%s4255_s1 + $0x1a4] sm:$0xf0] }
  0x1f   :  { %v2693_v60 = vld [vmem:[%s4255_s1 + $0x234] sm:$0xf0]  ;;  %v3069_v7 = vor.u32 %v2573_v52, %v1926_v53  ;;  %v2329_v13 = vor.u32 %v2675_v5, %v2328_v2  ;;  %v2320_v16 = vld [vmem:[%s4255_s1 + $0x190] sm:$0xf]  ;;  %v2392_v18 = vld [vmem:[%s4255_s1 + $0x220] sm:$0xf] }
  0x20   :  { %2741 = vmatpush.bf16.msra.mxu2 %v2121_v54  ;;  %1045 = vmatpush.bf16.msra.mxu0 %v2121_v54  ;;  %v2409_v54 = vor.u32 %v2695_v42, %v2408_v37  ;;  %v2673_v17 = vld [vmem:[%s4255_s1 + $0x194] sm:$0xf0]  ;;  %v2691_v21 = vld [vmem:[%s4255_s1 + $0x224] sm:$0xf0]  ;;  %v2312_v28 = vld [vmem:[%s4255_s1 + $0x180] sm:$0xf] }
  0x21   :  { %2749 = vmatpush.bf16.msra.mxu3 %v2185_v58  ;;  %1094 = vmatpush.bf16.msra.mxu1 %v2185_v58  ;;  %v2273_v58 = vor.u32 %v2661_v47, %v2272_v36  ;;  %v2321_v20 = vor.u32 %v2673_v17, %v2320_v16  ;;  %v2393_v24 = vor.u32 %v2691_v21, %v2392_v18  ;;  %v2671_v29 = vld [vmem:[%s4255_s1 + $0x184] sm:$0xf0]  ;;  %v2384_v30 = vld [vmem:[%s4255_s1 + $0x210] sm:$0xf]  ;;  %v2689_v31 = vld [vmem:[%s4255_s1 + $0x214] sm:$0xf0] }
  0x22   :  { %v2385_v32 = vor.u32 %v2689_v31, %v2384_v30  ;;  %v2448_v33 = vld [vmem:[%s4255_s1 + $0x290] sm:$0xf]  ;;  %v2313_v36 = vor.u32 %v2671_v29, %v2312_v28  ;;  %v2608_v42 = vld [vmem:[%s4256_s0 + $0x154] sm:$0xf]  ;;  %v2583_v44 = vld [vmem:[%s4256_s0 + $0x88] sm:$0xf0] }
  0x23   :  { %1066 = vmatmul.bf16.vlgmr.msra.gmra.mxu2 %v2922_v3  ;;  %1046 = vmatmul.bf16.vlgmr.msra.gmra.mxu0 %v2924_v4  ;;  %v1952_v43 = vld [vmem:[%s4256_s0 + $0x70] sm:$0xf]  ;;  %v2580_v46 = vld [vmem:[%s4256_s0 + $0x74] sm:$0xf]  ;;  %v2440_v53 = vld [vmem:[%s4255_s1 + $0x280] sm:$0xf] }
  0x24   :  { %1136 = vmatpush.bf16.msrb.mxu2 %v2305_v62  ;;  %1115 = vmatmul.bf16.vlgmr.msra.gmra.mxu3 %v2935_v8  ;;  %v2709_v62 = vld [vmem:[%s4255_s1 + $0x2b4] sm:$0xf0]  ;;  %v2066_v45 = vld [vmem:[%s4256_s0 + $0x16c] sm:$0xf0]  ;;  %v3155_v50 = vor.u32 %v2583_v44, %v1952_v43  ;;  %v2242_v1 = vld [vmem:[%s4255_s1 + $0xf8] sm:$0xf0] }
  0x25   :  { %1185 = vmatpush.bf16.msrb.mxu3 %v2369_v63  ;;  %1095 = vmatmul.bf16.vlgmr.msra.gmra.mxu1 %v2937_v9  ;;  %v3054_v63 = vor.u32 %v2604_v39, %v2036_v38  ;;  %v2376_v38 = vld [vmem:[%s4255_s1 + $0x200] sm:$0xf]  ;;  %v2687_v39 = vld [vmem:[%s4255_s1 + $0x204] sm:$0xf0]  ;;  %v1954_v47 = vld [vmem:[%s4256_s0 + $0x8c] sm:$0xf0]  ;;  %v3157_v51 = vor.u32 %v2608_v42, %v2066_v45 }
  0x26   :  { %1234 = vmatpush.bf16.msrb.mxu0 %v2433_v10  ;;  %1283 = vmatpush.bf16.msrb.mxu1 %v2497_v11  ;;  %v2401_v10 = vor.u32 %v2693_v60, %v2400_v57  ;;  %v2465_v11 = vor.u32 %v2709_v62, %v2464_v61  ;;  %v2377_v48 = vor.u32 %v2687_v39, %v2376_v38  ;;  %v2560_v56 = vld [vmem:[%s4255_s1 + $0x370] sm:$0xf]  ;;  %v2733_v57 = vld [vmem:[%s4255_s1 + $0x374] sm:$0xf0]  ;;  %v2178_v60 = vld [vmem:[%s4255_s1 + $0x78] sm:$0xf0] }
  0x27   :  { %v3159_v52 = vor.u32 %v2580_v46, %v1954_v47  ;;  %v2652_v62 = vld [vmem:[%s4255_s1 + $0xf4] sm:$0xf]  ;;  %v2590_v16 = vld [vmem:[%s4256_s0 + $0xc0] sm:$0xf0]  ;;  %v2094_v17 = vld [vmem:[%s4256_s0 + $0x1a4] sm:$0xf0] }
  0x28   :  { %1137 = vmatpush.bf16.msrb.mxu2 %v2297_v14  ;;  %v2256_v14 = vld [vmem:[%s4255_s1 + $0x110] sm:$0xf]  ;;  %v2668_v2 = vld [vmem:[%s4255_s1 + $0x174] sm:$0xf]  ;;  %v2245_v5 = vor.u32 %v2652_v62, %v2242_v1  ;;  %v2587_v18 = vld [vmem:[%s4256_s0 + $0xac] sm:$0xf] }
  0x29   :  { %1186 = vmatpush.bf16.msrb.mxu3 %v2361_v15  ;;  %v2657_v15 = vld [vmem:[%s4255_s1 + $0x114] sm:$0xf0]  ;;  %v2170_v28 = vld [vmem:[%s4255_s1 + $0x68] sm:$0xf0]  ;;  %v2650_v30 = vld [vmem:[%s4255_s1 + $0xe4] sm:$0xf] }
  0x2a   :  { %1235 = vmatpush.bf16.msrb.mxu0 %v2425_v22  ;;  %1284 = vmatpush.bf16.msrb.mxu1 %v2489_v23  ;;  %v2257_v19 = vor.u32 %v2657_v15, %v2256_v14  ;;  %v2456_v22 = vld [vmem:[%s4255_s1 + $0x2a0] sm:$0xf]  ;;  %v2707_v23 = vld [vmem:[%s4255_s1 + $0x2a4] sm:$0xf0]  ;;  %v2615_v14 = vld [vmem:[%s4256_s0 + $0x18c] sm:$0xf] }
  0x2b   :  { %v2457_v25 = vor.u32 %v2707_v23, %v2456_v22  ;;  %v1980_v15 = vld [vmem:[%s4256_s0 + $0xa8] sm:$0xf]  ;;  %v3223_v22 = vor.u32 %v2615_v14, %v2094_v17  ;;  %v2234_v31 = vld [vmem:[%s4255_s1 + $0xe8] sm:$0xf0]  ;;  %v1912_v39 = vld [vmem:[%s4256_s0 + $0x10] sm:$0xf] }
  0x2c   :  { %1138 = vmatpush.bf16.msrb.mxu2 %v2289_v26  ;;  %v2248_v26 = vld [vmem:[%s4255_s1 + $0x100] sm:$0xf]  ;;  %v3221_v21 = vor.u32 %v2590_v16, %v1980_v15  ;;  %v2567_v38 = vld [vmem:[%s4256_s0 + $0xc] sm:$0xf]  ;;  %v2568_v42 = vld [vmem:[%s4256_s0 + $0x14] sm:$0xf] }
  0x2d   :  { %1187 = vmatpush.bf16.msrb.mxu3 %v2353_v27  ;;  %v2655_v27 = vld [vmem:[%s4255_s1 + $0x104] sm:$0xf0]  ;;  %v1914_v43 = vld [vmem:[%s4256_s0 + $0x2c] sm:$0xf0]  ;;  %v2290_v62 = vld [vmem:[%s4255_s1 + $0x158] sm:$0xf0] }
  0x2e   :  { %1236 = vmatpush.bf16.msrb.mxu0 %v2417_v34  ;;  %1285 = vmatpush.bf16.msrb.mxu1 %v2481_v35  ;;  %v2705_v34 = vld [vmem:[%s4255_s1 + $0x294] sm:$0xf0]  ;;  %v2249_v35 = vor.u32 %v2655_v27, %v2248_v26  ;;  %v2634_v26 = vld [vmem:[%s4255_s1 + $0x64] sm:$0xf]  ;;  %v3285_v47 = vor.u32 %v2568_v42, %v1914_v43  ;;  %v2575_v14 = vld [vmem:[%s4256_s0 + $0x4c] sm:$0xf] }
  0x2f   :  { %v2449_v37 = vor.u32 %v2705_v34, %v2448_v33  ;;  %v2173_v29 = vor.u32 %v2634_v26, %v2170_v28  ;;  %v2237_v33 = vor.u32 %v2650_v30, %v2234_v31  ;;  %v2298_v34 = vld [vmem:[%s4255_s1 + $0x168] sm:$0xf0]  ;;  %v1942_v15 = vld [vmem:[%s4256_s0 + $0x64] sm:$0xf0]  ;;  %v2630_v26 = vld [vmem:[%s4255_s1 + $0x44] sm:$0xf] }
  0x30   :  { %1139 = vmatpush.bf16.msrb.mxu2 %v2281_v40  ;;  %v2064_v40 = vld [vmem:[%s4256_s0 + $0x150] sm:$0xf]  ;;  %v2154_v28 = vld [vmem:[%s4255_s1 + $0x48] sm:$0xf0]  ;;  %v2646_v30 = vld [vmem:[%s4255_s1 + $0xc4] sm:$0xf] }
  0x31   :  { %1188 = vmatpush.bf16.msrb.mxu3 %v2345_v41  ;;  %v2611_v41 = vld [vmem:[%s4256_s0 + $0x168] sm:$0xf0]  ;;  %v2582_v42 = vld [vmem:[%s4256_s0 + $0x84] sm:$0xf]  ;;  %v1970_v43 = vld [vmem:[%s4256_s0 + $0x9c] sm:$0xf0] }
  0x32   :  { %1237 = vmatpush.bf16.msrb.mxu0 %v2409_v54  ;;  %1286 = vmatpush.bf16.msrb.mxu1 %v2473_v55  ;;  %v3153_v49 = vor.u32 %v2611_v41, %v2064_v40  ;;  %v2703_v54 = vld [vmem:[%s4255_s1 + $0x284] sm:$0xf0]  ;;  %v2571_v40 = vld [vmem:[%s4256_s0 + $0x28] sm:$0xf0] }
  0x33   :  { %1071 = vmatmul.bf16.gmra.mxu2 %v3054_v63  ;;  %1051 = vmatmul.bf16.gmra.mxu0 %v3056_v0  ;;  %v2441_v55 = vor.u32 %v2703_v54, %v2440_v53  ;;  %v1906_v41 = vld [vmem:[%s4256_s0 + $0x24] sm:$0xf0]  ;;  %v3281_v45 = vor.u32 %v2571_v40, %v1912_v39  ;;  %v2729_v53 = vld [vmem:[%s4255_s1 + $0x354] sm:$0xf0]  ;;  %v2632_v54 = vld [vmem:[%s4255_s1 + $0x54] sm:$0xf] }
  0x34   :  { %1140 = vmatpush.bf16.msrb.mxu2 %v2273_v58  ;;  %1120 = vmatmul.bf16.gmra.mxu3 %v3067_v6  ;;  %v2636_v58 = vld [vmem:[%s4255_s1 + $0x74] sm:$0xf]  ;;  %v3283_v46 = vor.u32 %v2567_v38, %v1906_v41  ;;  %v2218_v31 = vld [vmem:[%s4255_s1 + $0xc8] sm:$0xf0]  ;;  %v2581_v38 = vld [vmem:[%s4256_s0 + $0x7c] sm:$0xf] }
  0x35   :  { %1189 = vmatpush.bf16.msrb.mxu3 %v2337_v59  ;;  %1100 = vmatmul.bf16.gmra.mxu1 %v3069_v7  ;;  %v2561_v59 = vor.u32 %v2733_v57, %v2560_v56  ;;  %v2181_v61 = vor.u32 %v2636_v58, %v2178_v60  ;;  %v2162_v56 = vld [vmem:[%s4255_s1 + $0x58] sm:$0xf0]  ;;  %v2648_v58 = vld [vmem:[%s4255_s1 + $0xd4] sm:$0xf]  ;;  %v1968_v39 = vld [vmem:[%s4256_s0 + $0x80] sm:$0xf] }
  0x36   :  { %1238 = vmatpush.bf16.msrb.mxu0 %v2401_v10  ;;  %1287 = vmatpush.bf16.msrb.mxu1 %v2465_v11  ;;  %v2306_v10 = vld [vmem:[%s4255_s1 + $0x178] sm:$0xf0]  ;;  %v2165_v57 = vor.u32 %v2632_v54, %v2162_v56  ;;  %v2664_v60 = vld [vmem:[%s4255_s1 + $0x154] sm:$0xf]  ;;  %v1962_v41 = vld [vmem:[%s4256_s0 + $0x94] sm:$0xf0] }
  0x37   :  { %v2309_v11 = vor.u32 %v2668_v2, %v2306_v10  ;;  %v2293_v1 = vor.u32 %v2664_v60, %v2290_v62  ;;  %v1932_v2 = vld [vmem:[%s4256_s0 + $0x40] sm:$0xf]  ;;  %v2574_v10 = vld [vmem:[%s4256_s0 + $0x44] sm:$0xf]  ;;  %v2585_v40 = vld [vmem:[%s4256_s0 + $0x98] sm:$0xf0]  ;;  %v3403_v54 = vor.u32 %v2581_v38, %v1962_v41 }
  0x38   :  { %1141 = vmatpush.bf16.msrb.mxu2 %v2265_v12  ;;  %v2092_v12 = vld [vmem:[%s4256_s0 + $0x188] sm:$0xf]  ;;  %v2528_v56 = vld [vmem:[%s4255_s1 + $0x330] sm:$0xf]  ;;  %v2146_v60 = vld [vmem:[%s4255_s1 + $0x38] sm:$0xf0] }
  0x39   :  { %1190 = vmatpush.bf16.msrb.mxu3 %v2329_v13  ;;  %v2618_v13 = vld [vmem:[%s4256_s0 + $0x1a0] sm:$0xf0]  ;;  %v2644_v62 = vld [vmem:[%s4255_s1 + $0xb4] sm:$0xf] }
  0x3a   :  { %1239 = vmatpush.bf16.msrb.mxu0 %v2393_v24  ;;  %1288 = vmatpush.bf16.msrb.mxu1 %v2457_v25  ;;  %v2552_v24 = vld [vmem:[%s4255_s1 + $0x360] sm:$0xf]  ;;  %v2731_v25 = vld [vmem:[%s4255_s1 + $0x364] sm:$0xf0]  ;;  %v2642_v38 = vld [vmem:[%s4255_s1 + $0xa4] sm:$0xf] }
  0x3b   :  { %v2553_v27 = vor.u32 %v2731_v25, %v2552_v24  ;;  %v2536_v24 = vld [vmem:[%s4255_s1 + $0x340] sm:$0xf]  ;;  %v2727_v25 = vld [vmem:[%s4255_s1 + $0x344] sm:$0xf0]  ;;  %v2598_v41 = vld [vmem:[%s4256_s0 + $0x100] sm:$0xf0] }
  0x3c   :  { %1142 = vmatpush.bf16.msrb.mxu2 %v2257_v19  ;;  %v1982_v19 = vld [vmem:[%s4256_s0 + $0xc4] sm:$0xf0] }
  0x3d   :  { %1191 = vmatpush.bf16.msrb.mxu3 %v2321_v20  ;;  %v3219_v20 = vor.u32 %v2618_v13, %v2092_v12  ;;  %v3225_v23 = vor.u32 %v2587_v18, %v1982_v19  ;;  %v2578_v12 = vld [vmem:[%s4256_s0 + $0x60] sm:$0xf0]  ;;  %v1934_v13 = vld [vmem:[%s4256_s0 + $0x5c] sm:$0xf0]  ;;  %v3345_v19 = vor.u32 %v2575_v14, %v1942_v15  ;;  %v1990_v14 = vld [vmem:[%s4256_s0 + $0xcc] sm:$0xf0] }
  0x3e   :  { %1240 = vmatpush.bf16.msrb.mxu0 %v2385_v32  ;;  %1289 = vmatpush.bf16.msrb.mxu1 %v2449_v37  ;;  %v2666_v32 = vld [vmem:[%s4255_s1 + $0x164] sm:$0xf]  ;;  %v3343_v18 = vor.u32 %v2574_v10, %v1934_v13  ;;  %v2592_v13 = vld [vmem:[%s4256_s0 + $0xd0] sm:$0xf0]  ;;  %v2589_v15 = vld [vmem:[%s4256_s0 + $0xbc] sm:$0xf] }
  0x3f   :  { %v2570_v37 = vld [vmem:[%s4256_s0 + $0x20] sm:$0xf0] }
  0x40   :  { %1143 = vmatpush.bf16.msrb.mxu2 %v2249_v35  ;;  %v2301_v35 = vor.u32 %v2666_v32, %v2298_v34  ;;  %v2662_v32 = vld [vmem:[%s4255_s1 + $0x144] sm:$0xf]  ;;  %v2282_v34 = vld [vmem:[%s4255_s1 + $0x148] sm:$0xf0] }
  0x41   :  { %1192 = vmatpush.bf16.msrb.mxu3 %v2313_v36  ;;  %v1904_v36 = vld [vmem:[%s4256_s0 + $0x8] sm:$0xf] }
  0x42   :  { %1241 = vmatpush.bf16.msrb.mxu0 %v2377_v48  ;;  %1290 = vmatpush.bf16.msrb.mxu1 %v2441_v55  ;;  %v3279_v44 = vor.u32 %v2570_v37, %v1904_v36  ;;  %v2544_v48 = vld [vmem:[%s4255_s1 + $0x350] sm:$0xf]  ;;  %v1960_v36 = vld [vmem:[%s4256_s0 + $0x78] sm:$0xf]  ;;  %v2584_v37 = vld [vmem:[%s4256_s0 + $0x90] sm:$0xf0] }
  0x43   :  { %1076 = vmatmul.bf16.gmra.mxu2 %v3153_v49  ;;  %1056 = vmatmul.bf16.gmra.mxu0 %v3155_v50  ;;  %v2545_v55 = vor.u32 %v2729_v53, %v2544_v48  ;;  %v3399_v48 = vor.u32 %v2584_v37, %v1960_v36  ;;  %v3401_v53 = vor.u32 %v2585_v40, %v1968_v39  ;;  %v2138_v36 = vld [vmem:[%s4255_s1 + $0x28] sm:$0xf0]  ;;  %v2016_v40 = vld [vmem:[%s4256_s0 + $0xe8] sm:$0xf] }
  0x44   :  { %1125 = vmatmul.bf16.gmra.mxu3 %v3157_v51  ;;  %1332 = vmatpush.bf16.msra.mxu2 %v2561_v59  ;;  %v2226_v59 = vld [vmem:[%s4255_s1 + $0xd8] sm:$0xf0]  ;;  %v2202_v39 = vld [vmem:[%s4255_s1 + $0xa8] sm:$0xf0] }
  0x45   :  { %1105 = vmatmul.bf16.gmra.mxu1 %v3159_v52  ;;  %1381 = vmatpush.bf16.msra.mxu3 %v2181_v61  ;;  %v2229_v61 = vor.u32 %v2648_v58, %v2226_v59  ;;  %v2628_v58 = vld [vmem:[%s4255_s1 + $0x34] sm:$0xf] }
  0x46   :  { %1430 = vmatpush.bf16.msra.mxu0 %v2245_v5  ;;  %1479 = vmatpush.bf16.msra.mxu1 %v2309_v11  ;;  %v2577_v5 = vld [vmem:[%s4256_s0 + $0x58] sm:$0xf0]  ;;  %v1940_v11 = vld [vmem:[%s4256_s0 + $0x48] sm:$0xf] }
  0x47   :  { %v3339_v16 = vor.u32 %v2577_v5, %v1932_v2  ;;  %v3341_v17 = vor.u32 %v2578_v12, %v1940_v11  ;;  %v1988_v2 = vld [vmem:[%s4256_s0 + $0xb0] sm:$0xf]  ;;  %v2591_v5 = vld [vmem:[%s4256_s0 + $0xc8] sm:$0xf0]  ;;  %v2588_v11 = vld [vmem:[%s4256_s0 + $0xb4] sm:$0xf] }
  0x48   :  { %1333 = vmatpush.bf16.msra.mxu2 %v2553_v27  ;;  %v2537_v27 = vor.u32 %v2727_v25, %v2536_v24  ;;  %v1996_v12 = vld [vmem:[%s4256_s0 + $0xb8] sm:$0xf]  ;;  %v3453_v25 = vor.u32 %v2591_v5, %v1988_v2 }
  0x49   :  { %1382 = vmatpush.bf16.msra.mxu3 %v2173_v29  ;;  %v2157_v29 = vor.u32 %v2630_v26, %v2154_v28  ;;  %v1998_v24 = vld [vmem:[%s4256_s0 + $0xd4] sm:$0xf0]  ;;  %v3455_v26 = vor.u32 %v2592_v13, %v1996_v12 }
  0x4a   :  { %1431 = vmatpush.bf16.msra.mxu0 %v2237_v33  ;;  %1480 = vmatpush.bf16.msra.mxu1 %v2301_v35  ;;  %v2221_v33 = vor.u32 %v2646_v30, %v2218_v31  ;;  %v2285_v35 = vor.u32 %v2662_v32, %v2282_v34  ;;  %v3459_v28 = vor.u32 %v2589_v15, %v1998_v24  ;;  %v2274_v30 = vld [vmem:[%s4255_s1 + $0x138] sm:$0xf0]  ;;  %v2520_v32 = vld [vmem:[%s4255_s1 + $0x320] sm:$0xf]  ;;  %v2626_v34 = vld [vmem:[%s4255_s1 + $0x24] sm:$0xf] }
  0x4b   :  { %4275 = vst [vmem:[#allocation2_spill] sm:$0xff] %v3455_v26  ;;  %v2141_v37 = vor.u32 %v2626_v34, %v2138_v36  ;;  %v2512_v15 = vld [vmem:[%s4255_s1 + $0x310] sm:$0xf]  ;;  %v2721_v24 = vld [vmem:[%s4255_s1 + $0x314] sm:$0xf0] }
  0x4c   :  { %1334 = vmatpush.bf16.msra.mxu2 %v2545_v55  ;;  %v3405_v55 = vor.u32 %v2582_v42, %v1970_v43  ;;  %4277 = vst [vmem:[#allocation4_spill] sm:$0xff] %v3459_v28  ;;  %v2205_v42 = vor.u32 %v2642_v38, %v2202_v39  ;;  %v2595_v43 = vld [vmem:[%s4256_s0 + $0xec] sm:$0xf]  ;;  %v2640_v39 = vld [vmem:[%s4255_s1 + $0x94] sm:$0xf] }
  0x4d   :  { %1383 = vmatpush.bf16.msra.mxu3 %v2165_v57  ;;  %v2725_v57 = vld [vmem:[%s4255_s1 + $0x334] sm:$0xf0] }
  0x4e   :  { %1432 = vmatpush.bf16.msra.mxu0 %v2229_v61  ;;  %1481 = vmatpush.bf16.msra.mxu1 %v2293_v1  ;;  %v2529_v59 = vor.u32 %v2725_v57, %v2528_v56  ;;  %v2149_v61 = vor.u32 %v2628_v58, %v2146_v60  ;;  %v2210_v1 = vld [vmem:[%s4255_s1 + $0xb8] sm:$0xf0]  ;;  %v2024_v56 = vld [vmem:[%s4256_s0 + $0xf0] sm:$0xf]  ;;  %v2599_v57 = vld [vmem:[%s4256_s0 + $0x108] sm:$0xf0] }
  0x4f   :  { %v2213_v10 = vor.u32 %v2644_v62, %v2210_v1  ;;  %v2018_v58 = vld [vmem:[%s4256_s0 + $0x104] sm:$0xf0]  ;;  %v2026_v60 = vld [vmem:[%s4256_s0 + $0x10c] sm:$0xf0]  ;;  %v3515_v62 = vor.u32 %v2599_v57, %v2024_v56  ;;  %v2602_v56 = vld [vmem:[%s4256_s0 + $0x124] sm:$0xf] }
  0x50   :  { %1335 = vmatpush.bf16.msra.mxu2 %v2537_v27  ;;  %v3457_v27 = vor.u32 %v2588_v11, %v1990_v14  ;;  %v3517_v2 = vor.u32 %v2595_v43, %v2018_v58  ;;  %v2266_v11 = vld [vmem:[%s4255_s1 + $0x128] sm:$0xf0]  ;;  %v2052_v57 = vld [vmem:[%s4256_s0 + $0x128] sm:$0xf]  ;;  %v2606_v58 = vld [vmem:[%s4256_s0 + $0x140] sm:$0xf0] }
  0x51   :  { %1384 = vmatpush.bf16.msra.mxu3 %v2157_v29  ;;  %v2660_v29 = vld [vmem:[%s4255_s1 + $0x134] sm:$0xf]  ;;  %4278 = vst [vmem:[#allocation5_spill] sm:$0xff] %v3515_v62 }
  0x52   :  { %1433 = vmatpush.bf16.msra.mxu0 %v2221_v33  ;;  %1482 = vmatpush.bf16.msra.mxu1 %v2285_v35  ;;  %4276 = vst [vmem:[#allocation3_spill] sm:$0xff] %v3457_v27  ;;  %v2277_v31 = vor.u32 %v2660_v29, %v2274_v30  ;;  %v2723_v33 = vld [vmem:[%s4255_s1 + $0x324] sm:$0xf0]  ;;  %v2624_v29 = vld [vmem:[%s4255_s1 + $0x14] sm:$0xf]  ;;  %v2513_v30 = vor.u32 %v2721_v24, %v2512_v15 }
  0x53   :  { %1081 = vmatmul.bf16.gmra.mxu2 %v3219_v20  ;;  %1061 = vmatmul.bf16.gmra.mxu0 %v3221_v21  ;;  %v2521_v35 = vor.u32 %v2723_v33, %v2520_v32  ;;  %4279 = vst [vmem:[#allocation6_spill] sm:$0xff] %v3517_v2 }
  0x54   :  { %1130 = vmatmul.bf16.gmra.mxu3 %v3223_v22  ;;  %1336 = vmatpush.bf16.msra.mxu2 %v2529_v59  ;;  %v2596_v59 = vld [vmem:[%s4256_s0 + $0xf4] sm:$0xf] }
  0x55   :  { %1110 = vmatmul.bf16.gmra.mxu1 %v3225_v23  ;;  %1385 = vmatpush.bf16.msra.mxu3 %v2149_v61  ;;  %v3513_v61 = vor.u32 %v2598_v41, %v2016_v40  ;;  %v3519_v5 = vor.u32 %v2596_v59, %v2026_v60  ;;  %v2194_v40 = vld [vmem:[%s4255_s1 + $0x98] sm:$0xf0]  ;;  %v2044_v41 = vld [vmem:[%s4256_s0 + $0x120] sm:$0xf]  ;;  %v2603_v60 = vld [vmem:[%s4256_s0 + $0x12c] sm:$0xf] }
  0x56   :  { %1434 = vmatpush.bf16.msra.mxu0 %v2213_v10  ;;  %1483 = vmatpush.bf16.msra.mxu1 %v2277_v31  ;;  %v2658_v10 = vld [vmem:[%s4255_s1 + $0x124] sm:$0xf]  ;;  %v2130_v31 = vld [vmem:[%s4255_s1 + $0x18] sm:$0xf0]  ;;  %v2197_v43 = vor.u32 %v2640_v39, %v2194_v40  ;;  %v2046_v59 = vld [vmem:[%s4256_s0 + $0x13c] sm:$0xf0] }
  0x57   :  { %4280 = vst [vmem:[#allocation7_spill] sm:$0xff] %v3519_v5  ;;  %v2269_v13 = vor.u32 %v2658_v10, %v2266_v11  ;;  %v2133_v33 = vor.u32 %v2624_v29, %v2130_v31  ;;  %v3585_v29 = vor.u32 %v2602_v56, %v2046_v59  ;;  %v2656_v31 = vld [vmem:[%s4255_s1 + $0x114] sm:$0xf]  ;;  %v2719_v39 = vld [vmem:[%s4255_s1 + $0x304] sm:$0xf0] }
  0x58   :  { %1337 = vmatpush.bf16.msra.mxu2 %v2521_v35  ;;  %v2622_v40 = vld [vmem:[%s4255_s1 + $0x4] sm:$0xf] }
  0x59   :  { %1386 = vmatpush.bf16.msra.mxu3 %v2141_v37  ;;  %4282 = vst [vmem:[#allocation9_spill] sm:$0xff] %v3585_v29 }
  0x5a   :  { %1435 = vmatpush.bf16.msra.mxu0 %v2205_v42  ;;  %1484 = vmatpush.bf16.msra.mxu1 %v2269_v13  ;;  %v2605_v42 = vld [vmem:[%s4256_s0 + $0x138] sm:$0xf0]  ;;  %v3581_v13 = vor.u32 %v2606_v58, %v2052_v57 }
  0x5c   :  { %1338 = vmatpush.bf16.msra.mxu2 %v2513_v30  ;;  %4281 = vst [vmem:[#allocation8_spill] sm:$0xff] %v3581_v13 }
  0x5d   :  { %1387 = vmatpush.bf16.msra.mxu3 %v2133_v33 }
  0x5e   :  { %1436 = vmatpush.bf16.msra.mxu0 %v2197_v43 }
  0x63   :  { %1144 = vmatmul.bf16.vlgmr.msrb.gmra.mxu2 %v3279_v44  ;;  %1242 = vmatmul.bf16.vlgmr.msrb.gmra.mxu0 %v3281_v45 }
  0x64   :  { %1193 = vmatmul.bf16.vlgmr.msrb.gmra.mxu3 %v3283_v46 }
  0x65   :  { %1291 = vmatmul.bf16.vlgmr.msrb.gmra.mxu1 %v3285_v47 }
  0x73   :  { %1149 = vmatmul.bf16.gmra.mxu2 %v3339_v16  ;;  %1247 = vmatmul.bf16.gmra.mxu0 %v3341_v17 }
  0x74   :  { %1198 = vmatmul.bf16.gmra.mxu3 %v3343_v18 }
  0x75   :  { %1296 = vmatmul.bf16.gmra.mxu1 %v3345_v19 }
  0x83   :  { %1154 = vmatmul.bf16.gmra.mxu2 %v3399_v48  ;;  %1252 = vmatmul.bf16.gmra.mxu0 %v3401_v53 }
  0x84   :  { %1203 = vmatmul.bf16.gmra.mxu3 %v3403_v54 }
  0x85   :  { %1301 = vmatmul.bf16.gmra.mxu1 %v3405_v55 }
  0x93   :  { %1159 = vmatmul.bf16.gmra.mxu2 %v3453_v25  ;;  %1257 = vmatmul.bf16.gmra.mxu0 %v3455_v26 }
  0x94   :  { %1208 = vmatmul.bf16.gmra.mxu3 %v3457_v27 }
  0x95   :  { %1306 = vmatmul.bf16.gmra.mxu1 %v3459_v28 }
  0xa0   :  { %v1047_v1 = vpop.f32.mrf.mxu0 }
  0xa2   :  { %v1096_v12 = vpop.f32.mrf.mxu1 }
  0xa3   :  { %v3527_v14 = vadd.f32 %v1096_v12, %v1047_v1  ;;  %1164 = vmatmul.bf16.gmra.mxu2 %v3513_v61  ;;  %1262 = vmatmul.bf16.gmra.mxu0 %v3515_v62  ;;  %v2054_v1 = vld [vmem:[%s4256_s0 + $0x144] sm:$0xf0]  ;;  %v3579_v12 = vor.u32 %v2605_v42, %v2044_v41  ;;  %v2122_v42 = vld [vmem:[%s4255_s1 + $0x8] sm:$0xf0] }
  0xa4   :  { %1213 = vmatmul.bf16.gmra.mxu3 %v3517_v2  ;;  %v3587_v30 = vor.u32 %v2603_v60, %v2054_v1  ;;  %v2125_v56 = vor.u32 %v2622_v40, %v2122_v42  ;;  %v2610_v40 = vld [vmem:[%s4256_s0 + $0x164] sm:$0xf] }
  0xa5   :  { %1311 = vmatmul.bf16.gmra.mxu1 %v3519_v5 }
  0xa6   :  { %v1067_v32 = vpop.f32.mrf.mxu2  ;;  %4283 = vst [vmem:[#allocation10_spill] sm:$0xff] %v3587_v30  ;;  %1388 = vmatpush.bf16.msra.mxu3 %v2125_v56 }
  0xa7   :  { %v1116_v34 = vpop.f32.mrf.mxu3 }
  0xa8   :  { %v3545_v35 = vadd.f32 %v1116_v34, %v1067_v32  ;;  %v1049_v36 = vpop.f32.mrf.mxu0  ;;  %v2258_v32 = vld [vmem:[%s4255_s1 + $0x118] sm:$0xf0] }
  0xa9   :  { %v2261_v34 = vor.u32 %v2656_v31, %v2258_v32  ;;  %v2612_v31 = vld [vmem:[%s4256_s0 + $0x170] sm:$0xf0] }
  0xaa   :  { %v1098_v37 = vpop.f32.mrf.mxu1 }
  0xab   :  { %v3547_v38 = vadd.f32 %v1098_v37, %v1049_v36  ;;  %v2504_v37 = vld [vmem:[%s4255_s1 + $0x300] sm:$0xf]  ;;  %1485 = vmatpush.bf16.msra.mxu1 %v2261_v34 }
  0xac   :  { %v2505_v41 = vor.u32 %v2719_v39, %v2504_v37  ;;  %v2080_v34 = vld [vmem:[%s4256_s0 + $0x160] sm:$0xf]  ;;  %v2613_v37 = vld [vmem:[%s4256_s0 + $0x178] sm:$0xf0]  ;;  %v2074_v39 = vld [vmem:[%s4256_s0 + $0x174] sm:$0xf0] }
  0xae   :  { %v1069_v10 = vpop.f32.mrf.mxu2  ;;  %1339 = vmatpush.bf16.msra.mxu2 %v2505_v41  ;;  %v2082_v41 = vld [vmem:[%s4256_s0 + $0x17c] sm:$0xf0] }
  0xaf   :  { %v1118_v11 = vpop.f32.mrf.mxu3 }
  0xb0   :  { %v3583_v15 = vadd.f32 %v1118_v11, %v1069_v10  ;;  %v1052_v24 = vpop.f32.mrf.mxu0  ;;  %v2638_v10 = vld [vmem:[%s4255_s1 + $0x84] sm:$0xf]  ;;  %v2186_v11 = vld [vmem:[%s4255_s1 + $0x88] sm:$0xf0] }
  0xb1   :  { %v2189_v32 = vor.u32 %v2638_v10, %v2186_v11  ;;  %v3655_v11 = vor.u32 %v2610_v40, %v2082_v41 }
  0xb2   :  { %v1101_v33 = vpop.f32.mrf.mxu1 }
  0xb3   :  { %v3595_v36 = vadd.f32 %v1101_v33, %v1052_v24  ;;  %1169 = vmatmul.bf16.gmra.mxu2 %v3579_v12  ;;  %1267 = vmatmul.bf16.gmra.mxu0 %v3581_v13  ;;  %v2072_v24 = vld [vmem:[%s4256_s0 + $0x158] sm:$0xf]  ;;  %v2609_v33 = vld [vmem:[%s4256_s0 + $0x15c] sm:$0xf]  ;;  %4286 = vst [vmem:[#allocation13_spill] sm:$0xff] %v3655_v11 }
  0xb4   :  { %1218 = vmatmul.bf16.gmra.mxu3 %v3585_v29  ;;  %1437 = vmatpush.bf16.msra.mxu0 %v2189_v32  ;;  %v3647_v56 = vor.u32 %v2612_v31, %v2072_v24  ;;  %v3653_v10 = vor.u32 %v2609_v33, %v2074_v39  ;;  %v2654_v13 = vld [vmem:[%s4255_s1 + $0x104] sm:$0xf]  ;;  %v2250_v32 = vld [vmem:[%s4255_s1 + $0x108] sm:$0xf0]  ;;  %v2684_v33 = vld [vmem:[%s4255_s1 + $0x1f4] sm:$0xf] }
  0xb5   :  { %1316 = vmatmul.bf16.gmra.mxu1 %v3587_v30  ;;  %v2253_v24 = vor.u32 %v2654_v13, %v2250_v32  ;;  %v2700_v13 = vld [vmem:[%s4255_s1 + $0x274] sm:$0xf] }
  0xb6   :  { %v1072_v43 = vpop.f32.mrf.mxu2  ;;  %4285 = vst [vmem:[#allocation12_spill] sm:$0xff] %v3653_v10 }
  0xb7   :  { %v1121_v57 = vpop.f32.mrf.mxu3  ;;  %1486 = vmatpush.bf16.msra.mxu1 %v2253_v24  ;;  %v2100_v24 = vld [vmem:[%s4256_s0 + $0x190] sm:$0xf] }
  0xb8   :  { %v3613_v58 = vadd.f32 %v1121_v57, %v1072_v43  ;;  %v1054_v59 = vpop.f32.mrf.mxu0  ;;  %v3649_v57 = vor.u32 %v2613_v37, %v2080_v34  ;;  %v2370_v34 = vld [vmem:[%s4255_s1 + $0x1f8] sm:$0xf0] }
  0xb9   :  { %v2434_v37 = vld [vmem:[%s4255_s1 + $0x278] sm:$0xf0] }
  0xba   :  { %v1103_v60 = vpop.f32.mrf.mxu1  ;;  %4284 = vst [vmem:[#allocation11_spill] sm:$0xff] %v3649_v57  ;;  %v2437_v40 = vor.u32 %v2700_v13, %v2434_v37  ;;  %v2498_v13 = vld [vmem:[%s4255_s1 + $0x2f8] sm:$0xf0]  ;;  %v2108_v37 = vld [vmem:[%s4256_s0 + $0x198] sm:$0xf] }
  0xbb   :  { %v3615_v1 = vadd.f32 %v1103_v60, %v1054_v59 }
  0xbc   :  { %1577 = vmatpush.bf16.msrb.mxu3 %v2437_v40 }
  0xbe   :  { %v1074_v42 = vpop.f32.mrf.mxu2 }
  0xbf   :  { %v1123_v43 = vpop.f32.mrf.mxu3 }
  0xc0   :  { %v3651_v59 = vadd.f32 %v1123_v43, %v1074_v42  ;;  %v1057_v60 = vpop.f32.mrf.mxu0 }
  0xc2   :  { %v1106_v30 = vpop.f32.mrf.mxu1 }
  0xc3   :  { %v3663_v31 = vadd.f32 %v1106_v30, %v1057_v60  ;;  %1174 = vmatmul.bf16.gmra.mxu2 %v3647_v56  ;;  %1272 = vmatmul.bf16.gmra.mxu0 %v3649_v57  ;;  %v2373_v30 = vor.u32 %v2684_v33, %v2370_v34  ;;  %v2619_v33 = vld [vmem:[%s4256_s0 + $0x1a8] sm:$0xf0]  ;;  %v2716_v34 = vld [vmem:[%s4255_s1 + $0x2f4] sm:$0xf] }
  0xc4   :  { %1223 = vmatmul.bf16.gmra.mxu3 %v3653_v10  ;;  %v2501_v40 = vor.u32 %v2716_v34, %v2498_v13  ;;  %v3715_v10 = vor.u32 %v2619_v33, %v2100_v24  ;;  %v2732_v24 = vld [vmem:[%s4255_s1 + $0x374] sm:$0xf]  ;;  %v2362_v33 = vld [vmem:[%s4255_s1 + $0x1e8] sm:$0xf0] }
  0xc5   :  { %1321 = vmatmul.bf16.gmra.mxu1 %v3655_v11  ;;  %1528 = vmatpush.bf16.msrb.mxu2 %v2373_v30  ;;  %v2616_v30 = vld [vmem:[%s4256_s0 + $0x194] sm:$0xf] }
  0xc6   :  { %v1077_v39 = vpop.f32.mrf.mxu2  ;;  %1626 = vmatpush.bf16.msrb.mxu0 %v2501_v40 }
  0xc7   :  { %v1126_v41 = vpop.f32.mrf.mxu3 }
  0xc8   :  { %v3681_v42 = vadd.f32 %v1126_v41, %v1077_v39  ;;  %v1059_v43 = vpop.f32.mrf.mxu0  ;;  %v2620_v39 = vld [vmem:[%s4256_s0 + $0x1b0] sm:$0xf0]  ;;  %v2102_v41 = vld [vmem:[%s4256_s0 + $0x1ac] sm:$0xf0] }
  0xc9   :  { %v3717_v29 = vor.u32 %v2620_v39, %v2108_v37  ;;  %v3721_v62 = vor.u32 %v2616_v30, %v2102_v41  ;;  %v2698_v30 = vld [vmem:[%s4255_s1 + $0x264] sm:$0xf]  ;;  %v2426_v39 = vld [vmem:[%s4255_s1 + $0x268] sm:$0xf0] }
  0xca   :  { %v1108_v60 = vpop.f32.mrf.mxu1  ;;  %v2429_v41 = vor.u32 %v2698_v30, %v2426_v39  ;;  %v2572_v30 = vld [vmem:[%s4256_s0 + $0x30] sm:$0xf0] }
  0xcb   :  { %v3683_v32 = vadd.f32 %v1108_v60, %v1059_v43  ;;  %v2617_v43 = vld [vmem:[%s4256_s0 + $0x19c] sm:$0xf]  ;;  %v2110_v60 = vld [vmem:[%s4256_s0 + $0x1b4] sm:$0xf0]  ;;  %4287 = vst [vmem:[#allocation14_spill] sm:$0xff] %v3717_v29 }
  0xcc   :  { %4288 = vst [vmem:[#allocation15_spill] sm:$0xff] %v3721_v62  ;;  %v3723_v5 = vor.u32 %v2617_v43, %v2110_v60  ;;  %1578 = vmatpush.bf16.msrb.mxu3 %v2429_v41 }
  0xce   :  { %v1079_v57 = vpop.f32.mrf.mxu2  ;;  %4289 = vst [vmem:[#allocation16_spill] sm:$0xff] %v3723_v5 }
  0xcf   :  { %v1128_v11 = vpop.f32.mrf.mxu3 }
  0xd0   :  { %v3719_v34 = vadd.f32 %v1128_v11, %v1079_v57  ;;  %v1062_v13 = vpop.f32.mrf.mxu0  ;;  %v2562_v57 = vld [vmem:[%s4255_s1 + $0x378] sm:$0xf0] }
  0xd1   :  { %v2565_v11 = vor.u32 %v2732_v24, %v2562_v57 }
  0xd2   :  { %v1111_v2 = vpop.f32.mrf.mxu1 }
  0xd3   :  { %v3725_v26 = vadd.f32 %v1111_v2, %v1062_v13  ;;  %1179 = vmatmul.bf16.gmra.mxu2 %v3715_v10  ;;  %1277 = vmatmul.bf16.gmra.mxu0 %v3717_v29  ;;  %v2682_v2 = vld [vmem:[%s4255_s1 + $0x1e4] sm:$0xf] }
  0xd4   :  { %1228 = vmatmul.bf16.gmra.mxu3 %v3721_v62  ;;  %v2365_v37 = vor.u32 %v2682_v2, %v2362_v33  ;;  %1675 = vmatpush.bf16.msrb.mxu1 %v2565_v11  ;;  %v2714_v2 = vld [vmem:[%s4255_s1 + $0x2e4] sm:$0xf]  ;;  %v2490_v33 = vld [vmem:[%s4255_s1 + $0x2e8] sm:$0xf0]  ;;  %v1920_v11 = vld [vmem:[%s4256_s0 + $0x18] sm:$0xf] }
  0xd5   :  { %1326 = vmatmul.bf16.gmra.mxu1 %v3723_v5  ;;  %v3765_v41 = vor.u32 %v2572_v30, %v1920_v11  ;;  %v2730_v29 = vld [vmem:[%s4255_s1 + $0x364] sm:$0xf]  ;;  %v2680_v11 = vld [vmem:[%s4255_s1 + $0x1d4] sm:$0xf] }
  0xd6   :  { %v1082_v40 = vpop.f32.mrf.mxu2  ;;  %1529 = vmatpush.bf16.msrb.mxu2 %v2365_v37  ;;  %v2493_v37 = vor.u32 %v2714_v2, %v2490_v33  ;;  %v2554_v2 = vld [vmem:[%s4255_s1 + $0x368] sm:$0xf0]  ;;  %v2696_v30 = vld [vmem:[%s4255_s1 + $0x254] sm:$0xf] }
  0xd7   :  { %v1131_v43 = vpop.f32.mrf.mxu3  ;;  %v2557_v33 = vor.u32 %v2730_v29, %v2554_v2 }
  0xd8   :  { %v3749_v60 = vadd.f32 %v1131_v43, %v1082_v40  ;;  %v1064_v13 = vpop.f32.mrf.mxu0  ;;  %1627 = vmatpush.bf16.msrb.mxu0 %v2493_v37 }
  0xd9   :  { %1676 = vmatpush.bf16.msrb.mxu1 %v2557_v33  ;;  %v1948_v33 = vld [vmem:[%s4256_s0 + $0x50] sm:$0xf] }
  0xda   :  { %v1113_v24 = vpop.f32.mrf.mxu1 }
  0xdb   :  { %v3751_v57 = vadd.f32 %v1113_v24, %v1064_v13 }
  0xde   :  { %v1084_v39 = vpop.f32.mrf.mxu2 }
  0xdf   :  { %v1133_v40 = vpop.f32.mrf.mxu3 }
  0xe0   :  { %v3767_v43 = vadd.f32 %v1133_v40, %v1084_v39  ;;  %v1243_v13 = vpop.f32.mrf.mxu0 }
  0xe2   :  { %v1292_v24 = vpop.f32.mrf.mxu1 }
  0xe3   :  { %1340 = vmatmul.bf16.vlgmr.msra.gmra.mxu2 %v3765_v41  ;;  %1438 = vmatmul.bf16.vlgmr.msra.gmra.mxu0 %v2937_v9  ;;  %v2354_v9 = vld [vmem:[%s4255_s1 + $0x1d8] sm:$0xf0] }
  0xe4   :  { %1389 = vmatmul.bf16.vlgmr.msra.gmra.mxu3 %v2924_v4  ;;  %v2357_v37 = vor.u32 %v2680_v11, %v2354_v9  ;;  %v2418_v4 = vld [vmem:[%s4255_s1 + $0x258] sm:$0xf0]  ;;  %v2712_v11 = vld [vmem:[%s4255_s1 + $0x2d4] sm:$0xf] }
  0xe5   :  { %1487 = vmatmul.bf16.vlgmr.msra.gmra.mxu1 %v3279_v44  ;;  %v2421_v44 = vor.u32 %v2696_v30, %v2418_v4  ;;  %v2482_v9 = vld [vmem:[%s4255_s1 + $0x2d8] sm:$0xf0] }
  0xe6   :  { %v1145_v39 = vpop.f32.mrf.mxu2  ;;  %1530 = vmatpush.bf16.msrb.mxu2 %v2357_v37  ;;  %v2485_v30 = vor.u32 %v2712_v11, %v2482_v9  ;;  %v2694_v11 = vld [vmem:[%s4255_s1 + $0x244] sm:$0xf] }
  0xe7   :  { %v1146_v29 = vadd.f32 %v1145_v39, %v3527_v14  ;;  %v1194_v40 = vpop.f32.mrf.mxu3  ;;  %1579 = vmatpush.bf16.msrb.mxu3 %v2421_v44  ;;  %v2579_v14 = vld [vmem:[%s4256_s0 + $0x68] sm:$0xf0] }
  0xe8   :  { %v1245_v2 = vpop.f32.mrf.mxu0  ;;  %1628 = vmatpush.bf16.msrb.mxu0 %v2485_v30  ;;  %v3807_v39 = vor.u32 %v2579_v14, %v1948_v33 }
  0xe9   :  { %v1195_v5 = vadd.f32 %v1194_v40, %v1146_v29 }
  0xea   :  { %v1294_v62 = vpop.f32.mrf.mxu1 }
  0xeb   :  { %v1244_v28 = vadd.f32 %v1243_v13, %v1195_v5 }
  0xed   :  { %v3804_v37 = vadd.f32 %v1292_v24, %v1244_v28  ;;  %v2728_v28 = vld [vmem:[%s4255_s1 + $0x354] sm:$0xf]  ;;  %v2546_v24 = vld [vmem:[%s4255_s1 + $0x358] sm:$0xf0] }
  0xee   :  { %v1147_v5 = vpop.f32.mrf.mxu2 }
  0xef   :  { %v1148_v13 = vadd.f32 %v1147_v5, %v3547_v38  ;;  %v1196_v4 = vpop.f32.mrf.mxu3  ;;  %v2549_v38 = vor.u32 %v2728_v28, %v2546_v24  ;;  %v2710_v24 = vld [vmem:[%s4255_s1 + $0x2c4] sm:$0xf] }
  0xf0   :  { %v1248_v44 = vpop.f32.mrf.mxu0 }
  0xf1   :  { %v1197_v29 = vadd.f32 %v1196_v4, %v1148_v13  ;;  %1677 = vmatpush.bf16.msrb.mxu1 %v2549_v38 }
  0xf2   :  { %v1297_v40 = vpop.f32.mrf.mxu1 }
  0xf3   :  { %v1246_v27 = vadd.f32 %v1245_v2, %v1197_v29  ;;  %1345 = vmatmul.bf16.gmra.mxu2 %v3807_v39  ;;  %1443 = vmatmul.bf16.gmra.mxu0 %v3069_v7  ;;  %v2678_v2 = vld [vmem:[%s4255_s1 + $0x1c4] sm:$0xf]  ;;  %v2346_v7 = vld [vmem:[%s4255_s1 + $0x1c8] sm:$0xf0] }
  0xf4   :  { %1394 = vmatmul.bf16.gmra.mxu3 %v3056_v0  ;;  %v2349_v9 = vor.u32 %v2678_v2, %v2346_v7  ;;  %v2410_v0 = vld [vmem:[%s4255_s1 + $0x248] sm:$0xf0] }
  0xf5   :  { %1492 = vmatmul.bf16.gmra.mxu1 %v3339_v16  ;;  %v3831_v33 = vadd.f32 %v1294_v62, %v1246_v27  ;;  %v2413_v14 = vor.u32 %v2694_v11, %v2410_v0  ;;  %v2474_v27 = vld [vmem:[%s4255_s1 + $0x2c8] sm:$0xf0]  ;;  %v1976_v62 = vld [vmem:[%s4256_s0 + $0x88] sm:$0xf] }
  0xf6   :  { %v1150_v16 = vpop.f32.mrf.mxu2  ;;  %1531 = vmatpush.bf16.msrb.mxu2 %v2349_v9  ;;  %v2477_v38 = vor.u32 %v2710_v24, %v2474_v27 }
  0xf7   :  { %v1151_v30 = vadd.f32 %v1150_v16, %v3595_v36  ;;  %v1199_v5 = vpop.f32.mrf.mxu3  ;;  %1580 = vmatpush.bf16.msrb.mxu3 %v2413_v14  ;;  %v2586_v36 = vld [vmem:[%s4256_s0 + $0xa0] sm:$0xf0] }
  0xf8   :  { %v1250_v13 = vpop.f32.mrf.mxu0  ;;  %1629 = vmatpush.bf16.msrb.mxu0 %v2477_v38  ;;  %v3849_v9 = vor.u32 %v2586_v36, %v1976_v62 }
  0xf9   :  { %v1200_v4 = vadd.f32 %v1199_v5, %v1151_v30  ;;  %v2538_v5 = vld [vmem:[%s4255_s1 + $0x348] sm:$0xf0] }
  0xfa   :  { %v1299_v29 = vpop.f32.mrf.mxu1 }
  0xfb   :  { %v1249_v28 = vadd.f32 %v1248_v44, %v1200_v4  ;;  %v2692_v4 = vld [vmem:[%s4255_s1 + $0x234] sm:$0xf] }
  0xfd   :  { %v3846_v2 = vadd.f32 %v1297_v40, %v1249_v28  ;;  %v2726_v40 = vld [vmem:[%s4255_s1 + $0x344] sm:$0xf] }
  0xfe   :  { %v1152_v44 = vpop.f32.mrf.mxu2 }
  0xff   :  { %v1153_v7 = vadd.f32 %v1152_v44, %v3615_v1  ;;  %v1201_v11 = vpop.f32.mrf.mxu3  ;;  %v2541_v1 = vor.u32 %v2726_v40, %v2538_v5 }
 0x100   :  { %v1253_v0 = vpop.f32.mrf.mxu0 }
 0x101   :  { %v1202_v16 = vadd.f32 %v1201_v11, %v1153_v7  ;;  %1678 = vmatpush.bf16.msrb.mxu1 %v2541_v1 }
 0x102   :  { %v1302_v14 = vpop.f32.mrf.mxu1 }
 0x103   :  { %v1251_v30 = vadd.f32 %v1250_v13, %v1202_v16  ;;  %1350 = vmatmul.bf16.gmra.mxu2 %v3849_v9  ;;  %1448 = vmatmul.bf16.gmra.mxu0 %v3159_v52  ;;  %v2676_v13 = vld [vmem:[%s4255_s1 + $0x1b4] sm:$0xf]  ;;  %v2338_v52 = vld [vmem:[%s4255_s1 + $0x1b8] sm:$0xf0] }
 0x104   :  { %1399 = vmatmul.bf16.gmra.mxu3 %v3155_v50  ;;  %v2341_v28 = vor.u32 %v2676_v13, %v2338_v52  ;;  %v2402_v50 = vld [vmem:[%s4255_s1 + $0x238] sm:$0xf0]  ;;  %v2708_v16 = vld [vmem:[%s4255_s1 + $0x2b4] sm:$0xf] }
 0x105   :  { %1497 = vmatmul.bf16.gmra.mxu1 %v3399_v48  ;;  %v3873_v24 = vadd.f32 %v1299_v29, %v1251_v30  ;;  %v2405_v27 = vor.u32 %v2692_v4, %v2402_v50  ;;  %v2466_v29 = vld [vmem:[%s4255_s1 + $0x2b8] sm:$0xf0]  ;;  %v2004_v30 = vld [vmem:[%s4256_s0 + $0xc0] sm:$0xf] }
 0x106   :  { %v1155_v48 = vpop.f32.mrf.mxu2  ;;  %1532 = vmatpush.bf16.msrb.mxu2 %v2341_v28  ;;  %v2469_v40 = vor.u32 %v2708_v16, %v2466_v29 }
 0x107   :  { %v1156_v62 = vadd.f32 %v1155_v48, %v3663_v31  ;;  %v1204_v36 = vpop.f32.mrf.mxu3  ;;  %1581 = vmatpush.bf16.msrb.mxu3 %v2405_v27  ;;  %v2593_v31 = vld [vmem:[%s4256_s0 + $0xd8] sm:$0xf0] }
 0x108   :  { %v1255_v38 = vpop.f32.mrf.mxu0  ;;  %1630 = vmatpush.bf16.msrb.mxu0 %v2469_v40  ;;  %v3891_v52 = vor.u32 %v2593_v31, %v2004_v30  ;;  %v2530_v27 = vld [vmem:[%s4255_s1 + $0x338] sm:$0xf0] }
 0x109   :  { %v1205_v44 = vadd.f32 %v1204_v36, %v1156_v62  ;;  %v2674_v62 = vld [vmem:[%s4255_s1 + $0x1a4] sm:$0xf] }
 0x10a   :  { %v1304_v7 = vpop.f32.mrf.mxu1  ;;  %v2690_v36 = vld [vmem:[%s4255_s1 + $0x224] sm:$0xf] }
 0x10b   :  { %v1254_v11 = vadd.f32 %v1253_v0, %v1205_v44 }
 0x10d   :  { %v3888_v5 = vadd.f32 %v1302_v14, %v1254_v11  ;;  %v2724_v14 = vld [vmem:[%s4255_s1 + $0x334] sm:$0xf] }
 0x10e   :  { %v1157_v0 = vpop.f32.mrf.mxu2 }
 0x10f   :  { %v1158_v1 = vadd.f32 %v1157_v0, %v3683_v32  ;;  %v1206_v13 = vpop.f32.mrf.mxu3  ;;  %v2533_v32 = vor.u32 %v2724_v14, %v2530_v27 }
 0x110   :  { %v1258_v4 = vpop.f32.mrf.mxu0 }
 0x111   :  { %v1207_v28 = vadd.f32 %v1206_v13, %v1158_v1  ;;  %1679 = vmatpush.bf16.msrb.mxu1 %v2533_v32  ;;  %v2706_v1 = vld [vmem:[%s4255_s1 + $0x2a4] sm:$0xf]  ;;  %v2032_v13 = vld [vmem:[%s4256_s0 + $0xf8] sm:$0xf] }
 0x112   :  { %v1307_v50 = vpop.f32.mrf.mxu1 }
 0x113   :  { %v1256_v48 = vadd.f32 %v1255_v38, %v1207_v28  ;;  %1355 = vmatmul.bf16.gmra.mxu2 %v3891_v52  ;;  %1453 = vmatmul.bf16.gmra.mxu0 %v3225_v23  ;;  %v2330_v23 = vld [vmem:[%s4255_s1 + $0x1a8] sm:$0xf0] }
 0x114   :  { %1404 = vmatmul.bf16.gmra.mxu3 %v3221_v21  ;;  %v2333_v38 = vor.u32 %v2674_v62, %v2330_v23  ;;  %v2394_v21 = vld [vmem:[%s4255_s1 + $0x228] sm:$0xf0] }
 0x115   :  { %1502 = vmatmul.bf16.gmra.mxu1 %v3453_v25  ;;  %v3915_v44 = vadd.f32 %v1304_v7, %v1256_v48  ;;  %v2397_v11 = vor.u32 %v2690_v36, %v2394_v21  ;;  %v2458_v7 = vld [vmem:[%s4255_s1 + $0x2a8] sm:$0xf0] }
 0x116   :  { %v1160_v25 = vpop.f32.mrf.mxu2  ;;  %1533 = vmatpush.bf16.msrb.mxu2 %v2333_v38  ;;  %v2461_v28 = vor.u32 %v2706_v1, %v2458_v7  ;;  %v2522_v21 = vld [vmem:[%s4255_s1 + $0x328] sm:$0xf0] }
 0x117   :  { %v1161_v16 = vadd.f32 %v1160_v25, %v3725_v26  ;;  %v1209_v29 = vpop.f32.mrf.mxu3  ;;  %1582 = vmatpush.bf16.msrb.mxu3 %v2397_v11  ;;  %v2600_v26 = vld [vmem:[%s4256_s0 + $0x110] sm:$0xf0] }
 0x118   :  { %v1260_v30 = vpop.f32.mrf.mxu0  ;;  %1631 = vmatpush.bf16.msrb.mxu0 %v2461_v28  ;;  %v3933_v32 = vor.u32 %v2600_v26, %v2032_v13  ;;  %v2672_v25 = vld [vmem:[%s4255_s1 + $0x194] sm:$0xf] }
 0x119   :  { %v1210_v31 = vadd.f32 %v1209_v29, %v1161_v16  ;;  %v2688_v11 = vld [vmem:[%s4255_s1 + $0x214] sm:$0xf] }
 0x11a   :  { %v1309_v40 = vpop.f32.mrf.mxu1  ;;  %v2704_v28 = vld [vmem:[%s4255_s1 + $0x294] sm:$0xf] }
 0x11b   :  { %v1259_v0 = vadd.f32 %v1258_v4, %v1210_v31 }
 0x11d   :  { %v3930_v48 = vadd.f32 %v1307_v50, %v1259_v0  ;;  %v2722_v50 = vld [vmem:[%s4255_s1 + $0x324] sm:$0xf] }
 0x11e   :  { %v1162_v4 = vpop.f32.mrf.mxu2 }
 0x11f   :  { %v1163_v14 = vadd.f32 %v1162_v4, %v3751_v57  ;;  %v1211_v27 = vpop.f32.mrf.mxu3  ;;  %v2525_v57 = vor.u32 %v2722_v50, %v2522_v21  ;;  %v2060_v4 = vld [vmem:[%s4256_s0 + $0x130] sm:$0xf] }
 0x120   :  { %v1263_v62 = vpop.f32.mrf.mxu0 }
 0x121   :  { %v1212_v23 = vadd.f32 %v1211_v27, %v1163_v14  ;;  %1680 = vmatpush.bf16.msrb.mxu1 %v2525_v57 }
 0x122   :  { %v1312_v36 = vpop.f32.mrf.mxu1 }
 0x123   :  { %v1261_v38 = vadd.f32 %v1260_v30, %v1212_v23  ;;  %1360 = vmatmul.bf16.gmra.mxu2 %v3933_v32  ;;  %1458 = vmatmul.bf16.gmra.mxu0 %v2935_v8  ;;  %v2322_v8 = vld [vmem:[%s4255_s1 + $0x198] sm:$0xf0] }
 0x124   :  { %1409 = vmatmul.bf16.gmra.mxu3 %v2922_v3  ;;  %v2325_v16 = vor.u32 %v2672_v25, %v2322_v8  ;;  %v2386_v3 = vld [vmem:[%s4255_s1 + $0x218] sm:$0xf0] }
 0x125   :  { %1507 = vmatmul.bf16.gmra.mxu1 %v3513_v61  ;;  %v3957_v29 = vadd.f32 %v1309_v40, %v1261_v38  ;;  %v2389_v30 = vor.u32 %v2688_v11, %v2386_v3  ;;  %v2450_v40 = vld [vmem:[%s4255_s1 + $0x298] sm:$0xf0]  ;;  %v2686_v3 = vld [vmem:[%s4255_s1 + $0x204] sm:$0xf] }
 0x126   :  { %v1165_v61 = vpop.f32.mrf.mxu2  ;;  %1534 = vmatpush.bf16.msrb.mxu2 %v2325_v16  ;;  %v2453_v14 = vor.u32 %v2704_v28, %v2450_v40  ;;  %v2514_v11 = vld [vmem:[%s4255_s1 + $0x318] sm:$0xf0]  ;;  %v2670_v16 = vld [vmem:[%s4255_s1 + $0x184] sm:$0xf] }
 0x127   :  { %v1166_v31 = vadd.f32 %v1165_v61, %v3545_v35  ;;  %v1214_v0 = vpop.f32.mrf.mxu3  ;;  %1583 = vmatpush.bf16.msrb.mxu3 %v2389_v30  ;;  %v2607_v35 = vld [vmem:[%s4256_s0 + $0x148] sm:$0xf0] }
 0x128   :  { %v1265_v1 = vpop.f32.mrf.mxu0  ;;  %1632 = vmatpush.bf16.msrb.mxu0 %v2453_v14  ;;  %v3975_v50 = vor.u32 %v2607_v35, %v2060_v4  ;;  %v2702_v4 = vld [vmem:[%s4255_s1 + $0x284] sm:$0xf]  ;;  %v2088_v35 = vld [vmem:[%s4256_s0 + $0x168] sm:$0xf] }
 0x129   :  { %v1215_v7 = vadd.f32 %v1214_v0, %v1166_v31 }
 0x12a   :  { %v1314_v13 = vpop.f32.mrf.mxu1 }
 0x12b   :  { %v1264_v26 = vadd.f32 %v1263_v62, %v1215_v7 }
 0x12d   :  { %v3972_v27 = vadd.f32 %v1312_v36, %v1264_v26  ;;  %v2720_v36 = vld [vmem:[%s4255_s1 + $0x314] sm:$0xf] }
 0x12e   :  { %v1167_v62 = vpop.f32.mrf.mxu2 }
 0x12f   :  { %v1168_v23 = vadd.f32 %v1167_v62, %v3583_v15  ;;  %v1216_v38 = vpop.f32.mrf.mxu3  ;;  %v2517_v15 = vor.u32 %v2720_v36, %v2514_v11 }
 0x130   :  { %v1268_v21 = vpop.f32.mrf.mxu0 }
 0x131   :  { %v1217_v57 = vadd.f32 %v1216_v38, %v1168_v23  ;;  %1681 = vmatpush.bf16.msrb.mxu1 %v2517_v15  ;;  %v2718_v15 = vld [vmem:[%s4255_s1 + $0x304] sm:$0xf] }
 0x132   :  { %v1317_v25 = vpop.f32.mrf.mxu1 }
 0x133   :  { %v1266_v8 = vadd.f32 %v1265_v1, %v1217_v57  ;;  %1365 = vmatmul.bf16.gmra.mxu2 %v3975_v50  ;;  %1463 = vmatmul.bf16.gmra.mxu0 %v3067_v6  ;;  %v2314_v6 = vld [vmem:[%s4255_s1 + $0x188] sm:$0xf0] }
 0x134   :  { %1414 = vmatmul.bf16.gmra.mxu3 %v3054_v63  ;;  %v2317_v61 = vor.u32 %v2670_v16, %v2314_v6  ;;  %v2378_v63 = vld [vmem:[%s4255_s1 + $0x208] sm:$0xf0] }
 0x135   :  { %1512 = vmatmul.bf16.gmra.mxu1 %v3579_v12  ;;  %v3999_v30 = vadd.f32 %v1314_v13, %v1266_v8  ;;  %v2381_v31 = vor.u32 %v2686_v3, %v2378_v63  ;;  %v2442_v13 = vld [vmem:[%s4255_s1 + $0x288] sm:$0xf0] }
 0x136   :  { %v1170_v12 = vpop.f32.mrf.mxu2  ;;  %1535 = vmatpush.bf16.msrb.mxu2 %v2317_v61  ;;  %v2445_v14 = vor.u32 %v2702_v4, %v2442_v13  ;;  %v2506_v16 = vld [vmem:[%s4255_s1 + $0x308] sm:$0xf0] }
 0x137   :  { %v1171_v0 = vadd.f32 %v1170_v12, %v3613_v58  ;;  %v1219_v1 = vpop.f32.mrf.mxu3  ;;  %1584 = vmatpush.bf16.msrb.mxu3 %v2381_v31  ;;  %v2614_v58 = vld [vmem:[%s4256_s0 + $0x180] sm:$0xf0] }
 0x138   :  { %v1270_v7 = vpop.f32.mrf.mxu0  ;;  %1633 = vmatpush.bf16.msrb.mxu0 %v2445_v14  ;;  %v4017_v57 = vor.u32 %v2614_v58, %v2088_v35 }
 0x139   :  { %v1220_v26 = vadd.f32 %v1219_v1, %v1171_v0 }
 0x13a   :  { %v1319_v28 = vpop.f32.mrf.mxu1 }
 0x13b   :  { %v1269_v40 = vadd.f32 %v1268_v21, %v1220_v26 }
 0x13d   :  { %v4014_v62 = vadd.f32 %v1317_v25, %v1269_v40 }
 0x13e   :  { %v1172_v23 = vpop.f32.mrf.mxu2 }
 0x13f   :  { %v1173_v38 = vadd.f32 %v1172_v23, %v3651_v59  ;;  %v1221_v21 = vpop.f32.mrf.mxu3  ;;  %v2509_v59 = vor.u32 %v2718_v15, %v2506_v16 }
 0x140   :  { %v1273_v8 = vpop.f32.mrf.mxu0 }
 0x141   :  { %v1222_v36 = vadd.f32 %v1221_v21, %v1173_v38  ;;  %1682 = vmatpush.bf16.msrb.mxu1 %v2509_v59 }
 0x142   :  { %v1322_v11 = vpop.f32.mrf.mxu1 }
 0x143   :  { %v1271_v25 = vadd.f32 %v1270_v7, %v1222_v36  ;;  %1370 = vmatmul.bf16.gmra.mxu2 %v4017_v57  ;;  %1468 = vmatmul.bf16.gmra.mxu0 %v3157_v51  ;;  %v2116_v51 = vld [vmem:[%s4256_s0 + $0x1a0] sm:$0xf] }
 0x144   :  { %1419 = vmatmul.bf16.gmra.mxu3 %v3153_v49  ;;  %v2621_v49 = vld [vmem:[%s4256_s0 + $0x1b8] sm:$0xf0] }
 0x145   :  { %1517 = vmatmul.bf16.gmra.mxu1 %v3647_v56  ;;  %v4029_v6 = vadd.f32 %v1319_v28, %v1271_v25 }
 0x146   :  { %v1175_v3 = vpop.f32.mrf.mxu2 }
 0x147   :  { %v1176_v61 = vadd.f32 %v1175_v3, %v3681_v42  ;;  %v1224_v63 = vpop.f32.mrf.mxu3  ;;  %v4041_v42 = vor.u32 %v2621_v49, %v2116_v51 }
 0x148   :  { %v1275_v12 = vpop.f32.mrf.mxu0 }
 0x149   :  { %v1225_v31 = vadd.f32 %v1224_v63, %v1176_v61 }
 0x14a   :  { %v1324_v0 = vpop.f32.mrf.mxu1 }
 0x14b   :  { %v1274_v1 = vadd.f32 %v1273_v8, %v1225_v31 }
 0x14d   :  { %v4038_v56 = vadd.f32 %v1322_v11, %v1274_v1 }
 0x14e   :  { %v1177_v7 = vpop.f32.mrf.mxu2 }
 0x14f   :  { %v1178_v26 = vadd.f32 %v1177_v7, %v3719_v34  ;;  %v1226_v28 = vpop.f32.mrf.mxu3 }
 0x150   :  { %v1278_v40 = vpop.f32.mrf.mxu0 }
 0x151   :  { %v1227_v4 = vadd.f32 %v1226_v28, %v1178_v26 }
 0x152   :  { %v1327_v13 = vpop.f32.mrf.mxu1 }
 0x153   :  { %v1276_v35 = vadd.f32 %v1275_v12, %v1227_v4  ;;  %1375 = vmatmul.bf16.gmra.mxu2 %v4041_v42  ;;  %1473 = vmatmul.bf16.gmra.mxu0 %v3223_v22 }
 0x154   :  { %1424 = vmatmul.bf16.gmra.mxu3 %v3219_v20 }
 0x155   :  { %1522 = vmatmul.bf16.gmra.mxu1 %v3715_v10  ;;  %v4047_v58 = vadd.f32 %v1324_v0, %v1276_v35 }
 0x156   :  { %v1180_v14 = vpop.f32.mrf.mxu2 }
 0x157   :  { %v1181_v34 = vadd.f32 %v1180_v14, %v3749_v60  ;;  %v1229_v23 = vpop.f32.mrf.mxu3 }
 0x158   :  { %v1280_v38 = vpop.f32.mrf.mxu0 }
 0x159   :  { %v1230_v21 = vadd.f32 %v1229_v23, %v1181_v34 }
 0x15a   :  { %v1329_v8 = vpop.f32.mrf.mxu1 }
 0x15b   :  { %v1279_v36 = vadd.f32 %v1278_v40, %v1230_v21 }
 0x15d   :  { %v4050_v11 = vadd.f32 %v1327_v13, %v1279_v36 }
 0x15e   :  { %v1182_v15 = vpop.f32.mrf.mxu2 }
 0x15f   :  { %v1183_v16 = vadd.f32 %v1182_v15, %v3767_v43  ;;  %v1231_v22 = vpop.f32.mrf.mxu3 }
 0x160   :  { %v1439_v25 = vpop.f32.mrf.mxu0 }
 0x161   :  { %v1232_v20 = vadd.f32 %v1231_v22, %v1183_v16 }
 0x162   :  { %v1488_v59 = vpop.f32.mrf.mxu1 }
 0x163   :  { %v1281_v10 = vadd.f32 %v1280_v38, %v1232_v20  ;;  %1536 = vmatmul.bf16.vlgmr.msrb.gmra.mxu2 %v3283_v46  ;;  %1634 = vmatmul.bf16.vlgmr.msrb.gmra.mxu0 %v3285_v47 }
 0x164   :  { %1585 = vmatmul.bf16.vlgmr.msrb.gmra.mxu3 %v3281_v45 }
 0x165   :  { %1683 = vmatmul.bf16.vlgmr.msrb.gmra.mxu1 %v3765_v41  ;;  %v4057_v60 = vadd.f32 %v1329_v8, %v1281_v10 }
 0x166   :  { %v1341_v3 = vpop.f32.mrf.mxu2 }
 0x167   :  { %v1342_v61 = vadd.f32 %v1341_v3, %v3804_v37  ;;  %v1390_v63 = vpop.f32.mrf.mxu3 }
 0x168   :  { %v1440_v43 = vadd.f32 %v1439_v25, %v1390_v63  ;;  %v1441_v12 = vpop.f32.mrf.mxu0 }
 0x169   :  { %1724 = vst [vmem:[%s4257_s2] sm:$0xff] %v1342_v61  ;;  %v1798_v51 = vmul.f32 %v1342_v61, %v1342_v61 }
 0x16a   :  { %v1490_v31 = vpop.f32.mrf.mxu1  ;;  %v4063_v46 = vadd.f32 %v1488_v59, %v1440_v43 }
 0x16e   :  { %v1343_v47 = vpop.f32.mrf.mxu2 }
 0x16f   :  { %v1344_v45 = vadd.f32 %v1343_v47, %v3831_v33  ;;  %v1392_v0 = vpop.f32.mrf.mxu3 }
 0x170   :  { %v1442_v41 = vadd.f32 %v1441_v12, %v1392_v0  ;;  %v1444_v1 = vpop.f32.mrf.mxu0 }
 0x171   :  { %1725 = vst [vmem:[%s4257_s2 + $0x8] sm:$0xff] %v1344_v45  ;;  %v1756_v37 = vadd.f32 %v1344_v45, %v1342_v61  ;;  %v1800_v49 = vmul.f32 %v1344_v45, %v1344_v45 }
 0x172   :  { %v1493_v7 = vpop.f32.mrf.mxu1  ;;  %v4069_v26 = vadd.f32 %v1490_v31, %v1442_v41 }
 0x173   :  { %v1830_v28 = vadd.f32 %v1800_v49, %v1798_v51  ;;  %1541 = vmatmul.bf16.gmra.mxu2 %v3343_v18  ;;  %1639 = vmatmul.bf16.gmra.mxu0 %v3345_v19  ;;  %v4291_v51 = vld [vmem:[#allocation4_spill] sm:$0xff] }
 0x174   :  { %1590 = vmatmul.bf16.gmra.mxu3 %v3341_v17 }
 0x175   :  { %1688 = vmatmul.bf16.gmra.mxu1 %v3807_v39 }
 0x176   :  { %v1346_v33 = vpop.f32.mrf.mxu2 }
 0x177   :  { %v1347_v40 = vadd.f32 %v1346_v33, %v3846_v2  ;;  %v1395_v4 = vpop.f32.mrf.mxu3 }
 0x178   :  { %v1445_v13 = vadd.f32 %v1444_v1, %v1395_v4  ;;  %v1446_v35 = vpop.f32.mrf.mxu0  ;;  %v4290_v1 = vld [vmem:[#allocation3_spill] sm:$0xff] }
 0x179   :  { %1726 = vst [vmem:[%s4257_s2 + $0x10] sm:$0xff] %v1347_v40  ;;  %v1757_v14 = vadd.f32 %v1756_v37, %v1347_v40  ;;  %v1802_v34 = vmul.f32 %v1347_v40, %v1347_v40  ;;  %v4292_v37 = vld [vmem:[#allocation2_spill] sm:$0xff] }
 0x17a   :  { %v1495_v23 = vpop.f32.mrf.mxu1  ;;  %v4079_v18 = vadd.f32 %v1493_v7, %v1445_v13 }
 0x17b   :  { %v1831_v19 = vadd.f32 %v1830_v28, %v1802_v34 }
 0x17e   :  { %v1348_v38 = vpop.f32.mrf.mxu2 }
 0x17f   :  { %v1349_v17 = vadd.f32 %v1348_v38, %v3873_v24  ;;  %v1397_v39 = vpop.f32.mrf.mxu3 }
 0x180   :  { %v1447_v21 = vadd.f32 %v1446_v35, %v1397_v39  ;;  %v1449_v8 = vpop.f32.mrf.mxu0 }
 0x181   :  { %1727 = vst [vmem:[%s4257_s2 + $0x18] sm:$0xff] %v1349_v17  ;;  %v1758_v2 = vadd.f32 %v1757_v14, %v1349_v17  ;;  %v1804_v36 = vmul.f32 %v1349_v17, %v1349_v17 }
 0x182   :  { %v1498_v15 = vpop.f32.mrf.mxu1  ;;  %v4085_v16 = vadd.f32 %v1495_v23, %v1447_v21 }
 0x183   :  { %v1832_v22 = vadd.f32 %v1831_v19, %v1804_v36  ;;  %1546 = vmatmul.bf16.gmra.mxu2 %v3403_v54  ;;  %1644 = vmatmul.bf16.gmra.mxu0 %v3405_v55  ;;  %v4294_v36 = vld [vmem:[#allocation7_spill] sm:$0xff] }
 0x184   :  { %1595 = vmatmul.bf16.gmra.mxu3 %v3401_v53 }
 0x185   :  { %1693 = vmatmul.bf16.gmra.mxu1 %v3849_v9 }
 0x186   :  { %v1351_v24 = vpop.f32.mrf.mxu2 }
 0x187   :  { %v1352_v25 = vadd.f32 %v1351_v24, %v3888_v5  ;;  %v1400_v20 = vpop.f32.mrf.mxu3 }
 0x188   :  { %v1450_v59 = vadd.f32 %v1449_v8, %v1400_v20  ;;  %v1451_v10 = vpop.f32.mrf.mxu0 }
 0x189   :  { %1728 = vst [vmem:[%s4257_s2 + $0x20] sm:$0xff] %v1352_v25  ;;  %v1759_v3 = vadd.f32 %v1758_v2, %v1352_v25  ;;  %v1806_v61 = vmul.f32 %v1352_v25, %v1352_v25  ;;  %v4293_v2 = vld [vmem:[#allocation6_spill] sm:$0xff] }
 0x18a   :  { %v1500_v63 = vpop.f32.mrf.mxu1  ;;  %v4095_v54 = vadd.f32 %v1498_v15, %v1450_v59  ;;  %v4295_v15 = vld [vmem:[#allocation5_spill] sm:$0xff] }
 0x18b   :  { %v1833_v55 = vadd.f32 %v1832_v22, %v1806_v61 }
 0x18e   :  { %v1353_v43 = vpop.f32.mrf.mxu2 }
 0x18f   :  { %v1354_v53 = vadd.f32 %v1353_v43, %v3915_v44  ;;  %v1402_v9 = vpop.f32.mrf.mxu3 }
 0x190   :  { %v1452_v12 = vadd.f32 %v1451_v10, %v1402_v9  ;;  %v1454_v31 = vpop.f32.mrf.mxu0 }
 0x191   :  { %1729 = vst [vmem:[%s4257_s2 + $0x28] sm:$0xff] %v1354_v53  ;;  %v1760_v5 = vadd.f32 %v1759_v3, %v1354_v53  ;;  %v1808_v47 = vmul.f32 %v1354_v53, %v1354_v53 }
 0x192   :  { %v1503_v45 = vpop.f32.mrf.mxu1  ;;  %v4101_v0 = vadd.f32 %v1500_v63, %v1452_v12 }
 0x193   :  { %v1834_v41 = vadd.f32 %v1833_v55, %v1808_v47  ;;  %1551 = vmatmul.bf16.gmra.mxu2 %v4290_v1  ;;  %1649 = vmatmul.bf16.gmra.mxu0 %v4291_v51  ;;  %v4298_v1 = vld [vmem:[#allocation8_spill] sm:$0xff] }
 0x194   :  { %1600 = vmatmul.bf16.gmra.mxu3 %v4292_v37 }
 0x195   :  { %1698 = vmatmul.bf16.gmra.mxu1 %v3891_v52 }
 0x196   :  { %v1356_v44 = vpop.f32.mrf.mxu2 }
 0x197   :  { %v1357_v49 = vadd.f32 %v1356_v44, %v3930_v48  ;;  %v1405_v7 = vpop.f32.mrf.mxu3 }
 0x198   :  { %v1455_v28 = vadd.f32 %v1454_v31, %v1405_v7  ;;  %v1456_v33 = vpop.f32.mrf.mxu0 }
 0x199   :  { %1730 = vst [vmem:[%s4257_s2 + $0x30] sm:$0xff] %v1357_v49  ;;  %v1761_v40 = vadd.f32 %v1760_v5, %v1357_v49  ;;  %v1810_v4 = vmul.f32 %v1357_v49, %v1357_v49 }
 0x19a   :  { %v1505_v13 = vpop.f32.mrf.mxu1  ;;  %v4111_v35 = vadd.f32 %v1503_v45, %v1455_v28  ;;  %v4296_v45 = vld [vmem:[#allocation9_spill] sm:$0xff] }
 0x19b   :  { %v1835_v14 = vadd.f32 %v1834_v41, %v1810_v4  ;;  %v4297_v41 = vld [vmem:[#allocation10_spill] sm:$0xff] }
 0x19e   :  { %v1358_v34 = vpop.f32.mrf.mxu2 }
 0x19f   :  { %v1359_v23 = vadd.f32 %v1358_v34, %v3957_v29  ;;  %v1407_v52 = vpop.f32.mrf.mxu3 }
 0x1a0   :  { %v1457_v19 = vadd.f32 %v1456_v33, %v1407_v52  ;;  %v1459_v38 = vpop.f32.mrf.mxu0 }
 0x1a1   :  { %1731 = vst [vmem:[%s4257_s2 + $0x38] sm:$0xff] %v1359_v23  ;;  %v1762_v48 = vadd.f32 %v1761_v40, %v1359_v23  ;;  %v1812_v17 = vmul.f32 %v1359_v23, %v1359_v23 }
 0x1a2   :  { %v1508_v39 = vpop.f32.mrf.mxu1  ;;  %v4117_v21 = vadd.f32 %v1505_v13, %v1457_v19 }
 0x1a3   :  { %v1836_v8 = vadd.f32 %v1835_v14, %v1812_v17  ;;  %1556 = vmatmul.bf16.gmra.mxu2 %v4293_v2  ;;  %1654 = vmatmul.bf16.gmra.mxu0 %v4294_v36  ;;  %v4299_v17 = vld [vmem:[#allocation12_spill] sm:$0xff] }
 0x1a4   :  { %1605 = vmatmul.bf16.gmra.mxu3 %v4295_v15 }
 0x1a5   :  { %1703 = vmatmul.bf16.gmra.mxu1 %v3933_v32 }
 0x1a6   :  { %v1361_v29 = vpop.f32.mrf.mxu2 }
 0x1a7   :  { %v1362_v22 = vadd.f32 %v1361_v29, %v3972_v27  ;;  %v1410_v24 = vpop.f32.mrf.mxu3 }
 0x1a8   :  { %v1460_v25 = vadd.f32 %v1459_v38, %v1410_v24  ;;  %v1461_v20 = vpop.f32.mrf.mxu0 }
 0x1a9   :  { %1732 = vst [vmem:[%s4257_s2 + $0x40] sm:$0xff] %v1362_v22  ;;  %v1763_v59 = vadd.f32 %v1762_v48, %v1362_v22  ;;  %v1814_v10 = vmul.f32 %v1362_v22, %v1362_v22 }
 0x1aa   :  { %v1510_v3 = vpop.f32.mrf.mxu1  ;;  %v4127_v61 = vadd.f32 %v1508_v39, %v1460_v25  ;;  %v4300_v39 = vld [vmem:[#allocation13_spill] sm:$0xff] }
 0x1ab   :  { %v1837_v63 = vadd.f32 %v1836_v8, %v1814_v10  ;;  %v4301_v8 = vld [vmem:[#allocation11_spill] sm:$0xff] }
 0x1ae   :  { %v1363_v55 = vpop.f32.mrf.mxu2 }
 0x1af   :  { %v1364_v43 = vadd.f32 %v1363_v55, %v3999_v30  ;;  %v1412_v32 = vpop.f32.mrf.mxu3 }
 0x1b0   :  { %v1462_v53 = vadd.f32 %v1461_v20, %v1412_v32  ;;  %v1464_v9 = vpop.f32.mrf.mxu0 }
 0x1b1   :  { %1733 = vst [vmem:[%s4257_s2 + $0x48] sm:$0xff] %v1364_v43  ;;  %v1764_v27 = vadd.f32 %v1763_v59, %v1364_v43  ;;  %v1816_v12 = vmul.f32 %v1364_v43, %v1364_v43 }
 0x1b2   :  { %v1513_v31 = vpop.f32.mrf.mxu1  ;;  %v4133_v5 = vadd.f32 %v1510_v3, %v1462_v53 }
 0x1b3   :  { %v1838_v47 = vadd.f32 %v1837_v63, %v1816_v12  ;;  %1561 = vmatmul.bf16.gmra.mxu2 %v4296_v45  ;;  %1659 = vmatmul.bf16.gmra.mxu0 %v4297_v41  ;;  %v4303_v12 = vld [vmem:[#allocation16_spill] sm:$0xff] }
 0x1b4   :  { %1610 = vmatmul.bf16.gmra.mxu3 %v4298_v1 }
 0x1b5   :  { %1708 = vmatmul.bf16.gmra.mxu1 %v3975_v50 }
 0x1b6   :  { %v1366_v30 = vpop.f32.mrf.mxu2 }
 0x1b7   :  { %v1367_v51 = vadd.f32 %v1366_v30, %v4014_v62  ;;  %v1415_v37 = vpop.f32.mrf.mxu3 }
 0x1b8   :  { %v1465_v44 = vadd.f32 %v1464_v9, %v1415_v37  ;;  %v1466_v49 = vpop.f32.mrf.mxu0 }
 0x1b9   :  { %1734 = vst [vmem:[%s4257_s2 + $0x50] sm:$0xff] %v1367_v51  ;;  %v1765_v7 = vadd.f32 %v1764_v27, %v1367_v51  ;;  %v1818_v28 = vmul.f32 %v1367_v51, %v1367_v51  ;;  %v4302_v27 = vld [vmem:[#allocation15_spill] sm:$0xff] }
 0x1ba   :  { %v1515_v33 = vpop.f32.mrf.mxu1  ;;  %v4143_v40 = vadd.f32 %v1513_v31, %v1465_v44  ;;  %v4304_v31 = vld [vmem:[#allocation14_spill] sm:$0xff] }
 0x1bb   :  { %v1839_v4 = vadd.f32 %v1838_v47, %v1818_v28 }
 0x1be   :  { %v1368_v13 = vpop.f32.mrf.mxu2 }
 0x1bf   :  { %v1369_v14 = vadd.f32 %v1368_v13, %v4029_v6  ;;  %v1417_v50 = vpop.f32.mrf.mxu3 }
 0x1c0   :  { %v1467_v34 = vadd.f32 %v1466_v49, %v1417_v50  ;;  %v1469_v23 = vpop.f32.mrf.mxu0 }
 0x1c1   :  { %1735 = vst [vmem:[%s4257_s2 + $0x58] sm:$0xff] %v1369_v14  ;;  %v1766_v62 = vadd.f32 %v1765_v7, %v1369_v14  ;;  %v1820_v52 = vmul.f32 %v1369_v14, %v1369_v14 }
 0x1c2   :  { %v1518_v19 = vpop.f32.mrf.mxu1  ;;  %v4149_v38 = vadd.f32 %v1515_v33, %v1467_v34 }
 0x1c3   :  { %v1840_v48 = vadd.f32 %v1839_v4, %v1820_v52  ;;  %1566 = vmatmul.bf16.gmra.mxu2 %v4299_v17  ;;  %1664 = vmatmul.bf16.gmra.mxu0 %v4300_v39 }
 0x1c4   :  { %1615 = vmatmul.bf16.gmra.mxu3 %v4301_v8 }
 0x1c5   :  { %1713 = vmatmul.bf16.gmra.mxu1 %v4017_v57 }
 0x1c6   :  { %v1371_v6 = vpop.f32.mrf.mxu2 }
 0x1c7   :  { %v1372_v2 = vadd.f32 %v1371_v6, %v4038_v56  ;;  %v1420_v36 = vpop.f32.mrf.mxu3 }
 0x1c8   :  { %v1470_v15 = vadd.f32 %v1469_v23, %v1420_v36  ;;  %v1471_v29 = vpop.f32.mrf.mxu0 }
 0x1c9   :  { %1736 = vst [vmem:[%s4257_s2 + $0x60] sm:$0xff] %v1372_v2  ;;  %v1767_v22 = vadd.f32 %v1766_v62, %v1372_v2  ;;  %v1822_v24 = vmul.f32 %v1372_v2, %v1372_v2 }
 0x1ca   :  { %v1520_v25 = vpop.f32.mrf.mxu1  ;;  %v4159_v20 = vadd.f32 %v1518_v19, %v1470_v15 }
 0x1cb   :  { %v1841_v59 = vadd.f32 %v1840_v48, %v1822_v24 }
 0x1ce   :  { %v1373_v10 = vpop.f32.mrf.mxu2 }
 0x1cf   :  { %v1374_v3 = vadd.f32 %v1373_v10, %v4047_v58  ;;  %v1422_v57 = vpop.f32.mrf.mxu3 }
 0x1d0   :  { %v1472_v63 = vadd.f32 %v1471_v29, %v1422_v57  ;;  %v1474_v55 = vpop.f32.mrf.mxu0 }
 0x1d1   :  { %1737 = vst [vmem:[%s4257_s2 + $0x68] sm:$0xff] %v1374_v3  ;;  %v1768_v56 = vadd.f32 %v1767_v22, %v1374_v3  ;;  %v1824_v43 = vmul.f32 %v1374_v3, %v1374_v3 }
 0x1d2   :  { %v1523_v32 = vpop.f32.mrf.mxu1  ;;  %v4165_v53 = vadd.f32 %v1520_v25, %v1472_v63 }
 0x1d3   :  { %v1842_v9 = vadd.f32 %v1841_v59, %v1824_v43  ;;  %1571 = vmatmul.bf16.gmra.mxu2 %v4302_v27  ;;  %1669 = vmatmul.bf16.gmra.mxu0 %v4303_v12 }
 0x1d4   :  { %1620 = vmatmul.bf16.gmra.mxu3 %v4304_v31 }
 0x1d5   :  { %1718 = vmatmul.bf16.gmra.mxu1 %v4041_v42 }
 0x1d6   :  { %v1376_v58 = vpop.f32.mrf.mxu2 }
 0x1d7   :  { %v1377_v47 = vadd.f32 %v1376_v58, %v4050_v11  ;;  %v1425_v45 = vpop.f32.mrf.mxu3 }
 0x1d8   :  { %v1475_v41 = vadd.f32 %v1474_v55, %v1425_v45  ;;  %v1476_v1 = vpop.f32.mrf.mxu0 }
 0x1d9   :  { %1738 = vst [vmem:[%s4257_s2 + $0x70] sm:$0xff] %v1377_v47  ;;  %v1769_v30 = vadd.f32 %v1768_v56, %v1377_v47  ;;  %v1826_v51 = vmul.f32 %v1377_v47, %v1377_v47 }
 0x1da   :  { %v1525_v37 = vpop.f32.mrf.mxu1  ;;  %v4175_v44 = vadd.f32 %v1523_v32, %v1475_v41 }
 0x1db   :  { %v1843_v49 = vadd.f32 %v1842_v9, %v1826_v51 }
 0x1de   :  { %v1378_v7 = vpop.f32.mrf.mxu2 }
 0x1df   :  { %v1379_v28 = vadd.f32 %v1378_v7, %v4057_v60  ;;  %v1427_v42 = vpop.f32.mrf.mxu3 }
 0x1e0   :  { %v1477_v33 = vadd.f32 %v1476_v1, %v1427_v42  ;;  %v1635_v4 = vpop.f32.mrf.mxu0 }
 0x1e1   :  { %1739 = vst [vmem:[%s4257_s2 + $0x78] sm:$0xff] %v1379_v28  ;;  %v1770_v11 = vadd.f32 %v1769_v30, %v1379_v28  ;;  %v1828_v13 = vmul.f32 %v1379_v28, %v1379_v28 }
 0x1e2   :  { %v1684_v14 = vpop.f32.mrf.mxu1  ;;  %v4181_v50 = vadd.f32 %v1525_v37, %v1477_v33 }
 0x1e3   :  { %v1771_v34 = vrot.slane %v1770_v11, 4  ;;  %v1844_v23 = vadd.f32 %v1843_v49, %v1828_v13 }
 0x1e5   :  { %v1772_v62 = vadd.f32 %v1771_v34, %v1770_v11  ;;  %v1845_v52 = vrot.slane %v1844_v23, 4 }
 0x1e6   :  { %v1537_v19 = vpop.f32.mrf.mxu2 }
 0x1e7   :  { %v1773_v48 = vrot.slane %v1772_v62, 2  ;;  %v1846_v17 = vadd.f32 %v1845_v52, %v1844_v23  ;;  %v1538_v60 = vadd.f32 %v1537_v19, %v4063_v46  ;;  %v1586_v39 = vpop.f32.mrf.mxu3 }
 0x1e8   :  { %v1637_v8 = vpop.f32.mrf.mxu0 }
 0x1e9   :  { %v1774_v6 = vadd.f32 %v1773_v48, %v1772_v62  ;;  %v1847_v2 = vrot.slane %v1846_v17, 2  ;;  %v1587_v36 = vadd.f32 %v1586_v39, %v1538_v60 }
 0x1ea   :  { %v1686_v15 = vpop.f32.mrf.mxu1 }
 0x1eb   :  { %v1775_v29 = vrot.slane %v1774_v6, 1  ;;  %v1848_v22 = vadd.f32 %v1847_v2, %v1846_v17  ;;  %v1636_v24 = vadd.f32 %v1635_v4, %v1587_v36 }
 0x1ed   :  { %v1849_v25 = vrot.slane %v1848_v22, 1  ;;  %v1685_v59 = vadd.f32 %v1684_v14, %v1636_v24  ;;  %v1776_v3 = vadd.f32 %v1775_v29, %v1774_v6 }
 0x1ee   :  { %v1539_v10 = vpop.f32.mrf.mxu2 }
 0x1ef   :  { %v1850_v57 = vadd.f32 %v1849_v25, %v1848_v22  ;;  %1740 = vst [vmem:[%s4258_s3] sm:$0xff] %v1685_v59  ;;  %v1540_v46 = vadd.f32 %v1539_v10, %v4069_v26  ;;  %v1588_v63 = vpop.f32.mrf.mxu3  ;;  %v1799_v31 = vmul.f32 %v1685_v59, %v1685_v59 }
 0x1f0   :  { %v1640_v55 = vpop.f32.mrf.mxu0 }
 0x1f1   :  { %v4189_v56 = vsel %vm1872_vm0, %v1776_v3, %v1850_v57  ;;  %v1589_v43 = vadd.f32 %v1588_v63, %v1540_v46 }
 0x1f2   :  { %v1689_v32 = vpop.f32.mrf.mxu1 }
 0x1f3   :  { %v1638_v9 = vadd.f32 %v1637_v8, %v1589_v43 }
 0x1f5   :  { %v1687_v27 = vadd.f32 %v1686_v15, %v1638_v9 }
 0x1f6   :  { %v1542_v12 = vpop.f32.mrf.mxu2 }
 0x1f7   :  { %1741 = vst [vmem:[%s4258_s3 + $0x8] sm:$0xff] %v1687_v27  ;;  %v1777_v58 = vadd.f32 %v1687_v27, %v1685_v59  ;;  %v1801_v47 = vmul.f32 %v1687_v27, %v1687_v27  ;;  %v1543_v45 = vadd.f32 %v1542_v12, %v4079_v18  ;;  %v1591_v26 = vpop.f32.mrf.mxu3 }
 0x1f8   :  { %v1642_v41 = vpop.f32.mrf.mxu0 }
 0x1f9   :  { %v1851_v1 = vadd.f32 %v1801_v47, %v1799_v31  ;;  %v1592_v30 = vadd.f32 %v1591_v26, %v1543_v45 }
 0x1fa   :  { %v1691_v51 = vpop.f32.mrf.mxu1 }
 0x1fb   :  { %v1641_v37 = vadd.f32 %v1640_v55, %v1592_v30 }
 0x1fd   :  { %v1690_v49 = vadd.f32 %v1689_v32, %v1641_v37 }
 0x1fe   :  { %v1544_v7 = vpop.f32.mrf.mxu2 }
 0x1ff   :  { %1742 = vst [vmem:[%s4258_s3 + $0x10] sm:$0xff] %v1690_v49  ;;  %v1778_v28 = vadd.f32 %v1777_v58, %v1690_v49  ;;  %v1803_v42 = vmul.f32 %v1690_v49, %v1690_v49  ;;  %v1545_v33 = vadd.f32 %v1544_v7, %v4085_v16  ;;  %v1593_v4 = vpop.f32.mrf.mxu3 }
 0x200   :  { %v1645_v11 = vpop.f32.mrf.mxu0 }
 0x201   :  { %v1852_v13 = vadd.f32 %v1851_v1, %v1803_v42  ;;  %v1594_v18 = vadd.f32 %v1593_v4, %v1545_v33 }
 0x202   :  { %v1694_v14 = vpop.f32.mrf.mxu1 }
 0x203   :  { %v1643_v34 = vadd.f32 %v1642_v41, %v1594_v18 }
 0x205   :  { %v1692_v23 = vadd.f32 %v1691_v51, %v1643_v34 }
 0x206   :  { %v1547_v62 = vpop.f32.mrf.mxu2 }
 0x207   :  { %1743 = vst [vmem:[%s4258_s3 + $0x18] sm:$0xff] %v1692_v23  ;;  %v1779_v52 = vadd.f32 %v1778_v28, %v1692_v23  ;;  %v1805_v19 = vmul.f32 %v1692_v23, %v1692_v23  ;;  %v1548_v48 = vadd.f32 %v1547_v62, %v4095_v54  ;;  %v1596_v17 = vpop.f32.mrf.mxu3 }
 0x208   :  { %v1647_v60 = vpop.f32.mrf.mxu0 }
 0x209   :  { %v1853_v39 = vadd.f32 %v1852_v13, %v1805_v19  ;;  %v1597_v16 = vadd.f32 %v1596_v17, %v1548_v48 }
 0x20a   :  { %v1696_v8 = vpop.f32.mrf.mxu1 }
 0x20b   :  { %v1646_v6 = vadd.f32 %v1645_v11, %v1597_v16 }
 0x20d   :  { %v1695_v2 = vadd.f32 %v1694_v14, %v1646_v6 }
 0x20e   :  { %v1549_v36 = vpop.f32.mrf.mxu2 }
 0x20f   :  { %1744 = vst [vmem:[%s4258_s3 + $0x20] sm:$0xff] %v1695_v2  ;;  %v1780_v15 = vadd.f32 %v1779_v52, %v1695_v2  ;;  %v1807_v29 = vmul.f32 %v1695_v2, %v1695_v2  ;;  %v1550_v22 = vadd.f32 %v1549_v36, %v4101_v0  ;;  %v1598_v24 = vpop.f32.mrf.mxu3 }
 0x210   :  { %v1650_v25 = vpop.f32.mrf.mxu0 }
 0x211   :  { %v1854_v59 = vadd.f32 %v1853_v39, %v1807_v29  ;;  %v1599_v54 = vadd.f32 %v1598_v24, %v1550_v22 }
 0x212   :  { %v1699_v10 = vpop.f32.mrf.mxu1 }
 0x213   :  { %v1648_v3 = vadd.f32 %v1647_v60, %v1599_v54 }
 0x215   :  { %v1697_v57 = vadd.f32 %v1696_v8, %v1648_v3 }
 0x216   :  { %v1552_v46 = vpop.f32.mrf.mxu2 }
 0x217   :  { %1745 = vst [vmem:[%s4258_s3 + $0x28] sm:$0xff] %v1697_v57  ;;  %v1781_v63 = vadd.f32 %v1780_v15, %v1697_v57  ;;  %v1809_v55 = vmul.f32 %v1697_v57, %v1697_v57  ;;  %v1553_v43 = vadd.f32 %v1552_v46, %v4111_v35  ;;  %v1601_v32 = vpop.f32.mrf.mxu3 }
 0x218   :  { %v1652_v9 = vpop.f32.mrf.mxu0 }
 0x219   :  { %v1855_v27 = vadd.f32 %v1854_v59, %v1809_v55  ;;  %v1602_v0 = vadd.f32 %v1601_v32, %v1553_v43 }
 0x21a   :  { %v1701_v12 = vpop.f32.mrf.mxu1 }
 0x21b   :  { %v1651_v31 = vadd.f32 %v1650_v25, %v1602_v0 }
 0x21d   :  { %v1700_v58 = vadd.f32 %v1699_v10, %v1651_v31 }
 0x21e   :  { %v1554_v47 = vpop.f32.mrf.mxu2 }
 0x21f   :  { %1746 = vst [vmem:[%s4258_s3 + $0x30] sm:$0xff] %v1700_v58  ;;  %v1782_v45 = vadd.f32 %v1781_v63, %v1700_v58  ;;  %v1811_v26 = vmul.f32 %v1700_v58, %v1700_v58  ;;  %v1555_v41 = vadd.f32 %v1554_v47, %v4117_v21  ;;  %v1603_v1 = vpop.f32.mrf.mxu3 }
 0x220   :  { %v1655_v30 = vpop.f32.mrf.mxu0 }
 0x221   :  { %v1856_v51 = vadd.f32 %v1855_v27, %v1811_v26  ;;  %v1604_v35 = vadd.f32 %v1603_v1, %v1555_v41 }
 0x222   :  { %v1704_v37 = vpop.f32.mrf.mxu1 }
 0x223   :  { %v1653_v49 = vadd.f32 %v1652_v9, %v1604_v35 }
 0x225   :  { %v1702_v7 = vadd.f32 %v1701_v12, %v1653_v49 }
 0x226   :  { %v1557_v28 = vpop.f32.mrf.mxu2 }
 0x227   :  { %1747 = vst [vmem:[%s4258_s3 + $0x38] sm:$0xff] %v1702_v7  ;;  %v1783_v42 = vadd.f32 %v1782_v45, %v1702_v7  ;;  %v1813_v33 = vmul.f32 %v1702_v7, %v1702_v7  ;;  %v1558_v4 = vadd.f32 %v1557_v28, %v4127_v61  ;;  %v1606_v11 = vpop.f32.mrf.mxu3 }
 0x228   :  { %v1657_v13 = vpop.f32.mrf.mxu0 }
 0x229   :  { %v1857_v18 = vadd.f32 %v1856_v51, %v1813_v33  ;;  %v1607_v21 = vadd.f32 %v1606_v11, %v1558_v4 }
 0x22a   :  { %v1706_v14 = vpop.f32.mrf.mxu1 }
 0x22b   :  { %v1656_v34 = vadd.f32 %v1655_v30, %v1607_v21 }
 0x22d   :  { %v1705_v23 = vadd.f32 %v1704_v37, %v1656_v34 }
 0x22e   :  { %v1559_v62 = vpop.f32.mrf.mxu2 }
 0x22f   :  { %1748 = vst [vmem:[%s4258_s3 + $0x40] sm:$0xff] %v1705_v23  ;;  %v1784_v52 = vadd.f32 %v1783_v42, %v1705_v23  ;;  %v1815_v19 = vmul.f32 %v1705_v23, %v1705_v23  ;;  %v1560_v48 = vadd.f32 %v1559_v62, %v4133_v5  ;;  %v1608_v17 = vpop.f32.mrf.mxu3 }
 0x230   :  { %v1660_v60 = vpop.f32.mrf.mxu0 }
 0x231   :  { %v1858_v39 = vadd.f32 %v1857_v18, %v1815_v19  ;;  %v1609_v61 = vadd.f32 %v1608_v17, %v1560_v48 }
 0x232   :  { %v1709_v16 = vpop.f32.mrf.mxu1 }
 0x233   :  { %v1658_v8 = vadd.f32 %v1657_v13, %v1609_v61 }
 0x235   :  { %v1707_v6 = vadd.f32 %v1706_v14, %v1658_v8 }
 0x236   :  { %v1562_v2 = vpop.f32.mrf.mxu2 }
 0x237   :  { %1749 = vst [vmem:[%s4258_s3 + $0x48] sm:$0xff] %v1707_v6  ;;  %v1785_v36 = vadd.f32 %v1784_v52, %v1707_v6  ;;  %v1817_v15 = vmul.f32 %v1707_v6, %v1707_v6  ;;  %v1563_v29 = vadd.f32 %v1562_v2, %v4143_v40  ;;  %v1611_v22 = vpop.f32.mrf.mxu3 }
 0x238   :  { %v1662_v5 = vpop.f32.mrf.mxu0 }
 0x239   :  { %v1859_v24 = vadd.f32 %v1858_v39, %v1817_v15  ;;  %v1612_v25 = vadd.f32 %v1611_v22, %v1563_v29 }
 0x23a   :  { %v1711_v54 = vpop.f32.mrf.mxu1 }
 0x23b   :  { %v1661_v59 = vadd.f32 %v1660_v60, %v1612_v25 }
 0x23d   :  { %v1710_v10 = vadd.f32 %v1709_v16, %v1661_v59 }
 0x23e   :  { %v1564_v3 = vpop.f32.mrf.mxu2 }
 0x23f   :  { %1750 = vst [vmem:[%s4258_s3 + $0x50] sm:$0xff] %v1710_v10  ;;  %v1786_v57 = vadd.f32 %v1785_v36, %v1710_v10  ;;  %v1819_v46 = vmul.f32 %v1710_v10, %v1710_v10  ;;  %v1565_v63 = vadd.f32 %v1564_v3, %v4149_v38  ;;  %v1613_v55 = vpop.f32.mrf.mxu3 }
 0x240   :  { %v1665_v9 = vpop.f32.mrf.mxu0 }
 0x241   :  { %v1860_v43 = vadd.f32 %v1859_v24, %v1819_v46  ;;  %v1614_v32 = vadd.f32 %v1613_v55, %v1565_v63 }
 0x242   :  { %v1714_v0 = vpop.f32.mrf.mxu1 }
 0x243   :  { %v1663_v40 = vadd.f32 %v1662_v5, %v1614_v32 }
 0x245   :  { %v1712_v27 = vadd.f32 %v1711_v54, %v1663_v40 }
 0x246   :  { %v1567_v12 = vpop.f32.mrf.mxu2 }
 0x247   :  { %1751 = vst [vmem:[%s4258_s3 + $0x58] sm:$0xff] %v1712_v27  ;;  %v1787_v31 = vadd.f32 %v1786_v57, %v1712_v27  ;;  %v1821_v58 = vmul.f32 %v1712_v27, %v1712_v27  ;;  %v1568_v47 = vadd.f32 %v1567_v12, %v4159_v20  ;;  %v1616_v45 = vpop.f32.mrf.mxu3 }
 0x248   :  { %v1667_v30 = vpop.f32.mrf.mxu0 }
 0x249   :  { %v1861_v26 = vadd.f32 %v1860_v43, %v1821_v58  ;;  %v1617_v41 = vadd.f32 %v1616_v45, %v1568_v47 }
 0x24a   :  { %v1716_v28 = vpop.f32.mrf.mxu1 }
 0x24b   :  { %v1666_v38 = vadd.f32 %v1665_v9, %v1617_v41 }
 0x24d   :  { %v1715_v1 = vadd.f32 %v1714_v0, %v1666_v38 }
 0x24e   :  { %v1569_v51 = vpop.f32.mrf.mxu2 }
 0x24f   :  { %1752 = vst [vmem:[%s4258_s3 + $0x60] sm:$0xff] %v1715_v1  ;;  %v1788_v35 = vadd.f32 %v1787_v31, %v1715_v1  ;;  %v1823_v37 = vmul.f32 %v1715_v1, %v1715_v1  ;;  %v1570_v49 = vadd.f32 %v1569_v51, %v4165_v53  ;;  %v1618_v7 = vpop.f32.mrf.mxu3 }
 0x250   :  { %v1670_v34 = vpop.f32.mrf.mxu0 }
 0x251   :  { %v1862_v42 = vadd.f32 %v1861_v26, %v1823_v37  ;;  %v1619_v33 = vadd.f32 %v1618_v7, %v1570_v49 }
 0x252   :  { %v1719_v53 = vpop.f32.mrf.mxu1 }
 0x253   :  { %v1668_v20 = vadd.f32 %v1667_v30, %v1619_v33 }
 0x255   :  { %v1717_v4 = vadd.f32 %v1716_v28, %v1668_v20 }
 0x256   :  { %v1572_v11 = vpop.f32.mrf.mxu2 }
 0x257   :  { %1753 = vst [vmem:[%s4258_s3 + $0x68] sm:$0xff] %v1717_v4  ;;  %v1789_v13 = vadd.f32 %v1788_v35, %v1717_v4  ;;  %v1825_v18 = vmul.f32 %v1717_v4, %v1717_v4  ;;  %v1573_v21 = vadd.f32 %v1572_v11, %v4175_v44  ;;  %v1621_v14 = vpop.f32.mrf.mxu3 }
 0x258   :  { %v1672_v44 = vpop.f32.mrf.mxu0 }
 0x259   :  { %v1863_v23 = vadd.f32 %v1862_v42, %v1825_v18  ;;  %v1622_v62 = vadd.f32 %v1621_v14, %v1573_v21 }
 0x25a   :  { %v1721_v2 = vpop.f32.mrf.mxu1 }
 0x25b   :  { %v1671_v52 = vadd.f32 %v1670_v34, %v1622_v62 }
 0x25d   :  { %v1720_v19 = vadd.f32 %v1719_v53, %v1671_v52 }
 0x25e   :  { %v1574_v48 = vpop.f32.mrf.mxu2 }
 0x25f   :  { %1754 = vst [vmem:[%s4258_s3 + $0x70] sm:$0xff] %v1720_v19  ;;  %v1790_v17 = vadd.f32 %v1789_v13, %v1720_v19  ;;  %v1827_v60 = vmul.f32 %v1720_v19, %v1720_v19  ;;  %v1575_v39 = vadd.f32 %v1574_v48, %v4181_v50  ;;  %v1623_v61 = vpop.f32.mrf.mxu3 }
 0x261   :  { %v1864_v16 = vadd.f32 %v1863_v23, %v1827_v60  ;;  %v1624_v8 = vadd.f32 %v1623_v61, %v1575_v39 }
 0x263   :  { %v1673_v6 = vadd.f32 %v1672_v44, %v1624_v8 }
 0x265   :  { %v1722_v36 = vadd.f32 %v1721_v2, %v1673_v6 }
 0x267   :  { %1755 = vst [vmem:[%s4258_s3 + $0x78] sm:$0xff] %v1722_v36  ;;  %v1791_v15 = vadd.f32 %v1790_v17, %v1722_v36  ;;  %v1829_v29 = vmul.f32 %v1722_v36, %v1722_v36 }
 0x269   :  { %v1792_v22 = vrot.slane %v1791_v15, 4  ;;  %v1865_v24 = vadd.f32 %v1864_v16, %v1829_v29 }
 0x26b   :  { %v1793_v25 = vadd.f32 %v1792_v22, %v1791_v15  ;;  %v1866_v5 = vrot.slane %v1865_v24, 4 }
 0x26d   :  { %v1794_v59 = vrot.slane %v1793_v25, 2  ;;  %v1867_v54 = vadd.f32 %v1866_v5, %v1865_v24 }
 0x26f   :  { %v1795_v50 = vadd.f32 %v1794_v59, %v1793_v25  ;;  %v1868_v10 = vrot.slane %v1867_v54, 2 }
 0x271   :  { %v1796_v3 = vrot.slane %v1795_v50, 1  ;;  %v1869_v57 = vadd.f32 %v1868_v10, %v1867_v54 }
 0x273   :  { %v1870_v46 = vrot.slane %v1869_v57, 1  ;;  %v1797_v63 = vadd.f32 %v1796_v3, %v1795_v50 }
 0x275   :  { %v1871_v55 = vadd.f32 %v1870_v46, %v1869_v57 }
 0x277   :  { %v1874_v43 = vsel %vm1872_vm0, %v1797_v63, %v1871_v55 }
 0x278   :  { %v1877_v32 = vrot.slane %v1874_v43, 6 }
 0x27a   :  { %v1879_v40 = vsel %vm1878_vm1, %v4189_v56, %v1877_v32 }
 0x27b   :  { %1881 = vst [vmem:[%s4259_s4] sm:$0xf] %v1879_v40 }

// kernel: block17_forward.8
= control target key start
LH: loop header
LB: loop body
LE: loop exit
PB: predicated region body
PF: predicated region fallthrough
CT: control target
= control target key end

     0   :  { %s2249_s12 = smov 0   ;;  %s3017_s0 = inlined_call_operand.vmem [shape: bf16[16,14,128], index: 0, kind: input, shape index: {}]   ;;  %s3018_s1 = inlined_call_operand.vmem [shape: bf16[7,128,128], index: 1, kind: input, shape index: {}]   ;;  %s3019_s2 = inlined_call_operand.vmem [shape: f32[16,8,128], index: 2, kind: output, shape index: {0}]   ;;  %s3020_s3 = inlined_call_operand.vmem [shape: f32[2,2,128], index: 3, kind: output, shape index: {1}]  }
   0x1 LB: > { %s2255_s13 = sadd.s32 4294967295, %s2227_s12   ;;  %p1759_p0 = scmp.ge.s32.totalorder %s2227_s12, 1  ;;  %s2227_s12 = sphi %s2249_s12, %s14_s12  }
   0x2   : > { %p142_p1 = scmp.lt.s32.totalorder %s2227_s12, 3 }
   0x4   : > { %p143_p2 = pnand %p1759_p0, %p142_p1 }
   0x5   : > { %s1760_s20 = sshll.u32 (!%p143_p2), %s2255_s13, 3  ;;  %p184_p4 = scmp.lt.s32.totalorder (!%p143_p2), %s2255_s13, 1 }
   0x6   : > { %146 = sbr.rel (%p143_p2) target bundleno = 307 (0x133), region = 28  ;;  %p172_p3 = scmp.lt.s32.totalorder (!%p143_p2), %s1760_s20, 15 }
   0xb   : > { %v2148_v0 = vld [vmem:[%s3018_s1 + $0x78] sm:$0xff]  ;;  %v2147_v3 = vld [vmem:[%s3018_s1 + $0x70] sm:$0xff]  ;;  %s3034_s20 = smov (!%p172_p3, %s1760_s20), 15  ;;  %v2146_v6 = vld [vmem:[%s3018_s1 + $0x68] sm:$0xff]  ;;  %vm220_vm0 = vsmask.f32 3328 }
   0xc   : > { %v2140_v1 = vld [vmem:[%s3018_s1 + $0x38] sm:$0xff]  ;;  %416 = vmatpush.bf16.msra.mxu0 %v2148_v0  ;;  %2189 = vmatpush.bf16.msra.mxu3 %v2148_v0  ;;  %v2139_v4 = vld [vmem:[%s3018_s1 + $0x30] sm:$0xff]  ;;  %s2128_s27 = sshll.u32 %s3034_s20, 3  ;;  %v2138_v7 = vld [vmem:[%s3018_s1 + $0x28] sm:$0xff]  ;;  %vm221_vm1 = vsmask.f32 7440 }
   0xd   : > { %v2156_v2 = vld [vmem:[%s3018_s1 + $0xb8] sm:$0xff]  ;;  %517 = vmatpush.bf16.msra.mxu1 %v2140_v1  ;;  %v2155_v5 = vld [vmem:[%s3018_s1 + $0xb0] sm:$0xff]  ;;  %s2289_s5 = scalar_lea.vmem %s3017_s0, %s2128_s27  ;;  %v2154_v8 = vld [vmem:[%s3018_s1 + $0xa8] sm:$0xff]  ;;  %vm570_vm2 = vcmask 1042432   ;;  %vm571_vm3 = vcmask 1046532   ;;  %vm1020_vm8 = vcmask 1041408   ;;  %s2994_s19 = scalar_lea.vmem %s3019_s2, %s2128_s27 }
   0xe   : > { %686 = vmatpush.bf16.msra.mxu2 %v2156_v2  ;;  %v2145_v9 = vld [vmem:[%s3018_s1 + $0x60] sm:$0xff]  ;;  %v189_v11 = vld [vmem:[%s2289_s5 + $0x8] sm:$0xf]  ;;  %v2312_v15 = vld [vmem:[%s2289_s5 + $0xc] sm:$0x1]  ;;  %vm1021_vm9 = vcmask 1045508  }
   0xf   : > { %v188_v10 = vld [vmem:[%s2289_s5] sm:$0xf]  ;;  %v2303_v12 = vld [vmem:[%s2289_s5 + $0x4] sm:$0x1]  ;;  %v238_v19 = vshrl.u32 %v189_v11, 16  ;;  %v241_v20 = vshll.u32 %v189_v11, 16  ;;  %vm2333_vm4 = vmor %vm220_vm0, %vm221_vm1 }
  0x10   : > { %417 = vmatpush.bf16.msra.mxu0 %v2147_v3  ;;  %2190 = vmatpush.bf16.msra.mxu3 %v2147_v3  ;;  %v2137_v13 = vld [vmem:[%s3018_s1 + $0x20] sm:$0xff]  ;;  %v224_v16 = vshrl.u32 %v188_v10, 16  ;;  %v227_v17 = vshll.u32 %v188_v10, 16  ;;  %v233_v18 = vshll.u32 %v2303_v12, 16  ;;  %v247_v21 = vshll.u32 %v2312_v15, 16  ;;  %v2144_v38 = vld [vmem:[%s3018_s1 + $0x58] sm:$0xff]  ;;  %vm2349_vm5 = vmor %vm570_vm2, %vm571_vm3 }
  0x11   : > { %518 = vmatpush.bf16.msra.mxu1 %v2139_v4  ;;  %v2153_v14 = vld [vmem:[%s3018_s1 + $0xa0] sm:$0xff]  ;;  %v193_v23 = vld [vmem:[%s2289_s5 + $0x28] sm:$0xf]  ;;  %v240_v27 = vrot.slane %v238_v19, 4  ;;  %v243_v29 = vrot.slane %v241_v20, 5  ;;  %v2136_v39 = vld [vmem:[%s3018_s1 + $0x18] sm:$0xff] }
  0x12   : > { %687 = vmatpush.bf16.msra.mxu2 %v2155_v5  ;;  %v192_v22 = vld [vmem:[%s2289_s5 + $0x20] sm:$0xf]  ;;  %v226_v24 = vrot.slane %v224_v16, 4  ;;  %v229_v25 = vrot.slane %v227_v17, 5  ;;  %v235_v26 = vrot.slane %v233_v18, 5  ;;  %v249_v30 = vrot.slane %v247_v21, 5  ;;  %vm2591_vm11 = vmor %vm1020_vm8, %vm1021_vm9 }
  0x13   : > { %v2319_v28 = vld [vmem:[%s2289_s5 + $0x24] sm:$0x1]  ;;  %v2322_v31 = vld [vmem:[%s2289_s5 + $0x2c] sm:$0x1]  ;;  %v280_v32 = vshrl.u32 %v192_v22, 16  ;;  %v283_v33 = vshll.u32 %v192_v22, 16  ;;  %v244_v41 = vor.u32 %v243_v29, %v240_v27 }
  0x14   : > { %418 = vmatpush.bf16.msra.mxu0 %v2146_v6  ;;  %2191 = vmatpush.bf16.msra.mxu3 %v2146_v6  ;;  %v230_v34 = vor.u32 %v229_v25, %v226_v24  ;;  %v289_v35 = vshll.u32 %v2319_v28, 16  ;;  %v294_v36 = vshrl.u32 %v193_v23, 16  ;;  %v297_v37 = vshll.u32 %v193_v23, 16  ;;  %v2152_v45 = vld [vmem:[%s3018_s1 + $0x98] sm:$0xff]  ;;  %v2342_v49 = vld [vmem:[%s2289_s5] sm:$0xe] }
  0x15   : > { %519 = vmatpush.bf16.msra.mxu1 %v2138_v7  ;;  %v282_v42 = vrot.slane %v280_v32, 4  ;;  %v285_v43 = vrot.slane %v283_v33, 5  ;;  %v303_v44 = vshll.u32 %v2322_v31, 16  ;;  %v245_v50 = vrot.slane %v244_v41, 4  ;;  %v2345_v54 = vld [vmem:[%s2289_s5 + $0x8] sm:$0xe] }
  0x16   : > { %688 = vmatpush.bf16.msra.mxu2 %v2154_v8  ;;  %v231_v46 = vrot.slane %v230_v34, 4  ;;  %v296_v47 = vrot.slane %v294_v36, 4  ;;  %v299_v48 = vrot.slane %v297_v37, 5  ;;  %v291_v52 = vrot.slane %v289_v35, 5  ;;  %v2143_v60 = vld [vmem:[%s3018_s1 + $0x50] sm:$0xff]  ;;  %v2142_v11 = vld [vmem:[%s3018_s1 + $0x48] sm:$0xff] }
  0x17   : > { %v286_v51 = vor.u32 %v285_v43, %v282_v42  ;;  %v305_v53 = vrot.slane %v303_v44, 5  ;;  %v1862_v58 = vrot.slane %v2342_v49, 9  ;;  %v575_v59 = vrot.slane %v2303_v12, 5  ;;  %v2135_v61 = vld [vmem:[%s3018_s1 + $0x10] sm:$0xff]  ;;  %v2374_v5 = vld [vmem:[%s2289_s5] sm:$0xf] }
  0x18   : > { %419 = vmatpush.bf16.msra.mxu0 %v2145_v9  ;;  %2192 = vmatpush.bf16.msra.mxu3 %v2145_v9  ;;  %v236_v56 = vsel %vm2333_vm4, %v231_v46, %v235_v26  ;;  %v300_v57 = vor.u32 %v299_v48, %v296_v47  ;;  %v2151_v62 = vld [vmem:[%s3018_s1 + $0x90] sm:$0xff]  ;;  %v250_v63 = vsel %vm2333_vm4, %v245_v50, %v249_v30  ;;  %v1863_v2 = vrot.slane %v2345_v54, 9  ;;  %v2377_v6 = vld [vmem:[%s2289_s5 + $0x4] sm:$0xf0]  ;;  %v191_v10 = vld [vmem:[%s2289_s5 + $0x18] sm:$0xf] }
  0x19   : > { %520 = vmatpush.bf16.msra.mxu1 %v2137_v13  ;;  %v2368_v0 = vunpack.c.l.b16 %v236_v56  ;;  %v287_v1 = vrot.slane %v286_v51, 4  ;;  %v2371_v3 = vunpack.c.l.b16 %v250_v63  ;;  %v576_v7 = vsel %vm2349_vm5, %v1862_v58, %v575_v59  ;;  %v190_v9 = vld [vmem:[%s2289_s5 + $0x10] sm:$0xf]  ;;  %v2399_v18 = vld [vmem:[%s2289_s5 + $0x14] sm:$0x1]  ;;  %v2150_v20 = vld [vmem:[%s3018_s1 + $0x88] sm:$0xff] }
  0x1a   : > { %689 = vmatpush.bf16.msra.mxu2 %v2153_v14  ;;  %v301_v4 = vrot.slane %v300_v57, 4  ;;  %v579_v8 = vrot.slane %v2312_v15, 5  ;;  %v2134_v15 = vld [vmem:[%s3018_s1 + $0x8] sm:$0xff]  ;;  %v1817_v16 = vor.u32 %v2377_v6, %v2374_v5  ;;  %v622_v17 = vunpack.c.l.b16 %v576_v7  ;;  %v2402_v19 = vld [vmem:[%s2289_s5 + $0x1c] sm:$0x1]  ;;  %v2149_v46 = vld [vmem:[%s3018_s1 + $0x80] sm:$0xff] }
  0x1b   : > { %v292_v12 = vsel %vm2333_vm4, %v287_v1, %v291_v52  ;;  %v360_v21 = vpack.c.b16 %v2371_v3, %v2368_v0  ;;  %v252_v22 = vshrl.u32 %v190_v9, 16  ;;  %v255_v23 = vshll.u32 %v190_v9, 16  ;;  %v194_v25 = vld [vmem:[%s2289_s5 + $0x30] sm:$0xf]  ;;  %v195_v32 = vld [vmem:[%s2289_s5 + $0x38] sm:$0xf] }
  0x1c   : > { %420 = vmatpush.bf16.msra.mxu0 %v2144_v38  ;;  %2193 = vmatpush.bf16.msra.mxu3 %v2144_v38  ;;  %v306_v13 = vsel %vm2333_vm4, %v301_v4, %v305_v53  ;;  %v580_v14 = vsel %vm2349_vm5, %v1863_v2, %v579_v8  ;;  %v266_v24 = vshrl.u32 %v191_v10, 16  ;;  %v356_v26 = vunpack.c.l.b16 %v292_v12  ;;  %v2412_v33 = vld [vmem:[%s2289_s5 + $0x34] sm:$0x1]  ;;  %v2416_v38 = vld [vmem:[%s2289_s5 + $0x3c] sm:$0x1]  ;;  %s3036_s13 = smov (!%p184_p4, %s2255_s13), 1 }
  0x1d   : > { %521 = vmatpush.bf16.msra.mxu1 %v2136_v39  ;;  %v357_v27 = vunpack.c.l.b16 %v306_v13  ;;  %v623_v29 = vunpack.c.l.b16 %v580_v14  ;;  %v269_v30 = vshll.u32 %v191_v10, 16  ;;  %v254_v34 = vrot.slane %v252_v22, 4  ;;  %v2141_v39 = vld [vmem:[%s3018_s1 + $0x40] sm:$0xff]  ;;  %v2172_v47 = vld [vmem:[%s3018_s1 + $0x138] sm:$0xff]  ;;  %v2477_v3 = vld [vmem:[%s3018_s1 + $0x1b0] sm:$0xff]  ;;  %s1765_s20 = sshll.u32 %s3036_s13, 1 }
  0x1e   : > { %690 = vmatpush.bf16.msra.mxu2 %v2152_v45  ;;  %v257_v35 = vrot.slane %v255_v23, 5  ;;  %v261_v36 = vshll.u32 %v2399_v18, 16  ;;  %v268_v37 = vrot.slane %v266_v24, 4  ;;  %v275_v42 = vshll.u32 %v2402_v19, 16  ;;  %v2133_v45 = vld [vmem:[%s3018_s1] sm:$0xff]  ;;  %v2164_v53 = vld [vmem:[%s3018_s1 + $0xf8] sm:$0xff]  ;;  %s187_s22 = scalar_lea.vmem %s3020_s3, %s1765_s20 }
  0x1f   : > { %v271_v41 = vrot.slane %v269_v30, 5  ;;  %v308_v43 = vshrl.u32 %v194_v25, 16  ;;  %v311_v44 = vshll.u32 %v194_v25, 16  ;;  %v317_v50 = vshll.u32 %v2412_v33, 16  ;;  %v2440_v9 = vld [vmem:[%s2289_s5 + $0x18] sm:$0xe] }
  0x20   : > { %421 = vmatpush.bf16.msra.mxu0 %v2143_v60  ;;  %2194 = vmatpush.bf16.msra.mxu3 %v2143_v60  ;;  %v258_v48 = vor.u32 %v257_v35, %v254_v34  ;;  %v322_v51 = vshrl.u32 %v195_v32, 16  ;;  %v325_v52 = vshll.u32 %v195_v32, 16  ;;  %v331_v59 = vshll.u32 %v2416_v38, 16  ;;  %v2437_v60 = vld [vmem:[%s2289_s5 + $0x10] sm:$0xe]  ;;  %v2445_v10 = vld [vmem:[%s3018_s1 + $0x1b8] sm:$0xff] }
  0x21   : > { %522 = vmatpush.bf16.msra.mxu1 %v2135_v61  ;;  %v272_v56 = vor.u32 %v271_v41, %v268_v37  ;;  %v310_v57 = vrot.slane %v308_v43, 4  ;;  %v313_v58 = vrot.slane %v311_v44, 5  ;;  %v362_v61 = vpack.c.b16 %v357_v27, %v356_v26  ;;  %v2170_v30 = vld [vmem:[%s3018_s1 + $0x128] sm:$0xff] }
  0x22   : > { %691 = vmatpush.bf16.msra.mxu2 %v2151_v62  ;;  %v630_v62 = vpack.c.b16 %v623_v29, %v622_v17  ;;  %v324_v63 = vrot.slane %v322_v51, 4  ;;  %v327_v1 = vrot.slane %v325_v52, 5  ;;  %v259_v2 = vrot.slane %v258_v48, 4  ;;  %v2171_v17 = vld [vmem:[%s3018_s1 + $0x130] sm:$0xff]  ;;  %v2162_v32 = vld [vmem:[%s3018_s1 + $0xe8] sm:$0xff]  ;;  %v2169_v52 = vld [vmem:[%s3018_s1 + $0x120] sm:$0xff] }
  0x23   : > { %v263_v4 = vrot.slane %v261_v36, 5  ;;  %v277_v7 = vrot.slane %v275_v42, 5  ;;  %v314_v8 = vor.u32 %v313_v58, %v310_v57  ;;  %v273_v12 = vrot.slane %v272_v56, 4  ;;  %v2506_v36 = vld [vmem:[%s2289_s5 + $0x4] sm:$0x3]  ;;  %v2533_v48 = vld [vmem:[%s3018_s1 + $0x168] sm:$0xff] }
  0x24   : > { %422 = vmatpush.bf16.msra.mxu0 %v2142_v11  ;;  %2195 = vmatpush.bf16.msra.mxu3 %v2142_v11  ;;  %v2450_v11 = vld [vmem:[%s3018_s1 + $0x178] sm:$0xff]  ;;  %v328_v13 = vor.u32 %v327_v1, %v324_v63  ;;  %v1864_v14 = vrot.slane %v2437_v60, 9  ;;  %v319_v23 = vrot.slane %v317_v50, 5  ;;  %v333_v24 = vrot.slane %v331_v59, 5  ;;  %v2517_v44 = vld [vmem:[%s2289_s5 + $0xc] sm:$0x3] }
  0x25   : > { %523 = vmatpush.bf16.msra.mxu1 %v2134_v15  ;;  %v583_v15 = vrot.slane %v2399_v18, 5  ;;  %v315_v22 = vrot.slane %v314_v8, 4  ;;  %v735_v18 = vshrl.u32 %v2342_v49, 16  ;;  %v1865_v26 = vrot.slane %v2440_v9, 9  ;;  %v2544_v57 = vld [vmem:[%s2289_s5 + $0x28] sm:$0xe] }
  0x26   : > { %692 = vmatpush.bf16.msra.mxu2 %v2150_v20  ;;  %v2163_v20 = vld [vmem:[%s3018_s1 + $0xf0] sm:$0xff]  ;;  %v329_v25 = vrot.slane %v328_v13, 4  ;;  %v587_v27 = vrot.slane %v2402_v19, 5  ;;  %v738_v29 = vshll.u32 %v2342_v49, 16  ;;  %v264_v0 = vsel %vm2333_vm4, %v259_v2, %v263_v4  ;;  %v2130_v63 = vld [vmem:[%s2289_s5 + $0x14] sm:$0xf0] }
  0x27   : > { %v278_v5 = vsel %vm2333_vm4, %v273_v12, %v277_v7  ;;  %v2483_v6 = vsel %vm2349_vm5, %v1864_v14, %v583_v15  ;;  %v2488_v49 = vld [vmem:[%s3018_s1 + $0x170] sm:$0xff]  ;;  %v753_v19 = vshrl.u32 %v2345_v54, 16  ;;  %v320_v34 = vsel %vm2333_vm4, %v315_v22, %v319_v23  ;;  %v2551_v8 = vld [vmem:[%s2289_s5] sm:$0xc]  ;;  %v2160_v22 = vld [vmem:[%s3018_s1 + $0xd8] sm:$0xff] }
  0x28   : > { %423 = vmatpush.bf16.msra.mxu0 %v2141_v39  ;;  %2196 = vmatpush.bf16.msra.mxu3 %v2141_v39  ;;  %v334_v35 = vsel %vm2333_vm4, %v329_v25, %v333_v24  ;;  %v2508_v37 = vunpack.c.l.b16 %v264_v0  ;;  %v737_v39 = vrot.slane %v735_v18, 5  ;;  %v2512_v41 = vunpack.c.l.b16 %v278_v5  ;;  %v2559_v14 = vld [vmem:[%s3018_s1 + $0x1a0] sm:$0xff]  ;;  %v2585_v0 = vld [vmem:[%s2289_s5 + $0x8] sm:$0xc] }
  0x29   : > { %524 = vmatpush.bf16.msra.mxu1 %v2133_v45  ;;  %v624_v42 = vunpack.c.l.b16 %v2483_v6  ;;  %v740_v45 = vrot.slane %v738_v29, 6  ;;  %v2520_v40 = vunpack.c.l.b16 %v320_v34  ;;  %v744_v50 = vshrl.u32 %v2506_v36, 16 }
  0x2a   : > { %693 = vmatpush.bf16.msra.mxu2 %v2149_v46  ;;  %v2522_v46 = vunpack.c.l.b16 %v334_v35  ;;  %v747_v51 = vshll.u32 %v2506_v36, 16  ;;  %v755_v59 = vrot.slane %v753_v19, 5  ;;  %v762_v4 = vshrl.u32 %v2517_v44, 16  ;;  %v2604_v35 = vld [vmem:[%s3018_s1 + $0x198] sm:$0xff] }
  0x2b   : > { %424 = vmatmul.bf16.vlgmr.msra.gmra.mxu0 %v360_v21  ;;  %434 = vmatmul.bf16.vlgmr.msra.gmra.mxu3 %v362_v61  ;;  %v756_v21 = vshll.u32 %v2345_v54, 16  ;;  %v588_v54 = vsel %vm2349_vm5, %v1865_v26, %v587_v27  ;;  %v741_v58 = vor.u32 %v740_v45, %v737_v39  ;;  %v746_v1 = vrot.slane %v744_v50, 5 }
  0x2c   : > { %1136 = vmatpush.bf16.msrb.mxu0 %v2172_v47  ;;  %959 = vmatpush.bf16.msrb.mxu3 %v2164_v53  ;;  %v2528_v47 = vld [vmem:[%s3018_s1 + $0x1a8] sm:$0xff]  ;;  %v2161_v53 = vld [vmem:[%s3018_s1 + $0xe0] sm:$0xff]  ;;  %v625_v56 = vunpack.c.l.b16 %v588_v54  ;;  %v749_v2 = vrot.slane %v747_v51, 6  ;;  %v765_v7 = vshll.u32 %v2517_v44, 16  ;;  %v591_v12 = vrot.slane %v2319_v28, 5  ;;  %v2159_v54 = vld [vmem:[%s3018_s1 + $0xd0] sm:$0xff] }
  0x2d   : > { %525 = vmatmul.bf16.vlgmr.msra.gmra.mxu1 %v1817_v16  ;;  %694 = vmatmul.bf16.vlgmr.msra.gmra.mxu2 %v630_v62  ;;  %v2491_v16 = vld [vmem:[%s2289_s5 + $0x20] sm:$0xe]  ;;  %v758_v61 = vrot.slane %v756_v21, 6  ;;  %v1820_v62 = vld [vmem:[%s2289_s5 + $0x10] sm:$0xf]  ;;  %v764_v15 = vrot.slane %v762_v4, 5  ;;  %v361_v26 = vpack.c.b16 %v2512_v41, %v2508_v37  ;;  %v363_v27 = vpack.c.b16 %v2522_v46, %v2520_v40 }
  0x2e   : > { %1586 = vmatpush.bf16.msrb.mxu2 %v2445_v10  ;;  %2197 = vmatpush.bf16.msrb.mxu1 %v2450_v11  ;;  %v1866_v43 = vrot.slane %v2491_v16, 9  ;;  %vm731_vm6 = vsmask.f32 2304  ;;  %vm732_vm7 = vsmask.f32 6416  ;;  %v2564_v28 = vld [vmem:[%s3018_s1 + $0x160] sm:$0xff]  ;;  %v750_v25 = vor.u32 %v749_v2, %v746_v1 }
  0x2f   : > { %v759_v13 = vor.u32 %v758_v61, %v755_v59  ;;  %v1867_v23 = vrot.slane %v2544_v57, 9  ;;  %v595_v24 = vrot.slane %v2322_v31, 5  ;;  %v742_v18 = vrot.slane %v741_v58, 4  ;;  %vm2580_vm10 = vmor %vm731_vm6, %vm732_vm7  ;;  %v2167_v37 = vld [vmem:[%s3018_s1 + $0x110] sm:$0xff]  ;;  %v2166_v61 = vld [vmem:[%s3018_s1 + $0x108] sm:$0xff] }
  0x30   : > { %1137 = vmatpush.bf16.msrb.mxu0 %v2171_v17  ;;  %960 = vmatpush.bf16.msrb.mxu3 %v2163_v20  ;;  %v767_v17 = vrot.slane %v765_v7, 6  ;;  %v2168_v20 = vld [vmem:[%s3018_s1 + $0x118] sm:$0xff]  ;;  %v1966_v5 = vrot.slane %v2551_v8, 10  ;;  %v1025_v31 = vrot.slane %v2506_v36, 6  ;;  %v1821_v6 = vor.u32 %v2130_v63, %v1820_v62  ;;  %v2632_v40 = vld [vmem:[%s2289_s5 + $0x14] sm:$0x3] }
  0x31   : > { %v631_v19 = vpack.c.b16 %v625_v56, %v624_v42  ;;  %v760_v21 = vrot.slane %v759_v13, 4  ;;  %v2598_v34 = vsel %vm2349_vm5, %v1866_v43, %v591_v12  ;;  %v2609_v36 = vld [vmem:[%s3018_s1 + $0x158] sm:$0xff]  ;;  %v2619_v39 = vsel %vm2349_vm5, %v1867_v23, %v595_v24  ;;  %v2654_v59 = vld [vmem:[%s3018_s1 + $0x150] sm:$0xff]  ;;  %v2158_v62 = vld [vmem:[%s3018_s1 + $0xc8] sm:$0xff] }
  0x32   : > { %1587 = vmatpush.bf16.msrb.mxu2 %v2477_v3  ;;  %2198 = vmatpush.bf16.msrb.mxu1 %v2488_v49  ;;  %v2623_v41 = vsel %vm2580_vm10, %v742_v18, %v750_v25  ;;  %v1967_v42 = vrot.slane %v2585_v0, 10  ;;  %v1029_v43 = vrot.slane %v2517_v44, 6  ;;  %v2629_v45 = vsel %vm2591_vm11, %v1966_v5, %v1025_v31  ;;  %v2644_v44 = vld [vmem:[%s3018_s1 + $0x190] sm:$0xff]  ;;  %v2668_v4 = vld [vmem:[%s2289_s5 + $0x20] sm:$0xf] }
  0x33   : > { %v626_v46 = vunpack.c.l.b16 %v2598_v34  ;;  %v627_v51 = vunpack.c.l.b16 %v2619_v39  ;;  %v771_v56 = vshrl.u32 %v2437_v60, 16  ;;  %v774_v58 = vshll.u32 %v2437_v60, 16  ;;  %v2680_v25 = vld [vmem:[%s2289_s5 + $0x18] sm:$0xc] }
  0x34   : > { %1138 = vmatpush.bf16.msrb.mxu0 %v2170_v30  ;;  %961 = vmatpush.bf16.msrb.mxu3 %v2162_v32  ;;  %v768_v30 = vor.u32 %v767_v17, %v764_v15  ;;  %v1030_v63 = vsel %vm2591_vm11, %v1967_v42, %v1029_v43  ;;  %v1072_v60 = vunpack.c.l.b16 %v2629_v45  ;;  %v780_v1 = vshrl.u32 %v2632_v40, 16  ;;  %v2672_v17 = vld [vmem:[%s2289_s5 + $0x10] sm:$0xc] }
  0x35   : > { %v783_v2 = vshll.u32 %v2632_v40, 16  ;;  %v773_v12 = vrot.slane %v771_v56, 5  ;;  %v776_v13 = vrot.slane %v774_v58, 6  ;;  %v789_v15 = vshrl.u32 %v2440_v9, 16 }
  0x36   : > { %1588 = vmatpush.bf16.msrb.mxu2 %v2528_v47  ;;  %2199 = vmatpush.bf16.msrb.mxu1 %v2533_v48  ;;  %v769_v50 = vsel %vm2580_vm10, %v760_v21, %v768_v30  ;;  %v792_v24 = vshll.u32 %v2440_v9, 16  ;;  %v2691_v9 = vld [vmem:[%s3018_s1 + $0x188] sm:$0xff]  ;;  %v2157_v21 = vld [vmem:[%s3018_s1 + $0xc0] sm:$0xff]  ;;  %v2702_v30 = vld [vmem:[%s2289_s5 + $0x30] sm:$0xe]  ;;  %v1968_v39 = vrot.slane %v2672_v17, 10  ;;  %v632_v58 = vpack.c.b16 %v627_v51, %v626_v46 }
  0x37   : > { %v896_v7 = vunpack.c.l.b16 %v769_v50  ;;  %v785_v23 = vrot.slane %v783_v2, 6  ;;  %v777_v5 = vor.u32 %v776_v13, %v773_v12  ;;  %v791_v31 = vrot.slane %v789_v15, 5  ;;  %v2725_v46 = vld [vmem:[%s3018_s1 + $0x140] sm:$0xff] }
  0x38   : > { %1139 = vmatpush.bf16.msrb.mxu0 %v2169_v52  ;;  %962 = vmatpush.bf16.msrb.mxu3 %v2161_v53  ;;  %v895_v52 = vunpack.c.l.b16 %v2623_v41  ;;  %v2647_v53 = vld [vmem:[%s2289_s5 + $0x1c] sm:$0x3]  ;;  %v2706_v41 = vld [vmem:[%s2289_s5 + $0x38] sm:$0xe]  ;;  %v1033_v45 = vrot.slane %v2632_v40, 6  ;;  %v1969_v50 = vrot.slane %v2680_v25, 10 }
  0x39   : > { %v798_v18 = vshrl.u32 %v2647_v53, 16  ;;  %v778_v42 = vrot.slane %v777_v5, 4  ;;  %v599_v2 = vrot.slane %v2412_v33, 5  ;;  %v2720_v40 = vld [vmem:[%s3018_s1 + $0x180] sm:$0xff]  ;;  %v807_v15 = vshrl.u32 %v2491_v16, 16 }
  0x3a   : > { %1589 = vmatpush.bf16.msrb.mxu2 %v2559_v14  ;;  %2200 = vmatpush.bf16.msrb.mxu1 %v2564_v28  ;;  %v2728_v51 = vld [vmem:[%s2289_s5 + $0x24] sm:$0x3]  ;;  %v1034_v13 = vsel %vm2591_vm11, %v1968_v39, %v1033_v45  ;;  %v1203_v45 = vshrl.u32 %v2585_v0, 16  ;;  %vm1181_vm12 = vsmask.f32 1280  ;;  %vm1470_vm14 = vcmask 1040384  }
  0x3b   : > { %429 = vmatmul.bf16.gmra.mxu0 %v361_v26  ;;  %439 = vmatmul.bf16.gmra.mxu3 %v363_v27  ;;  %v2683_v26 = vld [vmem:[%s2289_s5 + $0x24] sm:$0xf0]  ;;  %v1073_v27 = vunpack.c.l.b16 %v1030_v63  ;;  %v903_v63 = vpack.c.b16 %v896_v7, %v895_v52  ;;  %v1869_v52 = vrot.slane %v2706_v41, 9  ;;  %v1074_v5 = vunpack.c.l.b16 %v1034_v13 }
  0x3c   : > { %1140 = vmatpush.bf16.msrb.mxu0 %v2168_v20  ;;  %963 = vmatpush.bf16.msrb.mxu3 %v2160_v22  ;;  %v2165_v20 = vld [vmem:[%s3018_s1 + $0x100] sm:$0xff]  ;;  %v782_v22 = vrot.slane %v780_v1, 5  ;;  %v1825_v56 = vor.u32 %v2683_v26, %v2668_v4  ;;  %v1868_v1 = vrot.slane %v2702_v30, 9  ;;  %v2758_v26 = vld [vmem:[%s2289_s5 + $0x34] sm:$0xf0]  ;;  %v809_v55 = vrot.slane %v807_v15, 5 }
  0x3d   : > { %530 = vmatmul.bf16.gmra.mxu1 %v1821_v6  ;;  %699 = vmatmul.bf16.gmra.mxu2 %v631_v19  ;;  %v801_v6 = vshll.u32 %v2647_v53, 16  ;;  %v2696_v19 = vld [vmem:[%s3018_s1 + $0x148] sm:$0xff]  ;;  %v1080_v33 = vpack.c.b16 %v1073_v27, %v1072_v60  ;;  %vm1182_vm13 = vsmask.f32 5392  ;;  %vm1471_vm0 = vcmask 1044484  }
  0x3e   : > { %1590 = vmatpush.bf16.msrb.mxu2 %v2604_v35  ;;  %2201 = vmatpush.bf16.msrb.mxu1 %v2609_v36  ;;  %v786_v34 = vor.u32 %v785_v23, %v782_v22  ;;  %v1185_v22 = vshrl.u32 %v2551_v8, 16  ;;  %v1188_v23 = vshll.u32 %v2551_v8, 16  ;;  %vm2823_vm15 = vmor %vm1181_vm12, %vm1182_vm13 }
  0x3f   : > { %v803_v43 = vrot.slane %v801_v6, 6  ;;  %v2766_v6 = vld [vmem:[%s2289_s5 + $0x2c] sm:$0x3]  ;;  %vm2835_vm1 = vmor %vm1470_vm14, %vm1471_vm0 }
  0x40   : > { %1141 = vmatpush.bf16.msrb.mxu0 %v2167_v37  ;;  %964 = vmatpush.bf16.msrb.mxu3 %v2159_v54  ;;  %v794_v37 = vrot.slane %v792_v24, 6  ;;  %v800_v54 = vrot.slane %v798_v18, 5  ;;  %v787_v7 = vsel %vm2580_vm10, %v778_v42, %v786_v34  ;;  %v2749_v24 = vld [vmem:[%s2289_s5 + $0x30] sm:$0xf]  ;;  %v2753_v18 = vsel %vm2349_vm5, %v1868_v1, %v599_v2  ;;  %v2786_v1 = vld [vmem:[%s2289_s5 + $0x14] sm:$0x7] }
  0x41   : > { %v897_v27 = vunpack.c.l.b16 %v787_v7  ;;  %v1233_v15 = vshll.u32 %v2786_v1, 16 }
  0x42   : > { %1591 = vmatpush.bf16.msrb.mxu2 %v2644_v44  ;;  %2202 = vmatpush.bf16.msrb.mxu1 %v2654_v59  ;;  %v804_v12 = vor.u32 %v803_v43, %v800_v54  ;;  %v828_v54 = vshll.u32 %v2544_v57, 16 }
  0x44   : > { %1142 = vmatpush.bf16.msrb.mxu0 %v2166_v61  ;;  %965 = vmatpush.bf16.msrb.mxu3 %v2158_v62  ;;  %v795_v61 = vor.u32 %v794_v37, %v791_v31  ;;  %v1037_v62 = vrot.slane %v2647_v53, 6  ;;  %v603_v53 = vrot.slane %v2416_v38, 5  ;;  %v1221_v31 = vshrl.u32 %v2672_v17, 16 }
  0x45   : > { %v825_v37 = vshrl.u32 %v2544_v57, 16  ;;  %v834_v57 = vshrl.u32 %v2766_v6, 16 }
  0x46   : > { %1592 = vmatpush.bf16.msrb.mxu2 %v2691_v9  ;;  %2203 = vmatpush.bf16.msrb.mxu1 %v2696_v19  ;;  %v796_v4 = vrot.slane %v795_v61, 4  ;;  %v1038_v60 = vsel %vm2591_vm11, %v1969_v50, %v1037_v62  ;;  %v1829_v50 = vor.u32 %v2758_v26, %v2749_v24  ;;  %v1224_v61 = vshll.u32 %v2672_v17, 16 }
  0x47   : > { %v1075_v34 = vunpack.c.l.b16 %v1038_v60  ;;  %v1242_v62 = vshll.u32 %v2680_v25, 16  ;;  %v827_v17 = vrot.slane %v825_v37, 5  ;;  %v836_v7 = vrot.slane %v834_v57, 5  ;;  %v2810_v37 = vld [vmem:[%s2289_s5 + $0x4] sm:$0x7] }
  0x48   : > { %1143 = vmatpush.bf16.msrb.mxu0 %v2165_v20  ;;  %966 = vmatpush.bf16.msrb.mxu3 %v2157_v21  ;;  %v805_v38 = vsel %vm2580_vm10, %v796_v4, %v804_v12  ;;  %v816_v20 = vshrl.u32 %v2728_v51, 16  ;;  %v830_v12 = vrot.slane %v828_v54, 6  ;;  %v2797_v4 = vld [vmem:[%s2289_s5 + $0x20] sm:$0xc]  ;;  %v1226_v13 = vrot.slane %v1224_v61, 7 }
  0x49   : > { %v898_v21 = vunpack.c.l.b16 %v805_v38  ;;  %v2789_v2 = vpack.c.b16 %v1075_v34, %v1074_v5  ;;  %v1230_v60 = vshrl.u32 %v2786_v1, 16  ;;  %v1235_v5 = vrot.slane %v1233_v15, 7 }
  0x4a   : > { %1593 = vmatpush.bf16.msrb.mxu2 %v2720_v40  ;;  %2204 = vmatpush.bf16.msrb.mxu1 %v2725_v46  ;;  %v2770_v42 = vrot.slane %v816_v20, 5  ;;  %v1244_v20 = vrot.slane %v1242_v62, 7  ;;  %v1045_v61 = vrot.slane %v2766_v6, 6  ;;  %v1260_v8 = vshll.u32 %v2797_v4, 16 }
  0x4b   : > { %967 = vmatmul.bf16.vlgmr.msrb.gmra.mxu3 %v903_v63  ;;  %1144 = vmatmul.bf16.vlgmr.msrb.gmra.mxu0 %v1080_v33  ;;  %v837_v63 = vshll.u32 %v2766_v6, 16  ;;  %v2792_v33 = vld [vmem:[%s2289_s5 + $0x1c] sm:$0x7]  ;;  %v2829_v6 = vrot.slane %v1185_v22, 6 }
  0x4c   : > { %1409 = vmatpush.bf16.msra.mxu0 %v2450_v11  ;;  %2205 = vmatpush.bf16.msra.mxu3 %v2445_v10  ;;  %v810_v11 = vshll.u32 %v2491_v16, 16  ;;  %v819_v10 = vshll.u32 %v2728_v51, 16  ;;  %v2762_v16 = vsel %vm2349_vm5, %v1869_v52, %v603_v53  ;;  %v1251_v34 = vshll.u32 %v2792_v33, 16 }
  0x4d   : > { %535 = vmatmul.bf16.gmra.mxu1 %v1825_v56  ;;  %704 = vmatmul.bf16.gmra.mxu2 %v632_v58  ;;  %v628_v56 = vunpack.c.l.b16 %v2753_v18  ;;  %v1239_v58 = vshrl.u32 %v2680_v25, 16  ;;  %v1223_v25 = vrot.slane %v1221_v31, 6  ;;  %v839_v38 = vrot.slane %v837_v63, 6 }
  0x4e   : > { %v812_v39 = vrot.slane %v810_v11, 6  ;;  %v2772_v43 = vrot.slane %v819_v10, 6  ;;  %v1248_v10 = vshrl.u32 %v2792_v33, 16  ;;  %v831_v18 = vor.u32 %v830_v12, %v827_v17  ;;  %v1447_v17 = vld [vmem:[%s2289_s5 + $0x8] sm:$0x8] }
  0x4f   : > { %v1241_v11 = vrot.slane %v1239_v58, 6  ;;  %v1253_v57 = vrot.slane %v1251_v34, 7  ;;  %v1446_v58 = vld [vmem:[%s2289_s5] sm:$0x8]  ;;  %v861_v34 = vshrl.u32 %v2706_v41, 16 }
  0x50   : > { %1410 = vmatpush.bf16.msra.mxu0 %v2488_v49  ;;  %2206 = vmatpush.bf16.msra.mxu3 %v2477_v3  ;;  %v629_v49 = vunpack.c.l.b16 %v2762_v16  ;;  %v904_v3 = vpack.c.b16 %v898_v21, %v897_v27  ;;  %v813_v52 = vor.u32 %v812_v39, %v809_v55  ;;  %v822_v53 = vor.u32 %v2772_v43, %v2770_v42  ;;  %v2805_v16 = vld [vmem:[%s2289_s5 + $0x28] sm:$0xc]  ;;  %v2816_v39 = vld [vmem:[%s2289_s5 + $0xc] sm:$0x7] }
  0x51   : > { %v1227_v27 = vor.u32 %v1226_v13, %v1223_v25  ;;  %v1245_v31 = vor.u32 %v1244_v20, %v1241_v11  ;;  %v1250_v21 = vrot.slane %v1248_v10, 6  ;;  %v1041_v55 = vrot.slane %v2728_v51, 6  ;;  %v2842_v13 = vld [vmem:[%s2289_s5 + $0x34] sm:$0x3] }
  0x52   : > { %v814_v54 = vrot.slane %v813_v52, 4  ;;  %v840_v42 = vor.u32 %v839_v38, %v836_v7  ;;  %v1971_v43 = vrot.slane %v2805_v16, 10  ;;  %v832_v62 = vrot.slane %v831_v18, 4 }
  0x53   : > { %v1228_v63 = vrot.slane %v1227_v27, 4  ;;  %v633_v51 = vpack.c.b16 %v629_v49, %v628_v56  ;;  %v1254_v52 = vor.u32 %v1253_v57, %v1250_v21  ;;  %v2070_v49 = vrot.slane %v1446_v58, 11 }
  0x54   : > { %1411 = vmatpush.bf16.msra.mxu0 %v2533_v48  ;;  %2207 = vmatpush.bf16.msra.mxu3 %v2528_v47  ;;  %v1970_v48 = vrot.slane %v2797_v4, 10  ;;  %v1232_v47 = vrot.slane %v1230_v60, 6  ;;  %v1475_v7 = vrot.slane %v2810_v37, 7  ;;  %v823_v22 = vsel %vm2580_vm10, %v814_v54, %v822_v53 }
  0x55   : > { %v2071_v60 = vrot.slane %v1447_v17, 11  ;;  %v1479_v15 = vrot.slane %v2816_v39, 7  ;;  %v841_v38 = vsel %vm2580_vm10, %v832_v62, %v840_v42  ;;  %v846_v53 = vshll.u32 %v2702_v30, 16 }
  0x56   : > { %v1042_v25 = vsel %vm2591_vm11, %v1970_v48, %v1041_v55  ;;  %v852_v20 = vshrl.u32 %v2842_v13, 16  ;;  %v855_v10 = vshll.u32 %v2842_v13, 16  ;;  %v900_v27 = vunpack.c.l.b16 %v841_v38 }
  0x57   : > { %v1076_v18 = vunpack.c.l.b16 %v1042_v25  ;;  %v1480_v48 = vsel %vm2835_vm1, %v2071_v60, %v1479_v15  ;;  %v848_v26 = vrot.slane %v846_v53, 6  ;;  %v864_v54 = vshll.u32 %v2706_v41, 16 }
  0x58   : > { %1412 = vmatpush.bf16.msra.mxu0 %v2564_v28  ;;  %2208 = vmatpush.bf16.msra.mxu3 %v2559_v14  ;;  %v1236_v28 = vor.u32 %v1235_v5, %v1232_v47  ;;  %v1246_v14 = vrot.slane %v1245_v31, 4  ;;  %v1523_v55 = vunpack.c.l.b16 %v1480_v48  ;;  %v857_v42 = vrot.slane %v855_v10, 6 }
  0x59   : > { %v1206_v57 = vshll.u32 %v2585_v0, 16  ;;  %v1257_v17 = vshrl.u32 %v2797_v4, 16  ;;  %v1049_v4 = vrot.slane %v2842_v13, 6  ;;  %v1194_v48 = vshrl.u32 %v2810_v37, 16 }
  0x5a   : > { %v1237_v11 = vsel %vm2823_vm15, %v1228_v63, %v1236_v28  ;;  %v2885_v63 = vld [vmem:[%s2289_s5 + $0x30] sm:$0xc]  ;;  %v1215_v0 = vshll.u32 %v2816_v39, 16 }
  0x5b   : > { %972 = vmatmul.bf16.gmra.mxu3 %v904_v3  ;;  %1149 = vmatmul.bf16.gmra.mxu0 %v2789_v2  ;;  %v1255_v3 = vsel %vm2823_vm15, %v1246_v14, %v1254_v52  ;;  %v1476_v2 = vsel %vm2835_vm1, %v2070_v49, %v1475_v7  ;;  %v1347_v5 = vunpack.c.l.b16 %v1237_v11  ;;  %v866_v14 = vrot.slane %v864_v54, 6 }
  0x5c   : > { %1413 = vmatpush.bf16.msra.mxu0 %v2609_v36  ;;  %2209 = vmatpush.bf16.msra.mxu3 %v2604_v35  ;;  %v843_v36 = vshrl.u32 %v2702_v30, 16  ;;  %v1046_v35 = vsel %vm2591_vm11, %v1971_v43, %v1045_v61  ;;  %v2869_v30 = vld [vmem:[%s2289_s5 + $0x3c] sm:$0x3]  ;;  %v1348_v31 = vunpack.c.l.b16 %v1255_v3  ;;  %v1522_v21 = vunpack.c.l.b16 %v1476_v2  ;;  %v2876_v61 = vld [vmem:[%s2289_s5 + $0x24] sm:$0x7] }
  0x5d   : > { %540 = vmatmul.bf16.gmra.mxu1 %v1829_v50  ;;  %709 = vmatmul.bf16.gmra.mxu2 %v633_v51  ;;  %v899_v50 = vunpack.c.l.b16 %v823_v22  ;;  %v1077_v47 = vunpack.c.l.b16 %v1046_v35  ;;  %v870_v43 = vshrl.u32 %v2869_v30, 16  ;;  %v873_v62 = vshll.u32 %v2869_v30, 16  ;;  %v2903_v3 = vld [vmem:[%s2289_s5 + $0x38] sm:$0xc] }
  0x5e   : > { %v845_v24 = vrot.slane %v843_v36, 5  ;;  %v863_v51 = vrot.slane %v861_v34, 5  ;;  %v1266_v52 = vshrl.u32 %v2876_v61, 16  ;;  %v1530_v25 = vpack.c.b16 %v1523_v55, %v1522_v21  ;;  %v1449_v21 = vld [vmem:[%s2289_s5 + $0x18] sm:$0x8] }
  0x5f   : > { %v905_v41 = vpack.c.b16 %v900_v27, %v899_v50  ;;  %v1082_v28 = vpack.c.b16 %v1077_v47, %v1076_v18  ;;  %v872_v7 = vrot.slane %v870_v43, 5  ;;  %v1972_v22 = vrot.slane %v2885_v63, 10  ;;  %v1448_v50 = vld [vmem:[%s2289_s5 + $0x10] sm:$0x8] }
  0x60   : > { %1414 = vmatpush.bf16.msra.mxu0 %v2654_v59  ;;  %2210 = vmatpush.bf16.msra.mxu3 %v2644_v44  ;;  %v854_v59 = vrot.slane %v852_v20, 5  ;;  %v2880_v44 = vrot.slane %v1188_v23, 7  ;;  %v849_v58 = vor.u32 %v848_v26, %v845_v24  ;;  %v1354_v23 = vpack.c.b16 %v1348_v31, %v1347_v5 }
  0x61   : > { %v875_v60 = vrot.slane %v873_v62, 6  ;;  %v1259_v15 = vrot.slane %v1257_v17, 6  ;;  %v1262_v36 = vrot.slane %v1260_v8, 7  ;;  %v1269_v38 = vshll.u32 %v2876_v61, 16 }
  0x62   : > { %v858_v49 = vor.u32 %v857_v42, %v854_v59  ;;  %v1275_v35 = vshrl.u32 %v2805_v16, 16  ;;  %v1278_v11 = vshll.u32 %v2805_v16, 16  ;;  %v867_v53 = vor.u32 %v866_v14, %v863_v51 }
  0x63   : > { %v1263_v2 = vor.u32 %v1262_v36, %v1259_v15  ;;  %v1268_v20 = vrot.slane %v1266_v52, 6  ;;  %v1197_v24 = vshll.u32 %v2810_v37, 16  ;;  %v1212_v26 = vshrl.u32 %v2816_v39, 16 }
  0x64   : > { %1415 = vmatpush.bf16.msra.mxu0 %v2696_v19  ;;  %2211 = vmatpush.bf16.msra.mxu3 %v2691_v9  ;;  %v2894_v19 = vld [vmem:[%s2289_s5 + $0x2c] sm:$0x7]  ;;  %v850_v9 = vrot.slane %v849_v58, 4  ;;  %v1277_v18 = vrot.slane %v1275_v35, 6  ;;  %v1973_v27 = vrot.slane %v2903_v3, 10  ;;  %v1053_v47 = vrot.slane %v2869_v30, 6 }
  0x65   : > { %v1284_v10 = vshrl.u32 %v2894_v19, 16  ;;  %v1287_v13 = vshll.u32 %v2894_v19, 16  ;;  %v868_v54 = vrot.slane %v867_v53, 4  ;;  %v876_v55 = vor.u32 %v875_v60, %v872_v7  ;;  %v1180_v60 = vld [vmem:[%s2289_s5 + $0x3c] sm:$0x7] }
  0x66   : > { %v859_v34 = vsel %vm2580_vm10, %v850_v9, %v858_v49  ;;  %v1050_v37 = vsel %vm2591_vm11, %v1972_v22, %v1049_v4  ;;  %v1264_v59 = vrot.slane %v1263_v2, 4  ;;  %v2072_v43 = vrot.slane %v1448_v50, 11  ;;  %v2938_v49 = vld [vmem:[%s2289_s5 + $0x34] sm:$0x7] }
  0x67   : > { %v1286_v16 = vrot.slane %v1284_v10, 6  ;;  %v1289_v31 = vrot.slane %v1287_v13, 7  ;;  %v1483_v30 = vrot.slane %v2786_v1, 7  ;;  %v1205_v17 = vrot.slane %v1203_v45, 6 }
  0x68   : > { %1416 = vmatpush.bf16.msra.mxu0 %v2725_v46  ;;  %2212 = vmatpush.bf16.msra.mxu3 %v2720_v40  ;;  %v1271_v46 = vrot.slane %v1269_v38, 7  ;;  %v1280_v40 = vrot.slane %v1278_v11, 7  ;;  %v1208_v8 = vrot.slane %v1206_v57, 7  ;;  %v2924_v51 = vrot.slane %v1194_v48, 6 }
  0x69   : > { %v1290_v62 = vor.u32 %v1289_v31, %v1286_v16  ;;  %v877_v1 = vsel %vm2580_vm10, %v868_v54, %v876_v55  ;;  %v1054_v14 = vsel %vm2591_vm11, %v1973_v27, %v1053_v47  ;;  %v1293_v52 = vshrl.u32 %v2885_v63, 16  ;;  %v1450_v31 = vld [vmem:[%s2289_s5 + $0x20] sm:$0x8]  ;;  %v1452_v55 = vld [vmem:[%s2289_s5 + $0x30] sm:$0x8] }
  0x6a   : > { %v1281_v5 = vor.u32 %v1280_v40, %v1277_v18  ;;  %v1272_v42 = vor.u32 %v1271_v46, %v1268_v20  ;;  %v901_v45 = vunpack.c.l.b16 %v859_v34  ;;  %v1078_v57 = vunpack.c.l.b16 %v1050_v37  ;;  %v1453_v37 = vld [vmem:[%s2289_s5 + $0x38] sm:$0x8] }
  0x6b   : > { %977 = vmatmul.bf16.gmra.mxu3 %v905_v41  ;;  %1154 = vmatmul.bf16.gmra.mxu0 %v1082_v28  ;;  %v2073_v41 = vrot.slane %v1449_v21, 11  ;;  %v1487_v28 = vrot.slane %v2792_v33, 7  ;;  %v1296_v33 = vshll.u32 %v2885_v63, 16  ;;  %v1484_v32 = vsel %vm2835_vm1, %v2072_v43, %v1483_v30 }
  0x6c   : > { %v1282_v58 = vrot.slane %v1281_v5, 4  ;;  %v1273_v29 = vsel %vm2823_vm15, %v1264_v59, %v1272_v42  ;;  %v902_v22 = vunpack.c.l.b16 %v877_v1  ;;  %v1079_v9 = vunpack.c.l.b16 %v1054_v14 }
  0x6d   : > { %1422 = vmatmul.bf16.vlgmr.msrb.gmra.mxu1 %v1354_v23  ;;  %1594 = vmatmul.bf16.vlgmr.msrb.gmra.mxu2 %v1530_v25  ;;  %v2926_v23 = vrot.slane %v1197_v24, 7  ;;  %v2934_v25 = vrot.slane %v1212_v26, 6  ;;  %v1488_v63 = vsel %vm2835_vm1, %v2073_v41, %v1487_v28  ;;  %v1311_v39 = vshrl.u32 %v2903_v3, 16 }
  0x6e   : > { %v1291_v7 = vsel %vm2823_vm15, %v1282_v58, %v1290_v62  ;;  %v1314_v15 = vshll.u32 %v2903_v3, 16  ;;  %v1295_v36 = vrot.slane %v1293_v52, 6  ;;  %v1298_v4 = vrot.slane %v1296_v33, 7 }
  0x6f   : > { %v1302_v38 = vshrl.u32 %v2938_v49, 16  ;;  %v1305_v35 = vshll.u32 %v2938_v49, 16  ;;  %v1349_v11 = vunpack.c.l.b16 %v1273_v29  ;;  %v1350_v53 = vunpack.c.l.b16 %v1291_v7 }
  0x70   : > { %v1524_v2 = vunpack.c.l.b16 %v1484_v32  ;;  %v1525_v20 = vunpack.c.l.b16 %v1488_v63  ;;  %v1313_v10 = vrot.slane %v1311_v39, 6  ;;  %v1316_v46 = vrot.slane %v1314_v15, 7 }
  0x71   : > { %v1320_v18 = vshrl.u32 %v1180_v60, 16  ;;  %v1323_v40 = vshll.u32 %v1180_v60, 16  ;;  %v1217_v13 = vrot.slane %v1215_v0, 7  ;;  %v1083_v48 = vpack.c.b16 %v1079_v9, %v1078_v57 }
  0x72   : > { %v1191_v3 = vor.u32 %v2880_v44, %v2829_v6  ;;  %v1209_v24 = vor.u32 %v1208_v8, %v1205_v17  ;;  %v906_v26 = vpack.c.b16 %v902_v22, %v901_v45  ;;  %v1299_v16 = vor.u32 %v1298_v4, %v1295_v36  ;;  %v1451_v44 = vld [vmem:[%s2289_s5 + $0x28] sm:$0x8] }
  0x73   : > { %v1304_v50 = vrot.slane %v1302_v38, 6  ;;  %v1307_v27 = vrot.slane %v1305_v35, 7  ;;  %v1355_v47 = vpack.c.b16 %v1350_v53, %v1349_v11  ;;  %v1531_v5 = vpack.c.b16 %v1525_v20, %v1524_v2 }
  0x74   : > { %v1317_v21 = vor.u32 %v1316_v46, %v1313_v10  ;;  %v1322_v34 = vrot.slane %v1320_v18, 6  ;;  %v1325_v54 = vrot.slane %v1323_v40, 7  ;;  %v1192_v59 = vrot.slane %v1191_v3, 4 }
  0x75   : > { %v1200_v42 = vor.u32 %v2926_v23, %v2924_v51  ;;  %v1210_v43 = vrot.slane %v1209_v24, 4  ;;  %v1218_v6 = vor.u32 %v1217_v13, %v2934_v25  ;;  %v1300_v30 = vrot.slane %v1299_v16, 4 }
  0x76   : > { %v1308_v58 = vor.u32 %v1307_v27, %v1304_v50  ;;  %v2074_v62 = vrot.slane %v1450_v31, 11  ;;  %v1491_v41 = vrot.slane %v2876_v61, 7  ;;  %v2076_v28 = vrot.slane %v1452_v55, 11 }
  0x77   : > { %v1499_v17 = vrot.slane %v2938_v49, 7  ;;  %v2077_v8 = vrot.slane %v1453_v37, 11  ;;  %v1503_v1 = vrot.slane %v1180_v60, 7  ;;  %v1318_v14 = vrot.slane %v1317_v21, 4 }
  0x78   : > { %v1326_v51 = vor.u32 %v1325_v54, %v1322_v34  ;;  %v2075_v23 = vrot.slane %v1451_v44, 11  ;;  %v1495_v52 = vrot.slane %v2894_v19, 7  ;;  %v1201_v33 = vsel %vm2823_vm15, %v1192_v59, %v1200_v42 }
  0x79   : > { %v1219_v25 = vsel %vm2823_vm15, %v1210_v43, %v1218_v6  ;;  %v1500_v61 = vsel %vm2835_vm1, %v2076_v28, %v1499_v17  ;;  %v1504_v0 = vsel %vm2835_vm1, %v2077_v8, %v1503_v1  ;;  %v1309_v45 = vsel %vm2823_vm15, %v1300_v30, %v1308_v58 }
  0x7a   : > { %v1327_v57 = vsel %vm2823_vm15, %v1318_v14, %v1326_v51  ;;  %v1492_v19 = vsel %vm2835_vm1, %v2074_v62, %v1491_v41  ;;  %v1496_v49 = vsel %vm2835_vm1, %v2075_v23, %v1495_v52  ;;  %v1345_v29 = vunpack.c.l.b16 %v1201_v33 }
  0x7b   : > { %982 = vmatmul.bf16.gmra.mxu3 %v906_v26  ;;  %1159 = vmatmul.bf16.gmra.mxu0 %v1083_v48  ;;  %v1346_v7 = vunpack.c.l.b16 %v1219_v25  ;;  %v1528_v32 = vunpack.c.l.b16 %v1500_v61  ;;  %v1529_v63 = vunpack.c.l.b16 %v1504_v0  ;;  %v1351_v22 = vunpack.c.l.b16 %v1309_v45 }
  0x7c   : > { %v1352_v9 = vunpack.c.l.b16 %v1327_v57  ;;  %v1526_v60 = vunpack.c.l.b16 %v1492_v19  ;;  %v1527_v39 = vunpack.c.l.b16 %v1496_v49 }
  0x7d   : > { %1427 = vmatmul.bf16.gmra.mxu1 %v1355_v47  ;;  %1599 = vmatmul.bf16.gmra.mxu2 %v1531_v5  ;;  %v1353_v15 = vpack.c.b16 %v1346_v7, %v1345_v29  ;;  %v1533_v36 = vpack.c.b16 %v1529_v63, %v1528_v32 }
  0x7e   : > { %v1356_v4 = vpack.c.b16 %v1352_v9, %v1351_v22  ;;  %v1532_v38 = vpack.c.b16 %v1527_v39, %v1526_v60 }
  0x8b   : > { %1417 = vmatmul.bf16.vlgmr.msra.gmra.mxu0 %v1353_v15  ;;  %1609 = vmatmul.bf16.vlgmr.msra.gmra.mxu3 %v1533_v36 }
  0x8d   : > { %1432 = vmatmul.bf16.gmra.mxu1 %v1356_v4  ;;  %1604 = vmatmul.bf16.gmra.mxu2 %v1532_v38 }
  0xa8   : > { %v425_v12 = vpop.f32.mrf.mxu0 }
  0xaa   : > { %v526_v35 = vpop.f32.mrf.mxu1 }
  0xab   : > { %v527_v56 = vadd.f32 %v526_v35, %v425_v12 }
  0xae   : > { %v435_v11 = vpop.f32.mrf.mxu3 }
  0xb0   : > { %v695_v53 = vpop.f32.mrf.mxu2  ;;  %v427_v20 = vpop.f32.mrf.mxu0 }
  0xb1   : > { %v715_v2 = vadd.f32 %v695_v53, %v527_v56 }
  0xb2   : > { %v528_v10 = vpop.f32.mrf.mxu1 }
  0xb3   : > { %v529_v46 = vadd.f32 %v528_v10, %v427_v20 }
  0xb6   : > { %v2981_v18 = vpop.f32.mrf.mxu3 }
  0xb8   : > { %v697_v40 = vpop.f32.mrf.mxu2  ;;  %v430_v48 = vpop.f32.mrf.mxu0 }
  0xb9   : > { %v2983_v13 = vadd.f32 %v697_v40, %v529_v46 }
  0xba   : > { %v531_v3 = vpop.f32.mrf.mxu1 }
  0xbb   : > { %v532_v23 = vadd.f32 %v531_v3, %v430_v48 }
  0xbe   : > { %v440_v24 = vpop.f32.mrf.mxu3 }
  0xc0   : > { %v700_v26 = vpop.f32.mrf.mxu2  ;;  %v432_v16 = vpop.f32.mrf.mxu0 }
  0xc1   : > { %v717_v52 = vadd.f32 %v700_v26, %v532_v23 }
  0xc2   : > { %v533_v50 = vpop.f32.mrf.mxu1 }
  0xc3   : > { %v534_v57 = vadd.f32 %v533_v50, %v432_v16 }
  0xc6   : > { %v442_v27 = vpop.f32.mrf.mxu3 }
  0xc8   : > { %v702_v47 = vpop.f32.mrf.mxu2  ;;  %v1145_v5 = vpop.f32.mrf.mxu0 }
  0xc9   : > { %v718_v49 = vadd.f32 %v702_v47, %v534_v57 }
  0xca   : > { %v536_v31 = vpop.f32.mrf.mxu1 }
  0xcb   : > { %v537_v36 = vadd.f32 %v536_v31, %v435_v11 }
  0xce   : > { %v968_v21 = vpop.f32.mrf.mxu3 }
  0xcf   : > { %v988_v39 = vadd.f32 %v968_v21, %v715_v2 }
  0xd0   : > { %v705_v34 = vpop.f32.mrf.mxu2  ;;  %v2985_v54 = vpop.f32.mrf.mxu0 }
  0xd1   : > { %v719_v12 = vadd.f32 %v705_v34, %v537_v36  ;;  %v1165_v10 = vadd.f32 %v1145_v5, %v988_v39 }
  0xd2   : > { %v538_v55 = vpop.f32.mrf.mxu1 }
  0xd3   : > { %v539_v50 = vadd.f32 %v538_v55, %v2981_v18 }
  0xd6   : > { %v970_v37 = vpop.f32.mrf.mxu3 }
  0xd7   : > { %v989_v2 = vadd.f32 %v970_v37, %v2983_v13 }
  0xd8   : > { %v707_v59 = vpop.f32.mrf.mxu2  ;;  %v1150_v42 = vpop.f32.mrf.mxu0 }
  0xd9   : > { %v720_v5 = vadd.f32 %v707_v59, %v539_v50  ;;  %v1166_v13 = vadd.f32 %v2985_v54, %v989_v2 }
  0xda   : > { %v541_v43 = vpop.f32.mrf.mxu1 }
  0xdb   : > { %v542_v15 = vadd.f32 %v541_v43, %v440_v24 }
  0xde   : > { %v973_v6 = vpop.f32.mrf.mxu3 }
  0xdf   : > { %v990_v61 = vadd.f32 %v973_v6, %v717_v52 }
  0xe0   : > { %v710_v44 = vpop.f32.mrf.mxu2  ;;  %v1152_v30 = vpop.f32.mrf.mxu0 }
  0xe1   : > { %v1167_v19 = vadd.f32 %v1150_v42, %v990_v61  ;;  %v721_v38 = vadd.f32 %v710_v44, %v542_v15 }
  0xe2   : > { %v543_v58 = vpop.f32.mrf.mxu1 }
  0xe3   : > { %v544_v16 = vadd.f32 %v543_v58, %v442_v27 }
  0xe6   : > { %v975_v62 = vpop.f32.mrf.mxu3 }
  0xe7   : > { %v991_v63 = vadd.f32 %v975_v62, %v718_v49 }
  0xe8   : > { %v712_v41 = vpop.f32.mrf.mxu2  ;;  %v1155_v28 = vpop.f32.mrf.mxu0 }
  0xe9   : > { %v1168_v4 = vadd.f32 %v1152_v30, %v991_v63  ;;  %v722_v31 = vadd.f32 %v712_v41, %v544_v16 }
  0xea   : > { %v1423_v17 = vpop.f32.mrf.mxu1 }
  0xeb   : > { %v1440_v29 = vadd.f32 %v1423_v17, %v1167_v19 }
  0xee   : > { %v978_v8 = vpop.f32.mrf.mxu3 }
  0xef   : > { %v992_v46 = vadd.f32 %v978_v8, %v719_v12 }
  0xf0   : > { %v1595_v1 = vpop.f32.mrf.mxu2  ;;  %v2987_v14 = vpop.f32.mrf.mxu0 }
  0xf1   : > { %v1169_v47 = vadd.f32 %v1155_v28, %v992_v46 }
  0xf2   : > { %v1425_v51 = vpop.f32.mrf.mxu1 }
  0xf3   : > { %v1441_v35 = vadd.f32 %v1425_v51, %v1168_v4 }
  0xf6   : > { %v980_v33 = vpop.f32.mrf.mxu3 }
  0xf7   : > { %v993_v27 = vadd.f32 %v980_v33, %v720_v5 }
  0xf8   : > { %v1597_v25 = vpop.f32.mrf.mxu2  ;;  %v1160_v0 = vpop.f32.mrf.mxu0 }
  0xf9   : > { %v1170_v41 = vadd.f32 %v2987_v14, %v993_v27 }
  0xfa   : > { %v1428_v45 = vpop.f32.mrf.mxu1 }
  0xfb   : > { %v1442_v34 = vadd.f32 %v1428_v45, %v1169_v47 }
  0xfe   : > { %v983_v7 = vpop.f32.mrf.mxu3 }
  0xff   : > { %v994_v53 = vadd.f32 %v983_v7, %v721_v38 }
 0x100   : > { %v1600_v32 = vpop.f32.mrf.mxu2  ;;  %v1162_v9 = vpop.f32.mrf.mxu0 }
 0x101   : > { %v1617_v22 = vadd.f32 %v1600_v32, %v1440_v29  ;;  %v1171_v11 = vadd.f32 %v1160_v0, %v994_v53 }
 0x102   : > { %v1430_v60 = vpop.f32.mrf.mxu1 }
 0x103   : > { %1625 = vst [vmem:[%s2994_s19 + $0x10] sm:$0xff] %v1617_v22  ;;  %v1646_v51 = vmul.f32 %v1617_v22, %v1617_v22 }
 0x106   : > { %v985_v56 = vpop.f32.mrf.mxu3 }
 0x107   : > { %v995_v43 = vadd.f32 %v985_v56, %v722_v31 }
 0x108   : > { %v1602_v20 = vpop.f32.mrf.mxu2  ;;  %v1418_v48 = vpop.f32.mrf.mxu0 }
 0x109   : > { %v1618_v40 = vadd.f32 %v1602_v20, %v1441_v35  ;;  %v1438_v3 = vadd.f32 %v1418_v48, %v1165_v10  ;;  %v1172_v62 = vadd.f32 %v1162_v9, %v995_v43 }
 0x10a   : > { %v1433_v26 = vpop.f32.mrf.mxu1 }
 0x10b   : > { %1626 = vst [vmem:[%s2994_s19 + $0x18] sm:$0xff] %v1618_v40  ;;  %v1615_v24 = vadd.f32 %v1595_v1, %v1438_v3  ;;  %v1444_v21 = vadd.f32 %v1433_v26, %v1171_v11  ;;  %v1443_v1 = vadd.f32 %v1430_v60, %v1170_v41  ;;  %v1647_v45 = vmul.f32 %v1618_v40, %v1618_v40 }
 0x10d   : > { %1623 = vst [vmem:[%s2994_s19] sm:$0xff] %v1615_v24  ;;  %v1644_v59 = vmul.f32 %v1615_v24, %v1615_v24 }
 0x10e   : > { %v1610_v42 = vpop.f32.mrf.mxu3 }
 0x10f   : > { %v1621_v44 = vadd.f32 %v1610_v42, %v1444_v21 }
 0x110   : > { %v1605_v6 = vpop.f32.mrf.mxu2  ;;  %v1420_v30 = vpop.f32.mrf.mxu0 }
 0x111   : > { %v1619_v37 = vadd.f32 %v1605_v6, %v1442_v34  ;;  %1629 = vst [vmem:[%s2994_s19 + $0x30] sm:$0xff] %v1621_v44  ;;  %v1439_v58 = vadd.f32 %v1420_v30, %v1166_v13  ;;  %v1650_v63 = vmul.f32 %v1621_v44, %v1621_v44 }
 0x112   : > { %v1435_v18 = vpop.f32.mrf.mxu1 }
 0x113   : > { %1627 = vst [vmem:[%s2994_s19 + $0x20] sm:$0xff] %v1619_v37  ;;  %v1616_v55 = vadd.f32 %v1597_v25, %v1439_v58  ;;  %v1445_v8 = vadd.f32 %v1435_v18, %v1172_v62  ;;  %v1648_v14 = vmul.f32 %v1619_v37, %v1619_v37 }
 0x115   : > { %1624 = vst [vmem:[%s2994_s19 + $0x8] sm:$0xff] %v1616_v55  ;;  %v1631_v28 = vadd.f32 %v1616_v55, %v1615_v24  ;;  %v1645_v17 = vmul.f32 %v1616_v55, %v1616_v55 }
 0x116   : > { %v1612_v54 = vpop.f32.mrf.mxu3 }
 0x117   : > { %v1632_v23 = vadd.f32 %v1631_v28, %v1617_v22  ;;  %v1652_v52 = vadd.f32 %v1645_v17, %v1644_v59  ;;  %v1622_v61 = vadd.f32 %v1612_v54, %v1445_v8 }
 0x118   : > { %v1607_v33 = vpop.f32.mrf.mxu2 }
 0x119   : > { %v1620_v0 = vadd.f32 %v1607_v33, %v1443_v1  ;;  %v1653_v25 = vadd.f32 %v1652_v52, %v1646_v51  ;;  %v1633_v57 = vadd.f32 %v1632_v23, %v1618_v40  ;;  %1630 = vst [vmem:[%s2994_s19 + $0x38] sm:$0xff] %v1622_v61  ;;  %v1651_v39 = vmul.f32 %v1622_v61, %v1622_v61 }
 0x11b   : > { %1628 = vst [vmem:[%s2994_s19 + $0x28] sm:$0xff] %v1620_v0  ;;  %v1634_v19 = vadd.f32 %v1633_v57, %v1619_v37  ;;  %v1654_v49 = vadd.f32 %v1653_v25, %v1647_v45  ;;  %v1649_v7 = vmul.f32 %v1620_v0, %v1620_v0 }
 0x11d   : > { %v1635_v29 = vadd.f32 %v1634_v19, %v1620_v0  ;;  %v1655_v32 = vadd.f32 %v1654_v49, %v1648_v14 }
 0x11f   : > { %v1656_v9 = vadd.f32 %v1655_v32, %v1649_v7  ;;  %v1636_v22 = vadd.f32 %v1635_v29, %v1621_v44 }
 0x121   : > { %v1637_v60 = vadd.f32 %v1636_v22, %v1622_v61  ;;  %v1657_v15 = vadd.f32 %v1656_v9, %v1650_v63 }
 0x123   : > { %v1638_v36 = vrot.slane %v1637_v60, 4  ;;  %v1658_v4 = vadd.f32 %v1657_v15, %v1651_v39 }
 0x125   : > { %v1639_v38 = vadd.f32 %v1638_v36, %v1637_v60  ;;  %v1659_v12 = vrot.slane %v1658_v4, 4 }
 0x127   : > { %v1640_v35 = vrot.slane %v1639_v38, 2  ;;  %v1660_v56 = vadd.f32 %v1659_v12, %v1658_v4 }
 0x129   : > { %v1641_v53 = vadd.f32 %v1640_v35, %v1639_v38  ;;  %v1661_v20 = vrot.slane %v1660_v56, 2 }
 0x12b   : > { %v1642_v10 = vrot.slane %v1641_v53, 1  ;;  %v1662_v46 = vadd.f32 %v1661_v20, %v1660_v56 }
 0x12d   : > { %v1663_v40 = vrot.slane %v1662_v46, 1  ;;  %v1643_v48 = vadd.f32 %v1642_v10, %v1641_v53 }
 0x12f   : > { %v1664_v3 = vadd.f32 %v1663_v40, %v1662_v46 }
 0x131   : > { %v1666_v26 = vsel %vm1470_vm14, %v1643_v48, %v1664_v3 }
 0x132   : > { %1667 = vst [vmem:[%s187_s22] sm:$0x3] %v1666_v26 }
 0x133 PF: > { %s14_s12 = sadd.s32 1, %s2227_s12  }
 0x134   : > { %p11_p5 = scmp.ge.s32.totalorder %s14_s12, 4  }
 0x136   :  { %13 = sbr.rel (!%p11_p5) target bundleno = 1 (0x1), region = 76 }

// kernel: block17_forward.10
= control target key start
LH: loop header
LB: loop body
LE: loop exit
PB: predicated region body
PF: predicated region fallthrough
CT: control target
= control target key end

     0   :  { %s1877_s12 = smov 0   ;;  %s2150_s0 = inlined_call_operand.vmem [shape: bf16[2,14,8,128], index: 0, kind: input, shape index: {}]   ;;  %s2151_s1 = inlined_call_operand.vmem [shape: bf16[7,128,128], index: 1, kind: input, shape index: {}]   ;;  %s2152_s2 = inlined_call_operand.vmem [shape: f32[2,8,8,128], index: 2, kind: output, shape index: {0}]   ;;  %s2153_s3 = inlined_call_operand.vmem [shape: f32[2,2,128], index: 3, kind: output, shape index: {1}]  }
   0x1 LB: > { %s1240_s13 = sadd.s32 4294967295, %s1855_s12   ;;  %p1244_p0 = scmp.ge.s32.totalorder %s1855_s12, 1  ;;  %s1855_s12 = sphi %s1877_s12, %s14_s12  }
   0x2   : > { %p140_p1 = scmp.lt.s32.totalorder %s1855_s12, 3 }
   0x4   : > { %p141_p2 = pnand %p1244_p0, %p140_p1 }
   0x5   : > { %p168_p3 = scmp.lt.s32.totalorder (!%p141_p2), %s1240_s13, 1 }
   0x6   : > { %144 = sbr.rel (%p141_p2) target bundleno = 307 (0x133), region = 28 }
   0xb   : > { %v1755_v0 = vld [vmem:[%s2151_s1 + $0x78] sm:$0xff]  ;;  %v1754_v3 = vld [vmem:[%s2151_s1 + $0x70] sm:$0xff]  ;;  %v1753_v6 = vld [vmem:[%s2151_s1 + $0x68] sm:$0xff]  ;;  %s2155_s13 = smov (!%p168_p3, %s1240_s13), 1  ;;  %vm1151_vm0 = vcmask 1040384  }
   0xc   : > { %v1743_v1 = vld [vmem:[%s2151_s1 + $0x38] sm:$0xff]  ;;  %304 = vmatpush.bf16.msra.mxu0 %v1755_v0  ;;  %1816 = vmatpush.bf16.msra.mxu3 %v1755_v0  ;;  %v1742_v4 = vld [vmem:[%s2151_s1 + $0x30] sm:$0xff]  ;;  %v1741_v7 = vld [vmem:[%s2151_s1 + $0x28] sm:$0xff]  ;;  %s1840_s27 = smul.u32 56, %s2155_s13  ;;  %s1248_s8 = sshll.u32 %s2155_s13, 1 }
   0xd   : > { %v1767_v2 = vld [vmem:[%s2151_s1 + $0xb8] sm:$0xff]  ;;  %405 = vmatpush.bf16.msra.mxu1 %v1743_v1  ;;  %v1766_v5 = vld [vmem:[%s2151_s1 + $0xb0] sm:$0xff]  ;;  %v1765_v8 = vld [vmem:[%s2151_s1 + $0xa8] sm:$0xff]  ;;  %s181_s14 = scalar_lea.vmem %s2153_s3, %s1248_s8 }
   0xe   : > { %532 = vmatpush.bf16.msra.mxu2 %v1767_v2  ;;  %v1752_v9 = vld [vmem:[%s2151_s1 + $0x60] sm:$0xff]  ;;  %v1751_v12 = vld [vmem:[%s2151_s1 + $0x58] sm:$0xff]  ;;  %v1750_v15 = vld [vmem:[%s2151_s1 + $0x50] sm:$0xff]  ;;  %s1961_s9 = scalar_lea.vmem %s2150_s0, %s1840_s27 }
   0xf   : > { %v1740_v10 = vld [vmem:[%s2151_s1 + $0x20] sm:$0xff]  ;;  %v1739_v13 = vld [vmem:[%s2151_s1 + $0x18] sm:$0xff]  ;;  %v1738_v16 = vld [vmem:[%s2151_s1 + $0x10] sm:$0xff] }
  0x10   : > { %305 = vmatpush.bf16.msra.mxu0 %v1754_v3  ;;  %1817 = vmatpush.bf16.msra.mxu3 %v1754_v3  ;;  %v1764_v11 = vld [vmem:[%s2151_s1 + $0xa0] sm:$0xff]  ;;  %v1763_v14 = vld [vmem:[%s2151_s1 + $0x98] sm:$0xff]  ;;  %v1762_v17 = vld [vmem:[%s2151_s1 + $0x90] sm:$0xff] }
  0x11   : > { %406 = vmatpush.bf16.msra.mxu1 %v1742_v4  ;;  %v1749_v18 = vld [vmem:[%s2151_s1 + $0x48] sm:$0xff]  ;;  %v1748_v21 = vld [vmem:[%s2151_s1 + $0x40] sm:$0xff]  ;;  %v1791_v24 = vld [vmem:[%s2151_s1 + $0x138] sm:$0xff] }
  0x12   : > { %533 = vmatpush.bf16.msra.mxu2 %v1766_v5  ;;  %v1737_v19 = vld [vmem:[%s2151_s1 + $0x8] sm:$0xff]  ;;  %v1736_v22 = vld [vmem:[%s2151_s1] sm:$0xff]  ;;  %v1779_v25 = vld [vmem:[%s2151_s1 + $0xf8] sm:$0xff] }
  0x13   : > { %v1761_v20 = vld [vmem:[%s2151_s1 + $0x88] sm:$0xff]  ;;  %v1760_v23 = vld [vmem:[%s2151_s1 + $0x80] sm:$0xff]  ;;  %v1746_v27 = vld [vmem:[%s1961_s9 + $0x14] sm:$0xff] }
  0x14   : > { %306 = vmatpush.bf16.msra.mxu0 %v1753_v6  ;;  %1818 = vmatpush.bf16.msra.mxu3 %v1753_v6  ;;  %v1744_v26 = vld [vmem:[%s1961_s9 + $0x4] sm:$0xff]  ;;  %v1982_v30 = vld [vmem:[%s2151_s1 + $0x1b8] sm:$0xff]  ;;  %v1790_v32 = vld [vmem:[%s2151_s1 + $0x130] sm:$0xff] }
  0x15   : > { %407 = vmatpush.bf16.msra.mxu1 %v1741_v7  ;;  %v1732_v28 = vld [vmem:[%s1961_s9] sm:$0xff]  ;;  %v1756_v29 = vld [vmem:[%s1961_s9 + $0x8] sm:$0xff]  ;;  %v1987_v31 = vld [vmem:[%s2151_s1 + $0x178] sm:$0xff] }
  0x16   : > { %534 = vmatpush.bf16.msra.mxu2 %v1765_v8  ;;  %v1778_v33 = vld [vmem:[%s2151_s1 + $0xf0] sm:$0xff]  ;;  %v1789_v36 = vld [vmem:[%s2151_s1 + $0x128] sm:$0xff]  ;;  %v1788_v40 = vld [vmem:[%s2151_s1 + $0x120] sm:$0xff] }
  0x17   : > { %v2000_v34 = vld [vmem:[%s2151_s1 + $0x1b0] sm:$0xff]  ;;  %v1777_v37 = vld [vmem:[%s2151_s1 + $0xe8] sm:$0xff]  ;;  %v1776_v41 = vld [vmem:[%s2151_s1 + $0xe0] sm:$0xff] }
  0x18   : > { %307 = vmatpush.bf16.msra.mxu0 %v1752_v9  ;;  %1819 = vmatpush.bf16.msra.mxu3 %v1752_v9  ;;  %v2005_v35 = vld [vmem:[%s2151_s1 + $0x170] sm:$0xff]  ;;  %v2018_v38 = vld [vmem:[%s2151_s1 + $0x1a8] sm:$0xff]  ;;  %v1812_v42 = vld [vmem:[%s2151_s1 + $0x1a0] sm:$0xff] }
  0x19   : > { %408 = vmatpush.bf16.msra.mxu1 %v1740_v10  ;;  %v2023_v39 = vld [vmem:[%s2151_s1 + $0x168] sm:$0xff]  ;;  %v1800_v43 = vld [vmem:[%s2151_s1 + $0x160] sm:$0xff]  ;;  %v1787_v44 = vld [vmem:[%s2151_s1 + $0x118] sm:$0xff] }
  0x1a   : > { %535 = vmatpush.bf16.msra.mxu2 %v1764_v11  ;;  %v1775_v45 = vld [vmem:[%s2151_s1 + $0xd8] sm:$0xff]  ;;  %v1745_v46 = vld [vmem:[%s1961_s9 + $0xc] sm:$0xff]  ;;  %v1784_v60 = vld [vmem:[%s2151_s1 + $0x100] sm:$0xff] }
  0x1b   : > { %v1747_v47 = vld [vmem:[%s1961_s9 + $0x1c] sm:$0xff]  ;;  %v1733_v48 = vld [vmem:[%s1961_s9 + $0x8] sm:$0xff]  ;;  %v1757_v49 = vld [vmem:[%s1961_s9 + $0x10] sm:$0xff] }
  0x1c   : > { %308 = vmatpush.bf16.msra.mxu0 %v1751_v12  ;;  %1820 = vmatpush.bf16.msra.mxu3 %v1751_v12  ;;  %v1811_v50 = vld [vmem:[%s2151_s1 + $0x198] sm:$0xff]  ;;  %v1786_v52 = vld [vmem:[%s2151_s1 + $0x110] sm:$0xff]  ;;  %v1785_v56 = vld [vmem:[%s2151_s1 + $0x108] sm:$0xff] }
  0x1d   : > { %409 = vmatpush.bf16.msra.mxu1 %v1739_v13  ;;  %v1799_v51 = vld [vmem:[%s2151_s1 + $0x158] sm:$0xff]  ;;  %v1774_v53 = vld [vmem:[%s2151_s1 + $0xd0] sm:$0xff]  ;;  %v1773_v57 = vld [vmem:[%s2151_s1 + $0xc8] sm:$0xff] }
  0x1e   : > { %536 = vmatpush.bf16.msra.mxu2 %v1763_v14  ;;  %v1810_v54 = vld [vmem:[%s2151_s1 + $0x190] sm:$0xff]  ;;  %v1809_v58 = vld [vmem:[%s2151_s1 + $0x188] sm:$0xff]  ;;  %v1772_v61 = vld [vmem:[%s2151_s1 + $0xc0] sm:$0xff] }
  0x1f   : > { %v1798_v55 = vld [vmem:[%s2151_s1 + $0x150] sm:$0xff]  ;;  %v1797_v59 = vld [vmem:[%s2151_s1 + $0x148] sm:$0xff]  ;;  %v1808_v62 = vld [vmem:[%s2151_s1 + $0x180] sm:$0xff] }
  0x20   : > { %309 = vmatpush.bf16.msra.mxu0 %v1750_v15  ;;  %1821 = vmatpush.bf16.msra.mxu3 %v1750_v15  ;;  %v1796_v63 = vld [vmem:[%s2151_s1 + $0x140] sm:$0xff]  ;;  %v1768_v0 = vld [vmem:[%s1961_s9 + $0xc] sm:$0xff]  ;;  %v1758_v3 = vld [vmem:[%s1961_s9 + $0x18] sm:$0xff] }
  0x21   : > { %410 = vmatpush.bf16.msra.mxu1 %v1738_v16  ;;  %v1780_v1 = vld [vmem:[%s1961_s9 + $0x10] sm:$0xff]  ;;  %v1781_v5 = vld [vmem:[%s1961_s9 + $0x18] sm:$0xff]  ;;  %v1759_v7 = vld [vmem:[%s1961_s9 + $0x20] sm:$0xff] }
  0x22   : > { %537 = vmatpush.bf16.msra.mxu2 %v1762_v17  ;;  %v1734_v2 = vld [vmem:[%s1961_s9 + $0x10] sm:$0xff]  ;;  %v1735_v6 = vld [vmem:[%s1961_s9 + $0x18] sm:$0xff]  ;;  %v1782_v9 = vld [vmem:[%s1961_s9 + $0x20] sm:$0xff] }
  0x23   : > { %v1769_v4 = vld [vmem:[%s1961_s9 + $0x14] sm:$0xff]  ;;  %v1770_v8 = vld [vmem:[%s1961_s9 + $0x1c] sm:$0xff]  ;;  %v1771_v12 = vld [vmem:[%s1961_s9 + $0x24] sm:$0xff] }
  0x24   : > { %310 = vmatpush.bf16.msra.mxu0 %v1749_v18  ;;  %1822 = vmatpush.bf16.msra.mxu3 %v1749_v18  ;;  %v1793_v10 = vld [vmem:[%s1961_s9 + $0x1c] sm:$0xff]  ;;  %v1783_v13 = vld [vmem:[%s1961_s9 + $0x28] sm:$0xff]  ;;  %v1792_v16 = vld [vmem:[%s1961_s9 + $0x14] sm:$0xff] }
  0x25   : > { %411 = vmatpush.bf16.msra.mxu1 %v1737_v19  ;;  %v1804_v11 = vld [vmem:[%s1961_s9 + $0x18] sm:$0xff]  ;;  %v1794_v14 = vld [vmem:[%s1961_s9 + $0x24] sm:$0xff]  ;;  %v1807_v17 = vld [vmem:[%s1961_s9 + $0x30] sm:$0xff] }
  0x26   : > { %538 = vmatpush.bf16.msra.mxu2 %v1761_v20  ;;  %v1805_v15 = vld [vmem:[%s1961_s9 + $0x20] sm:$0xff]  ;;  %v1795_v18 = vld [vmem:[%s1961_s9 + $0x2c] sm:$0xff] }
  0x27   : > { %v1806_v19 = vld [vmem:[%s1961_s9 + $0x28] sm:$0xff]  ;;  %s1731_s9 = sshll.u32 %s2155_s13, 6 }
  0x28   : > { %311 = vmatpush.bf16.msra.mxu0 %v1748_v21  ;;  %1823 = vmatpush.bf16.msra.mxu3 %v1748_v21  ;;  %s2129_s7 = scalar_lea.vmem %s2152_s2, %s1731_s9 }
  0x29   : > { %412 = vmatpush.bf16.msra.mxu1 %v1736_v22 }
  0x2a   : > { %539 = vmatpush.bf16.msra.mxu2 %v1760_v23 }
  0x2b   : > { %312 = vmatmul.bf16.vlgmr.msra.gmra.mxu0 %v1744_v26  ;;  %322 = vmatmul.bf16.vlgmr.msra.gmra.mxu3 %v1746_v27 }
  0x2c   : > { %802 = vmatpush.bf16.msrb.mxu0 %v1791_v24  ;;  %667 = vmatpush.bf16.msrb.mxu3 %v1779_v25 }
  0x2d   : > { %413 = vmatmul.bf16.vlgmr.msra.gmra.mxu1 %v1732_v28  ;;  %540 = vmatmul.bf16.vlgmr.msra.gmra.mxu2 %v1756_v29 }
  0x2e   : > { %1072 = vmatpush.bf16.msrb.mxu2 %v1982_v30  ;;  %1824 = vmatpush.bf16.msrb.mxu1 %v1987_v31 }
  0x30   : > { %803 = vmatpush.bf16.msrb.mxu0 %v1790_v32  ;;  %668 = vmatpush.bf16.msrb.mxu3 %v1778_v33 }
  0x32   : > { %1073 = vmatpush.bf16.msrb.mxu2 %v2000_v34  ;;  %1825 = vmatpush.bf16.msrb.mxu1 %v2005_v35 }
  0x34   : > { %804 = vmatpush.bf16.msrb.mxu0 %v1789_v36  ;;  %669 = vmatpush.bf16.msrb.mxu3 %v1777_v37 }
  0x36   : > { %1074 = vmatpush.bf16.msrb.mxu2 %v2018_v38  ;;  %1826 = vmatpush.bf16.msrb.mxu1 %v2023_v39 }
  0x38   : > { %805 = vmatpush.bf16.msrb.mxu0 %v1788_v40  ;;  %670 = vmatpush.bf16.msrb.mxu3 %v1776_v41 }
  0x3a   : > { %1075 = vmatpush.bf16.msrb.mxu2 %v1812_v42  ;;  %1827 = vmatpush.bf16.msrb.mxu1 %v1800_v43 }
  0x3b   : > { %317 = vmatmul.bf16.gmra.mxu0 %v1745_v46  ;;  %327 = vmatmul.bf16.gmra.mxu3 %v1747_v47 }
  0x3c   : > { %806 = vmatpush.bf16.msrb.mxu0 %v1787_v44  ;;  %671 = vmatpush.bf16.msrb.mxu3 %v1775_v45 }
  0x3d   : > { %418 = vmatmul.bf16.gmra.mxu1 %v1733_v48  ;;  %545 = vmatmul.bf16.gmra.mxu2 %v1757_v49 }
  0x3e   : > { %1076 = vmatpush.bf16.msrb.mxu2 %v1811_v50  ;;  %1828 = vmatpush.bf16.msrb.mxu1 %v1799_v51 }
  0x40   : > { %807 = vmatpush.bf16.msrb.mxu0 %v1786_v52  ;;  %672 = vmatpush.bf16.msrb.mxu3 %v1774_v53 }
  0x42   : > { %1077 = vmatpush.bf16.msrb.mxu2 %v1810_v54  ;;  %1829 = vmatpush.bf16.msrb.mxu1 %v1798_v55 }
  0x44   : > { %808 = vmatpush.bf16.msrb.mxu0 %v1785_v56  ;;  %673 = vmatpush.bf16.msrb.mxu3 %v1773_v57 }
  0x46   : > { %1078 = vmatpush.bf16.msrb.mxu2 %v1809_v58  ;;  %1830 = vmatpush.bf16.msrb.mxu1 %v1797_v59 }
  0x48   : > { %809 = vmatpush.bf16.msrb.mxu0 %v1784_v60  ;;  %674 = vmatpush.bf16.msrb.mxu3 %v1772_v61 }
  0x4a   : > { %1079 = vmatpush.bf16.msrb.mxu2 %v1808_v62  ;;  %1831 = vmatpush.bf16.msrb.mxu1 %v1796_v63 }
  0x4b   : > { %675 = vmatmul.bf16.vlgmr.msrb.gmra.mxu3 %v1768_v0  ;;  %810 = vmatmul.bf16.vlgmr.msrb.gmra.mxu0 %v1780_v1 }
  0x4c   : > { %937 = vmatpush.bf16.msra.mxu0 %v1987_v31  ;;  %1832 = vmatpush.bf16.msra.mxu3 %v1982_v30 }
  0x4d   : > { %423 = vmatmul.bf16.gmra.mxu1 %v1734_v2  ;;  %550 = vmatmul.bf16.gmra.mxu2 %v1758_v3 }
  0x50   : > { %938 = vmatpush.bf16.msra.mxu0 %v2005_v35  ;;  %1833 = vmatpush.bf16.msra.mxu3 %v2000_v34 }
  0x54   : > { %939 = vmatpush.bf16.msra.mxu0 %v2023_v39  ;;  %1834 = vmatpush.bf16.msra.mxu3 %v2018_v38 }
  0x58   : > { %940 = vmatpush.bf16.msra.mxu0 %v1800_v43  ;;  %1835 = vmatpush.bf16.msra.mxu3 %v1812_v42 }
  0x5b   : > { %680 = vmatmul.bf16.gmra.mxu3 %v1769_v4  ;;  %815 = vmatmul.bf16.gmra.mxu0 %v1781_v5 }
  0x5c   : > { %941 = vmatpush.bf16.msra.mxu0 %v1799_v51  ;;  %1836 = vmatpush.bf16.msra.mxu3 %v1811_v50 }
  0x5d   : > { %428 = vmatmul.bf16.gmra.mxu1 %v1735_v6  ;;  %555 = vmatmul.bf16.gmra.mxu2 %v1759_v7 }
  0x60   : > { %942 = vmatpush.bf16.msra.mxu0 %v1798_v55  ;;  %1837 = vmatpush.bf16.msra.mxu3 %v1810_v54 }
  0x64   : > { %943 = vmatpush.bf16.msra.mxu0 %v1797_v59  ;;  %1838 = vmatpush.bf16.msra.mxu3 %v1809_v58 }
  0x68   : > { %944 = vmatpush.bf16.msra.mxu0 %v1796_v63  ;;  %1839 = vmatpush.bf16.msra.mxu3 %v1808_v62 }
  0x6b   : > { %685 = vmatmul.bf16.gmra.mxu3 %v1770_v8  ;;  %820 = vmatmul.bf16.gmra.mxu0 %v1782_v9 }
  0x6d   : > { %950 = vmatmul.bf16.vlgmr.msrb.gmra.mxu1 %v1793_v10  ;;  %1080 = vmatmul.bf16.vlgmr.msrb.gmra.mxu2 %v1804_v11 }
  0x7b   : > { %690 = vmatmul.bf16.gmra.mxu3 %v1771_v12  ;;  %825 = vmatmul.bf16.gmra.mxu0 %v1783_v13 }
  0x7d   : > { %955 = vmatmul.bf16.gmra.mxu1 %v1794_v14  ;;  %1085 = vmatmul.bf16.gmra.mxu2 %v1805_v15 }
  0x8b   : > { %945 = vmatmul.bf16.vlgmr.msra.gmra.mxu0 %v1792_v16  ;;  %1095 = vmatmul.bf16.vlgmr.msra.gmra.mxu3 %v1807_v17 }
  0x8d   : > { %960 = vmatmul.bf16.gmra.mxu1 %v1795_v18  ;;  %1090 = vmatmul.bf16.gmra.mxu2 %v1806_v19 }
  0xa8   : > { %v313_v20 = vpop.f32.mrf.mxu0 }
  0xaa   : > { %v414_v21 = vpop.f32.mrf.mxu1 }
  0xab   : > { %v415_v22 = vadd.f32 %v414_v21, %v313_v20 }
  0xae   : > { %v323_v23 = vpop.f32.mrf.mxu3 }
  0xb0   : > { %v541_v24 = vpop.f32.mrf.mxu2  ;;  %v315_v26 = vpop.f32.mrf.mxu0 }
  0xb1   : > { %v561_v25 = vadd.f32 %v541_v24, %v415_v22 }
  0xb2   : > { %v416_v27 = vpop.f32.mrf.mxu1 }
  0xb3   : > { %v417_v28 = vadd.f32 %v416_v27, %v315_v26 }
  0xb6   : > { %v2117_v29 = vpop.f32.mrf.mxu3 }
  0xb8   : > { %v543_v30 = vpop.f32.mrf.mxu2  ;;  %v318_v32 = vpop.f32.mrf.mxu0 }
  0xb9   : > { %v2119_v31 = vadd.f32 %v543_v30, %v417_v28 }
  0xba   : > { %v419_v33 = vpop.f32.mrf.mxu1 }
  0xbb   : > { %v420_v62 = vadd.f32 %v419_v33, %v318_v32 }
  0xbe   : > { %v328_v34 = vpop.f32.mrf.mxu3 }
  0xc0   : > { %v546_v35 = vpop.f32.mrf.mxu2  ;;  %v320_v36 = vpop.f32.mrf.mxu0 }
  0xc1   : > { %v563_v63 = vadd.f32 %v546_v35, %v420_v62 }
  0xc2   : > { %v421_v37 = vpop.f32.mrf.mxu1 }
  0xc3   : > { %v422_v5 = vadd.f32 %v421_v37, %v320_v36 }
  0xc6   : > { %v330_v38 = vpop.f32.mrf.mxu3 }
  0xc8   : > { %v548_v39 = vpop.f32.mrf.mxu2  ;;  %v811_v40 = vpop.f32.mrf.mxu0 }
  0xc9   : > { %v564_v7 = vadd.f32 %v548_v39, %v422_v5 }
  0xca   : > { %v424_v41 = vpop.f32.mrf.mxu1 }
  0xcb   : > { %v425_v17 = vadd.f32 %v424_v41, %v323_v23 }
  0xce   : > { %v676_v42 = vpop.f32.mrf.mxu3 }
  0xcf   : > { %v696_v15 = vadd.f32 %v676_v42, %v561_v25 }
  0xd0   : > { %v551_v43 = vpop.f32.mrf.mxu2  ;;  %v2121_v44 = vpop.f32.mrf.mxu0 }
  0xd1   : > { %v565_v20 = vadd.f32 %v551_v43, %v425_v17  ;;  %v831_v27 = vadd.f32 %v811_v40, %v696_v15 }
  0xd2   : > { %v426_v45 = vpop.f32.mrf.mxu1 }
  0xd3   : > { %v427_v37 = vadd.f32 %v426_v45, %v2117_v29 }
  0xd6   : > { %v678_v46 = vpop.f32.mrf.mxu3 }
  0xd7   : > { %v697_v25 = vadd.f32 %v678_v46, %v2119_v31 }
  0xd8   : > { %v553_v47 = vpop.f32.mrf.mxu2  ;;  %v816_v48 = vpop.f32.mrf.mxu0 }
  0xd9   : > { %v566_v40 = vadd.f32 %v553_v47, %v427_v37  ;;  %v832_v31 = vadd.f32 %v2121_v44, %v697_v25 }
  0xda   : > { %v429_v49 = vpop.f32.mrf.mxu1 }
  0xdb   : > { %v430_v16 = vadd.f32 %v429_v49, %v328_v34 }
  0xde   : > { %v681_v50 = vpop.f32.mrf.mxu3 }
  0xdf   : > { %v698_v2 = vadd.f32 %v681_v50, %v563_v63 }
  0xe0   : > { %v556_v51 = vpop.f32.mrf.mxu2  ;;  %v818_v52 = vpop.f32.mrf.mxu0 }
  0xe1   : > { %v833_v6 = vadd.f32 %v816_v48, %v698_v2  ;;  %v567_v19 = vadd.f32 %v556_v51, %v430_v16 }
  0xe2   : > { %v431_v53 = vpop.f32.mrf.mxu1 }
  0xe3   : > { %v432_v36 = vadd.f32 %v431_v53, %v330_v38 }
  0xe6   : > { %v683_v54 = vpop.f32.mrf.mxu3 }
  0xe7   : > { %v699_v11 = vadd.f32 %v683_v54, %v564_v7 }
  0xe8   : > { %v558_v55 = vpop.f32.mrf.mxu2  ;;  %v821_v56 = vpop.f32.mrf.mxu0 }
  0xe9   : > { %v834_v18 = vadd.f32 %v818_v52, %v699_v11  ;;  %v568_v41 = vadd.f32 %v558_v55, %v432_v36 }
  0xea   : > { %v951_v57 = vpop.f32.mrf.mxu1 }
  0xeb   : > { %v968_v8 = vadd.f32 %v951_v57, %v833_v6 }
  0xee   : > { %v686_v58 = vpop.f32.mrf.mxu3 }
  0xef   : > { %v700_v28 = vadd.f32 %v686_v58, %v565_v20 }
  0xf0   : > { %v1081_v59 = vpop.f32.mrf.mxu2  ;;  %v2123_v60 = vpop.f32.mrf.mxu0 }
  0xf1   : > { %v835_v39 = vadd.f32 %v821_v56, %v700_v28 }
  0xf2   : > { %v953_v61 = vpop.f32.mrf.mxu1 }
  0xf3   : > { %v969_v21 = vadd.f32 %v953_v61, %v834_v18 }
  0xf6   : > { %v688_v0 = vpop.f32.mrf.mxu3 }
  0xf7   : > { %v701_v38 = vadd.f32 %v688_v0, %v566_v40 }
  0xf8   : > { %v1083_v1 = vpop.f32.mrf.mxu2  ;;  %v826_v3 = vpop.f32.mrf.mxu0 }
  0xf9   : > { %v836_v55 = vadd.f32 %v2123_v60, %v701_v38 }
  0xfa   : > { %v956_v4 = vpop.f32.mrf.mxu1 }
  0xfb   : > { %v970_v43 = vadd.f32 %v956_v4, %v835_v39 }
  0xfe   : > { %v691_v9 = vpop.f32.mrf.mxu3 }
  0xff   : > { %v702_v24 = vadd.f32 %v691_v9, %v567_v19 }
 0x100   : > { %v1086_v10 = vpop.f32.mrf.mxu2  ;;  %v828_v13 = vpop.f32.mrf.mxu0 }
 0x101   : > { %v1103_v12 = vadd.f32 %v1086_v10, %v968_v8  ;;  %v837_v23 = vadd.f32 %v826_v3, %v702_v24 }
 0x102   : > { %v958_v14 = vpop.f32.mrf.mxu1 }
 0x103   : > { %1111 = vst [vmem:[%s2129_s7 + $0x10] sm:$0xff] %v1103_v12  ;;  %v1132_v61 = vmul.f32 %v1103_v12, %v1103_v12 }
 0x106   : > { %v693_v22 = vpop.f32.mrf.mxu3 }
 0x107   : > { %v703_v49 = vadd.f32 %v693_v22, %v568_v41 }
 0x108   : > { %v1088_v26 = vpop.f32.mrf.mxu2  ;;  %v946_v32 = vpop.f32.mrf.mxu0 }
 0x109   : > { %v1104_v30 = vadd.f32 %v1088_v26, %v969_v21  ;;  %v966_v33 = vadd.f32 %v946_v32, %v831_v27  ;;  %v838_v54 = vadd.f32 %v828_v13, %v703_v49 }
 0x10a   : > { %v961_v35 = vpop.f32.mrf.mxu1 }
 0x10b   : > { %1112 = vst [vmem:[%s2129_s7 + $0x18] sm:$0xff] %v1104_v30  ;;  %v1101_v34 = vadd.f32 %v1081_v59, %v966_v33  ;;  %v972_v42 = vadd.f32 %v961_v35, %v837_v23  ;;  %v971_v59 = vadd.f32 %v958_v14, %v836_v55  ;;  %v1133_v4 = vmul.f32 %v1104_v30, %v1104_v30 }
 0x10d   : > { %1109 = vst [vmem:[%s2129_s7] sm:$0xff] %v1101_v34  ;;  %v1130_v47 = vmul.f32 %v1101_v34, %v1101_v34 }
 0x10e   : > { %v1096_v48 = vpop.f32.mrf.mxu3 }
 0x10f   : > { %v1107_v51 = vadd.f32 %v1096_v48, %v972_v42 }
 0x110   : > { %v1091_v50 = vpop.f32.mrf.mxu2  ;;  %v948_v52 = vpop.f32.mrf.mxu0 }
 0x111   : > { %v1105_v46 = vadd.f32 %v1091_v50, %v970_v43  ;;  %1115 = vst [vmem:[%s2129_s7 + $0x30] sm:$0xff] %v1107_v51  ;;  %v967_v53 = vadd.f32 %v948_v52, %v832_v31  ;;  %v1136_v11 = vmul.f32 %v1107_v51, %v1107_v51 }
 0x112   : > { %v963_v29 = vpop.f32.mrf.mxu1 }
 0x113   : > { %1113 = vst [vmem:[%s2129_s7 + $0x20] sm:$0xff] %v1105_v46  ;;  %v1102_v45 = vadd.f32 %v1083_v1, %v967_v53  ;;  %v973_v58 = vadd.f32 %v963_v29, %v838_v54  ;;  %v1134_v60 = vmul.f32 %v1105_v46, %v1105_v46 }
 0x115   : > { %1110 = vst [vmem:[%s2129_s7 + $0x8] sm:$0xff] %v1102_v45  ;;  %v1117_v56 = vadd.f32 %v1102_v45, %v1101_v34  ;;  %v1131_v57 = vmul.f32 %v1102_v45, %v1102_v45 }
 0x116   : > { %v1098_v44 = vpop.f32.mrf.mxu3 }
 0x117   : > { %v1118_v62 = vadd.f32 %v1117_v56, %v1103_v12  ;;  %v1138_v63 = vadd.f32 %v1131_v57, %v1130_v47  ;;  %v1108_v2 = vadd.f32 %v1098_v44, %v973_v58 }
 0x118   : > { %v1093_v0 = vpop.f32.mrf.mxu2 }
 0x119   : > { %v1106_v3 = vadd.f32 %v1093_v0, %v971_v59  ;;  %v1139_v1 = vadd.f32 %v1138_v63, %v1132_v61  ;;  %v1119_v5 = vadd.f32 %v1118_v62, %v1104_v30  ;;  %1116 = vst [vmem:[%s2129_s7 + $0x38] sm:$0xff] %v1108_v2  ;;  %v1137_v15 = vmul.f32 %v1108_v2, %v1108_v2 }
 0x11b   : > { %1114 = vst [vmem:[%s2129_s7 + $0x28] sm:$0xff] %v1106_v3  ;;  %v1120_v6 = vadd.f32 %v1119_v5, %v1105_v46  ;;  %v1140_v7 = vadd.f32 %v1139_v1, %v1133_v4  ;;  %v1135_v9 = vmul.f32 %v1106_v3, %v1106_v3 }
 0x11d   : > { %v1121_v8 = vadd.f32 %v1120_v6, %v1106_v3  ;;  %v1141_v10 = vadd.f32 %v1140_v7, %v1134_v60 }
 0x11f   : > { %v1142_v13 = vadd.f32 %v1141_v10, %v1135_v9  ;;  %v1122_v14 = vadd.f32 %v1121_v8, %v1107_v51 }
 0x121   : > { %v1123_v12 = vadd.f32 %v1122_v14, %v1108_v2  ;;  %v1143_v16 = vadd.f32 %v1142_v13, %v1136_v11 }
 0x123   : > { %v1124_v17 = vrot.slane %v1123_v12, 4  ;;  %v1144_v18 = vadd.f32 %v1143_v16, %v1137_v15 }
 0x125   : > { %v1125_v19 = vadd.f32 %v1124_v17, %v1123_v12  ;;  %v1145_v20 = vrot.slane %v1144_v18, 4 }
 0x127   : > { %v1126_v21 = vrot.slane %v1125_v19, 2  ;;  %v1146_v22 = vadd.f32 %v1145_v20, %v1144_v18 }
 0x129   : > { %v1127_v24 = vadd.f32 %v1126_v21, %v1125_v19  ;;  %v1147_v26 = vrot.slane %v1146_v22, 2 }
 0x12b   : > { %v1128_v27 = vrot.slane %v1127_v24, 1  ;;  %v1148_v28 = vadd.f32 %v1147_v26, %v1146_v22 }
 0x12d   : > { %v1149_v30 = vrot.slane %v1148_v28, 1  ;;  %v1129_v32 = vadd.f32 %v1128_v27, %v1127_v24 }
 0x12f   : > { %v1150_v33 = vadd.f32 %v1149_v30, %v1148_v28 }
 0x131   : > { %v1152_v35 = vsel %vm1151_vm0, %v1129_v32, %v1150_v33 }
 0x132   : > { %1153 = vst [vmem:[%s181_s14] sm:$0x3] %v1152_v35 }
 0x133 PF: > { %s14_s12 = sadd.s32 1, %s1855_s12  }
 0x134   : > { %p11_p4 = scmp.ge.s32.totalorder %s14_s12, 4  }
 0x136   :  { %13 = sbr.rel (!%p11_p4) target bundleno = 1 (0x1), region = 82 }

// kernel: block17_forward.11
= control target key start
LH: loop header
LB: loop body
LE: loop exit
PB: predicated region body
PF: predicated region fallthrough
CT: control target
= control target key end

     0   :  { %s4744_s0 = inlined_call_operand.vmem [shape: f32[128,128], index: 0, kind: input, shape index: {}]   ;;  %s4745_s1 = inlined_call_operand.vmem [shape: f32[128,128], index: 1, kind: input, shape index: {}]   ;;  %s4746_s2 = inlined_call_operand.vmem [shape: f32[2,128], index: 2, kind: input, shape index: {}]   ;;  %s4747_s3 = inlined_call_operand.vmem [shape: f32[2,128], index: 3, kind: input, shape index: {}]   ;;  %s4748_s4 = inlined_call_operand.vmem [shape: bf16[128,896], index: 4, kind: input, shape index: {}]   ;;  %s4749_s5 = inlined_call_operand.vmem [shape: bf16[128,896], index: 5, kind: input, shape index: {}]   ;;  %s4750_s6 = inlined_call_operand.vmem [shape: f32[1,896], index: 6, kind: input, shape index: {}]   ;;  %s4751_s7 = inlined_call_operand.vmem [shape: f32[128,896], index: 7, kind: input, shape index: {}]   ;;  %s4752_s8 = inlined_call_operand.hbm [shape: f32[128,896], index: 8, kind: output, shape index: {}]  }
   0x1   :  { %v2476_v0 = vld [vmem:[%s4749_s5 + $0x188] sm:$0xf]  ;;  %v2834_v1 = vld [vmem:[%s4749_s5 + $0x1a0] sm:$0xf0]  ;;  %v2831_v2 = vld [vmem:[%s4749_s5 + $0x18c] sm:$0xf] }
   0x2   :  { %v2477_v3 = vor.u32 %v2834_v1, %v2476_v0  ;;  %v2478_v4 = vld [vmem:[%s4749_s5 + $0x1a4] sm:$0xf0]  ;;  %v2448_v5 = vld [vmem:[%s4749_s5 + $0x150] sm:$0xf]  ;;  %v2827_v6 = vld [vmem:[%s4749_s5 + $0x168] sm:$0xf0] }
   0x3   :  { %v2481_v7 = vor.u32 %v2831_v2, %v2478_v4  ;;  %v2824_v8 = vld [vmem:[%s4749_s5 + $0x154] sm:$0xf]  ;;  %v2450_v9 = vld [vmem:[%s4749_s5 + $0x16c] sm:$0xf0]  ;;  %v2449_v10 = vor.u32 %v2827_v6, %v2448_v5  ;;  %v2420_v12 = vld [vmem:[%s4749_s5 + $0x118] sm:$0xf] }
   0x4   :  { %598 = vmatpush.bf16.msra.mxu0 %v2477_v3  ;;  %2838 = vmatpush.bf16.msra.mxu2 %v2477_v3  ;;  %v2453_v11 = vor.u32 %v2824_v8, %v2450_v9  ;;  %v2820_v13 = vld [vmem:[%s4749_s5 + $0x130] sm:$0xf0]  ;;  %v2817_v14 = vld [vmem:[%s4749_s5 + $0x11c] sm:$0xf]  ;;  %v2422_v15 = vld [vmem:[%s4749_s5 + $0x134] sm:$0xf0] }
   0x5   :  { %647 = vmatpush.bf16.msra.mxu1 %v2481_v7  ;;  %2846 = vmatpush.bf16.msra.mxu3 %v2481_v7  ;;  %v2421_v16 = vor.u32 %v2820_v13, %v2420_v12  ;;  %v2425_v17 = vor.u32 %v2817_v14, %v2422_v15  ;;  %v2392_v18 = vld [vmem:[%s4749_s5 + $0xe0] sm:$0xf]  ;;  %v2813_v19 = vld [vmem:[%s4749_s5 + $0xf8] sm:$0xf0]  ;;  %v2810_v20 = vld [vmem:[%s4749_s5 + $0xe4] sm:$0xf] }
   0x6   :  { %v2394_v21 = vld [vmem:[%s4749_s5 + $0xfc] sm:$0xf0]  ;;  %v2393_v22 = vor.u32 %v2813_v19, %v2392_v18  ;;  %v2364_v24 = vld [vmem:[%s4749_s5 + $0xa8] sm:$0xf]  ;;  %v2806_v25 = vld [vmem:[%s4749_s5 + $0xc0] sm:$0xf0] }
   0x7   :  { %v2397_v23 = vor.u32 %v2810_v20, %v2394_v21  ;;  %v2803_v26 = vld [vmem:[%s4749_s5 + $0xac] sm:$0xf]  ;;  %v2366_v27 = vld [vmem:[%s4749_s5 + $0xc4] sm:$0xf0]  ;;  %v98_v28 = vld [vmem:[%s4745_s1] sm:$0xff]  ;;  %v2365_v30 = vor.u32 %v2806_v25, %v2364_v24 }
   0x8   :  { %599 = vmatpush.bf16.msra.mxu0 %v2449_v10  ;;  %2839 = vmatpush.bf16.msra.mxu2 %v2449_v10  ;;  %v3001_v29 = vld [vmem:[%s4747_s3] ss:$0 sm:$0xff]  ;;  %v99_v31 = vld [vmem:[%s4745_s1 + $0x8] sm:$0xff]  ;;  %v2369_v34 = vor.u32 %v2803_v26, %v2366_v27  ;;  %v2336_v35 = vld [vmem:[%s4749_s5 + $0x70] sm:$0xf] }
   0x9   :  { %648 = vmatpush.bf16.msra.mxu1 %v2453_v11  ;;  %2847 = vmatpush.bf16.msra.mxu3 %v2453_v11  ;;  %v106_v32 = vld [vmem:[%s4745_s1 + $0x40] sm:$0xff]  ;;  %v107_v33 = vld [vmem:[%s4745_s1 + $0x48] sm:$0xff]  ;;  %v2796_v37 = vld [vmem:[%s4749_s5 + $0x74] sm:$0xf]  ;;  %v116_v39 = vmul.f32 %v3001_v29, %v98_v28  ;;  %v117_v40 = vmul.f32 %v3001_v29, %v99_v31 }
   0xa   :  { %v2799_v36 = vld [vmem:[%s4749_s5 + $0x88] sm:$0xf0]  ;;  %v2338_v38 = vld [vmem:[%s4749_s5 + $0x8c] sm:$0xf0]  ;;  %v3029_v41 = vld [vmem:[%s4747_s3 + $0x1] ss:$0 sm:$0xff]  ;;  %v124_v42 = vmul.f32 %v3001_v29, %v106_v32  ;;  %v125_v43 = vmul.f32 %v3001_v29, %v107_v33 }
   0xb   :  { %v2337_v44 = vor.u32 %v2799_v36, %v2336_v35  ;;  %v2341_v45 = vor.u32 %v2796_v37, %v2338_v38  ;;  %v2308_v46 = vld [vmem:[%s4749_s5 + $0x38] sm:$0xf]  ;;  %v2792_v47 = vld [vmem:[%s4749_s5 + $0x50] sm:$0xf0]  ;;  %v2789_v48 = vld [vmem:[%s4749_s5 + $0x3c] sm:$0xf]  ;;  %v134_v50 = vadd.f32 %v3029_v41, %v116_v39  ;;  %v135_v51 = vadd.f32 %v3029_v41, %v117_v40 }
   0xc   :  { %600 = vmatpush.bf16.msra.mxu0 %v2421_v16  ;;  %2840 = vmatpush.bf16.msra.mxu2 %v2421_v16  ;;  %v2310_v49 = vld [vmem:[%s4749_s5 + $0x54] sm:$0xf0]  ;;  %v142_v52 = vadd.f32 %v3029_v41, %v124_v42  ;;  %v143_v53 = vadd.f32 %v3029_v41, %v125_v43  ;;  %v2309_v54 = vor.u32 %v2792_v47, %v2308_v46  ;;  %v2280_v55 = vld [vmem:[%s4749_s5] sm:$0xf]  ;;  %v2785_v56 = vld [vmem:[%s4749_s5 + $0x18] sm:$0xf0] }
   0xd   :  { %649 = vmatpush.bf16.msra.mxu1 %v2425_v17  ;;  %2848 = vmatpush.bf16.msra.mxu3 %v2425_v17  ;;  %v2313_v57 = vor.u32 %v2789_v48, %v2310_v49  ;;  %v2782_v58 = vld [vmem:[%s4749_s5 + $0x4] sm:$0xf]  ;;  %v2282_v59 = vld [vmem:[%s4749_s5 + $0x1c] sm:$0xf0]  ;;  %v2484_v60 = vld [vmem:[%s4749_s5 + $0x190] sm:$0xf]  ;;  %v2281_v6 = vor.u32 %v2785_v56, %v2280_v55 }
   0xe   :  { %v2835_v61 = vld [vmem:[%s4749_s5 + $0x1a8] sm:$0xf0]  ;;  %v2832_v62 = vld [vmem:[%s4749_s5 + $0x194] sm:$0xf]  ;;  %v2486_v63 = vld [vmem:[%s4749_s5 + $0x1ac] sm:$0xf0]  ;;  %v2285_v9 = vor.u32 %v2782_v58, %v2282_v59 }
   0xf   :  { %v150_v0 = vmax.f32 %v134_v50, 0.0  ;;  %v151_v1 = vmax.f32 %v135_v51, 0.0  ;;  %v158_v2 = vmax.f32 %v142_v52, 0.0  ;;  %v159_v3 = vmax.f32 %v143_v53, 0.0  ;;  %v2492_v4 = vld [vmem:[%s4749_s5 + $0x198] sm:$0xf] }
  0x10   :  { %601 = vmatpush.bf16.msra.mxu0 %v2393_v22  ;;  %2841 = vmatpush.bf16.msra.mxu2 %v2393_v22  ;;  %v2836_v5 = vld [vmem:[%s4749_s5 + $0x1b0] sm:$0xf0]  ;;  %v2833_v7 = vld [vmem:[%s4749_s5 + $0x19c] sm:$0xf]  ;;  %v2494_v8 = vld [vmem:[%s4749_s5 + $0x1b4] sm:$0xf0] }
  0x11   :  { %650 = vmatpush.bf16.msra.mxu1 %v2397_v23  ;;  %2849 = vmatpush.bf16.msra.mxu3 %v2397_v23  ;;  %v100_v10 = vld [vmem:[%s4745_s1 + $0x10] sm:$0xff]  ;;  %v101_v11 = vld [vmem:[%s4745_s1 + $0x18] sm:$0xff] }
  0x14   :  { %602 = vmatpush.bf16.msra.mxu0 %v2365_v30  ;;  %2842 = vmatpush.bf16.msra.mxu2 %v2365_v30 }
  0x15   :  { %651 = vmatpush.bf16.msra.mxu1 %v2369_v34  ;;  %2850 = vmatpush.bf16.msra.mxu3 %v2369_v34 }
  0x18   :  { %603 = vmatpush.bf16.msra.mxu0 %v2337_v44  ;;  %2843 = vmatpush.bf16.msra.mxu2 %v2337_v44 }
  0x19   :  { %652 = vmatpush.bf16.msra.mxu1 %v2341_v45  ;;  %2851 = vmatpush.bf16.msra.mxu3 %v2341_v45 }
  0x1c   :  { %604 = vmatpush.bf16.msra.mxu0 %v2309_v54  ;;  %2844 = vmatpush.bf16.msra.mxu2 %v2309_v54 }
  0x1d   :  { %653 = vmatpush.bf16.msra.mxu1 %v2313_v57  ;;  %2852 = vmatpush.bf16.msra.mxu3 %v2313_v57 }
  0x1e   :  { %13 = vsyncpa [#allocation3], 0  ;;  %v2485_v12 = vor.u32 %v2835_v61, %v2484_v60  ;;  %v2489_v13 = vor.u32 %v2832_v62, %v2486_v63  ;;  %v2456_v14 = vld [vmem:[%s4749_s5 + $0x158] sm:$0xf]  ;;  %v108_v15 = vld [vmem:[%s4745_s1 + $0x50] sm:$0xff]  ;;  %v3100_v17 = vpack.c.bf16 %v151_v1, %v150_v0  ;;  %v3102_v18 = vpack.c.bf16 %v159_v3, %v158_v2  ;;  %s2887_s14 = smov [#allocation2]  }
  0x1f   :  { %v109_v16 = vld [vmem:[%s4745_s1 + $0x58] sm:$0xff]  ;;  %v2828_v19 = vld [vmem:[%s4749_s5 + $0x170] sm:$0xf0]  ;;  %v2493_v22 = vor.u32 %v2836_v5, %v2492_v4  ;;  %v118_v23 = vmul.f32 %v3001_v29, %v100_v10  ;;  %v119_v24 = vmul.f32 %v3001_v29, %v101_v11  ;;  %v2497_v25 = vor.u32 %v2833_v7, %v2494_v8  ;;  %v2464_v26 = vld [vmem:[%s4749_s5 + $0x160] sm:$0xf]  ;;  %s2264_s15 = sshll.u32 %s2887_s14, 4  ;;  %s2265_s15 = int_to_ptr.vmem [resolvable:$true] %s2264_s15 }
  0x20   :  { %v2825_v20 = vld [vmem:[%s4749_s5 + $0x15c] sm:$0xf]  ;;  %v2458_v21 = vld [vmem:[%s4749_s5 + $0x174] sm:$0xf0]  ;;  %605 = vmatpush.bf16.msra.mxu0 %v2281_v6  ;;  %2845 = vmatpush.bf16.msra.mxu2 %v2281_v6  ;;  %v126_v28 = vmul.f32 %v3001_v29, %v108_v15  ;;  %v127_v30 = vmul.f32 %v3001_v29, %v109_v16  ;;  %v2457_v31 = vor.u32 %v2828_v19, %v2456_v14  ;;  %v2826_v33 = vld [vmem:[%s4749_s5 + $0x164] sm:$0xf] }
  0x21   :  { %654 = vmatpush.bf16.msra.mxu1 %v2285_v9  ;;  %2853 = vmatpush.bf16.msra.mxu3 %v2285_v9  ;;  %v2829_v27 = vld [vmem:[%s4749_s5 + $0x178] sm:$0xf0]  ;;  %v2461_v32 = vor.u32 %v2825_v20, %v2458_v21  ;;  %v2466_v34 = vld [vmem:[%s4749_s5 + $0x17c] sm:$0xf0]  ;;  %v2818_v37 = vld [vmem:[%s4749_s5 + $0x124] sm:$0xf]  ;;  %v136_v40 = vadd.f32 %v3029_v41, %v118_v23  ;;  %v137_v42 = vadd.f32 %v3029_v41, %v119_v24 }
  0x22   :  { %v2428_v35 = vld [vmem:[%s4749_s5 + $0x120] sm:$0xf]  ;;  %v2821_v36 = vld [vmem:[%s4749_s5 + $0x138] sm:$0xf0]  ;;  %v2465_v39 = vor.u32 %v2829_v27, %v2464_v26  ;;  %v2469_v43 = vor.u32 %v2826_v33, %v2466_v34  ;;  %v144_v44 = vadd.f32 %v3029_v41, %v126_v28  ;;  %v145_v45 = vadd.f32 %v3029_v41, %v127_v30  ;;  %v2436_v46 = vld [vmem:[%s4749_s5 + $0x128] sm:$0xf] }
  0x23   :  { %606 = vmatmul.bf16.vlgmr.msra.gmra.mxu0 %v3100_v17  ;;  %626 = vmatmul.bf16.vlgmr.msra.gmra.mxu2 %v3102_v18  ;;  %v2430_v38 = vld [vmem:[%s4749_s5 + $0x13c] sm:$0xf0]  ;;  %v2822_v47 = vld [vmem:[%s4749_s5 + $0x140] sm:$0xf0]  ;;  %v2429_v48 = vor.u32 %v2821_v36, %v2428_v35  ;;  %v2819_v50 = vld [vmem:[%s4749_s5 + $0x12c] sm:$0xf] }
  0x24   :  { %696 = vmatpush.bf16.msrb.mxu2 %v2485_v12  ;;  %655 = vmatmul.bf16.vlgmr.msra.gmra.mxu1 %v3100_v17  ;;  %v2433_v49 = vor.u32 %v2818_v37, %v2430_v38  ;;  %v2438_v51 = vld [vmem:[%s4749_s5 + $0x144] sm:$0xf0]  ;;  %v2814_v53 = vld [vmem:[%s4749_s5 + $0x100] sm:$0xf0]  ;;  %v2811_v54 = vld [vmem:[%s4749_s5 + $0xec] sm:$0xf]  ;;  %v2437_v60 = vor.u32 %v2822_v47, %v2436_v46 }
  0x25   :  { %745 = vmatpush.bf16.msrb.mxu3 %v2489_v13  ;;  %794 = vmatpush.bf16.msrb.mxu0 %v2493_v22  ;;  %v2400_v52 = vld [vmem:[%s4749_s5 + $0xe8] sm:$0xf]  ;;  %v152_v56 = vmax.f32 %v136_v40, 0.0  ;;  %v153_v57 = vmax.f32 %v137_v42, 0.0  ;;  %v160_v58 = vmax.f32 %v144_v44, 0.0  ;;  %v161_v59 = vmax.f32 %v145_v45, 0.0 }
  0x26   :  { %675 = vmatmul.bf16.vlgmr.msra.gmra.mxu3 %v3102_v18  ;;  %843 = vmatpush.bf16.msrb.mxu1 %v2497_v25  ;;  %v2402_v55 = vld [vmem:[%s4749_s5 + $0x104] sm:$0xf0]  ;;  %v2441_v61 = vor.u32 %v2819_v50, %v2438_v51  ;;  %v2408_v62 = vld [vmem:[%s4749_s5 + $0xf0] sm:$0xf]  ;;  %v2815_v63 = vld [vmem:[%s4749_s5 + $0x108] sm:$0xf0]  ;;  %v2401_v0 = vor.u32 %v2814_v53, %v2400_v52 }
  0x27   :  { %v2405_v1 = vor.u32 %v2811_v54, %v2402_v55  ;;  %v2812_v2 = vld [vmem:[%s4749_s5 + $0xf4] sm:$0xf]  ;;  %v2410_v3 = vld [vmem:[%s4749_s5 + $0x10c] sm:$0xf0]  ;;  %v2807_v5 = vld [vmem:[%s4749_s5 + $0xc8] sm:$0xf0]  ;;  %v2409_v8 = vor.u32 %v2815_v63, %v2408_v62  ;;  %v3215_v20 = vpack.c.bf16 %v153_v57, %v152_v56  ;;  %v3217_v21 = vpack.c.bf16 %v161_v59, %v160_v58 }
  0x28   :  { %697 = vmatpush.bf16.msrb.mxu2 %v2457_v31  ;;  %v2372_v4 = vld [vmem:[%s4749_s5 + $0xb0] sm:$0xf]  ;;  %v2804_v6 = vld [vmem:[%s4749_s5 + $0xb4] sm:$0xf]  ;;  %v2413_v9 = vor.u32 %v2812_v2, %v2410_v3  ;;  %v102_v10 = vld [vmem:[%s4745_s1 + $0x20] sm:$0xff]  ;;  %s2266_s17 = sshll.u32 %s4752_s8, 4  ;;  %s2267_s17 = int_to_ptr.hbm [resolvable:$true] %s2266_s17 }
  0x29   :  { %746 = vmatpush.bf16.msrb.mxu3 %v2461_v32  ;;  %795 = vmatpush.bf16.msrb.mxu0 %v2465_v39  ;;  %v2374_v7 = vld [vmem:[%s4749_s5 + $0xcc] sm:$0xf0]  ;;  %v2380_v11 = vld [vmem:[%s4749_s5 + $0xb8] sm:$0xf]  ;;  %v2808_v12 = vld [vmem:[%s4749_s5 + $0xd0] sm:$0xf0]  ;;  %v2373_v13 = vor.u32 %v2807_v5, %v2372_v4  ;;  %v120_v32 = vmul.f32 %v3001_v29, %v102_v10 }
  0x2a   :  { %844 = vmatpush.bf16.msrb.mxu1 %v2469_v43  ;;  %v2377_v14 = vor.u32 %v2804_v6, %v2374_v7  ;;  %v2805_v15 = vld [vmem:[%s4749_s5 + $0xbc] sm:$0xf]  ;;  %v2382_v16 = vld [vmem:[%s4749_s5 + $0xd4] sm:$0xf0]  ;;  %v2800_v22 = vld [vmem:[%s4749_s5 + $0x90] sm:$0xf0]  ;;  %v2381_v28 = vor.u32 %v2808_v12, %v2380_v11 }
  0x2b   :  { %v2344_v19 = vld [vmem:[%s4749_s5 + $0x78] sm:$0xf]  ;;  %v2797_v23 = vld [vmem:[%s4749_s5 + $0x7c] sm:$0xf]  ;;  %v103_v25 = vld [vmem:[%s4745_s1 + $0x28] sm:$0xff]  ;;  %v2385_v30 = vor.u32 %v2805_v15, %v2382_v16  ;;  %v138_v55 = vadd.f32 %v3029_v41, %v120_v32  ;;  %s2888_s18 = smov 896  }
  0x2c   :  { %698 = vmatpush.bf16.msrb.mxu2 %v2429_v48  ;;  %v2346_v24 = vld [vmem:[%s4749_s5 + $0x94] sm:$0xf0]  ;;  %v110_v26 = vld [vmem:[%s4745_s1 + $0x60] sm:$0xff]  ;;  %v111_v27 = vld [vmem:[%s4745_s1 + $0x68] sm:$0xff]  ;;  %v2345_v33 = vor.u32 %v2800_v22, %v2344_v19  ;;  %v121_v38 = vmul.f32 %v3001_v29, %v103_v25 }
  0x2d   :  { %747 = vmatpush.bf16.msrb.mxu3 %v2433_v49  ;;  %796 = vmatpush.bf16.msrb.mxu0 %v2437_v60  ;;  %v2352_v31 = vld [vmem:[%s4749_s5 + $0x80] sm:$0xf]  ;;  %v2349_v34 = vor.u32 %v2797_v23, %v2346_v24  ;;  %v2801_v35 = vld [vmem:[%s4749_s5 + $0x98] sm:$0xf0]  ;;  %v2798_v36 = vld [vmem:[%s4749_s5 + $0x84] sm:$0xf]  ;;  %v128_v39 = vmul.f32 %v3001_v29, %v110_v26  ;;  %v129_v40 = vmul.f32 %v3001_v29, %v111_v27 }
  0x2e   :  { %845 = vmatpush.bf16.msrb.mxu1 %v2441_v61  ;;  %v2354_v37 = vld [vmem:[%s4749_s5 + $0x9c] sm:$0xf0]  ;;  %v2793_v43 = vld [vmem:[%s4749_s5 + $0x58] sm:$0xf0]  ;;  %v2790_v44 = vld [vmem:[%s4749_s5 + $0x44] sm:$0xf]  ;;  %v2353_v45 = vor.u32 %v2801_v35, %v2352_v31  ;;  %v139_v56 = vadd.f32 %v3029_v41, %v121_v38 }
  0x2f   :  { %v2316_v42 = vld [vmem:[%s4749_s5 + $0x40] sm:$0xf]  ;;  %v2357_v46 = vor.u32 %v2798_v36, %v2354_v37  ;;  %v2324_v48 = vld [vmem:[%s4749_s5 + $0x48] sm:$0xf]  ;;  %v2794_v49 = vld [vmem:[%s4749_s5 + $0x60] sm:$0xf0]  ;;  %v146_v57 = vadd.f32 %v3029_v41, %v128_v39  ;;  %v147_v58 = vadd.f32 %v3029_v41, %v129_v40 }
  0x30   :  { %699 = vmatpush.bf16.msrb.mxu2 %v2401_v0  ;;  %v2318_v47 = vld [vmem:[%s4749_s5 + $0x5c] sm:$0xf0]  ;;  %v2317_v50 = vor.u32 %v2793_v43, %v2316_v42  ;;  %v2791_v52 = vld [vmem:[%s4749_s5 + $0x4c] sm:$0xf]  ;;  %v2326_v53 = vld [vmem:[%s4749_s5 + $0x64] sm:$0xf0]  ;;  %v2325_v62 = vor.u32 %v2794_v49, %v2324_v48 }
  0x31   :  { %748 = vmatpush.bf16.msrb.mxu3 %v2405_v1  ;;  %797 = vmatpush.bf16.msrb.mxu0 %v2409_v8  ;;  %v2321_v51 = vor.u32 %v2790_v44, %v2318_v47  ;;  %v2288_v54 = vld [vmem:[%s4749_s5 + $0x8] sm:$0xf]  ;;  %v2786_v59 = vld [vmem:[%s4749_s5 + $0x20] sm:$0xf0]  ;;  %v2783_v60 = vld [vmem:[%s4749_s5 + $0xc] sm:$0xf]  ;;  %v2329_v63 = vor.u32 %v2791_v52, %v2326_v53 }
  0x32   :  { %846 = vmatpush.bf16.msrb.mxu1 %v2413_v9  ;;  %v2290_v61 = vld [vmem:[%s4749_s5 + $0x24] sm:$0xf0]  ;;  %v2296_v0 = vld [vmem:[%s4749_s5 + $0x10] sm:$0xf]  ;;  %v2289_v1 = vor.u32 %v2786_v59, %v2288_v54  ;;  %v2787_v3 = vld [vmem:[%s4749_s5 + $0x28] sm:$0xf0] }
  0x33   :  { %611 = vmatmul.bf16.gmra.mxu0 %v3215_v20  ;;  %631 = vmatmul.bf16.gmra.mxu2 %v3217_v21  ;;  %v2293_v2 = vor.u32 %v2783_v60, %v2290_v61  ;;  %v2784_v4 = vld [vmem:[%s4749_s5 + $0x14] sm:$0xf]  ;;  %v2298_v5 = vld [vmem:[%s4749_s5 + $0x2c] sm:$0xf0]  ;;  %v154_v6 = vmax.f32 %v138_v55, 0.0  ;;  %v155_v7 = vmax.f32 %v139_v56, 0.0  ;;  %v2297_v10 = vor.u32 %v2787_v3, %v2296_v0 }
  0x34   :  { %700 = vmatpush.bf16.msrb.mxu2 %v2373_v13  ;;  %660 = vmatmul.bf16.gmra.mxu1 %v3215_v20  ;;  %v162_v8 = vmax.f32 %v146_v57, 0.0  ;;  %v163_v9 = vmax.f32 %v147_v58, 0.0  ;;  %v2301_v11 = vor.u32 %v2784_v4, %v2298_v5  ;;  %v105_v15 = vld [vmem:[%s4745_s1 + $0x38] sm:$0xff]  ;;  %v112_v16 = vld [vmem:[%s4745_s1 + $0x70] sm:$0xff]  ;;  %v2500_v26 = vld [vmem:[%s4749_s5 + $0x1a0] sm:$0xf] }
  0x35   :  { %749 = vmatpush.bf16.msrb.mxu3 %v2377_v14  ;;  %798 = vmatpush.bf16.msrb.mxu0 %v2381_v28  ;;  %v3309_v12 = vpack.c.bf16 %v155_v7, %v154_v6  ;;  %v104_v14 = vld [vmem:[%s4745_s1 + $0x30] sm:$0xff]  ;;  %v113_v19 = vld [vmem:[%s4745_s1 + $0x78] sm:$0xff]  ;;  %v123_v23 = vmul.f32 %v3001_v29, %v105_v15  ;;  %v130_v24 = vmul.f32 %v3001_v29, %v112_v16  ;;  %v2700_v28 = vld [vmem:[%s4748_s4 + $0x188] sm:$0xf] }
  0x36   :  { %680 = vmatmul.bf16.gmra.mxu3 %v3217_v21  ;;  %847 = vmatpush.bf16.msrb.mxu1 %v2385_v30  ;;  %v3311_v13 = vpack.c.bf16 %v163_v9, %v162_v8  ;;  %v122_v22 = vmul.f32 %v3001_v29, %v104_v14  ;;  %v131_v25 = vmul.f32 %v3001_v29, %v113_v19  ;;  %v2837_v27 = vld [vmem:[%s4749_s5 + $0x1b8] sm:$0xf0]  ;;  %v2778_v29 = vld [vmem:[%s4748_s4 + $0x1a0] sm:$0xf0]  ;;  %v2775_v31 = vld [vmem:[%s4748_s4 + $0x18c] sm:$0xf] }
  0x37   :  { %v2501_v30 = vor.u32 %v2837_v27, %v2500_v26  ;;  %v2702_v32 = vld [vmem:[%s4748_s4 + $0x1a4] sm:$0xf0]  ;;  %v2708_v36 = vld [vmem:[%s4748_s4 + $0x190] sm:$0xf]  ;;  %v2779_v37 = vld [vmem:[%s4748_s4 + $0x1a8] sm:$0xf0]  ;;  %v141_v38 = vadd.f32 %v3029_v41, %v123_v23  ;;  %v148_v39 = vadd.f32 %v3029_v41, %v130_v24 }
  0x38   :  { %701 = vmatpush.bf16.msrb.mxu2 %v2345_v33  ;;  %v140_v33 = vadd.f32 %v3029_v41, %v122_v22  ;;  %v2705_v35 = vor.u32 %v2775_v31, %v2702_v32  ;;  %v149_v40 = vadd.f32 %v3029_v41, %v131_v25  ;;  %v2709_v42 = vor.u32 %v2779_v37, %v2708_v36  ;;  %v2472_v41 = vld [vmem:[%s4749_s5 + $0x168] sm:$0xf]  ;;  %v2830_v49 = vld [vmem:[%s4749_s5 + $0x180] sm:$0xf0]  ;;  %v2771_v52 = vld [vmem:[%s4748_s4 + $0x168] sm:$0xf0] }
  0x39   :  { %750 = vmatpush.bf16.msrb.mxu3 %v2349_v34  ;;  %799 = vmatpush.bf16.msrb.mxu0 %v2353_v45  ;;  %v2701_v34 = vor.u32 %v2778_v29, %v2700_v28  ;;  %v157_v44 = vmax.f32 %v141_v38, 0.0  ;;  %v164_v45 = vmax.f32 %v148_v39, 0.0  ;;  %v2768_v53 = vld [vmem:[%s4748_s4 + $0x154] sm:$0xf]  ;;  %v2674_v54 = vld [vmem:[%s4748_s4 + $0x16c] sm:$0xf0] }
  0x3a   :  { %848 = vmatpush.bf16.msrb.mxu1 %v2357_v46  ;;  %v156_v43 = vmax.f32 %v140_v33, 0.0  ;;  %v165_v46 = vmax.f32 %v149_v40, 0.0  ;;  %v2677_v56 = vor.u32 %v2768_v53, %v2674_v54  ;;  %v2680_v57 = vld [vmem:[%s4748_s4 + $0x158] sm:$0xf]  ;;  %v2772_v58 = vld [vmem:[%s4748_s4 + $0x170] sm:$0xf0] }
  0x3b   :  { %v2681_v59 = vor.u32 %v2772_v58, %v2680_v57  ;;  %v2444_v60 = vld [vmem:[%s4749_s5 + $0x130] sm:$0xf]  ;;  %v2823_v61 = vld [vmem:[%s4749_s5 + $0x148] sm:$0xf0]  ;;  %v2764_v0 = vld [vmem:[%s4748_s4 + $0x130] sm:$0xf0] }
  0x3c   :  { %702 = vmatpush.bf16.msrb.mxu2 %v2317_v50  ;;  %v3361_v47 = vpack.c.bf16 %v157_v44, %v156_v43  ;;  %v3363_v48 = vpack.c.bf16 %v165_v46, %v164_v45  ;;  %v2672_v50 = vld [vmem:[%s4748_s4 + $0x150] sm:$0xf]  ;;  %v2652_v5 = vld [vmem:[%s4748_s4 + $0x120] sm:$0xf]  ;;  %v2765_v6 = vld [vmem:[%s4748_s4 + $0x138] sm:$0xf0] }
  0x3d   :  { %751 = vmatpush.bf16.msrb.mxu3 %v2321_v51  ;;  %800 = vmatpush.bf16.msrb.mxu0 %v2325_v62  ;;  %v2473_v51 = vor.u32 %v2830_v49, %v2472_v41  ;;  %v2673_v55 = vor.u32 %v2771_v52, %v2672_v50  ;;  %v2644_v62 = vld [vmem:[%s4748_s4 + $0x118] sm:$0xf]  ;;  %v2653_v7 = vor.u32 %v2765_v6, %v2652_v5  ;;  %v2816_v9 = vld [vmem:[%s4749_s5 + $0x110] sm:$0xf0]  ;;  %v2757_v14 = vld [vmem:[%s4748_s4 + $0xf8] sm:$0xf0] }
  0x3e   :  { %849 = vmatpush.bf16.msrb.mxu1 %v2329_v63  ;;  %v2445_v63 = vor.u32 %v2823_v61, %v2444_v60  ;;  %v2645_v3 = vor.u32 %v2764_v0, %v2644_v62  ;;  %v2416_v8 = vld [vmem:[%s4749_s5 + $0xf8] sm:$0xf]  ;;  %v2754_v15 = vld [vmem:[%s4748_s4 + $0xe4] sm:$0xf]  ;;  %v2618_v16 = vld [vmem:[%s4748_s4 + $0xfc] sm:$0xf0] }
  0x3f   :  { %v2621_v22 = vor.u32 %v2754_v15, %v2618_v16  ;;  %v2624_v23 = vld [vmem:[%s4748_s4 + $0xe8] sm:$0xf]  ;;  %v2758_v24 = vld [vmem:[%s4748_s4 + $0x100] sm:$0xf0]  ;;  %v2388_v26 = vld [vmem:[%s4749_s5 + $0xc0] sm:$0xf] }
  0x40   :  { %703 = vmatpush.bf16.msrb.mxu2 %v2289_v1  ;;  %v2761_v1 = vld [vmem:[%s4748_s4 + $0x11c] sm:$0xf]  ;;  %v2625_v25 = vor.u32 %v2758_v24, %v2624_v23  ;;  %v2588_v28 = vld [vmem:[%s4748_s4 + $0xa8] sm:$0xf]  ;;  %v2750_v29 = vld [vmem:[%s4748_s4 + $0xc0] sm:$0xf0] }
  0x41   :  { %752 = vmatpush.bf16.msrb.mxu3 %v2293_v2  ;;  %801 = vmatpush.bf16.msrb.mxu0 %v2297_v10  ;;  %v2646_v2 = vld [vmem:[%s4748_s4 + $0x134] sm:$0xf0]  ;;  %v2616_v10 = vld [vmem:[%s4748_s4 + $0xe0] sm:$0xf]  ;;  %v2809_v27 = vld [vmem:[%s4749_s5 + $0xd8] sm:$0xf0]  ;;  %v2589_v31 = vor.u32 %v2750_v29, %v2588_v28 }
  0x42   :  { %850 = vmatpush.bf16.msrb.mxu1 %v2301_v11  ;;  %v2649_v4 = vor.u32 %v2761_v1, %v2646_v2  ;;  %v2417_v11 = vor.u32 %v2816_v9, %v2416_v8  ;;  %v2617_v19 = vor.u32 %v2757_v14, %v2616_v10  ;;  %v2747_v32 = vld [vmem:[%s4748_s4 + $0xac] sm:$0xf]  ;;  %v2590_v33 = vld [vmem:[%s4748_s4 + $0xc4] sm:$0xf0]  ;;  %v2802_v39 = vld [vmem:[%s4749_s5 + $0xa0] sm:$0xf0] }
  0x43   :  { %616 = vmatmul.bf16.gmra.mxu0 %v3309_v12  ;;  %636 = vmatmul.bf16.gmra.mxu2 %v3311_v13  ;;  %v2751_v36 = vld [vmem:[%s4748_s4 + $0xc8] sm:$0xf0]  ;;  %v2360_v38 = vld [vmem:[%s4749_s5 + $0x88] sm:$0xf]  ;;  %v2560_v40 = vld [vmem:[%s4748_s4 + $0x70] sm:$0xf] }
  0x44   :  { %665 = vmatmul.bf16.gmra.mxu1 %v3309_v12  ;;  %892 = vmatpush.bf16.msra.mxu2 %v2501_v30  ;;  %v2389_v30 = vor.u32 %v2809_v27, %v2388_v26  ;;  %v2743_v43 = vld [vmem:[%s4748_s4 + $0x88] sm:$0xf0]  ;;  %v2740_v45 = vld [vmem:[%s4748_s4 + $0x74] sm:$0xf]  ;;  %v2562_v46 = vld [vmem:[%s4748_s4 + $0x8c] sm:$0xf0] }
  0x45   :  { %1229 = vmatpush.bf16.msra.mxu3 %v2701_v34  ;;  %1278 = vmatpush.bf16.msra.mxu0 %v2705_v35  ;;  %v2596_v34 = vld [vmem:[%s4748_s4 + $0xb0] sm:$0xf]  ;;  %v2593_v35 = vor.u32 %v2747_v32, %v2590_v33  ;;  %v2561_v44 = vor.u32 %v2743_v43, %v2560_v40  ;;  %v2568_v41 = vld [vmem:[%s4748_s4 + $0x78] sm:$0xf]  ;;  %v2565_v49 = vor.u32 %v2740_v45, %v2562_v46  ;;  %v2744_v50 = vld [vmem:[%s4748_s4 + $0x90] sm:$0xf0] }
  0x46   :  { %685 = vmatmul.bf16.gmra.mxu3 %v3311_v13  ;;  %1327 = vmatpush.bf16.msra.mxu1 %v2709_v42  ;;  %v2597_v37 = vor.u32 %v2751_v36, %v2596_v34  ;;  %v2361_v42 = vor.u32 %v2802_v39, %v2360_v38  ;;  %v2332_v54 = vld [vmem:[%s4749_s5 + $0x50] sm:$0xf]  ;;  %v2736_v58 = vld [vmem:[%s4748_s4 + $0x50] sm:$0xf0]  ;;  %v2733_v0 = vld [vmem:[%s4748_s4 + $0x3c] sm:$0xf] }
  0x47   :  { %v2534_v1 = vld [vmem:[%s4748_s4 + $0x54] sm:$0xf0]  ;;  %v2540_v2 = vld [vmem:[%s4748_s4 + $0x40] sm:$0xf]  ;;  %v2729_v16 = vld [vmem:[%s4748_s4 + $0x18] sm:$0xf0] }
  0x48   :  { %893 = vmatpush.bf16.msra.mxu2 %v2473_v51  ;;  %v2569_v51 = vor.u32 %v2744_v50, %v2568_v41  ;;  %v2304_v10 = vld [vmem:[%s4749_s5 + $0x18] sm:$0xf]  ;;  %v2504_v14 = vld [vmem:[%s4748_s4] sm:$0xf]  ;;  %v2726_v26 = vld [vmem:[%s4748_s4 + $0x4] sm:$0xf] }
  0x49   :  { %1230 = vmatpush.bf16.msra.mxu3 %v2673_v55  ;;  %1279 = vmatpush.bf16.msra.mxu0 %v2677_v56  ;;  %v2795_v55 = vld [vmem:[%s4749_s5 + $0x68] sm:$0xf0]  ;;  %v2532_v56 = vld [vmem:[%s4748_s4 + $0x38] sm:$0xf]  ;;  %v2506_v27 = vld [vmem:[%s4748_s4 + $0x1c] sm:$0xf0] }
  0x4a   :  { %1328 = vmatpush.bf16.msra.mxu1 %v2681_v59  ;;  %v2333_v57 = vor.u32 %v2795_v55, %v2332_v54  ;;  %v2533_v60 = vor.u32 %v2736_v58, %v2532_v56  ;;  %v2512_v28 = vld [vmem:[%s4748_s4 + $0x8] sm:$0xf]  ;;  %v2730_v29 = vld [vmem:[%s4748_s4 + $0x20] sm:$0xf0]  ;;  %v2776_v36 = vld [vmem:[%s4748_s4 + $0x194] sm:$0xf] }
  0x4b   :  { %v2716_v38 = vld [vmem:[%s4748_s4 + $0x198] sm:$0xf]  ;;  %v2780_v40 = vld [vmem:[%s4748_s4 + $0x1b0] sm:$0xf0]  ;;  %v2777_v41 = vld [vmem:[%s4748_s4 + $0x19c] sm:$0xf] }
  0x4c   :  { %894 = vmatpush.bf16.msra.mxu2 %v2445_v63  ;;  %v2717_v43 = vor.u32 %v2780_v40, %v2716_v38  ;;  %v2724_v50 = vld [vmem:[%s4748_s4 + $0x1a0] sm:$0xf]  ;;  %v2781_v54 = vld [vmem:[%s4748_s4 + $0x1b8] sm:$0xf0]  ;;  %v2696_v38 = vld [vmem:[%s4748_s4 + $0x168] sm:$0xf] }
  0x4d   :  { %1231 = vmatpush.bf16.msra.mxu3 %v2645_v3  ;;  %1280 = vmatpush.bf16.msra.mxu0 %v2649_v4  ;;  %v2537_v3 = vor.u32 %v2733_v0, %v2534_v1  ;;  %v2737_v4 = vld [vmem:[%s4748_s4 + $0x58] sm:$0xf0]  ;;  %v2725_v55 = vor.u32 %v2781_v54, %v2724_v50  ;;  %v3640_v58 = vld [vmem:[%s4746_s2] ss:$0 sm:$0xff]  ;;  %v31_v1 = vld [vmem:[%s4744_s0 + $0x8] sm:$0xff] }
  0x4e   :  { %1329 = vmatpush.bf16.msra.mxu1 %v2653_v7  ;;  %v2541_v5 = vor.u32 %v2737_v4, %v2540_v2  ;;  %v30_v0 = vld [vmem:[%s4744_s0] sm:$0xff]  ;;  %v49_v4 = vmul.f32 %v3640_v58, %v31_v1  ;;  %v33_v1 = vld [vmem:[%s4744_s0 + $0x18] sm:$0xff] }
  0x4f   :  { %v2774_v40 = vld [vmem:[%s4748_s4 + $0x180] sm:$0xf0] }
  0x50   :  { %895 = vmatpush.bf16.msra.mxu2 %v2417_v11  ;;  %v2788_v11 = vld [vmem:[%s4749_s5 + $0x30] sm:$0xf0] }
  0x51   :  { %1232 = vmatpush.bf16.msra.mxu3 %v2617_v19  ;;  %1281 = vmatpush.bf16.msra.mxu0 %v2621_v22  ;;  %v2305_v15 = vor.u32 %v2788_v11, %v2304_v10  ;;  %v2505_v22 = vor.u32 %v2729_v16, %v2504_v14  ;;  %v2769_v10 = vld [vmem:[%s4748_s4 + $0x15c] sm:$0xf]  ;;  %v2682_v11 = vld [vmem:[%s4748_s4 + $0x174] sm:$0xf0]  ;;  %v2688_v14 = vld [vmem:[%s4748_s4 + $0x160] sm:$0xf] }
  0x52   :  { %1330 = vmatpush.bf16.msra.mxu1 %v2625_v25  ;;  %v2773_v16 = vld [vmem:[%s4748_s4 + $0x178] sm:$0xf0] }
  0x53   :  { %621 = vmatmul.bf16.gmra.mxu0 %v3361_v47  ;;  %641 = vmatmul.bf16.gmra.mxu2 %v3363_v48 }
  0x54   :  { %670 = vmatmul.bf16.gmra.mxu1 %v3361_v47  ;;  %896 = vmatpush.bf16.msra.mxu2 %v2389_v30  ;;  %v2509_v30 = vor.u32 %v2726_v26, %v2506_v27  ;;  %v2689_v26 = vor.u32 %v2773_v16, %v2688_v14  ;;  %v2654_v14 = vld [vmem:[%s4748_s4 + $0x13c] sm:$0xf0]  ;;  %v2766_v16 = vld [vmem:[%s4748_s4 + $0x140] sm:$0xf0] }
  0x55   :  { %1233 = vmatpush.bf16.msra.mxu3 %v2589_v31  ;;  %1282 = vmatpush.bf16.msra.mxu0 %v2593_v35  ;;  %v2513_v31 = vor.u32 %v2730_v29, %v2512_v28 }
  0x56   :  { %690 = vmatmul.bf16.gmra.mxu3 %v3363_v48  ;;  %1331 = vmatpush.bf16.msra.mxu1 %v2597_v37  ;;  %v2710_v37 = vld [vmem:[%s4748_s4 + $0x1ac] sm:$0xf0] }
  0x57   :  { %v2713_v39 = vor.u32 %v2776_v36, %v2710_v37  ;;  %v2770_v36 = vld [vmem:[%s4748_s4 + $0x164] sm:$0xf]  ;;  %v2690_v37 = vld [vmem:[%s4748_s4 + $0x17c] sm:$0xf0] }
  0x58   :  { %897 = vmatpush.bf16.msra.mxu2 %v2361_v42 }
  0x59   :  { %1234 = vmatpush.bf16.msra.mxu3 %v2561_v44  ;;  %1283 = vmatpush.bf16.msra.mxu0 %v2565_v49  ;;  %v2718_v49 = vld [vmem:[%s4748_s4 + $0x1b4] sm:$0xf0] }
  0x5a   :  { %1332 = vmatpush.bf16.msra.mxu1 %v2569_v51  ;;  %v2721_v51 = vor.u32 %v2777_v41, %v2718_v49  ;;  %v2697_v49 = vor.u32 %v2774_v40, %v2696_v38  ;;  %v2763_v40 = vld [vmem:[%s4748_s4 + $0x12c] sm:$0xf] }
  0x5c   :  { %898 = vmatpush.bf16.msra.mxu2 %v2333_v57 }
  0x5d   :  { %1235 = vmatpush.bf16.msra.mxu3 %v2533_v60  ;;  %1284 = vmatpush.bf16.msra.mxu0 %v2537_v3  ;;  %v48_v3 = vmul.f32 %v3640_v58, %v30_v0  ;;  %v32_v0 = vld [vmem:[%s4744_s0 + $0x10] sm:$0xff] }
  0x5e   :  { %1333 = vmatpush.bf16.msra.mxu1 %v2541_v5  ;;  %v3659_v5 = vld [vmem:[%s4746_s2 + $0x1] ss:$0 sm:$0xff] }
  0x5f   :  { %v66_v28 = vadd.f32 %v3659_v5, %v48_v3 }
  0x60   :  { %899 = vmatpush.bf16.msra.mxu2 %v2305_v15  ;;  %v2685_v15 = vor.u32 %v2769_v10, %v2682_v11  ;;  %v51_v10 = vmul.f32 %v3640_v58, %v33_v1  ;;  %v2762_v11 = vld [vmem:[%s4748_s4 + $0x124] sm:$0xf] }
  0x61   :  { %1236 = vmatpush.bf16.msra.mxu3 %v2505_v22  ;;  %1285 = vmatpush.bf16.msra.mxu0 %v2509_v30  ;;  %v67_v30 = vadd.f32 %v3659_v5, %v49_v4  ;;  %v50_v4 = vmul.f32 %v3640_v58, %v32_v0  ;;  %v2767_v0 = vld [vmem:[%s4748_s4 + $0x148] sm:$0xf0] }
  0x62   :  { %1334 = vmatpush.bf16.msra.mxu1 %v2513_v31 }
  0x63   :  { %704 = vmatmul.bf16.vlgmr.msrb.gmra.mxu2 %v3100_v17  ;;  %802 = vmatmul.bf16.vlgmr.msrb.gmra.mxu0 %v3100_v17  ;;  %v83_v41 = vmax.f32 %v67_v30, 0.0 }
  0x64   :  { %851 = vmatmul.bf16.vlgmr.msrb.gmra.mxu1 %v3100_v17  ;;  %1376 = vmatpush.bf16.msrb.mxu2 %v2713_v39  ;;  %v2693_v39 = vor.u32 %v2770_v36, %v2690_v37  ;;  %v68_v36 = vadd.f32 %v3659_v5, %v50_v4  ;;  %v69_v37 = vadd.f32 %v3659_v5, %v51_v10 }
  0x65   :  { %1474 = vmatpush.bf16.msrb.mxu0 %v2721_v51 }
  0x66   :  { %753 = vmatmul.bf16.vlgmr.msrb.gmra.mxu3 %v3100_v17  ;;  %1523 = vmatpush.bf16.msrb.mxu1 %v2725_v55  ;;  %v84_v1 = vmax.f32 %v68_v36, 0.0  ;;  %v85_v4 = vmax.f32 %v69_v37, 0.0 }
  0x67   :  { %1425 = vmatpush.bf16.msrb.mxu3 %v2717_v43  ;;  %v82_v43 = vmax.f32 %v66_v28, 0.0 }
  0x68   :  { %1377 = vmatpush.bf16.msrb.mxu2 %v2685_v15  ;;  %v2657_v15 = vor.u32 %v2762_v11, %v2654_v14 }
  0x69   :  { %1475 = vmatpush.bf16.msrb.mxu0 %v2693_v39  ;;  %v3701_v54 = vpack.c.bf16 %v83_v41, %v82_v43  ;;  %v2662_v43 = vld [vmem:[%s4748_s4 + $0x144] sm:$0xf0]  ;;  %v2668_v41 = vld [vmem:[%s4748_s4 + $0x130] sm:$0xf] }
  0x6a   :  { %1524 = vmatpush.bf16.msrb.mxu1 %v2697_v49  ;;  %v2665_v49 = vor.u32 %v2763_v40, %v2662_v43  ;;  %v2669_v10 = vor.u32 %v2767_v0, %v2668_v41  ;;  %v2755_v43 = vld [vmem:[%s4748_s4 + $0xec] sm:$0xf]  ;;  %v2626_v41 = vld [vmem:[%s4748_s4 + $0x104] sm:$0xf0] }
  0x6b   :  { %1426 = vmatpush.bf16.msrb.mxu3 %v2689_v26  ;;  %v2759_v0 = vld [vmem:[%s4748_s4 + $0x108] sm:$0xf0] }
  0x6c   :  { %1378 = vmatpush.bf16.msrb.mxu2 %v2657_v15 }
  0x6d   :  { %1476 = vmatpush.bf16.msrb.mxu0 %v2665_v49  ;;  %v2629_v49 = vor.u32 %v2755_v43, %v2626_v41  ;;  %v2756_v43 = vld [vmem:[%s4748_s4 + $0xf4] sm:$0xf]  ;;  %v2634_v41 = vld [vmem:[%s4748_s4 + $0x10c] sm:$0xf0] }
  0x6e   :  { %1525 = vmatpush.bf16.msrb.mxu1 %v2669_v10 }
  0x70   :  { %1379 = vmatpush.bf16.msrb.mxu2 %v2629_v49 }
  0x73   :  { %709 = vmatmul.bf16.gmra.mxu2 %v3215_v20  ;;  %807 = vmatmul.bf16.gmra.mxu0 %v3215_v20 }
  0x74   :  { %856 = vmatmul.bf16.gmra.mxu1 %v3215_v20 }
  0x76   :  { %758 = vmatmul.bf16.gmra.mxu3 %v3215_v20 }
  0x83   :  { %714 = vmatmul.bf16.gmra.mxu2 %v3309_v12  ;;  %812 = vmatmul.bf16.gmra.mxu0 %v3309_v12 }
  0x84   :  { %861 = vmatmul.bf16.gmra.mxu1 %v3309_v12 }
  0x86   :  { %763 = vmatmul.bf16.gmra.mxu3 %v3309_v12 }
  0x93   :  { %719 = vmatmul.bf16.gmra.mxu2 %v3361_v47  ;;  %817 = vmatmul.bf16.gmra.mxu0 %v3361_v47 }
  0x94   :  { %866 = vmatmul.bf16.gmra.mxu1 %v3361_v47 }
  0x96   :  { %768 = vmatmul.bf16.gmra.mxu3 %v3361_v47 }
  0xa0   :  { %v3505_v52 = vpop.f32.mrf.mxu0 }
  0xa1   :  { %v3507_v53 = vpop.f32.mrf.mxu1 }
  0xa3   :  { %724 = vmatmul.bf16.gmra.mxu2 %v3102_v18  ;;  %822 = vmatmul.bf16.gmra.mxu0 %v3102_v18 }
  0xa4   :  { %871 = vmatmul.bf16.gmra.mxu1 %v3102_v18 }
  0xa6   :  { %773 = vmatmul.bf16.gmra.mxu3 %v3102_v18  ;;  %v3525_v59 = vpop.f32.mrf.mxu2 }
  0xa8   :  { %v3529_v62 = vpop.f32.mrf.mxu0 }
  0xa9   :  { %v3527_v61 = vpop.f32.mrf.mxu3  ;;  %v3531_v63 = vpop.f32.mrf.mxu1 }
  0xae   :  { %v3545_v6 = vpop.f32.mrf.mxu2 }
  0xb0   :  { %v3549_v8 = vpop.f32.mrf.mxu0 }
  0xb1   :  { %v3547_v7 = vpop.f32.mrf.mxu3  ;;  %v3551_v9 = vpop.f32.mrf.mxu1 }
  0xb3   :  { %729 = vmatmul.bf16.gmra.mxu2 %v3217_v21  ;;  %827 = vmatmul.bf16.gmra.mxu0 %v3217_v21 }
  0xb4   :  { %876 = vmatmul.bf16.gmra.mxu1 %v3217_v21 }
  0xb6   :  { %778 = vmatmul.bf16.gmra.mxu3 %v3217_v21  ;;  %v3569_v19 = vpop.f32.mrf.mxu2 }
  0xb8   :  { %v3573_v24 = vpop.f32.mrf.mxu0 }
  0xb9   :  { %v3571_v23 = vpop.f32.mrf.mxu3  ;;  %v3575_v25 = vpop.f32.mrf.mxu1 }
  0xbe   :  { %v3589_v32 = vpop.f32.mrf.mxu2 }
  0xc0   :  { %v3593_v34 = vpop.f32.mrf.mxu0 }
  0xc1   :  { %v3591_v33 = vpop.f32.mrf.mxu3  ;;  %v3595_v35 = vpop.f32.mrf.mxu1 }
  0xc3   :  { %734 = vmatmul.bf16.gmra.mxu2 %v3311_v13  ;;  %832 = vmatmul.bf16.gmra.mxu0 %v3311_v13 }
  0xc4   :  { %881 = vmatmul.bf16.gmra.mxu1 %v3311_v13 }
  0xc6   :  { %783 = vmatmul.bf16.gmra.mxu3 %v3311_v13  ;;  %v3613_v42 = vpop.f32.mrf.mxu2 }
  0xc8   :  { %v3617_v45 = vpop.f32.mrf.mxu0 }
  0xc9   :  { %v3615_v44 = vpop.f32.mrf.mxu3  ;;  %v3619_v46 = vpop.f32.mrf.mxu1 }
  0xce   :  { %v3633_v56 = vpop.f32.mrf.mxu2 }
  0xcf   :  { %4757 = vst [vmem:[#allocation5_spill] sm:$0xff] %v3633_v56 }
  0xd0   :  { %v3642_v60 = vpop.f32.mrf.mxu0 }
  0xd1   :  { %v3635_v57 = vpop.f32.mrf.mxu3  ;;  %v3650_v2 = vpop.f32.mrf.mxu1 }
  0xd3   :  { %739 = vmatmul.bf16.gmra.mxu2 %v3363_v48  ;;  %837 = vmatmul.bf16.gmra.mxu0 %v3363_v48 }
  0xd4   :  { %886 = vmatmul.bf16.gmra.mxu1 %v3363_v48 }
  0xd6   :  { %788 = vmatmul.bf16.gmra.mxu3 %v3363_v48  ;;  %v3675_v22 = vpop.f32.mrf.mxu2 }
  0xd7   :  { %4758 = vst [vmem:[#allocation6_spill] sm:$0xff] %v3675_v22 }
  0xd8   :  { %v3681_v29 = vpop.f32.mrf.mxu0 }
  0xd9   :  { %v3677_v27 = vpop.f32.mrf.mxu3  ;;  %v3683_v31 = vpop.f32.mrf.mxu1 }
  0xda   :  { %4759 = vst [vmem:[#allocation7_spill] sm:$0xff] %v3677_v27 }
  0xde   :  { %v3697_v50 = vpop.f32.mrf.mxu2 }
  0xdf   :  { %4760 = vst [vmem:[#allocation8_spill] sm:$0xff] %v3697_v50 }
  0xe0   :  { %v3703_v55 = vpop.f32.mrf.mxu0 }
  0xe1   :  { %v3699_v51 = vpop.f32.mrf.mxu3  ;;  %4762 = vst [vmem:[#allocation10_spill] sm:$0xff] %v3703_v55  ;;  %v3711_v3 = vpop.f32.mrf.mxu1 }
  0xe2   :  { %4761 = vst [vmem:[#allocation9_spill] sm:$0xff] %v3699_v51 }
  0xe3   :  { %4763 = vst [vmem:[#allocation11_spill] sm:$0xff] %v3711_v3  ;;  %900 = vmatmul.bf16.vlgmr.msra.gmra.mxu2 %v3100_v17  ;;  %1286 = vmatmul.bf16.vlgmr.msra.gmra.mxu0 %v3701_v54  ;;  %v2660_v17 = vld [vmem:[%s4748_s4 + $0x128] sm:$0xf] }
  0xe4   :  { %1335 = vmatmul.bf16.vlgmr.msra.gmra.mxu1 %v3701_v54  ;;  %v2661_v28 = vor.u32 %v2766_v16, %v2660_v17  ;;  %v3757_v17 = vpack.c.bf16 %v85_v4, %v84_v1  ;;  %v34_v16 = vld [vmem:[%s4744_s0 + $0x20] sm:$0xff] }
  0xe5   :  { %v52_v37 = vmul.f32 %v3640_v58, %v34_v16 }
  0xe6   :  { %1237 = vmatmul.bf16.vlgmr.msra.gmra.mxu3 %v3701_v54  ;;  %v3731_v26 = vpop.f32.mrf.mxu2 }
  0xe7   :  { %1427 = vmatpush.bf16.msrb.mxu3 %v2661_v28  ;;  %v35_v28 = vld [vmem:[%s4744_s0 + $0x28] sm:$0xff]  ;;  %v70_v16 = vadd.f32 %v3659_v5, %v52_v37  ;;  %v2640_v37 = vld [vmem:[%s4748_s4 + $0xf8] sm:$0xf] }
  0xe8   :  { %v3737_v38 = vpop.f32.mrf.mxu0  ;;  %v53_v40 = vmul.f32 %v3640_v58, %v35_v28 }
  0xe9   :  { %v3733_v30 = vpop.f32.mrf.mxu3  ;;  %4765 = vst [vmem:[#allocation13_spill] sm:$0xff] %v3737_v38  ;;  %v3739_v39 = vpop.f32.mrf.mxu1  ;;  %v86_v49 = vmax.f32 %v70_v16, 0.0  ;;  %v37_v16 = vld [vmem:[%s4744_s0 + $0x38] sm:$0xff] }
  0xea   :  { %4764 = vst [vmem:[#allocation12_spill] sm:$0xff] %v3733_v30  ;;  %v71_v28 = vadd.f32 %v3659_v5, %v53_v40  ;;  %v2760_v40 = vld [vmem:[%s4748_s4 + $0x110] sm:$0xf0] }
  0xeb   :  { %4766 = vst [vmem:[#allocation14_spill] sm:$0xff] %v3739_v39 }
  0xee   :  { %v3753_v11 = vpop.f32.mrf.mxu2 }
  0xf0   :  { %v3759_v15 = vpop.f32.mrf.mxu0 }
  0xf1   :  { %v3755_v14 = vpop.f32.mrf.mxu3  ;;  %4768 = vst [vmem:[#allocation16_spill] sm:$0xff] %v3759_v15  ;;  %v3767_v36 = vpop.f32.mrf.mxu1 }
  0xf2   :  { %4767 = vst [vmem:[#allocation15_spill] sm:$0xff] %v3755_v14 }
  0xf3   :  { %4769 = vst [vmem:[#allocation17_spill] sm:$0xff] %v3767_v36  ;;  %905 = vmatmul.bf16.gmra.mxu2 %v3215_v20  ;;  %1291 = vmatmul.bf16.gmra.mxu0 %v3757_v17  ;;  %v2632_v20 = vld [vmem:[%s4748_s4 + $0xf0] sm:$0xf] }
  0xf4   :  { %1340 = vmatmul.bf16.gmra.mxu1 %v3757_v17  ;;  %v2633_v4 = vor.u32 %v2759_v0, %v2632_v20  ;;  %v2637_v20 = vor.u32 %v2756_v43, %v2634_v41  ;;  %v87_v0 = vmax.f32 %v71_v28, 0.0  ;;  %v36_v43 = vld [vmem:[%s4744_s0 + $0x30] sm:$0xff] }
  0xf5   :  { %v54_v41 = vmul.f32 %v3640_v58, %v36_v43 }
  0xf6   :  { %1242 = vmatmul.bf16.gmra.mxu3 %v3757_v17  ;;  %v3787_v1 = vpop.f32.mrf.mxu2  ;;  %1477 = vmatpush.bf16.msrb.mxu0 %v2637_v20  ;;  %v2748_v20 = vld [vmem:[%s4748_s4 + $0xb4] sm:$0xf] }
  0xf7   :  { %1428 = vmatpush.bf16.msrb.mxu3 %v2633_v4  ;;  %v2641_v4 = vor.u32 %v2760_v40, %v2640_v37  ;;  %v55_v37 = vmul.f32 %v3640_v58, %v37_v16  ;;  %v2598_v40 = vld [vmem:[%s4748_s4 + $0xcc] sm:$0xf0] }
  0xf8   :  { %v3793_v15 = vpop.f32.mrf.mxu0 }
  0xf9   :  { %v3789_v10 = vpop.f32.mrf.mxu3  ;;  %4771 = vst [vmem:[#allocation19_spill] sm:$0xff] %v3793_v15  ;;  %v3795_v36 = vpop.f32.mrf.mxu1  ;;  %1526 = vmatpush.bf16.msrb.mxu1 %v2641_v4 }
  0xfa   :  { %4770 = vst [vmem:[#allocation18_spill] sm:$0xff] %v3789_v10  ;;  %v3813_v10 = vpack.c.bf16 %v87_v0, %v86_v49  ;;  %v2601_v49 = vor.u32 %v2748_v20, %v2598_v40  ;;  %v2752_v0 = vld [vmem:[%s4748_s4 + $0xd0] sm:$0xf0]  ;;  %v2749_v20 = vld [vmem:[%s4748_s4 + $0xbc] sm:$0xf] }
  0xfb   :  { %4772 = vst [vmem:[#allocation20_spill] sm:$0xff] %v3795_v36  ;;  %v2606_v40 = vld [vmem:[%s4748_s4 + $0xd4] sm:$0xf0] }
  0xfc   :  { %1380 = vmatpush.bf16.msrb.mxu2 %v2601_v49 }
  0xfe   :  { %v3809_v15 = vpop.f32.mrf.mxu2 }
 0x100   :  { %v3815_v38 = vpop.f32.mrf.mxu0 }
 0x101   :  { %v3811_v36 = vpop.f32.mrf.mxu3  ;;  %4774 = vst [vmem:[#allocation22_spill] sm:$0xff] %v3815_v38  ;;  %v3823_v28 = vpop.f32.mrf.mxu1  ;;  %v72_v38 = vadd.f32 %v3659_v5, %v54_v41  ;;  %v2612_v41 = vld [vmem:[%s4748_s4 + $0xc0] sm:$0xf] }
 0x102   :  { %4773 = vst [vmem:[#allocation21_spill] sm:$0xff] %v3811_v36 }
 0x103   :  { %4775 = vst [vmem:[#allocation23_spill] sm:$0xff] %v3823_v28  ;;  %910 = vmatmul.bf16.gmra.mxu2 %v3309_v12  ;;  %1296 = vmatmul.bf16.gmra.mxu0 %v3813_v10  ;;  %v2604_v12 = vld [vmem:[%s4748_s4 + $0xb8] sm:$0xf]  ;;  %v73_v28 = vadd.f32 %v3659_v5, %v55_v37  ;;  %v2753_v37 = vld [vmem:[%s4748_s4 + $0xd8] sm:$0xf0]  ;;  %v88_v49 = vmax.f32 %v72_v38, 0.0 }
 0x104   :  { %1345 = vmatmul.bf16.gmra.mxu1 %v3813_v10  ;;  %v2605_v43 = vor.u32 %v2752_v0, %v2604_v12  ;;  %v2609_v12 = vor.u32 %v2749_v20, %v2606_v40  ;;  %v38_v20 = vld [vmem:[%s4744_s0 + $0x40] sm:$0xff]  ;;  %v39_v38 = vld [vmem:[%s4744_s0 + $0x48] sm:$0xff] }
 0x105   :  { %v89_v0 = vmax.f32 %v73_v28, 0.0  ;;  %v56_v40 = vmul.f32 %v3640_v58, %v38_v20 }
 0x106   :  { %1247 = vmatmul.bf16.gmra.mxu3 %v3813_v10  ;;  %v3843_v4 = vpop.f32.mrf.mxu2  ;;  %1478 = vmatpush.bf16.msrb.mxu0 %v2609_v12  ;;  %v2741_v12 = vld [vmem:[%s4748_s4 + $0x7c] sm:$0xf] }
 0x107   :  { %1429 = vmatpush.bf16.msrb.mxu3 %v2605_v43  ;;  %v2613_v43 = vor.u32 %v2753_v37, %v2612_v41  ;;  %v57_v41 = vmul.f32 %v3640_v58, %v39_v38  ;;  %v2570_v37 = vld [vmem:[%s4748_s4 + $0x94] sm:$0xf0] }
 0x108   :  { %v3849_v36 = vpop.f32.mrf.mxu0 }
 0x109   :  { %v3845_v16 = vpop.f32.mrf.mxu3  ;;  %4777 = vst [vmem:[#allocation25_spill] sm:$0xff] %v3849_v36  ;;  %v3851_v14 = vpop.f32.mrf.mxu1  ;;  %1527 = vmatpush.bf16.msrb.mxu1 %v2613_v43 }
 0x10a   :  { %4776 = vst [vmem:[#allocation24_spill] sm:$0xff] %v3845_v16  ;;  %v3869_v16 = vpack.c.bf16 %v89_v0, %v88_v49  ;;  %v2573_v49 = vor.u32 %v2741_v12, %v2570_v37  ;;  %v2745_v0 = vld [vmem:[%s4748_s4 + $0x98] sm:$0xf0]  ;;  %v2742_v12 = vld [vmem:[%s4748_s4 + $0x84] sm:$0xf] }
 0x10b   :  { %4778 = vst [vmem:[#allocation26_spill] sm:$0xff] %v3851_v14  ;;  %v2578_v37 = vld [vmem:[%s4748_s4 + $0x9c] sm:$0xf0] }
 0x10c   :  { %1381 = vmatpush.bf16.msrb.mxu2 %v2573_v49 }
 0x10e   :  { %v3865_v36 = vpop.f32.mrf.mxu2 }
 0x110   :  { %v3871_v39 = vpop.f32.mrf.mxu0 }
 0x111   :  { %v3867_v14 = vpop.f32.mrf.mxu3  ;;  %4780 = vst [vmem:[#allocation28_spill] sm:$0xff] %v3871_v39  ;;  %v3879_v28 = vpop.f32.mrf.mxu1  ;;  %v74_v39 = vadd.f32 %v3659_v5, %v56_v40  ;;  %v2584_v40 = vld [vmem:[%s4748_s4 + $0x88] sm:$0xf] }
 0x112   :  { %4779 = vst [vmem:[#allocation27_spill] sm:$0xff] %v3867_v14 }
 0x113   :  { %4781 = vst [vmem:[#allocation29_spill] sm:$0xff] %v3879_v28  ;;  %915 = vmatmul.bf16.gmra.mxu2 %v3361_v47  ;;  %1301 = vmatmul.bf16.gmra.mxu0 %v3869_v16  ;;  %v2576_v47 = vld [vmem:[%s4748_s4 + $0x80] sm:$0xf]  ;;  %v75_v28 = vadd.f32 %v3659_v5, %v57_v41  ;;  %v2746_v41 = vld [vmem:[%s4748_s4 + $0xa0] sm:$0xf0]  ;;  %v90_v49 = vmax.f32 %v74_v39, 0.0 }
 0x114   :  { %1350 = vmatmul.bf16.gmra.mxu1 %v3869_v16  ;;  %v2577_v20 = vor.u32 %v2745_v0, %v2576_v47  ;;  %v2581_v47 = vor.u32 %v2742_v12, %v2578_v37  ;;  %v40_v12 = vld [vmem:[%s4744_s0 + $0x50] sm:$0xff]  ;;  %v41_v39 = vld [vmem:[%s4744_s0 + $0x58] sm:$0xff] }
 0x115   :  { %v91_v0 = vmax.f32 %v75_v28, 0.0  ;;  %v58_v37 = vmul.f32 %v3640_v58, %v40_v12 }
 0x116   :  { %1252 = vmatmul.bf16.gmra.mxu3 %v3869_v16  ;;  %v3899_v43 = vpop.f32.mrf.mxu2  ;;  %1479 = vmatpush.bf16.msrb.mxu0 %v2581_v47  ;;  %v2734_v47 = vld [vmem:[%s4748_s4 + $0x44] sm:$0xf] }
 0x117   :  { %1430 = vmatpush.bf16.msrb.mxu3 %v2577_v20  ;;  %v2585_v20 = vor.u32 %v2746_v41, %v2584_v40  ;;  %v59_v40 = vmul.f32 %v3640_v58, %v41_v39  ;;  %v2542_v41 = vld [vmem:[%s4748_s4 + $0x5c] sm:$0xf0] }
 0x118   :  { %v3905_v14 = vpop.f32.mrf.mxu0 }
 0x119   :  { %v3901_v38 = vpop.f32.mrf.mxu3  ;;  %4783 = vst [vmem:[#allocation31_spill] sm:$0xff] %v3905_v14  ;;  %v3907_v55 = vpop.f32.mrf.mxu1  ;;  %1528 = vmatpush.bf16.msrb.mxu1 %v2585_v20 }
 0x11a   :  { %4782 = vst [vmem:[#allocation30_spill] sm:$0xff] %v3901_v38  ;;  %v3925_v38 = vpack.c.bf16 %v91_v0, %v90_v49  ;;  %v2545_v49 = vor.u32 %v2734_v47, %v2542_v41  ;;  %v2738_v0 = vld [vmem:[%s4748_s4 + $0x60] sm:$0xf0]  ;;  %v2735_v47 = vld [vmem:[%s4748_s4 + $0x4c] sm:$0xf] }
 0x11b   :  { %4784 = vst [vmem:[#allocation32_spill] sm:$0xff] %v3907_v55  ;;  %v2550_v41 = vld [vmem:[%s4748_s4 + $0x64] sm:$0xf0] }
 0x11c   :  { %1382 = vmatpush.bf16.msrb.mxu2 %v2545_v49 }
 0x11e   :  { %v3921_v14 = vpop.f32.mrf.mxu2 }
 0x120   :  { %v3927_v30 = vpop.f32.mrf.mxu0 }
 0x121   :  { %v3923_v55 = vpop.f32.mrf.mxu3  ;;  %4786 = vst [vmem:[#allocation34_spill] sm:$0xff] %v3927_v30  ;;  %v3935_v28 = vpop.f32.mrf.mxu1  ;;  %v76_v30 = vadd.f32 %v3659_v5, %v58_v37  ;;  %v2556_v37 = vld [vmem:[%s4748_s4 + $0x50] sm:$0xf] }
 0x122   :  { %4785 = vst [vmem:[#allocation33_spill] sm:$0xff] %v3923_v55 }
 0x123   :  { %4787 = vst [vmem:[#allocation35_spill] sm:$0xff] %v3935_v28  ;;  %920 = vmatmul.bf16.gmra.mxu2 %v3102_v18  ;;  %1306 = vmatmul.bf16.gmra.mxu0 %v3925_v38  ;;  %v2548_v18 = vld [vmem:[%s4748_s4 + $0x48] sm:$0xf]  ;;  %v77_v28 = vadd.f32 %v3659_v5, %v59_v40  ;;  %v2739_v40 = vld [vmem:[%s4748_s4 + $0x68] sm:$0xf0]  ;;  %v92_v49 = vmax.f32 %v76_v30, 0.0 }
 0x124   :  { %1355 = vmatmul.bf16.gmra.mxu1 %v3925_v38  ;;  %v2549_v12 = vor.u32 %v2738_v0, %v2548_v18  ;;  %v2553_v18 = vor.u32 %v2735_v47, %v2550_v41  ;;  %v42_v47 = vld [vmem:[%s4744_s0 + $0x60] sm:$0xff]  ;;  %v43_v30 = vld [vmem:[%s4744_s0 + $0x68] sm:$0xff] }
 0x125   :  { %v93_v0 = vmax.f32 %v77_v28, 0.0  ;;  %v60_v41 = vmul.f32 %v3640_v58, %v42_v47 }
 0x126   :  { %1257 = vmatmul.bf16.gmra.mxu3 %v3925_v38  ;;  %v3955_v20 = vpop.f32.mrf.mxu2  ;;  %1480 = vmatpush.bf16.msrb.mxu0 %v2553_v18  ;;  %v2727_v18 = vld [vmem:[%s4748_s4 + $0xc] sm:$0xf] }
 0x127   :  { %1431 = vmatpush.bf16.msrb.mxu3 %v2549_v12  ;;  %v2557_v12 = vor.u32 %v2739_v40, %v2556_v37  ;;  %v61_v37 = vmul.f32 %v3640_v58, %v43_v30  ;;  %v2514_v40 = vld [vmem:[%s4748_s4 + $0x24] sm:$0xf0] }
 0x128   :  { %v3961_v55 = vpop.f32.mrf.mxu0 }
 0x129   :  { %v3957_v39 = vpop.f32.mrf.mxu3  ;;  %4789 = vst [vmem:[#allocation37_spill] sm:$0xff] %v3961_v55  ;;  %v3963_v3 = vpop.f32.mrf.mxu1  ;;  %1529 = vmatpush.bf16.msrb.mxu1 %v2557_v12 }
 0x12a   :  { %4788 = vst [vmem:[#allocation36_spill] sm:$0xff] %v3957_v39  ;;  %v3981_v39 = vpack.c.bf16 %v93_v0, %v92_v49  ;;  %v2517_v49 = vor.u32 %v2727_v18, %v2514_v40  ;;  %v2731_v0 = vld [vmem:[%s4748_s4 + $0x28] sm:$0xf0]  ;;  %v2728_v18 = vld [vmem:[%s4748_s4 + $0x14] sm:$0xf] }
 0x12b   :  { %4790 = vst [vmem:[#allocation38_spill] sm:$0xff] %v3963_v3  ;;  %v2522_v40 = vld [vmem:[%s4748_s4 + $0x2c] sm:$0xf0] }
 0x12c   :  { %1383 = vmatpush.bf16.msrb.mxu2 %v2517_v49 }
 0x12e   :  { %v3977_v55 = vpop.f32.mrf.mxu2 }
 0x130   :  { %v3983_v50 = vpop.f32.mrf.mxu0 }
 0x131   :  { %v3979_v3 = vpop.f32.mrf.mxu3  ;;  %4792 = vst [vmem:[#allocation40_spill] sm:$0xff] %v3983_v50  ;;  %v3991_v28 = vpop.f32.mrf.mxu1  ;;  %v78_v50 = vadd.f32 %v3659_v5, %v60_v41  ;;  %v2528_v41 = vld [vmem:[%s4748_s4 + $0x18] sm:$0xf] }
 0x132   :  { %4791 = vst [vmem:[#allocation39_spill] sm:$0xff] %v3979_v3 }
 0x133   :  { %4793 = vst [vmem:[#allocation41_spill] sm:$0xff] %v3991_v28  ;;  %925 = vmatmul.bf16.gmra.mxu2 %v3217_v21  ;;  %1311 = vmatmul.bf16.gmra.mxu0 %v3981_v39  ;;  %v2520_v21 = vld [vmem:[%s4748_s4 + $0x10] sm:$0xf]  ;;  %v79_v28 = vadd.f32 %v3659_v5, %v61_v37  ;;  %v2732_v37 = vld [vmem:[%s4748_s4 + $0x30] sm:$0xf0]  ;;  %v94_v49 = vmax.f32 %v78_v50, 0.0 }
 0x134   :  { %1360 = vmatmul.bf16.gmra.mxu1 %v3981_v39  ;;  %v2521_v47 = vor.u32 %v2731_v0, %v2520_v21  ;;  %v2525_v21 = vor.u32 %v2728_v18, %v2522_v40  ;;  %v44_v18 = vld [vmem:[%s4744_s0 + $0x70] sm:$0xff]  ;;  %v45_v50 = vld [vmem:[%s4744_s0 + $0x78] sm:$0xff]  ;;  %s2889_s0 = smov 56  }
 0x135   :  { %v95_v0 = vmax.f32 %v79_v28, 0.0  ;;  %v62_v40 = vmul.f32 %v3640_v58, %v44_v18 }
 0x136   :  { %1262 = vmatmul.bf16.gmra.mxu3 %v3981_v39  ;;  %v4011_v12 = vpop.f32.mrf.mxu2  ;;  %1481 = vmatpush.bf16.msrb.mxu0 %v2525_v21 }
 0x137   :  { %1432 = vmatpush.bf16.msrb.mxu3 %v2521_v47  ;;  %v2529_v47 = vor.u32 %v2732_v37, %v2528_v41  ;;  %v63_v41 = vmul.f32 %v3640_v58, %v45_v50 }
 0x138   :  { %v4017_v3 = vpop.f32.mrf.mxu0 }
 0x139   :  { %v4013_v30 = vpop.f32.mrf.mxu3  ;;  %4795 = vst [vmem:[#allocation43_spill] sm:$0xff] %v4017_v3  ;;  %v4019_v51 = vpop.f32.mrf.mxu1  ;;  %1530 = vmatpush.bf16.msrb.mxu1 %v2529_v47 }
 0x13a   :  { %4794 = vst [vmem:[#allocation42_spill] sm:$0xff] %v4013_v30  ;;  %v4037_v30 = vpack.c.bf16 %v95_v0, %v94_v49  ;;  %v80_v49 = vadd.f32 %v3659_v5, %v62_v40  ;;  %v81_v0 = vadd.f32 %v3659_v5, %v63_v41 }
 0x13b   :  { %4796 = vst [vmem:[#allocation44_spill] sm:$0xff] %v4019_v51 }
 0x13c   :  { %v97_v18 = vmax.f32 %v81_v0, 0.0 }
 0x13e   :  { %v4033_v3 = vpop.f32.mrf.mxu2 }
 0x140   :  { %v4039_v22 = vpop.f32.mrf.mxu0 }
 0x141   :  { %v4035_v51 = vpop.f32.mrf.mxu3  ;;  %4798 = vst [vmem:[#allocation46_spill] sm:$0xff] %v4039_v22  ;;  %v4047_v28 = vpop.f32.mrf.mxu1  ;;  %v96_v22 = vmax.f32 %v80_v49, 0.0  ;;  %v4090_v49 = vld [vmem:[%s4750_s6] sm:$0xff] }
 0x142   :  { %4797 = vst [vmem:[#allocation45_spill] sm:$0xff] %v4035_v51 }
 0x143   :  { %4799 = vst [vmem:[#allocation47_spill] sm:$0xff] %v4047_v28  ;;  %930 = vmatmul.bf16.gmra.mxu2 %v3311_v13  ;;  %1316 = vmatmul.bf16.gmra.mxu0 %v4037_v30  ;;  %v4069_v50 = vpack.c.bf16 %v97_v18, %v96_v22  ;;  %v4097_v18 = vperm.slane %v4090_v49, 1 }
 0x144   :  { %1365 = vmatmul.bf16.gmra.mxu1 %v4037_v30  ;;  %4812 = vst [vmem:[#allocation60_spill] sm:$0xff] %v4090_v49 }
 0x145   :  { %4805 = vst [vmem:[#allocation53_spill] sm:$0xff] %v4069_v50 }
 0x146   :  { %1267 = vmatmul.bf16.gmra.mxu3 %v4037_v30  ;;  %v4055_v21 = vpop.f32.mrf.mxu2 }
 0x148   :  { %v4061_v47 = vpop.f32.mrf.mxu0 }
 0x149   :  { %v4057_v37 = vpop.f32.mrf.mxu3  ;;  %4801 = vst [vmem:[#allocation49_spill] sm:$0xff] %v4061_v47  ;;  %v4063_v13 = vpop.f32.mrf.mxu1 }
 0x14a   :  { %4800 = vst [vmem:[#allocation48_spill] sm:$0xff] %v4057_v37 }
 0x14b   :  { %4802 = vst [vmem:[#allocation50_spill] sm:$0xff] %v4063_v13 }
 0x14e   :  { %v4065_v28 = vpop.f32.mrf.mxu2 }
 0x14f   :  { %4803 = vst [vmem:[#allocation51_spill] sm:$0xff] %v4065_v28 }
 0x150   :  { %v4071_v51 = vpop.f32.mrf.mxu0 }
 0x151   :  { %v4067_v58 = vpop.f32.mrf.mxu3  ;;  %4806 = vst [vmem:[#allocation54_spill] sm:$0xff] %v4071_v51  ;;  %v4073_v27 = vpop.f32.mrf.mxu1 }
 0x152   :  { %4804 = vst [vmem:[#allocation52_spill] sm:$0xff] %v4067_v58 }
 0x153   :  { %4807 = vst [vmem:[#allocation55_spill] sm:$0xff] %v4073_v27  ;;  %935 = vmatmul.bf16.gmra.mxu2 %v3363_v48  ;;  %1321 = vmatmul.bf16.gmra.mxu0 %v4069_v50  ;;  %v4100_v27 = vperm.slane %v4090_v49, 2 }
 0x154   :  { %1370 = vmatmul.bf16.gmra.mxu1 %v4069_v50 }
 0x156   :  { %1272 = vmatmul.bf16.gmra.mxu3 %v4069_v50  ;;  %v4079_v5 = vpop.f32.mrf.mxu2 }
 0x157   :  { %4808 = vst [vmem:[#allocation56_spill] sm:$0xff] %v4079_v5 }
 0x158   :  { %v4083_v41 = vpop.f32.mrf.mxu0 }
 0x159   :  { %v4081_v40 = vpop.f32.mrf.mxu3  ;;  %4810 = vst [vmem:[#allocation58_spill] sm:$0xff] %v4083_v41  ;;  %v4085_v22 = vpop.f32.mrf.mxu1 }
 0x15a   :  { %4809 = vst [vmem:[#allocation57_spill] sm:$0xff] %v4081_v40 }
 0x15b   :  { %4811 = vst [vmem:[#allocation59_spill] sm:$0xff] %v4085_v22 }
 0x15e   :  { %v4092_v48 = vpop.f32.mrf.mxu2 }
 0x15f   :  { %4813 = vst [vmem:[#allocation61_spill] sm:$0xff] %v4092_v48 }
 0x160   :  { %v1287_v51 = vpop.f32.mrf.mxu0 }
 0x161   :  { %v4094_v0 = vpop.f32.mrf.mxu3  ;;  %v1288_v41 = vadd.f32 %v1287_v51, %v3507_v53  ;;  %v1336_v40 = vpop.f32.mrf.mxu1  ;;  %v1814_v51 = vld [vmem:[%s4751_s7 + $0x10] sm:$0xff] }
 0x162   :  { %4814 = vst [vmem:[#allocation62_spill] sm:$0xff] %v4094_v0  ;;  %v1337_v22 = vadd.f32 %v1336_v40, %v3731_v26  ;;  %v1813_v0 = vld [vmem:[%s4751_s7 + $0x8] sm:$0xff] }
 0x163   :  { %v1589_v47 = vadd.f32 %v4097_v18, %v1288_v41  ;;  %1384 = vmatmul.bf16.vlgmr.msrb.gmra.mxu2 %v3701_v54  ;;  %1482 = vmatmul.bf16.vlgmr.msrb.gmra.mxu0 %v3701_v54  ;;  %v4119_v41 = vperm.slane %v4090_v49, 0 }
 0x164   :  { %v1590_v58 = vadd.f32 %v4100_v27, %v1337_v22  ;;  %1531 = vmatmul.bf16.vlgmr.msrb.gmra.mxu1 %v3701_v54 }
 0x165   :  { %v1701_v53 = vmul.f32 0.17, %v1589_v47 }
 0x166   :  { %1433 = vmatmul.bf16.vlgmr.msrb.gmra.mxu3 %v3701_v54  ;;  %v1702_v26 = vmul.f32 0.17, %v1590_v58  ;;  %v4116_v40 = vpop.f32.mrf.mxu2 }
 0x167   :  { %4815 = vst [vmem:[#allocation63_spill] sm:$0xff] %v4116_v40  ;;  %v1925_v13 = vadd.f32 %v1813_v0, %v1701_v53  ;;  %v1812_v40 = vld [vmem:[%s4751_s7] sm:$0xff] }
 0x168   :  { %v1926_v48 = vadd.f32 %v1814_v51, %v1702_v26  ;;  %v1289_v50 = vpop.f32.mrf.mxu0 }
 0x169   :  { %v1238_v37 = vpop.f32.mrf.mxu3  ;;  %v2037_v5 = vmax.f32 %v1925_v13, 0.0  ;;  %v1290_v54 = vadd.f32 %v1289_v50, %v3531_v63  ;;  %v1338_v47 = vpop.f32.mrf.mxu1 }
 0x16a   :  { %v1239_v22 = vadd.f32 %v1238_v37, %v3505_v52  ;;  %v2038_v56 = vmax.f32 %v1926_v48, 0.0  ;;  %v1339_v58 = vadd.f32 %v1338_v47, %v3753_v11  ;;  %v1820_v52 = vld [vmem:[%s4751_s7 + $0x40] sm:$0xff]  ;;  %v1821_v11 = vld [vmem:[%s4751_s7 + $0x48] sm:$0xff] }
 0x16b   :  { %2149 = vst [vmem:[#allocation2 + $0x8] sm:$0xff] %v2037_v5  ;;  %v1596_v0 = vadd.f32 %v4097_v18, %v1290_v54 }
 0x16c   :  { %v1588_v28 = vadd.f32 %v4119_v41, %v1239_v22  ;;  %2150 = vst [vmem:[#allocation2 + $0x10] sm:$0xff] %v2038_v56  ;;  %v1597_v63 = vadd.f32 %v4100_v27, %v1339_v58 }
 0x16d   :  { %v1708_v37 = vmul.f32 0.17, %v1596_v0 }
 0x16e   :  { %v1700_v53 = vmul.f32 0.17, %v1588_v28  ;;  %v1709_v50 = vmul.f32 0.17, %v1597_v63  ;;  %v4136_v5 = vpop.f32.mrf.mxu2 }
 0x16f   :  { %v1932_v48 = vadd.f32 %v1820_v52, %v1708_v37  ;;  %v1828_v37 = vld [vmem:[%s4751_s7 + $0x80] sm:$0xff] }
 0x170   :  { %v1924_v13 = vadd.f32 %v1812_v40, %v1700_v53  ;;  %v1933_v56 = vadd.f32 %v1821_v11, %v1709_v50  ;;  %v1292_v22 = vpop.f32.mrf.mxu0  ;;  %v1819_v53 = vld [vmem:[%s4751_s7 + $0x38] sm:$0xff] }
 0x171   :  { %v1240_v51 = vpop.f32.mrf.mxu3  ;;  %v2044_v54 = vmax.f32 %v1932_v48, 0.0  ;;  %v1293_v47 = vadd.f32 %v1292_v22, %v3551_v9  ;;  %v1341_v58 = vpop.f32.mrf.mxu1  ;;  %v1827_v9 = vld [vmem:[%s4751_s7 + $0x78] sm:$0xff] }
 0x172   :  { %v2036_v26 = vmax.f32 %v1924_v13, 0.0  ;;  %v1241_v28 = vadd.f32 %v1240_v51, %v3529_v62  ;;  %v2045_v0 = vmax.f32 %v1933_v56, 0.0  ;;  %v1342_v40 = vadd.f32 %v1341_v58, %v3787_v1 }
 0x173   :  { %2156 = vst [vmem:[#allocation2 + $0x40] sm:$0xff] %v2044_v54  ;;  %v1603_v52 = vadd.f32 %v4097_v18, %v1293_v47  ;;  %1389 = vmatmul.bf16.gmra.mxu2 %v3757_v17  ;;  %1487 = vmatmul.bf16.gmra.mxu0 %v3757_v17 }
 0x174   :  { %2148 = vst [vmem:[#allocation2] sm:$0xff] %v2036_v26  ;;  %v1595_v49 = vadd.f32 %v4119_v41, %v1241_v28  ;;  %v1604_v63 = vadd.f32 %v4100_v27, %v1342_v40  ;;  %1536 = vmatmul.bf16.gmra.mxu1 %v3757_v17  ;;  %v1826_v40 = vld [vmem:[%s4751_s7 + $0x70] sm:$0xff] }
 0x175   :  { %2157 = vst [vmem:[#allocation2 + $0x48] sm:$0xff] %v2045_v0  ;;  %v1715_v1 = vmul.f32 0.17, %v1603_v52 }
 0x176   :  { %v1707_v62 = vmul.f32 0.17, %v1595_v49  ;;  %1438 = vmatmul.bf16.gmra.mxu3 %v3757_v17  ;;  %v1716_v13 = vmul.f32 0.17, %v1604_v63  ;;  %v4157_v50 = vpop.f32.mrf.mxu2 }
 0x177   :  { %v1939_v49 = vadd.f32 %v1827_v9, %v1715_v1 }
 0x178   :  { %v1931_v11 = vadd.f32 %v1819_v53, %v1707_v62  ;;  %v1940_v26 = vadd.f32 %v1828_v37, %v1716_v13  ;;  %v1294_v28 = vpop.f32.mrf.mxu0 }
 0x179   :  { %v1243_v48 = vpop.f32.mrf.mxu3  ;;  %v2051_v22 = vmax.f32 %v1939_v49, 0.0  ;;  %v1295_v54 = vadd.f32 %v1294_v28, %v3575_v25  ;;  %v1343_v17 = vpop.f32.mrf.mxu1  ;;  %v1834_v25 = vld [vmem:[%s4751_s7 + $0xb0] sm:$0xff] }
 0x17a   :  { %v2043_v51 = vmax.f32 %v1931_v11, 0.0  ;;  %v1244_v56 = vadd.f32 %v1243_v48, %v3549_v8  ;;  %v2052_v47 = vmax.f32 %v1940_v26, 0.0  ;;  %v1344_v0 = vadd.f32 %v1343_v17, %v3809_v15  ;;  %v1835_v15 = vld [vmem:[%s4751_s7 + $0xb8] sm:$0xff] }
 0x17b   :  { %2163 = vst [vmem:[#allocation2 + $0x78] sm:$0xff] %v2051_v22  ;;  %v1610_v53 = vadd.f32 %v4097_v18, %v1295_v54 }
 0x17c   :  { %2155 = vst [vmem:[#allocation2 + $0x38] sm:$0xff] %v2043_v51  ;;  %v1602_v58 = vadd.f32 %v4119_v41, %v1244_v56  ;;  %v1611_v52 = vadd.f32 %v4100_v27, %v1344_v0 }
 0x17d   :  { %2164 = vst [vmem:[#allocation2 + $0x80] sm:$0xff] %v2052_v47  ;;  %v1722_v62 = vmul.f32 0.17, %v1610_v53  ;;  %v1833_v47 = vld [vmem:[%s4751_s7 + $0xa8] sm:$0xff] }
 0x17e   :  { %v1714_v8 = vmul.f32 0.17, %v1602_v58  ;;  %v1723_v63 = vmul.f32 0.17, %v1611_v52  ;;  %v4174_v1 = vpop.f32.mrf.mxu2 }
 0x17f   :  { %v1946_v37 = vadd.f32 %v1834_v25, %v1722_v62 }
 0x180   :  { %v1938_v9 = vadd.f32 %v1826_v40, %v1714_v8  ;;  %v1947_v49 = vadd.f32 %v1835_v15, %v1723_v63  ;;  %v1297_v51 = vpop.f32.mrf.mxu0  ;;  %v1842_v40 = vld [vmem:[%s4751_s7 + $0xf0] sm:$0xff] }
 0x181   :  { %v1245_v11 = vpop.f32.mrf.mxu3  ;;  %v2058_v26 = vmax.f32 %v1946_v37, 0.0  ;;  %v1298_v56 = vadd.f32 %v1297_v51, %v3595_v35  ;;  %v1346_v28 = vpop.f32.mrf.mxu1  ;;  %v1841_v35 = vld [vmem:[%s4751_s7 + $0xe8] sm:$0xff] }
 0x182   :  { %v2050_v13 = vmax.f32 %v1938_v9, 0.0  ;;  %v1246_v48 = vadd.f32 %v1245_v11, %v3573_v24  ;;  %v2059_v22 = vmax.f32 %v1947_v49, 0.0  ;;  %v1347_v17 = vadd.f32 %v1346_v28, %v3843_v4 }
 0x183   :  { %2170 = vst [vmem:[#allocation2 + $0xb0] sm:$0xff] %v2058_v26  ;;  %v1617_v58 = vadd.f32 %v4097_v18, %v1298_v56  ;;  %1394 = vmatmul.bf16.gmra.mxu2 %v3813_v10  ;;  %1492 = vmatmul.bf16.gmra.mxu0 %v3813_v10  ;;  %v1840_v26 = vld [vmem:[%s4751_s7 + $0xe0] sm:$0xff] }
 0x184   :  { %2162 = vst [vmem:[#allocation2 + $0x70] sm:$0xff] %v2050_v13  ;;  %v1609_v54 = vadd.f32 %v4119_v41, %v1246_v48  ;;  %v1618_v0 = vadd.f32 %v4100_v27, %v1347_v17  ;;  %1541 = vmatmul.bf16.gmra.mxu1 %v3813_v10 }
 0x185   :  { %2171 = vst [vmem:[#allocation2 + $0xb8] sm:$0xff] %v2059_v22  ;;  %v1729_v4 = vmul.f32 0.17, %v1617_v58 }
 0x186   :  { %v1721_v24 = vmul.f32 0.17, %v1609_v54  ;;  %1443 = vmatmul.bf16.gmra.mxu3 %v3813_v10  ;;  %v1730_v8 = vmul.f32 0.17, %v1618_v0  ;;  %v4195_v25 = vpop.f32.mrf.mxu2 }
 0x187   :  { %v1953_v52 = vadd.f32 %v1841_v35, %v1729_v4 }
 0x188   :  { %v1945_v53 = vadd.f32 %v1833_v47, %v1721_v24  ;;  %v1954_v9 = vadd.f32 %v1842_v40, %v1730_v8  ;;  %v1299_v37 = vpop.f32.mrf.mxu0 }
 0x189   :  { %v1248_v62 = vpop.f32.mrf.mxu3  ;;  %v2065_v11 = vmax.f32 %v1953_v52, 0.0  ;;  %v1300_v13 = vadd.f32 %v1299_v37, %v3619_v46  ;;  %v1348_v10 = vpop.f32.mrf.mxu1  ;;  %v1848_v46 = vld [vmem:[%s4751_s7 + $0x120] sm:$0xff] }
 0x18a   :  { %v2057_v15 = vmax.f32 %v1945_v53, 0.0  ;;  %v1249_v63 = vadd.f32 %v1248_v62, %v3593_v34  ;;  %v2066_v49 = vmax.f32 %v1954_v9, 0.0  ;;  %v1349_v51 = vadd.f32 %v1348_v10, %v3865_v36  ;;  %v1849_v36 = vld [vmem:[%s4751_s7 + $0x128] sm:$0xff] }
 0x18b   :  { %2177 = vst [vmem:[#allocation2 + $0xe8] sm:$0xff] %v2065_v11  ;;  %v1624_v56 = vadd.f32 %v4097_v18, %v1300_v13  ;;  %v1856_v13 = vld [vmem:[%s4751_s7 + $0x160] sm:$0xff] }
 0x18c   :  { %2169 = vst [vmem:[#allocation2 + $0xa8] sm:$0xff] %v2057_v15  ;;  %v1616_v48 = vadd.f32 %v4119_v41, %v1249_v63  ;;  %v1625_v28 = vadd.f32 %v4100_v27, %v1349_v51  ;;  %v1847_v63 = vld [vmem:[%s4751_s7 + $0x118] sm:$0xff] }
 0x18d   :  { %2178 = vst [vmem:[#allocation2 + $0xf0] sm:$0xff] %v2066_v49  ;;  %v1736_v22 = vmul.f32 0.17, %v1624_v56 }
 0x18e   :  { %v1728_v34 = vmul.f32 0.17, %v1616_v48  ;;  %v1737_v17 = vmul.f32 0.17, %v1625_v28  ;;  %v4212_v47 = vpop.f32.mrf.mxu2 }
 0x18f   :  { %v1960_v58 = vadd.f32 %v1848_v46, %v1736_v22 }
 0x190   :  { %v1952_v54 = vadd.f32 %v1840_v26, %v1728_v34  ;;  %v1961_v0 = vadd.f32 %v1849_v36, %v1737_v17  ;;  %v1302_v40 = vpop.f32.mrf.mxu0 }
 0x191   :  { %v1250_v24 = vpop.f32.mrf.mxu3  ;;  %v2072_v53 = vmax.f32 %v1960_v58, 0.0  ;;  %v1303_v8 = vadd.f32 %v1302_v40, %v3650_v2  ;;  %v1351_v52 = vpop.f32.mrf.mxu1  ;;  %v1855_v2 = vld [vmem:[%s4751_s7 + $0x158] sm:$0xff] }
 0x192   :  { %v2064_v35 = vmax.f32 %v1952_v54, 0.0  ;;  %v1251_v4 = vadd.f32 %v1250_v24, %v3617_v45  ;;  %v2073_v62 = vmax.f32 %v1961_v0, 0.0  ;;  %v1352_v9 = vadd.f32 %v1351_v52, %v3899_v43  ;;  %v1854_v24 = vld [vmem:[%s4751_s7 + $0x150] sm:$0xff] }
 0x193   :  { %2184 = vst [vmem:[#allocation2 + $0x120] sm:$0xff] %v2072_v53  ;;  %v1631_v37 = vadd.f32 %v4097_v18, %v1303_v8  ;;  %1399 = vmatmul.bf16.gmra.mxu2 %v3869_v16  ;;  %1497 = vmatmul.bf16.gmra.mxu0 %v3869_v16 }
 0x194   :  { %2176 = vst [vmem:[#allocation2 + $0xe0] sm:$0xff] %v2064_v35  ;;  %v1623_v15 = vadd.f32 %v4119_v41, %v1251_v4  ;;  %v1632_v11 = vadd.f32 %v4100_v27, %v1352_v9  ;;  %1546 = vmatmul.bf16.gmra.mxu1 %v3869_v16 }
 0x195   :  { %2185 = vst [vmem:[#allocation2 + $0x128] sm:$0xff] %v2073_v62  ;;  %v1743_v43 = vmul.f32 0.17, %v1631_v37 }
 0x196   :  { %v1735_v45 = vmul.f32 0.17, %v1623_v15  ;;  %1448 = vmatmul.bf16.gmra.mxu3 %v3869_v16  ;;  %v1744_v49 = vmul.f32 0.17, %v1632_v11  ;;  %v4233_v48 = vpop.f32.mrf.mxu2 }
 0x197   :  { %v1967_v51 = vadd.f32 %v1855_v2, %v1743_v43 }
 0x198   :  { %v1959_v10 = vadd.f32 %v1847_v63, %v1735_v45  ;;  %v1968_v34 = vadd.f32 %v1856_v13, %v1744_v49  ;;  %v1304_v28 = vpop.f32.mrf.mxu0  ;;  %v1861_v49 = vld [vmem:[%s4751_s7 + $0x188] sm:$0xff] }
 0x199   :  { %v1253_v26 = vpop.f32.mrf.mxu3  ;;  %v2079_v22 = vmax.f32 %v1967_v51, 0.0  ;;  %v1305_v36 = vadd.f32 %v1304_v28, %v3683_v31  ;;  %v1353_v16 = vpop.f32.mrf.mxu1  ;;  %v1862_v31 = vld [vmem:[%s4751_s7 + $0x190] sm:$0xff] }
 0x19a   :  { %v2071_v56 = vmax.f32 %v1959_v10, 0.0  ;;  %v1254_v46 = vadd.f32 %v1253_v26, %v3642_v60  ;;  %v2080_v54 = vmax.f32 %v1968_v34, 0.0  ;;  %v1354_v58 = vadd.f32 %v1353_v16, %v3921_v14  ;;  %v1863_v14 = vld [vmem:[%s4751_s7 + $0x198] sm:$0xff] }
 0x19b   :  { %2191 = vst [vmem:[#allocation2 + $0x158] sm:$0xff] %v2079_v22  ;;  %v1638_v35 = vadd.f32 %v4097_v18, %v1305_v36 }
 0x19c   :  { %2183 = vst [vmem:[#allocation2 + $0x118] sm:$0xff] %v2071_v56  ;;  %v1630_v17 = vadd.f32 %v4119_v41, %v1254_v46  ;;  %v1639_v0 = vadd.f32 %v4100_v27, %v1354_v58  ;;  %v1870_v56 = vld [vmem:[%s4751_s7 + $0x1d0] sm:$0xff] }
 0x19d   :  { %2192 = vst [vmem:[#allocation2 + $0x160] sm:$0xff] %v2080_v54  ;;  %v1750_v4 = vmul.f32 0.17, %v1638_v35 }
 0x19e   :  { %v1742_v60 = vmul.f32 0.17, %v1630_v17  ;;  %v1751_v53 = vmul.f32 0.17, %v1639_v0  ;;  %v4250_v8 = vpop.f32.mrf.mxu2 }
 0x19f   :  { %v1974_v52 = vadd.f32 %v1862_v31, %v1750_v4  ;;  %v1868_v4 = vld [vmem:[%s4751_s7 + $0x1c0] sm:$0xff] }
 0x1a0   :  { %v1966_v40 = vadd.f32 %v1854_v24, %v1742_v60  ;;  %v1975_v9 = vadd.f32 %v1863_v14, %v1751_v53  ;;  %v1307_v37 = vpop.f32.mrf.mxu0 }
 0x1a1   :  { %v1255_v62 = vpop.f32.mrf.mxu3  ;;  %v2086_v45 = vmax.f32 %v1974_v52, 0.0  ;;  %v1308_v2 = vadd.f32 %v1307_v37, %v3527_v61  ;;  %v1356_v11 = vpop.f32.mrf.mxu1 }
 0x1a2   :  { %v2078_v15 = vmax.f32 %v1966_v40, 0.0  ;;  %v1256_v63 = vadd.f32 %v1255_v62, %v3681_v29  ;;  %v2087_v43 = vmax.f32 %v1975_v9, 0.0  ;;  %v1357_v10 = vadd.f32 %v1356_v11, %v3955_v20  ;;  %v1869_v29 = vld [vmem:[%s4751_s7 + $0x1c8] sm:$0xff] }
 0x1a3   :  { %2198 = vst [vmem:[#allocation2 + $0x190] sm:$0xff] %v2086_v45  ;;  %v1645_v51 = vadd.f32 %v4097_v18, %v1308_v2  ;;  %1404 = vmatmul.bf16.gmra.mxu2 %v3925_v38  ;;  %1502 = vmatmul.bf16.gmra.mxu0 %v3925_v38 }
 0x1a4   :  { %2190 = vst [vmem:[#allocation2 + $0x150] sm:$0xff] %v2078_v15  ;;  %v1637_v13 = vadd.f32 %v4119_v41, %v1256_v63  ;;  %v1646_v26 = vadd.f32 %v4100_v27, %v1357_v10  ;;  %1551 = vmatmul.bf16.gmra.mxu1 %v3925_v38 }
 0x1a5   :  { %2199 = vst [vmem:[#allocation2 + $0x198] sm:$0xff] %v2087_v43  ;;  %v1757_v20 = vmul.f32 0.17, %v1645_v51 }
 0x1a6   :  { %v1749_v61 = vmul.f32 0.17, %v1637_v13  ;;  %1453 = vmatmul.bf16.gmra.mxu3 %v3925_v38  ;;  %v1758_v46 = vmul.f32 0.17, %v1646_v26  ;;  %v4271_v28 = vpop.f32.mrf.mxu2 }
 0x1a7   :  { %v1981_v22 = vadd.f32 %v1869_v29, %v1757_v20  ;;  %v1875_v29 = vld [vmem:[%s4751_s7 + $0x1f8] sm:$0xff] }
 0x1a8   :  { %v1973_v34 = vadd.f32 %v1861_v49, %v1749_v61  ;;  %v1982_v54 = vadd.f32 %v1870_v56, %v1758_v46  ;;  %v1309_v58 = vpop.f32.mrf.mxu0  ;;  %v1884_v56 = vld [vmem:[%s4751_s7 + $0x240] sm:$0xff] }
 0x1a9   :  { %v1258_v36 = vpop.f32.mrf.mxu3  ;;  %v2093_v24 = vmax.f32 %v1981_v22, 0.0  ;;  %v1310_v35 = vadd.f32 %v1309_v58, %v3547_v7  ;;  %v1358_v38 = vpop.f32.mrf.mxu1  ;;  %v1876_v7 = vld [vmem:[%s4751_s7 + $0x200] sm:$0xff] }
 0x1aa   :  { %v2085_v16 = vmax.f32 %v1973_v34, 0.0  ;;  %v1259_v17 = vadd.f32 %v1258_v36, %v3525_v59  ;;  %v2094_v60 = vmax.f32 %v1982_v54, 0.0  ;;  %v1359_v0 = vadd.f32 %v1358_v38, %v3977_v55  ;;  %v1877_v55 = vld [vmem:[%s4751_s7 + $0x208] sm:$0xff] }
 0x1ab   :  { %2205 = vst [vmem:[#allocation2 + $0x1c8] sm:$0xff] %v2093_v24  ;;  %v1652_v14 = vadd.f32 %v4097_v18, %v1310_v35 }
 0x1ac   :  { %2197 = vst [vmem:[#allocation2 + $0x188] sm:$0xff] %v2085_v16  ;;  %v1644_v31 = vadd.f32 %v4119_v41, %v1259_v17  ;;  %v1653_v40 = vadd.f32 %v4100_v27, %v1359_v0 }
 0x1ad   :  { %2206 = vst [vmem:[#allocation2 + $0x1d0] sm:$0xff] %v2094_v60  ;;  %v1764_v53 = vmul.f32 0.17, %v1652_v14 }
 0x1ae   :  { %v1756_v59 = vmul.f32 0.17, %v1644_v31  ;;  %v1765_v62 = vmul.f32 0.17, %v1653_v40  ;;  %v4288_v15 = vpop.f32.mrf.mxu2 }
 0x1af   :  { %v1988_v9 = vadd.f32 %v1876_v7, %v1764_v53 }
 0x1b0   :  { %v1980_v52 = vadd.f32 %v1868_v4, %v1756_v59  ;;  %v1989_v45 = vadd.f32 %v1877_v55, %v1765_v62  ;;  %v1312_v11 = vpop.f32.mrf.mxu0  ;;  %v1882_v4 = vld [vmem:[%s4751_s7 + $0x230] sm:$0xff] }
 0x1b1   :  { %v1260_v63 = vpop.f32.mrf.mxu3  ;;  %v2100_v43 = vmax.f32 %v1988_v9, 0.0  ;;  %v1313_v13 = vadd.f32 %v1312_v11, %v3571_v23  ;;  %v1361_v10 = vpop.f32.mrf.mxu1  ;;  %v1883_v23 = vld [vmem:[%s4751_s7 + $0x238] sm:$0xff] }
 0x1b2   :  { %v2092_v37 = vmax.f32 %v1980_v52, 0.0  ;;  %v1261_v2 = vadd.f32 %v1260_v63, %v3545_v6  ;;  %v2101_v49 = vmax.f32 %v1989_v45, 0.0  ;;  %v1362_v61 = vadd.f32 %v1361_v10, %v4011_v12 }
 0x1b3   :  { %2212 = vst [vmem:[#allocation2 + $0x200] sm:$0xff] %v2100_v43  ;;  %v1659_v26 = vadd.f32 %v4097_v18, %v1313_v13  ;;  %1409 = vmatmul.bf16.gmra.mxu2 %v3981_v39  ;;  %1507 = vmatmul.bf16.gmra.mxu0 %v3981_v39 }
 0x1b4   :  { %2204 = vst [vmem:[#allocation2 + $0x1c0] sm:$0xff] %v2092_v37  ;;  %v1651_v51 = vadd.f32 %v4119_v41, %v1261_v2  ;;  %v1660_v20 = vadd.f32 %v4100_v27, %v1362_v61  ;;  %1556 = vmatmul.bf16.gmra.mxu1 %v3981_v39 }
 0x1b5   :  { %2213 = vst [vmem:[#allocation2 + $0x208] sm:$0xff] %v2101_v49  ;;  %v1771_v12 = vmul.f32 0.17, %v1659_v26  ;;  %v1898_v26 = vld [vmem:[%s4751_s7 + $0x2b0] sm:$0xff] }
 0x1b6   :  { %v1763_v6 = vmul.f32 0.17, %v1651_v51  ;;  %1458 = vmatmul.bf16.gmra.mxu3 %v3981_v39  ;;  %v1772_v46 = vmul.f32 0.17, %v1660_v20  ;;  %v4309_v22 = vpop.f32.mrf.mxu2  ;;  %v1889_v51 = vld [vmem:[%s4751_s7 + $0x268] sm:$0xff] }
 0x1b7   :  { %v1995_v36 = vadd.f32 %v1883_v23, %v1771_v12 }
 0x1b8   :  { %v1987_v34 = vadd.f32 %v1875_v29, %v1763_v6  ;;  %v1996_v17 = vadd.f32 %v1884_v56, %v1772_v46  ;;  %v1314_v24 = vpop.f32.mrf.mxu0 }
 0x1b9   :  { %v1263_v16 = vpop.f32.mrf.mxu3  ;;  %v2107_v35 = vmax.f32 %v1995_v36, 0.0  ;;  %v1315_v38 = vadd.f32 %v1314_v24, %v3591_v33  ;;  %v1363_v39 = vpop.f32.mrf.mxu1  ;;  %v1890_v33 = vld [vmem:[%s4751_s7 + $0x270] sm:$0xff] }
 0x1ba   :  { %v2099_v54 = vmax.f32 %v1987_v34, 0.0  ;;  %v1264_v58 = vadd.f32 %v1263_v16, %v3569_v19  ;;  %v2108_v60 = vmax.f32 %v1996_v17, 0.0  ;;  %v1364_v0 = vadd.f32 %v1363_v39, %v4033_v3  ;;  %v1891_v3 = vld [vmem:[%s4751_s7 + $0x278] sm:$0xff]  ;;  %v1896_v39 = vld [vmem:[%s4751_s7 + $0x2a0] sm:$0xff] }
 0x1bb   :  { %2219 = vst [vmem:[#allocation2 + $0x238] sm:$0xff] %v2107_v35  ;;  %v1666_v14 = vadd.f32 %v4097_v18, %v1315_v38  ;;  %v4816_v35 = vld [vmem:[#allocation51_spill] sm:$0xff] }
 0x1bc   :  { %2211 = vst [vmem:[#allocation2 + $0x1f8] sm:$0xff] %v2099_v54  ;;  %v1658_v31 = vadd.f32 %v4119_v41, %v1264_v58  ;;  %v1667_v59 = vadd.f32 %v4100_v27, %v1364_v0 }
 0x1bd   :  { %2220 = vst [vmem:[#allocation2 + $0x240] sm:$0xff] %v2108_v60  ;;  %v1778_v7 = vmul.f32 0.17, %v1666_v14 }
 0x1be   :  { %v1770_v19 = vmul.f32 0.17, %v1658_v31  ;;  %v1779_v53 = vmul.f32 0.17, %v1667_v59  ;;  %v4326_v55 = vpop.f32.mrf.mxu2 }
 0x1bf   :  { %v2002_v52 = vadd.f32 %v1890_v33, %v1778_v7 }
 0x1c0   :  { %v1994_v40 = vadd.f32 %v1882_v4, %v1770_v19  ;;  %v2003_v63 = vadd.f32 %v1891_v3, %v1779_v53  ;;  %v1317_v45 = vpop.f32.mrf.mxu0  ;;  %v1905_v4 = vld [vmem:[%s4751_s7 + $0x2e8] sm:$0xff]  ;;  %v4817_v53 = vld [vmem:[#allocation5_spill] sm:$0xff] }
 0x1c1   :  { %v1265_v62 = vpop.f32.mrf.mxu3  ;;  %v2114_v2 = vmax.f32 %v2002_v52, 0.0  ;;  %v1318_v11 = vadd.f32 %v1317_v45, %v3615_v44  ;;  %v1366_v43 = vpop.f32.mrf.mxu1  ;;  %v1897_v44 = vld [vmem:[%s4751_s7 + $0x2a8] sm:$0xff] }
 0x1c2   :  { %v2106_v9 = vmax.f32 %v1994_v40, 0.0  ;;  %v1266_v37 = vadd.f32 %v1265_v62, %v3589_v32  ;;  %v2115_v13 = vmax.f32 %v2003_v63, 0.0  ;;  %v1367_v49 = vadd.f32 %v1366_v43, %v4055_v21  ;;  %v4818_v63 = vld [vmem:[#allocation7_spill] sm:$0xff]  ;;  %v4819_v43 = vld [vmem:[#allocation56_spill] sm:$0xff] }
 0x1c3   :  { %2226 = vst [vmem:[#allocation2 + $0x270] sm:$0xff] %v2114_v2  ;;  %v1673_v61 = vadd.f32 %v4097_v18, %v1318_v11  ;;  %1414 = vmatmul.bf16.gmra.mxu2 %v4037_v30  ;;  %1512 = vmatmul.bf16.gmra.mxu0 %v4037_v30 }
 0x1c4   :  { %2218 = vst [vmem:[#allocation2 + $0x230] sm:$0xff] %v2106_v9  ;;  %v1665_v10 = vadd.f32 %v4119_v41, %v1266_v37  ;;  %v1674_v29 = vadd.f32 %v4100_v27, %v1367_v49  ;;  %1561 = vmatmul.bf16.gmra.mxu1 %v4037_v30 }
 0x1c5   :  { %2227 = vst [vmem:[#allocation2 + $0x278] sm:$0xff] %v2115_v13  ;;  %v1785_v21 = vmul.f32 0.17, %v1673_v61 }
 0x1c6   :  { %v1777_v32 = vmul.f32 0.17, %v1665_v10  ;;  %1463 = vmatmul.bf16.gmra.mxu3 %v4037_v30  ;;  %v1786_v23 = vmul.f32 0.17, %v1674_v29  ;;  %v4347_v20 = vpop.f32.mrf.mxu2  ;;  %v1903_v10 = vld [vmem:[%s4751_s7 + $0x2d8] sm:$0xff] }
 0x1c7   :  { %v2009_v12 = vadd.f32 %v1897_v44, %v1785_v21  ;;  %v1912_v21 = vld [vmem:[%s4751_s7 + $0x320] sm:$0xff] }
 0x1c8   :  { %v2001_v6 = vadd.f32 %v1889_v51, %v1777_v32  ;;  %v2010_v46 = vadd.f32 %v1898_v26, %v1786_v23  ;;  %v1319_v16 = vpop.f32.mrf.mxu0  ;;  %v4820_v51 = vld [vmem:[#allocation53_spill] sm:$0xff]  ;;  %v1911_v32 = vld [vmem:[%s4751_s7 + $0x318] sm:$0xff] }
 0x1c9   :  { %v1268_v56 = vpop.f32.mrf.mxu3  ;;  %v2121_v54 = vmax.f32 %v2009_v12, 0.0  ;;  %v1320_v17 = vadd.f32 %v1319_v16, %v3635_v57  ;;  %v1368_v30 = vpop.f32.mrf.mxu1  ;;  %v1904_v57 = vld [vmem:[%s4751_s7 + $0x2e0] sm:$0xff] }
 0x1ca   :  { %v2113_v34 = vmax.f32 %v2001_v6, 0.0  ;;  %v1269_v36 = vadd.f32 %v1268_v56, %v3613_v42  ;;  %v2122_v58 = vmax.f32 %v2010_v46, 0.0  ;;  %v1369_v38 = vadd.f32 %v1368_v30, %v4816_v35  ;;  %v4822_v30 = vld [vmem:[#allocation9_spill] sm:$0xff] }
 0x1cb   :  { %2233 = vst [vmem:[#allocation2 + $0x2a8] sm:$0xff] %v2121_v54  ;;  %v1680_v60 = vadd.f32 %v4097_v18, %v1320_v17 }
 0x1cc   :  { %2225 = vst [vmem:[#allocation2 + $0x268] sm:$0xff] %v2113_v34  ;;  %v1672_v24 = vadd.f32 %v4119_v41, %v1269_v36  ;;  %v1681_v31 = vadd.f32 %v4100_v27, %v1369_v38  ;;  %v4821_v36 = vld [vmem:[#allocation6_spill] sm:$0xff] }
 0x1cd   :  { %2234 = vst [vmem:[#allocation2 + $0x2b0] sm:$0xff] %v2122_v58  ;;  %v1792_v0 = vmul.f32 0.17, %v1680_v60 }
 0x1ce   :  { %v1784_v42 = vmul.f32 0.17, %v1672_v24  ;;  %v1793_v19 = vmul.f32 0.17, %v1681_v31  ;;  %v4364_v33 = vpop.f32.mrf.mxu2 }
 0x1cf   :  { %v2016_v59 = vadd.f32 %v1904_v57, %v1792_v0  ;;  %v1918_v0 = vld [vmem:[%s4751_s7 + $0x350] sm:$0xff] }
 0x1d0   :  { %v2008_v14 = vadd.f32 %v1896_v39, %v1784_v42  ;;  %v2017_v40 = vadd.f32 %v1905_v4, %v1793_v19  ;;  %v1322_v62 = vpop.f32.mrf.mxu0  ;;  %v4823_v39 = vld [vmem:[#allocation61_spill] sm:$0xff]  ;;  %v1910_v42 = vld [vmem:[%s4751_s7 + $0x310] sm:$0xff]  ;;  %v1919_v19 = vld [vmem:[%s4751_s7 + $0x358] sm:$0xff] }
 0x1d1   :  { %v1270_v7 = vpop.f32.mrf.mxu3  ;;  %v2128_v9 = vmax.f32 %v2016_v59, 0.0  ;;  %v1323_v37 = vadd.f32 %v1322_v62, %v4818_v63  ;;  %v1371_v45 = vpop.f32.mrf.mxu1  ;;  %v4825_v63 = vld [vmem:[#allocation8_spill] sm:$0xff] }
 0x1d2   :  { %v2120_v3 = vmax.f32 %v2008_v14, 0.0  ;;  %v1271_v52 = vadd.f32 %v1270_v7, %v4817_v53  ;;  %v2129_v2 = vmax.f32 %v2017_v40, 0.0  ;;  %v1372_v13 = vadd.f32 %v1371_v45, %v4819_v43 }
 0x1d3   :  { %2240 = vst [vmem:[#allocation2 + $0x2e0] sm:$0xff] %v2128_v9  ;;  %v1687_v49 = vadd.f32 %v4097_v18, %v1323_v37  ;;  %1419 = vmatmul.bf16.gmra.mxu2 %v4820_v51  ;;  %1517 = vmatmul.bf16.gmra.mxu0 %v4820_v51 }
 0x1d4   :  { %2232 = vst [vmem:[#allocation2 + $0x2a0] sm:$0xff] %v2120_v3  ;;  %v1679_v11 = vadd.f32 %v4119_v41, %v1271_v52  ;;  %v1688_v44 = vadd.f32 %v4100_v27, %v1372_v13  ;;  %1566 = vmatmul.bf16.gmra.mxu1 %v4820_v51 }
 0x1d5   :  { %2241 = vst [vmem:[#allocation2 + $0x2e8] sm:$0xff] %v2129_v2  ;;  %v1799_v29 = vmul.f32 0.17, %v1687_v49 }
 0x1d6   :  { %v1791_v61 = vmul.f32 0.17, %v1679_v11  ;;  %1468 = vmatmul.bf16.gmra.mxu3 %v4820_v51  ;;  %v1800_v6 = vmul.f32 0.17, %v1688_v44  ;;  %v4385_v23 = vpop.f32.mrf.mxu2  ;;  %v4826_v11 = vld [vmem:[#allocation11_spill] sm:$0xff] }
 0x1d7   :  { %v2023_v12 = vadd.f32 %v1911_v32, %v1799_v29  ;;  %v4827_v51 = vld [vmem:[#allocation63_spill] sm:$0xff]  ;;  %v1917_v32 = vld [vmem:[%s4751_s7 + $0x348] sm:$0xff] }
 0x1d8   :  { %v2015_v26 = vadd.f32 %v1903_v10, %v1791_v61  ;;  %v2024_v46 = vadd.f32 %v1912_v21, %v1800_v6  ;;  %v1324_v54 = vpop.f32.mrf.mxu0  ;;  %v1817_v21 = vld [vmem:[%s4751_s7 + $0x28] sm:$0xff] }
 0x1d9   :  { %v1273_v56 = vpop.f32.mrf.mxu3  ;;  %v2135_v17 = vmax.f32 %v2023_v12, 0.0  ;;  %v1325_v58 = vadd.f32 %v1324_v54, %v4822_v30  ;;  %v1373_v24 = vpop.f32.mrf.mxu1  ;;  %v4828_v54 = vld [vmem:[#allocation12_spill] sm:$0xff] }
 0x1da   :  { %v2127_v34 = vmax.f32 %v2015_v26, 0.0  ;;  %v1274_v16 = vadd.f32 %v1273_v56, %v4821_v36  ;;  %v2136_v35 = vmax.f32 %v2024_v46, 0.0  ;;  %v1374_v60 = vadd.f32 %v1373_v24, %v4823_v39 }
 0x1db   :  { %2247 = vst [vmem:[#allocation2 + $0x318] sm:$0xff] %v2135_v17  ;;  %v1694_v57 = vadd.f32 %v4097_v18, %v1325_v58  ;;  %v4824_v18 = vld [vmem:[#allocation60_spill] sm:$0xff] }
 0x1dc   :  { %2239 = vst [vmem:[#allocation2 + $0x2d8] sm:$0xff] %v2127_v34  ;;  %v1686_v38 = vadd.f32 %v4119_v41, %v1274_v16  ;;  %v1695_v4 = vadd.f32 %v4100_v27, %v1374_v60  ;;  %v4405_v52 = vperm.slane %v4824_v18, 5  ;;  %v4409_v27 = vperm.slane %v4824_v18, 6 }
 0x1dd   :  { %2248 = vst [vmem:[#allocation2 + $0x320] sm:$0xff] %v2136_v35  ;;  %v1806_v14 = vmul.f32 0.17, %v1694_v57  ;;  %v4426_v12 = vperm.slane %v4824_v18, 3  ;;  %v4429_v36 = vperm.slane %v4824_v18, 4  ;;  %v4829_v35 = vld [vmem:[#allocation10_spill] sm:$0xff] }
 0x1de   :  { %v1798_v31 = vmul.f32 0.17, %v1686_v38  ;;  %v1807_v7 = vmul.f32 0.17, %v1695_v4  ;;  %v4402_v3 = vpop.f32.mrf.mxu2  ;;  %v4830_v57 = vld [vmem:[#allocation14_spill] sm:$0xff] }
 0x1df   :  { %v2030_v40 = vadd.f32 %v1918_v0, %v1806_v14  ;;  %v1815_v14 = vld [vmem:[%s4751_s7 + $0x18] sm:$0xff] }
 0x1e0   :  { %v2022_v59 = vadd.f32 %v1910_v42, %v1798_v31  ;;  %v2031_v9 = vadd.f32 %v1919_v19, %v1807_v7  ;;  %v1483_v45 = vpop.f32.mrf.mxu0 }
 0x1e1   :  { %v1275_v53 = vpop.f32.mrf.mxu3  ;;  %v2142_v2 = vmax.f32 %v2030_v40, 0.0  ;;  %v1484_v43 = vadd.f32 %v1483_v45, %v4826_v11  ;;  %v1532_v13 = vpop.f32.mrf.mxu1  ;;  %v1816_v40 = vld [vmem:[%s4751_s7 + $0x20] sm:$0xff] }
 0x1e2   :  { %v2134_v62 = vmax.f32 %v2022_v59, 0.0  ;;  %v1276_v37 = vadd.f32 %v1275_v53, %v4825_v63  ;;  %v2143_v10 = vmax.f32 %v2031_v9, 0.0  ;;  %v1533_v61 = vadd.f32 %v1532_v13, %v4827_v51 }
 0x1e3   :  { %2254 = vst [vmem:[#allocation2 + $0x350] sm:$0xff] %v2142_v2  ;;  %v1593_v44 = vadd.f32 %v4405_v52, %v1484_v43 }
 0x1e4   :  { %2246 = vst [vmem:[#allocation2 + $0x310] sm:$0xff] %v2134_v62  ;;  %v1693_v49 = vadd.f32 %v4119_v41, %v1276_v37  ;;  %v1594_v26 = vadd.f32 %v4409_v27, %v1533_v61  ;;  %v1818_v41 = vld [vmem:[%s4751_s7 + $0x30] sm:$0xff]  ;;  %v1824_v62 = vld [vmem:[%s4751_s7 + $0x60] sm:$0xff] }
 0x1e5   :  { %2255 = vst [vmem:[#allocation2 + $0x358] sm:$0xff] %v2143_v10  ;;  %v1705_v6 = vmul.f32 0.17, %v1593_v44  ;;  %v4831_v10 = vld [vmem:[#allocation15_spill] sm:$0xff]  ;;  %v4832_v44 = vld [vmem:[#allocation13_spill] sm:$0xff] }
 0x1e6   :  { %v1805_v29 = vmul.f32 0.17, %v1693_v49  ;;  %v1706_v34 = vmul.f32 0.17, %v1594_v26  ;;  %v1385_v46 = vpop.f32.mrf.mxu2 }
 0x1e7   :  { %v1929_v16 = vadd.f32 %v1817_v21, %v1705_v6  ;;  %v1386_v17 = vadd.f32 %v1385_v46, %v4828_v54 }
 0x1e8   :  { %v2029_v56 = vadd.f32 %v1917_v32, %v1805_v29  ;;  %v1930_v24 = vadd.f32 %v1818_v41, %v1706_v34  ;;  %v1485_v39 = vpop.f32.mrf.mxu0  ;;  %v4833_v41 = vld [vmem:[#allocation17_spill] sm:$0xff] }
 0x1e9   :  { %v1434_v30 = vpop.f32.mrf.mxu3  ;;  %v2041_v60 = vmax.f32 %v1929_v16, 0.0  ;;  %v1591_v42 = vadd.f32 %v4426_v12, %v1386_v17  ;;  %v1486_v31 = vadd.f32 %v1485_v39, %v4830_v57  ;;  %v1534_v0 = vpop.f32.mrf.mxu1  ;;  %v1822_v16 = vld [vmem:[%s4751_s7 + $0x50] sm:$0xff] }
 0x1ea   :  { %v2141_v58 = vmax.f32 %v2029_v56, 0.0  ;;  %v1435_v38 = vadd.f32 %v1434_v30, %v4829_v35  ;;  %v2042_v4 = vmax.f32 %v1930_v24, 0.0  ;;  %v1535_v59 = vadd.f32 %v1534_v0, %v4136_v5  ;;  %v1825_v5 = vld [vmem:[%s4751_s7 + $0x68] sm:$0xff] }
 0x1eb   :  { %2153 = vst [vmem:[#allocation2 + $0x28] sm:$0xff] %v2041_v60  ;;  %v1703_v7 = vmul.f32 0.17, %v1591_v42  ;;  %v1600_v53 = vadd.f32 %v4405_v52, %v1486_v31 }
 0x1ec   :  { %2253 = vst [vmem:[#allocation2 + $0x348] sm:$0xff] %v2141_v58  ;;  %v1592_v19 = vadd.f32 %v4429_v36, %v1435_v38  ;;  %v1601_v9 = vadd.f32 %v4409_v27, %v1535_v59  ;;  %v1823_v58 = vld [vmem:[%s4751_s7 + $0x58] sm:$0xff] }
 0x1ed   :  { %2154 = vst [vmem:[#allocation2 + $0x30] sm:$0xff] %v2042_v4  ;;  %v1927_v63 = vadd.f32 %v1815_v14, %v1703_v7  ;;  %v1712_v37 = vmul.f32 0.17, %v1600_v53  ;;  %v1831_v38 = vld [vmem:[%s4751_s7 + $0x98] sm:$0xff] }
 0x1ee   :  { %v1704_v18 = vmul.f32 0.17, %v1592_v19  ;;  %v1713_v2 = vmul.f32 0.17, %v1601_v9  ;;  %v1387_v11 = vpop.f32.mrf.mxu2  ;;  %v4834_v19 = vld [vmem:[#allocation18_spill] sm:$0xff] }
 0x1ef   :  { %v2039_v43 = vmax.f32 %v1927_v63, 0.0  ;;  %v1936_v13 = vadd.f32 %v1824_v62, %v1712_v37  ;;  %v1388_v49 = vadd.f32 %v1387_v11, %v4831_v10 }
 0x1f0   :  { %v1928_v45 = vadd.f32 %v1816_v40, %v1704_v18  ;;  %v1937_v32 = vadd.f32 %v1825_v5, %v1713_v2  ;;  %v1488_v21 = vpop.f32.mrf.mxu0  ;;  %v4835_v18 = vld [vmem:[#allocation16_spill] sm:$0xff] }
 0x1f1   :  { %v1436_v51 = vpop.f32.mrf.mxu3  ;;  %2151 = vst [vmem:[#allocation2 + $0x18] sm:$0xff] %v2039_v43  ;;  %v2048_v26 = vmax.f32 %v1936_v13, 0.0  ;;  %v1598_v6 = vadd.f32 %v4426_v12, %v1388_v49  ;;  %v1489_v56 = vadd.f32 %v1488_v21, %v4833_v41  ;;  %v1537_v34 = vpop.f32.mrf.mxu1  ;;  %v4836_v5 = vld [vmem:[#allocation20_spill] sm:$0xff]  ;;  %v1829_v43 = vld [vmem:[%s4751_s7 + $0x88] sm:$0xff] }
 0x1f2   :  { %v2040_v61 = vmax.f32 %v1928_v45, 0.0  ;;  %v1437_v29 = vadd.f32 %v1436_v51, %v4832_v44  ;;  %v2049_v46 = vmax.f32 %v1937_v32, 0.0  ;;  %v1538_v17 = vadd.f32 %v1537_v34, %v4157_v50  ;;  %v1832_v50 = vld [vmem:[%s4751_s7 + $0xa0] sm:$0xff]  ;;  %v1830_v51 = vld [vmem:[%s4751_s7 + $0x90] sm:$0xff] }
 0x1f3   :  { %2160 = vst [vmem:[#allocation2 + $0x60] sm:$0xff] %v2048_v26  ;;  %v1710_v30 = vmul.f32 0.17, %v1598_v6  ;;  %v1607_v24 = vadd.f32 %v4405_v52, %v1489_v56  ;;  %v1838_v44 = vld [vmem:[%s4751_s7 + $0xd0] sm:$0xff] }
 0x1f4   :  { %2152 = vst [vmem:[#allocation2 + $0x20] sm:$0xff] %v2040_v61  ;;  %v1599_v54 = vadd.f32 %v4429_v36, %v1437_v29  ;;  %v1608_v39 = vadd.f32 %v4409_v27, %v1538_v17 }
 0x1f5   :  { %2161 = vst [vmem:[#allocation2 + $0x68] sm:$0xff] %v2049_v46  ;;  %v1934_v60 = vadd.f32 %v1822_v16, %v1710_v30  ;;  %v1719_v42 = vmul.f32 0.17, %v1607_v24  ;;  %v4837_v16 = vld [vmem:[#allocation21_spill] sm:$0xff]  ;;  %v4838_v24 = vld [vmem:[#allocation19_spill] sm:$0xff] }
 0x1f6   :  { %v1711_v35 = vmul.f32 0.17, %v1599_v54  ;;  %v1720_v31 = vmul.f32 0.17, %v1608_v39  ;;  %v1390_v0 = vpop.f32.mrf.mxu2 }
 0x1f7   :  { %v2046_v4 = vmax.f32 %v1934_v60, 0.0  ;;  %v1943_v14 = vadd.f32 %v1831_v38, %v1719_v42  ;;  %v1391_v59 = vadd.f32 %v1390_v0, %v4834_v19  ;;  %v4839_v42 = vld [vmem:[#allocation23_spill] sm:$0xff]  ;;  %v1836_v0 = vld [vmem:[%s4751_s7 + $0xc0] sm:$0xff] }
 0x1f8   :  { %v1935_v57 = vadd.f32 %v1823_v58, %v1711_v35  ;;  %v1944_v53 = vadd.f32 %v1832_v50, %v1720_v31  ;;  %v1490_v9 = vpop.f32.mrf.mxu0 }
 0x1f9   :  { %v1439_v7 = vpop.f32.mrf.mxu3  ;;  %2158 = vst [vmem:[#allocation2 + $0x50] sm:$0xff] %v2046_v4  ;;  %v2055_v63 = vmax.f32 %v1943_v14, 0.0  ;;  %v1605_v37 = vadd.f32 %v4426_v12, %v1391_v59  ;;  %v1491_v45 = vadd.f32 %v1490_v9, %v4836_v5  ;;  %v1539_v2 = vpop.f32.mrf.mxu1  ;;  %v1837_v59 = vld [vmem:[%s4751_s7 + $0xc8] sm:$0xff] }
 0x1fa   :  { %v2047_v40 = vmax.f32 %v1935_v57, 0.0  ;;  %v1440_v62 = vadd.f32 %v1439_v7, %v4835_v18  ;;  %v2056_v11 = vmax.f32 %v1944_v53, 0.0  ;;  %v1540_v10 = vadd.f32 %v1539_v2, %v4174_v1  ;;  %v1839_v1 = vld [vmem:[%s4751_s7 + $0xd8] sm:$0xff]  ;;  %v1845_v53 = vld [vmem:[%s4751_s7 + $0x108] sm:$0xff] }
 0x1fb   :  { %2167 = vst [vmem:[#allocation2 + $0x98] sm:$0xff] %v2055_v63  ;;  %v1717_v49 = vmul.f32 0.17, %v1605_v37  ;;  %v1614_v61 = vadd.f32 %v4405_v52, %v1491_v45 }
 0x1fc   :  { %2159 = vst [vmem:[#allocation2 + $0x58] sm:$0xff] %v2047_v40  ;;  %v1606_v13 = vadd.f32 %v4429_v36, %v1440_v62  ;;  %v1615_v29 = vadd.f32 %v4409_v27, %v1540_v10 }
 0x1fd   :  { %2168 = vst [vmem:[#allocation2 + $0xa0] sm:$0xff] %v2056_v11  ;;  %v1941_v21 = vadd.f32 %v1829_v43, %v1717_v49  ;;  %v1726_v26 = vmul.f32 0.17, %v1614_v61  ;;  %v4840_v11 = vld [vmem:[#allocation24_spill] sm:$0xff] }
 0x1fe   :  { %v1718_v32 = vmul.f32 0.17, %v1606_v13  ;;  %v1727_v41 = vmul.f32 0.17, %v1615_v29  ;;  %v1392_v56 = vpop.f32.mrf.mxu2 }
 0x1ff   :  { %v2053_v34 = vmax.f32 %v1941_v21, 0.0  ;;  %v1950_v46 = vadd.f32 %v1838_v44, %v1726_v26  ;;  %v1393_v54 = vadd.f32 %v1392_v56, %v4837_v16  ;;  %v4842_v21 = vld [vmem:[#allocation26_spill] sm:$0xff]  ;;  %v1844_v16 = vld [vmem:[%s4751_s7 + $0x100] sm:$0xff] }
 0x200   :  { %v1942_v6 = vadd.f32 %v1830_v51, %v1718_v32  ;;  %v1951_v58 = vadd.f32 %v1839_v1, %v1727_v41  ;;  %v1493_v38 = vpop.f32.mrf.mxu0  ;;  %v4841_v51 = vld [vmem:[#allocation22_spill] sm:$0xff]  ;;  %v1843_v41 = vld [vmem:[%s4751_s7 + $0xf8] sm:$0xff] }
 0x201   :  { %v1441_v17 = vpop.f32.mrf.mxu3  ;;  %2165 = vst [vmem:[#allocation2 + $0x88] sm:$0xff] %v2053_v34  ;;  %v2062_v39 = vmax.f32 %v1950_v46, 0.0  ;;  %v1612_v60 = vadd.f32 %v4426_v12, %v1393_v54  ;;  %v1494_v50 = vadd.f32 %v1493_v38, %v4839_v42  ;;  %v1542_v57 = vpop.f32.mrf.mxu1 }
 0x202   :  { %v2054_v30 = vmax.f32 %v1942_v6, 0.0  ;;  %v1442_v35 = vadd.f32 %v1441_v17, %v4838_v24  ;;  %v2063_v31 = vmax.f32 %v1951_v58, 0.0  ;;  %v1543_v14 = vadd.f32 %v1542_v57, %v4195_v25  ;;  %v1846_v25 = vld [vmem:[%s4751_s7 + $0x110] sm:$0xff] }
 0x203   :  { %2174 = vst [vmem:[#allocation2 + $0xd0] sm:$0xff] %v2062_v39  ;;  %v1724_v19 = vmul.f32 0.17, %v1612_v60  ;;  %v1621_v7 = vadd.f32 %v4405_v52, %v1494_v50  ;;  %v4843_v57 = vld [vmem:[#allocation27_spill] sm:$0xff] }
 0x204   :  { %2166 = vst [vmem:[#allocation2 + $0x90] sm:$0xff] %v2054_v30  ;;  %v1613_v4 = vadd.f32 %v4429_v36, %v1442_v35  ;;  %v1622_v18 = vadd.f32 %v4409_v27, %v1543_v14  ;;  %v1852_v30 = vld [vmem:[%s4751_s7 + $0x140] sm:$0xff] }
 0x205   :  { %2175 = vst [vmem:[#allocation2 + $0xd8] sm:$0xff] %v2063_v31  ;;  %v1948_v62 = vadd.f32 %v1836_v0, %v1724_v19  ;;  %v1733_v9 = vmul.f32 0.17, %v1621_v7  ;;  %v4844_v19 = vld [vmem:[#allocation25_spill] sm:$0xff] }
 0x206   :  { %v1725_v40 = vmul.f32 0.17, %v1613_v4  ;;  %v1734_v37 = vmul.f32 0.17, %v1622_v18  ;;  %v1395_v5 = vpop.f32.mrf.mxu2  ;;  %v4845_v18 = vld [vmem:[#allocation29_spill] sm:$0xff] }
 0x207   :  { %v2060_v45 = vmax.f32 %v1948_v62, 0.0  ;;  %v1957_v2 = vadd.f32 %v1845_v53, %v1733_v9  ;;  %v1396_v43 = vadd.f32 %v1395_v5, %v4840_v11 }
 0x208   :  { %v1949_v63 = vadd.f32 %v1837_v59, %v1725_v40  ;;  %v1958_v49 = vadd.f32 %v1846_v25, %v1734_v37  ;;  %v1495_v32 = vpop.f32.mrf.mxu0 }
 0x209   :  { %v1444_v13 = vpop.f32.mrf.mxu3  ;;  %2172 = vst [vmem:[#allocation2 + $0xc0] sm:$0xff] %v2060_v45  ;;  %v2069_v44 = vmax.f32 %v1957_v2, 0.0  ;;  %v1619_v29 = vadd.f32 %v4426_v12, %v1396_v43  ;;  %v1496_v26 = vadd.f32 %v1495_v32, %v4842_v21  ;;  %v1544_v1 = vpop.f32.mrf.mxu1  ;;  %v1851_v2 = vld [vmem:[%s4751_s7 + $0x138] sm:$0xff] }
 0x20a   :  { %v2061_v10 = vmax.f32 %v1949_v63, 0.0  ;;  %v1445_v61 = vadd.f32 %v1444_v13, %v4841_v51  ;;  %v2070_v6 = vmax.f32 %v1958_v49, 0.0  ;;  %v1545_v34 = vadd.f32 %v1544_v1, %v4212_v47  ;;  %v1853_v47 = vld [vmem:[%s4751_s7 + $0x148] sm:$0xff]  ;;  %v1850_v63 = vld [vmem:[%s4751_s7 + $0x130] sm:$0xff]  ;;  %v1859_v13 = vld [vmem:[%s4751_s7 + $0x178] sm:$0xff] }
 0x20b   :  { %2181 = vst [vmem:[#allocation2 + $0x108] sm:$0xff] %v2069_v44  ;;  %v1731_v46 = vmul.f32 0.17, %v1619_v29  ;;  %v1628_v54 = vadd.f32 %v4405_v52, %v1496_v26  ;;  %v4846_v26 = vld [vmem:[#allocation30_spill] sm:$0xff] }
 0x20c   :  { %2173 = vst [vmem:[#allocation2 + $0xc8] sm:$0xff] %v2061_v10  ;;  %v1620_v56 = vadd.f32 %v4429_v36, %v1445_v61  ;;  %v1629_v58 = vadd.f32 %v4409_v27, %v1545_v34  ;;  %v4847_v34 = vld [vmem:[#allocation28_spill] sm:$0xff] }
 0x20d   :  { %2182 = vst [vmem:[#allocation2 + $0x110] sm:$0xff] %v2070_v6  ;;  %v1955_v24 = vadd.f32 %v1843_v41, %v1731_v46  ;;  %v1740_v35 = vmul.f32 0.17, %v1628_v54 }
 0x20e   :  { %v1732_v17 = vmul.f32 0.17, %v1620_v56  ;;  %v1741_v39 = vmul.f32 0.17, %v1629_v58  ;;  %v1397_v60 = vpop.f32.mrf.mxu2 }
 0x20f   :  { %v2067_v42 = vmax.f32 %v1955_v24, 0.0  ;;  %v1964_v50 = vadd.f32 %v1852_v30, %v1740_v35  ;;  %v1398_v31 = vadd.f32 %v1397_v60, %v4843_v57  ;;  %v4848_v30 = vld [vmem:[#allocation32_spill] sm:$0xff] }
 0x210   :  { %v1956_v38 = vadd.f32 %v1844_v16, %v1732_v17  ;;  %v1965_v14 = vadd.f32 %v1853_v47, %v1741_v39  ;;  %v1498_v7 = vpop.f32.mrf.mxu0  ;;  %v1857_v47 = vld [vmem:[%s4751_s7 + $0x168] sm:$0xff] }
 0x211   :  { %v1446_v0 = vpop.f32.mrf.mxu3  ;;  %2179 = vst [vmem:[#allocation2 + $0xf8] sm:$0xff] %v2067_v42  ;;  %v2076_v40 = vmax.f32 %v1964_v50, 0.0  ;;  %v1626_v53 = vadd.f32 %v4426_v12, %v1398_v31  ;;  %v1499_v62 = vadd.f32 %v1498_v7, %v4845_v18  ;;  %v1547_v9 = vpop.f32.mrf.mxu1  ;;  %v1858_v42 = vld [vmem:[%s4751_s7 + $0x170] sm:$0xff]  ;;  %v4849_v18 = vld [vmem:[#allocation33_spill] sm:$0xff] }
 0x212   :  { %v2068_v4 = vmax.f32 %v1956_v38, 0.0  ;;  %v1447_v59 = vadd.f32 %v1446_v0, %v4844_v19  ;;  %v2077_v25 = vmax.f32 %v1965_v14, 0.0  ;;  %v1548_v5 = vadd.f32 %v1547_v9, %v4233_v48  ;;  %v1860_v48 = vld [vmem:[%s4751_s7 + $0x180] sm:$0xff]  ;;  %v1866_v31 = vld [vmem:[%s4751_s7 + $0x1b0] sm:$0xff] }
 0x213   :  { %2188 = vst [vmem:[#allocation2 + $0x140] sm:$0xff] %v2076_v40  ;;  %v1738_v45 = vmul.f32 0.17, %v1626_v53  ;;  %v1635_v11 = vadd.f32 %v4405_v52, %v1499_v62 }
 0x214   :  { %2180 = vst [vmem:[#allocation2 + $0x100] sm:$0xff] %v2068_v4  ;;  %v1627_v37 = vadd.f32 %v4429_v36, %v1447_v59  ;;  %v1636_v10 = vadd.f32 %v4409_v27, %v1548_v5 }
 0x215   :  { %2189 = vst [vmem:[#allocation2 + $0x148] sm:$0xff] %v2077_v25  ;;  %v1962_v49 = vadd.f32 %v1850_v63, %v1738_v45  ;;  %v1747_v51 = vmul.f32 0.17, %v1635_v11 }
 0x216   :  { %v1739_v43 = vmul.f32 0.17, %v1627_v37  ;;  %v1748_v32 = vmul.f32 0.17, %v1636_v10  ;;  %v1400_v44 = vpop.f32.mrf.mxu2  ;;  %v4850_v37 = vld [vmem:[#allocation31_spill] sm:$0xff] }
 0x217   :  { %v2074_v29 = vmax.f32 %v1962_v49, 0.0  ;;  %v1971_v21 = vadd.f32 %v1859_v13, %v1747_v51  ;;  %v1401_v1 = vadd.f32 %v1400_v44, %v4846_v26  ;;  %v1864_v51 = vld [vmem:[%s4751_s7 + $0x1a0] sm:$0xff]  ;;  %v1865_v44 = vld [vmem:[%s4751_s7 + $0x1a8] sm:$0xff] }
 0x218   :  { %v1963_v61 = vadd.f32 %v1851_v2, %v1739_v43  ;;  %v1972_v56 = vadd.f32 %v1860_v48, %v1748_v32  ;;  %v1500_v16 = vpop.f32.mrf.mxu0  ;;  %v4851_v43 = vld [vmem:[#allocation35_spill] sm:$0xff]  ;;  %v1873_v26 = vld [vmem:[%s4751_s7 + $0x1e8] sm:$0xff] }
 0x219   :  { %v1449_v6 = vpop.f32.mrf.mxu3  ;;  %2186 = vst [vmem:[#allocation2 + $0x130] sm:$0xff] %v2074_v29  ;;  %v2083_v54 = vmax.f32 %v1971_v21, 0.0  ;;  %v1633_v17 = vadd.f32 %v4426_v12, %v1401_v1  ;;  %v1501_v58 = vadd.f32 %v1500_v16, %v4848_v30  ;;  %v1549_v24 = vpop.f32.mrf.mxu1 }
 0x21a   :  { %v2075_v41 = vmax.f32 %v1963_v61, 0.0  ;;  %v1450_v46 = vadd.f32 %v1449_v6, %v4847_v34  ;;  %v2084_v35 = vmax.f32 %v1972_v56, 0.0  ;;  %v1550_v39 = vadd.f32 %v1549_v24, %v4250_v8  ;;  %v1867_v8 = vld [vmem:[%s4751_s7 + $0x1b8] sm:$0xff] }
 0x21b   :  { %2195 = vst [vmem:[#allocation2 + $0x178] sm:$0xff] %v2083_v54  ;;  %v1745_v60 = vmul.f32 0.17, %v1633_v17  ;;  %v1642_v50 = vadd.f32 %v4405_v52, %v1501_v58  ;;  %v4852_v17 = vld [vmem:[#allocation36_spill] sm:$0xff] }
 0x21c   :  { %2187 = vst [vmem:[#allocation2 + $0x138] sm:$0xff] %v2075_v41  ;;  %v1634_v38 = vadd.f32 %v4429_v36, %v1450_v46  ;;  %v1643_v0 = vadd.f32 %v4409_v27, %v1550_v39 }
 0x21d   :  { %2196 = vst [vmem:[#allocation2 + $0x180] sm:$0xff] %v2084_v35  ;;  %v1969_v4 = vadd.f32 %v1857_v47, %v1745_v60  ;;  %v1754_v14 = vmul.f32 0.17, %v1642_v50  ;;  %v4853_v47 = vld [vmem:[#allocation34_spill] sm:$0xff] }
 0x21e   :  { %v1746_v57 = vmul.f32 0.17, %v1634_v38  ;;  %v1755_v59 = vmul.f32 0.17, %v1643_v0  ;;  %v1402_v7 = vpop.f32.mrf.mxu2  ;;  %v4854_v50 = vld [vmem:[#allocation38_spill] sm:$0xff] }
 0x21f   :  { %v2081_v40 = vmax.f32 %v1969_v4, 0.0  ;;  %v1978_v53 = vadd.f32 %v1866_v31, %v1754_v14  ;;  %v1403_v62 = vadd.f32 %v1402_v7, %v4849_v18  ;;  %v1871_v4 = vld [vmem:[%s4751_s7 + $0x1d8] sm:$0xff] }
 0x220   :  { %v1970_v19 = vadd.f32 %v1858_v42, %v1746_v57  ;;  %v1979_v63 = vadd.f32 %v1867_v8, %v1755_v59  ;;  %v1503_v45 = vpop.f32.mrf.mxu0  ;;  %v1872_v59 = vld [vmem:[%s4751_s7 + $0x1e0] sm:$0xff] }
 0x221   :  { %v1451_v9 = vpop.f32.mrf.mxu3  ;;  %2193 = vst [vmem:[#allocation2 + $0x168] sm:$0xff] %v2081_v40  ;;  %v2090_v2 = vmax.f32 %v1978_v53, 0.0  ;;  %v1640_v11 = vadd.f32 %v4426_v12, %v1403_v62  ;;  %v1504_v13 = vadd.f32 %v1503_v45, %v4851_v43  ;;  %v1552_v10 = vpop.f32.mrf.mxu1  ;;  %v1880_v53 = vld [vmem:[%s4751_s7 + $0x220] sm:$0xff] }
 0x222   :  { %v2082_v25 = vmax.f32 %v1970_v19, 0.0  ;;  %v1452_v5 = vadd.f32 %v1451_v9, %v4850_v37  ;;  %v2091_v49 = vmax.f32 %v1979_v63, 0.0  ;;  %v1553_v61 = vadd.f32 %v1552_v10, %v4271_v28  ;;  %v1874_v28 = vld [vmem:[%s4751_s7 + $0x1f0] sm:$0xff] }
 0x223   :  { %2202 = vst [vmem:[#allocation2 + $0x1b0] sm:$0xff] %v2090_v2  ;;  %v1752_v32 = vmul.f32 0.17, %v1640_v11  ;;  %v1649_v29 = vadd.f32 %v4405_v52, %v1504_v13  ;;  %v4855_v2 = vld [vmem:[#allocation39_spill] sm:$0xff] }
 0x224   :  { %2194 = vst [vmem:[#allocation2 + $0x170] sm:$0xff] %v2082_v25  ;;  %v1641_v48 = vadd.f32 %v4429_v36, %v1452_v5  ;;  %v1650_v1 = vadd.f32 %v4409_v27, %v1553_v61 }
 0x225   :  { %2203 = vst [vmem:[#allocation2 + $0x1b8] sm:$0xff] %v2091_v49  ;;  %v1976_v6 = vadd.f32 %v1864_v51, %v1752_v32  ;;  %v1761_v41 = vmul.f32 0.17, %v1649_v29  ;;  %v4856_v49 = vld [vmem:[#allocation37_spill] sm:$0xff] }
 0x226   :  { %v1753_v21 = vmul.f32 0.17, %v1641_v48  ;;  %v1762_v34 = vmul.f32 0.17, %v1650_v1  ;;  %v1405_v46 = vpop.f32.mrf.mxu2  ;;  %v1878_v1 = vld [vmem:[%s4751_s7 + $0x210] sm:$0xff] }
 0x227   :  { %v2088_v16 = vmax.f32 %v1976_v6, 0.0  ;;  %v1985_v54 = vadd.f32 %v1873_v26, %v1761_v41  ;;  %v1406_v30 = vadd.f32 %v1405_v46, %v4852_v17 }
 0x228   :  { %v1977_v56 = vadd.f32 %v1865_v44, %v1753_v21  ;;  %v1986_v35 = vadd.f32 %v1874_v28, %v1762_v34  ;;  %v1505_v39 = vpop.f32.mrf.mxu0  ;;  %v4857_v44 = vld [vmem:[#allocation41_spill] sm:$0xff] }
 0x229   :  { %v1454_v58 = vpop.f32.mrf.mxu3  ;;  %2200 = vst [vmem:[#allocation2 + $0x1a0] sm:$0xff] %v2088_v16  ;;  %v2097_v60 = vmax.f32 %v1985_v54, 0.0  ;;  %v1647_v42 = vadd.f32 %v4426_v12, %v1406_v30  ;;  %v1506_v57 = vadd.f32 %v1505_v39, %v4854_v50  ;;  %v1554_v31 = vpop.f32.mrf.mxu1  ;;  %v1887_v16 = vld [vmem:[%s4751_s7 + $0x258] sm:$0xff]  ;;  %v4858_v39 = vld [vmem:[#allocation42_spill] sm:$0xff] }
 0x22a   :  { %v2089_v24 = vmax.f32 %v1977_v56, 0.0  ;;  %v1455_v38 = vadd.f32 %v1454_v58, %v4853_v47  ;;  %v2098_v0 = vmax.f32 %v1986_v35, 0.0  ;;  %v1555_v8 = vadd.f32 %v1554_v31, %v4288_v15  ;;  %v1881_v15 = vld [vmem:[%s4751_s7 + $0x228] sm:$0xff]  ;;  %v1879_v56 = vld [vmem:[%s4751_s7 + $0x218] sm:$0xff] }
 0x22b   :  { %2209 = vst [vmem:[#allocation2 + $0x1e8] sm:$0xff] %v2097_v60  ;;  %v1759_v19 = vmul.f32 0.17, %v1647_v42  ;;  %v1656_v7 = vadd.f32 %v4405_v52, %v1506_v57  ;;  %v4859_v31 = vld [vmem:[#allocation40_spill] sm:$0xff] }
 0x22c   :  { %2201 = vst [vmem:[#allocation2 + $0x1a8] sm:$0xff] %v2089_v24  ;;  %v1648_v14 = vadd.f32 %v4429_v36, %v1455_v38  ;;  %v1657_v18 = vadd.f32 %v4409_v27, %v1555_v8 }
 0x22d   :  { %2210 = vst [vmem:[#allocation2 + $0x1f0] sm:$0xff] %v2098_v0  ;;  %v1983_v62 = vadd.f32 %v1871_v4, %v1759_v19  ;;  %v1768_v9 = vmul.f32 0.17, %v1656_v7  ;;  %v4860_v19 = vld [vmem:[#allocation44_spill] sm:$0xff] }
 0x22e   :  { %v1760_v40 = vmul.f32 0.17, %v1648_v14  ;;  %v1769_v63 = vmul.f32 0.17, %v1657_v18  ;;  %v1407_v37 = vpop.f32.mrf.mxu2 }
 0x22f   :  { %v2095_v5 = vmax.f32 %v1983_v62, 0.0  ;;  %v1992_v45 = vadd.f32 %v1880_v53, %v1768_v9  ;;  %v1408_v11 = vadd.f32 %v1407_v37, %v4855_v2  ;;  %v1885_v53 = vld [vmem:[%s4751_s7 + $0x248] sm:$0xff]  ;;  %v1894_v37 = vld [vmem:[%s4751_s7 + $0x290] sm:$0xff] }
 0x230   :  { %v1984_v25 = vadd.f32 %v1872_v59, %v1760_v40  ;;  %v1993_v10 = vadd.f32 %v1881_v15, %v1769_v63  ;;  %v1508_v48 = vpop.f32.mrf.mxu0  ;;  %v1886_v15 = vld [vmem:[%s4751_s7 + $0x250] sm:$0xff] }
 0x231   :  { %v1456_v43 = vpop.f32.mrf.mxu3  ;;  %2207 = vst [vmem:[#allocation2 + $0x1d8] sm:$0xff] %v2095_v5  ;;  %v2104_v61 = vmax.f32 %v1992_v45, 0.0  ;;  %v1654_v32 = vadd.f32 %v4426_v12, %v1408_v11  ;;  %v1509_v29 = vadd.f32 %v1508_v48, %v4857_v44  ;;  %v1557_v21 = vpop.f32.mrf.mxu1 }
 0x232   :  { %v2096_v13 = vmax.f32 %v1984_v25, 0.0  ;;  %v1457_v51 = vadd.f32 %v1456_v43, %v4856_v49  ;;  %v2105_v26 = vmax.f32 %v1993_v10, 0.0  ;;  %v1558_v41 = vadd.f32 %v1557_v21, %v4309_v22  ;;  %v1888_v22 = vld [vmem:[%s4751_s7 + $0x260] sm:$0xff] }
 0x233   :  { %2216 = vst [vmem:[#allocation2 + $0x220] sm:$0xff] %v2104_v61  ;;  %v1766_v28 = vmul.f32 0.17, %v1654_v32  ;;  %v1663_v34 = vadd.f32 %v4405_v52, %v1509_v29  ;;  %v4862_v29 = vld [vmem:[#allocation43_spill] sm:$0xff] }
 0x234   :  { %2208 = vst [vmem:[#allocation2 + $0x1e0] sm:$0xff] %v2096_v13  ;;  %v1655_v6 = vadd.f32 %v4429_v36, %v1457_v51  ;;  %v1664_v54 = vadd.f32 %v4409_v27, %v1558_v41  ;;  %v4861_v51 = vld [vmem:[#allocation45_spill] sm:$0xff]  ;;  %v4863_v41 = vld [vmem:[#allocation47_spill] sm:$0xff] }
 0x235   :  { %2217 = vst [vmem:[#allocation2 + $0x228] sm:$0xff] %v2105_v26  ;;  %v1990_v17 = vadd.f32 %v1878_v1, %v1766_v28  ;;  %v1775_v30 = vmul.f32 0.17, %v1663_v34 }
 0x236   :  { %v1767_v46 = vmul.f32 0.17, %v1655_v6  ;;  %v1776_v24 = vmul.f32 0.17, %v1664_v54  ;;  %v1410_v35 = vpop.f32.mrf.mxu2 }
 0x237   :  { %v2102_v47 = vmax.f32 %v1990_v17, 0.0  ;;  %v1999_v38 = vadd.f32 %v1887_v16, %v1775_v30  ;;  %v1411_v60 = vadd.f32 %v1410_v35, %v4858_v39  ;;  %v1893_v30 = vld [vmem:[%s4751_s7 + $0x288] sm:$0xff] }
 0x238   :  { %v1991_v58 = vadd.f32 %v1879_v56, %v1767_v46  ;;  %v2000_v57 = vadd.f32 %v1888_v22, %v1776_v24  ;;  %v1510_v4 = vpop.f32.mrf.mxu0  ;;  %v1892_v46 = vld [vmem:[%s4751_s7 + $0x280] sm:$0xff]  ;;  %v1901_v24 = vld [vmem:[%s4751_s7 + $0x2c8] sm:$0xff] }
 0x239   :  { %v1459_v42 = vpop.f32.mrf.mxu3  ;;  %2214 = vst [vmem:[#allocation2 + $0x210] sm:$0xff] %v2102_v47  ;;  %v2111_v14 = vmax.f32 %v1999_v38, 0.0  ;;  %v1661_v8 = vadd.f32 %v4426_v12, %v1411_v60  ;;  %v1511_v59 = vadd.f32 %v1510_v4, %v4860_v19  ;;  %v1559_v7 = vpop.f32.mrf.mxu1  ;;  %v4865_v19 = vld [vmem:[#allocation46_spill] sm:$0xff] }
 0x23a   :  { %v2103_v50 = vmax.f32 %v1991_v58, 0.0  ;;  %v1460_v0 = vadd.f32 %v1459_v42, %v4859_v31  ;;  %v2112_v40 = vmax.f32 %v2000_v57, 0.0  ;;  %v1560_v62 = vadd.f32 %v1559_v7, %v4326_v55  ;;  %v1895_v55 = vld [vmem:[%s4751_s7 + $0x298] sm:$0xff] }
 0x23b   :  { %2223 = vst [vmem:[#allocation2 + $0x258] sm:$0xff] %v2111_v14  ;;  %v1773_v9 = vmul.f32 0.17, %v1661_v8  ;;  %v1670_v25 = vadd.f32 %v4405_v52, %v1511_v59  ;;  %v4864_v31 = vld [vmem:[#allocation48_spill] sm:$0xff] }
 0x23c   :  { %2215 = vst [vmem:[#allocation2 + $0x218] sm:$0xff] %v2103_v50  ;;  %v1662_v18 = vadd.f32 %v4429_v36, %v1460_v0  ;;  %v1671_v5 = vadd.f32 %v4409_v27, %v1560_v62 }
 0x23d   :  { %2224 = vst [vmem:[#allocation2 + $0x260] sm:$0xff] %v2112_v40  ;;  %v1997_v45 = vadd.f32 %v1885_v53, %v1773_v9  ;;  %v1782_v2 = vmul.f32 0.17, %v1670_v25  ;;  %v1899_v25 = vld [vmem:[%s4751_s7 + $0x2b8] sm:$0xff] }
 0x23e   :  { %v1774_v63 = vmul.f32 0.17, %v1662_v18  ;;  %v1783_v43 = vmul.f32 0.17, %v1671_v5  ;;  %v1412_v13 = vpop.f32.mrf.mxu2  ;;  %v4866_v18 = vld [vmem:[#allocation50_spill] sm:$0xff] }
 0x23f   :  { %v2109_v10 = vmax.f32 %v1997_v45, 0.0  ;;  %v2006_v49 = vadd.f32 %v1894_v37, %v1782_v2  ;;  %v1413_v48 = vadd.f32 %v1412_v13, %v4861_v51  ;;  %v1900_v45 = vld [vmem:[%s4751_s7 + $0x2c0] sm:$0xff] }
 0x240   :  { %v1998_v11 = vadd.f32 %v1886_v15, %v1774_v63  ;;  %v2007_v44 = vadd.f32 %v1895_v55, %v1783_v43  ;;  %v1513_v26 = vpop.f32.mrf.mxu0 }
 0x241   :  { %v1461_v61 = vpop.f32.mrf.mxu3  ;;  %2221 = vst [vmem:[#allocation2 + $0x248] sm:$0xff] %v2109_v10  ;;  %v2118_v1 = vmax.f32 %v2006_v49, 0.0  ;;  %v1668_v6 = vadd.f32 %v4426_v12, %v1413_v48  ;;  %v1514_v28 = vadd.f32 %v1513_v26, %v4863_v41  ;;  %v1562_v56 = vpop.f32.mrf.mxu1 }
 0x242   :  { %v2110_v32 = vmax.f32 %v1998_v11, 0.0  ;;  %v1462_v21 = vadd.f32 %v1461_v61, %v4862_v29  ;;  %v2119_v34 = vmax.f32 %v2007_v44, 0.0  ;;  %v1563_v54 = vadd.f32 %v1562_v56, %v4347_v20  ;;  %v1902_v20 = vld [vmem:[%s4751_s7 + $0x2d0] sm:$0xff]  ;;  %v1908_v11 = vld [vmem:[%s4751_s7 + $0x300] sm:$0xff]  ;;  %v4867_v44 = vld [vmem:[#allocation52_spill] sm:$0xff] }
 0x243   :  { %2230 = vst [vmem:[#allocation2 + $0x290] sm:$0xff] %v2118_v1  ;;  %v1780_v17 = vmul.f32 0.17, %v1668_v6  ;;  %v1677_v22 = vadd.f32 %v4405_v52, %v1514_v28  ;;  %v4868_v6 = vld [vmem:[#allocation49_spill] sm:$0xff] }
 0x244   :  { %2222 = vst [vmem:[#allocation2 + $0x250] sm:$0xff] %v2110_v32  ;;  %v1669_v16 = vadd.f32 %v4429_v36, %v1462_v21  ;;  %v1678_v35 = vadd.f32 %v4409_v27, %v1563_v54 }
 0x245   :  { %2231 = vst [vmem:[#allocation2 + $0x298] sm:$0xff] %v2119_v34  ;;  %v2004_v47 = vadd.f32 %v1892_v46, %v1780_v17  ;;  %v1789_v38 = vmul.f32 0.17, %v1677_v22  ;;  %v4869_v46 = vld [vmem:[#allocation55_spill] sm:$0xff] }
 0x246   :  { %v1781_v58 = vmul.f32 0.17, %v1669_v16  ;;  %v1790_v60 = vmul.f32 0.17, %v1678_v35  ;;  %v1415_v42 = vpop.f32.mrf.mxu2  ;;  %v1907_v35 = vld [vmem:[%s4751_s7 + $0x2f8] sm:$0xff] }
 0x247   :  { %v2116_v50 = vmax.f32 %v2004_v47, 0.0  ;;  %v2013_v57 = vadd.f32 %v1901_v24, %v1789_v38  ;;  %v1416_v0 = vadd.f32 %v1415_v42, %v4864_v31 }
 0x248   :  { %v2005_v39 = vadd.f32 %v1893_v30, %v1781_v58  ;;  %v2014_v8 = vadd.f32 %v1902_v20, %v1790_v60  ;;  %v1515_v7 = vpop.f32.mrf.mxu0  ;;  %v1906_v30 = vld [vmem:[%s4751_s7 + $0x2f0] sm:$0xff]  ;;  %v1915_v20 = vld [vmem:[%s4751_s7 + $0x338] sm:$0xff] }
 0x249   :  { %v1464_v4 = vpop.f32.mrf.mxu3  ;;  %2228 = vst [vmem:[#allocation2 + $0x280] sm:$0xff] %v2116_v50  ;;  %v2125_v40 = vmax.f32 %v2013_v57, 0.0  ;;  %v1675_v53 = vadd.f32 %v4426_v12, %v1416_v0  ;;  %v1516_v62 = vadd.f32 %v1515_v7, %v4866_v18  ;;  %v1564_v9 = vpop.f32.mrf.mxu1 }
 0x24a   :  { %v2117_v14 = vmax.f32 %v2005_v39, 0.0  ;;  %v1465_v59 = vadd.f32 %v1464_v4, %v4865_v19  ;;  %v2126_v15 = vmax.f32 %v2014_v8, 0.0  ;;  %v1565_v37 = vadd.f32 %v1564_v9, %v4364_v33  ;;  %v1909_v33 = vld [vmem:[%s4751_s7 + $0x308] sm:$0xff] }
 0x24b   :  { %2237 = vst [vmem:[#allocation2 + $0x2c8] sm:$0xff] %v2125_v40  ;;  %v1787_v5 = vmul.f32 0.17, %v1675_v53  ;;  %v1684_v2 = vadd.f32 %v4405_v52, %v1516_v62  ;;  %v4871_v40 = vld [vmem:[#allocation54_spill] sm:$0xff] }
 0x24c   :  { %2229 = vst [vmem:[#allocation2 + $0x288] sm:$0xff] %v2117_v14  ;;  %v1676_v63 = vadd.f32 %v4429_v36, %v1465_v59  ;;  %v1685_v43 = vadd.f32 %v4409_v27, %v1565_v37  ;;  %v4870_v14 = vld [vmem:[#allocation57_spill] sm:$0xff] }
 0x24d   :  { %2238 = vst [vmem:[#allocation2 + $0x2d0] sm:$0xff] %v2126_v15  ;;  %v2011_v13 = vadd.f32 %v1899_v25, %v1787_v5  ;;  %v1796_v10 = vmul.f32 0.17, %v1684_v2  ;;  %v4872_v15 = vld [vmem:[#allocation59_spill] sm:$0xff]  ;;  %v1913_v5 = vld [vmem:[%s4751_s7 + $0x328] sm:$0xff] }
 0x24e   :  { %v1788_v55 = vmul.f32 0.17, %v1676_v63  ;;  %v1797_v51 = vmul.f32 0.17, %v1685_v43  ;;  %v1417_v48 = vpop.f32.mrf.mxu2 }
 0x24f   :  { %v2123_v61 = vmax.f32 %v2011_v13, 0.0  ;;  %v2020_v32 = vadd.f32 %v1908_v11, %v1796_v10  ;;  %v1418_v29 = vadd.f32 %v1417_v48, %v4867_v44  ;;  %v1914_v11 = vld [vmem:[%s4751_s7 + $0x330] sm:$0xff] }
 0x250   :  { %v2012_v49 = vadd.f32 %v1900_v45, %v1788_v55  ;;  %v2021_v1 = vadd.f32 %v1909_v33, %v1797_v51  ;;  %v1518_v28 = vpop.f32.mrf.mxu0  ;;  %v1922_v10 = vld [vmem:[%s4751_s7 + $0x370] sm:$0xff] }
 0x251   :  { %v1466_v21 = vpop.f32.mrf.mxu3  ;;  %2235 = vst [vmem:[#allocation2 + $0x2b8] sm:$0xff] %v2123_v61  ;;  %v2132_v56 = vmax.f32 %v2020_v32, 0.0  ;;  %v1682_v34 = vadd.f32 %v4426_v12, %v1418_v29  ;;  %v1519_v16 = vadd.f32 %v1518_v28, %v4869_v46  ;;  %v1567_v54 = vpop.f32.mrf.mxu1  ;;  %v1920_v46 = vld [vmem:[%s4751_s7 + $0x360] sm:$0xff] }
 0x252   :  { %v2124_v26 = vmax.f32 %v2012_v49, 0.0  ;;  %v1467_v41 = vadd.f32 %v1466_v21, %v4868_v6  ;;  %v2133_v17 = vmax.f32 %v2021_v1, 0.0  ;;  %v1568_v58 = vadd.f32 %v1567_v54, %v4385_v23  ;;  %v1916_v23 = vld [vmem:[%s4751_s7 + $0x340] sm:$0xff] }
 0x253   :  { %2244 = vst [vmem:[#allocation2 + $0x300] sm:$0xff] %v2132_v56  ;;  %v1794_v24 = vmul.f32 0.17, %v1682_v34  ;;  %v1691_v47 = vadd.f32 %v4405_v52, %v1519_v16 }
 0x254   :  { %2236 = vst [vmem:[#allocation2 + $0x2c0] sm:$0xff] %v2124_v26  ;;  %v1683_v22 = vadd.f32 %v4429_v36, %v1467_v41  ;;  %v1692_v39 = vadd.f32 %v4409_v27, %v1568_v58  ;;  %v4874_v41 = vld [vmem:[#allocation58_spill] sm:$0xff] }
 0x255   :  { %2245 = vst [vmem:[#allocation2 + $0x308] sm:$0xff] %v2133_v17  ;;  %v2018_v60 = vadd.f32 %v1906_v30, %v1794_v24  ;;  %v1803_v42 = vmul.f32 0.17, %v1691_v47  ;;  %v1921_v17 = vld [vmem:[%s4751_s7 + $0x368] sm:$0xff] }
 0x256   :  { %v1795_v38 = vmul.f32 0.17, %v1683_v22  ;;  %v1804_v57 = vmul.f32 0.17, %v1692_v39  ;;  %v1420_v31 = vpop.f32.mrf.mxu2 }
 0x257   :  { %v2130_v0 = vmax.f32 %v2018_v60, 0.0  ;;  %v2027_v4 = vadd.f32 %v1915_v20, %v1803_v42  ;;  %v1421_v8 = vadd.f32 %v1420_v31, %v4870_v14 }
 0x258   :  { %v2019_v50 = vadd.f32 %v1907_v35, %v1795_v38  ;;  %v2028_v7 = vadd.f32 %v1916_v23, %v1804_v57  ;;  %v1520_v18 = vpop.f32.mrf.mxu0 }
 0x259   :  { %v1469_v19 = vpop.f32.mrf.mxu3  ;;  %2242 = vst [vmem:[#allocation2 + $0x2f0] sm:$0xff] %v2130_v0  ;;  %v2139_v62 = vmax.f32 %v2027_v4, 0.0  ;;  %v1689_v9 = vadd.f32 %v4426_v12, %v1421_v8  ;;  %v1521_v25 = vadd.f32 %v1520_v18, %v4872_v15  ;;  %v1569_v63 = vpop.f32.mrf.mxu1 }
 0x25a   :  { %v2131_v59 = vmax.f32 %v2019_v50, 0.0  ;;  %v1470_v53 = vadd.f32 %v1469_v19, %v4871_v40  ;;  %v2140_v37 = vmax.f32 %v2028_v7, 0.0  ;;  %v1570_v2 = vadd.f32 %v1569_v63, %v4402_v3  ;;  %v1923_v3 = vld [vmem:[%s4751_s7 + $0x378] sm:$0xff] }
 0x25b   :  { %2251 = vst [vmem:[#allocation2 + $0x338] sm:$0xff] %v2139_v62  ;;  %v1801_v55 = vmul.f32 0.17, %v1689_v9  ;;  %v1698_v43 = vadd.f32 %v4405_v52, %v1521_v25  ;;  %v4873_v52 = vld [vmem:[#allocation62_spill] sm:$0xff] }
 0x25c   :  { %2243 = vst [vmem:[#allocation2 + $0x2f8] sm:$0xff] %v2131_v59  ;;  %v1690_v45 = vadd.f32 %v4429_v36, %v1470_v53  ;;  %v1699_v33 = vadd.f32 %v4409_v27, %v1570_v2 }
 0x25d   :  { %2252 = vst [vmem:[#allocation2 + $0x340] sm:$0xff] %v2140_v37  ;;  %v2025_v49 = vadd.f32 %v1913_v5, %v1801_v55  ;;  %v1810_v51 = vmul.f32 0.17, %v1698_v43 }
 0x25e   :  { %v1802_v13 = vmul.f32 0.17, %v1690_v45  ;;  %v1811_v61 = vmul.f32 0.17, %v1699_v33  ;;  %v1422_v32 = vpop.f32.mrf.mxu2 }
 0x25f   :  { %v2137_v44 = vmax.f32 %v2025_v49, 0.0  ;;  %v2034_v29 = vadd.f32 %v1922_v10, %v1810_v51  ;;  %v1423_v21 = vadd.f32 %v1422_v32, %v4873_v52 }
 0x260   :  { %v2026_v48 = vadd.f32 %v1914_v11, %v1802_v13  ;;  %v2035_v6 = vadd.f32 %v1923_v3, %v1811_v61 }
 0x261   :  { %v1471_v26 = vpop.f32.mrf.mxu3  ;;  %2249 = vst [vmem:[#allocation2 + $0x328] sm:$0xff] %v2137_v44  ;;  %v2146_v27 = vmax.f32 %v2034_v29, 0.0  ;;  %v1696_v56 = vadd.f32 %v4426_v12, %v1423_v21 }
 0x262   :  { %v2138_v1 = vmax.f32 %v2026_v48, 0.0  ;;  %v1472_v28 = vadd.f32 %v1471_v26, %v4874_v41  ;;  %v2147_v34 = vmax.f32 %v2035_v6, 0.0 }
 0x263   :  { %2258 = vst [vmem:[#allocation2 + $0x370] sm:$0xff] %v2146_v27  ;;  %v1808_v54 = vmul.f32 0.17, %v1696_v56 }
 0x264   :  { %2250 = vst [vmem:[#allocation2 + $0x330] sm:$0xff] %v2138_v1  ;;  %v1697_v16 = vadd.f32 %v4429_v36, %v1472_v28 }
 0x265   :  { %2259 = vst [vmem:[#allocation2 + $0x378] sm:$0xff] %v2147_v34  ;;  %v2032_v12 = vadd.f32 %v1920_v46, %v1808_v54 }
 0x266   :  { %v1809_v30 = vmul.f32 0.17, %v1697_v16 }
 0x267   :  { %v2144_v58 = vmax.f32 %v2032_v12, 0.0 }
 0x268   :  { %v2033_v22 = vadd.f32 %v1921_v17, %v1809_v30 }
 0x269   :  { %2256 = vst [vmem:[#allocation2 + $0x360] sm:$0xff] %v2144_v58 }
 0x26a   :  { %v2145_v36 = vmax.f32 %v2033_v22, 0.0 }
 0x26c   :  { %2257 = vst [vmem:[#allocation2 + $0x368] sm:$0xff] %v2145_v36 }
 0x26d   :  { %2272 = dma.vmem_to_hbm [thread:$0]  %s2265_s15, 14336, %s2267_s17, [#allocation3], %s2888_s18, %s2888_s18, %s2889_s0  }
 0x26e   :  { %2885 = dma.done.wait [#allocation3], 14336  }
 0x26f   :  { %2886 = vsyncadd [#allocation3], 4294952960 }
 0x270   :  { %2277 = vsyncpa [#allocation3], 1 }

</bundles_post_ra>
